<compile_context>
chip_gen: v7x
topology: tpu7x:2x2x1
jax: 0.10.0
libtpu: 0.0.40
codegen_flags: <defaults>
</compile_context>

<pallas_src>
import functools
from types import SimpleNamespace

import jax
import jax.numpy as jnp
from jax import lax
from jax.experimental import pallas as pl
from jax.experimental.pallas import tpu as pltpu

BN_EPS = 1e-5
_VMEM = functools.partial(pl.BlockSpec, memory_space=pltpu.MemorySpace.VMEM)


# ----------------------------------------------------------------------------
# Fused GEMM + bias + BatchNorm(batch stats) + activation (+residual / +add) kernel
# ----------------------------------------------------------------------------
def fused_gemm(a, w, bias, gamma=None, beta=None, extra_add=None, sub_from=None,
               act="none", eps=BN_EPS):
    """out = act( BN( a @ w + bias ) ) [+ extra_add]; optionally also emits
    (sub_from - out) as a second output (used to fuse r = target - g_pred).
    All operands are whole-array VMEM blocks (tiny shapes): no channel padding,
    no per-call padded HBM copies, one launch per layer."""
    a = a.astype(jnp.float32)
    w = w.astype(jnp.float32)
    M, K = a.shape
    Kw, N = w.shape
    assert K == Kw, (a.shape, w.shape)
    has_bn = gamma is not None
    has_add = extra_add is not None
    has_sub = sub_from is not None

    inputs = [a, w, bias.reshape(1, N).astype(jnp.float32)]
    if has_bn:
        inputs += [gamma.reshape(1, N).astype(jnp.float32),
                   beta.reshape(1, N).astype(jnp.float32)]
    if has_add:
        inputs.append(extra_add.astype(jnp.float32))
    if has_sub:
        inputs.append(sub_from.astype(jnp.float32))
    n_in = len(inputs)

    def kernel(*refs):
        in_refs, out_refs = refs[:n_in], refs[n_in:]
        a_ref, w_ref, b_ref = in_refs[0], in_refs[1], in_refs[2]
        idx = 3
        y = jnp.dot(a_ref[...], w_ref[...], preferred_element_type=jnp.float32)
        y = y + b_ref[...]
        if has_bn:
            g_ref, be_ref = in_refs[idx], in_refs[idx + 1]
            idx += 2
            mean = jnp.mean(y, axis=0, keepdims=True)
            var = jnp.mean((y - mean) ** 2, axis=0, keepdims=True)   # biased, PyTorch train fwd
            scale = g_ref[...] * lax.rsqrt(var + eps)
            y = y * scale + (be_ref[...] - mean * scale)
        if act == "relu":
            y = jnp.maximum(y, 0.0)
        elif act == "tanh":
            y = jnp.tanh(y)
        if has_add:
            y = y + in_refs[idx][...]
            idx += 1
        out_refs[0][...] = y.astype(out_refs[0].dtype)
        if has_sub:
            out_refs[1][...] = (in_refs[idx][...] - y).astype(out_refs[1].dtype)

    out_sd = jax.ShapeDtypeStruct((M, N), jnp.float32)
    if has_sub:
        out_shape = (out_sd, jax.ShapeDtypeStruct((M, N), jnp.float32))
        out_specs = (_VMEM(), _VMEM())
    else:
        out_shape = out_sd
        out_specs = _VMEM()
    return pl.pallas_call(
        kernel,
        out_shape=out_shape,
        in_specs=[_VMEM() for _ in range(n_in)],
        out_specs=out_specs,
    )(*inputs)


def phi_head(feat, fc_params, lat_params, eps=BN_EPS):
    """phi_network_fc (Linear+BN+ReLU, Linear+BN+ReLU, Linear+Tanh) and encoder_latent
    chained inside ONE VMEM-resident pallas_call (4 GEMMs, one launch)."""
    (w1, b1, g1, be1), (w2, b2, g2, be2), (w3, b3) = fc_params
    wz, bz = lat_params
    B = feat.shape[0]
    n_latent = w3.shape[1]
    nfeature = wz.shape[1]

    def kernel(x_ref, w1_ref, b1_ref, g1_ref, be1_ref,
               w2_ref, b2_ref, g2_ref, be2_ref,
               w3_ref, b3_ref, wz_ref, bz_ref,
               z_ref, zemb_ref):
        def bn_relu(y, g, be):
            mean = jnp.mean(y, axis=0, keepdims=True)
            var = jnp.mean((y - mean) ** 2, axis=0, keepdims=True)
            scale = g * lax.rsqrt(var + eps)
            return jnp.maximum(y * scale + (be - mean * scale), 0.0)

        h = jnp.dot(x_ref[...], w1_ref[...], preferred_element_type=jnp.float32) + b1_ref[...]
        h = bn_relu(h, g1_ref[...], be1_ref[...])
        h = jnp.dot(h, w2_ref[...], preferred_element_type=jnp.float32) + b2_ref[...]
        h = bn_relu(h, g2_ref[...], be2_ref[...])
        z = jnp.tanh(jnp.dot(h, w3_ref[...], preferred_element_type=jnp.float32) + b3_ref[...])
        z_ref[...] = z.astype(z_ref.dtype)
        zemb_ref[...] = (jnp.dot(z, wz_ref[...], preferred_element_type=jnp.float32)
                         + bz_ref[...]).astype(zemb_ref.dtype)

    inputs = [feat.astype(jnp.float32),
              w1, b1.reshape(1, -1), g1.reshape(1, -1), be1.reshape(1, -1),
              w2, b2.reshape(1, -1), g2.reshape(1, -1), be2.reshape(1, -1),
              w3, b3.reshape(1, -1), wz, bz.reshape(1, -1)]
    z, z_emb = pl.pallas_call(
        kernel,
        out_shape=(jax.ShapeDtypeStruct((B, n_latent), jnp.float32),
                   jax.ShapeDtypeStruct((B, nfeature), jnp.float32)),
        in_specs=[_VMEM() for _ in inputs],
        out_specs=(_VMEM(), _VMEM()),
    )(*inputs)
    return z, z_emb


# ----------------------------------------------------------------------------
# Conv / ConvTranspose built on the fused kernel (im2col stays in XLA glue)
# ----------------------------------------------------------------------------
def im2col(x_nhwc, k, stride, pad):
    # TODO(synk): stride-2 windows are not expressible with a BlockSpec index_map; patch
    #             extraction stays in XLA glue (tiny at these shapes).
    xp = jnp.pad(x_nhwc, ((0, 0), (pad, pad), (pad, pad), (0, 0)))
    N, Hp, Wp, C = xp.shape
    Ho = (Hp - k) // stride + 1
    Wo = (Wp - k) // stride + 1
    cols = []
    for i in range(k):
        for j in range(k):
            cols.append(xp[:, i:i + stride * (Ho - 1) + 1:stride,
                           j:j + stride * (Wo - 1) + 1:stride, :])
    patches = jnp.concatenate(cols, axis=-1).reshape(N * Ho * Wo, k * k * C)
    return patches, (N, Ho, Wo)


def conv_block(x_nhwc, wm, b, k, s, p, gamma=None, beta=None,
               act="relu", extra_add=None, sub_from=None):
    A, (N, Ho, Wo) = im2col(x_nhwc, k, s, p)
    out = fused_gemm(A, wm, b, gamma=gamma, beta=beta,
                     extra_add=extra_add, sub_from=sub_from, act=act)
    Cout = wm.shape[1]
    if sub_from is not None:
        y, r = out
        return y.reshape(N, Ho, Wo, Cout), r.reshape(N, Ho, Wo, Cout)
    return out.reshape(N, Ho, Wo, Cout)


def convT_block(x_nhwc, wm, b, k, s, p, gamma=None, beta=None,
                act="relu", extra_add=None, sub_from=None):
    """ConvTranspose2d(k, s, p) == zero-dilate by s, then conv (stride 1, pad k-1-p) with the
    flipped kernel; the flip/transpose is pre-baked into wm at prepare_params time."""
    N, H, W, C = x_nhwc.shape
    xd = jnp.zeros((N, (H - 1) * s + 1, (W - 1) * s + 1, C), x_nhwc.dtype)
    xd = xd.at[:, ::s, ::s, :].set(x_nhwc)
    return conv_block(xd, wm, b, k, 1, k - 1 - p, gamma=gamma, beta=beta,
                      act=act, extra_add=extra_add, sub_from=sub_from)


# ----------------------------------------------------------------------------
# Parameters: synthetic PyTorch-layout init + one-time GEMM-layout conversion
# ----------------------------------------------------------------------------
def make_arch(opt):
    k_dec = 3 if opt.task in ("breakout", "seaquest") else 4
    return {"enc": [(7, 2, 3), (5, 2, 2), (5, 2, 2)],
            "dec": [(k_dec, 2, 1), (4, 2, 1), (4, 2, 1)],
            "phi": [(7, 2, 3), (5, 2, 2), (5, 2, 2), (5, 2, 2)],
            "k_dec": k_dec}


def init_params(key, opt, k_dec):
    keys = iter(jax.random.split(key, 64))

    def conv_p(cin, cout, k):
        return (jax.random.normal(next(keys), (cout, cin, k, k), jnp.float32) * 0.05,
                jax.random.normal(next(keys), (cout,), jnp.float32) * 0.05)

    def convT_p(cin, cout, k):
        return (jax.random.normal(next(keys), (cin, cout, k, k), jnp.float32) * 0.05,
                jax.random.normal(next(keys), (cout,), jnp.float32) * 0.05)

    def bn_p(c):
        return (jnp.ones((c,), jnp.float32), jnp.zeros((c,), jnp.float32))

    def lin_p(fin, fout):
        return (jax.random.normal(next(keys), (fout, fin), jnp.float32) * 0.05,
                jax.random.normal(next(keys), (fout,), jnp.float32) * 0.05)

    nf, n_in, n_out, nl = opt.nfeature, opt.n_in, opt.n_out, opt.n_latent

    def enc(cin):
        return [conv_p(cin, nf, 7) + bn_p(nf),
                conv_p(nf, nf, 5) + bn_p(nf),
                conv_p(nf, nf, 5) + bn_p(nf)]

    def dec():
        return [convT_p(nf, nf, k_dec) + bn_p(nf),
                convT_p(nf, nf, 4) + bn_p(nf),
                convT_p(nf, n_out, 4)]

    return {
        "g_enc": enc(n_in),
        "g_dec": dec(),
        "phi_conv": [conv_p(n_out, nf, 7) + bn_p(nf),
                     conv_p(nf, nf, 5) + bn_p(nf),
                     conv_p(nf, nf, 5) + bn_p(nf),
                     conv_p(nf, nf, 5) + bn_p(nf)],
        "phi_fc": [lin_p(nf * opt.phi_fc_size, 1000) + bn_p(1000),
                   lin_p(1000, 1000) + bn_p(1000),
                   lin_p(1000, nl)],
        "f_enc": enc(n_in),
        "enc_lat": lin_p(nl, nf),
        "f_dec": dec(),
    }


def prepare_params(raw):
    """Hoisted out of forward(): convert PyTorch weight layouts to GEMM-ready matrices once
    (Conv2d [Cout,Cin,k,k] -> [k*k*Cin,Cout]; ConvTranspose2d flip+swap; Linear [out,in]->[in,out])."""
    def conv_w(w):
        return jnp.transpose(w, (2, 3, 1, 0)).reshape(-1, w.shape[0])

    def convT_w(w):
        w_conv = jnp.transpose(jnp.flip(w, axis=(2, 3)), (1, 0, 2, 3))   # [Cout,Cin,k,k]
        return conv_w(w_conv)

    def conv_layers(layers, transposed=False):
        f = convT_w if transposed else conv_w
        out = []
        for l in layers:
            if len(l) == 4:
                w, b, g, be = l
                out.append((f(w), b, g, be))
            else:
                w, b = l
                out.append((f(w), b))
        return out

    (w1, b1, g1, be1), (w2, b2, g2, be2), (w3, b3) = raw["phi_fc"]
    wz, bz = raw["enc_lat"]
    return {
        "g_enc": conv_layers(raw["g_enc"]),
        "g_dec": conv_layers(raw["g_dec"], transposed=True),
        "phi_conv": conv_layers(raw["phi_conv"]),
        "phi_fc": [(w1.T, b1, g1, be1), (w2.T, b2, g2, be2), (w3.T, b3)],
        "enc_lat": (wz.T, bz),
        "f_enc": conv_layers(raw["f_enc"]),
        "f_dec": conv_layers(raw["f_dec"], transposed=True),
    }


# ----------------------------------------------------------------------------
# Forward pass (matches LatentResidualModel3Layer.forward, training-mode BN)
# ----------------------------------------------------------------------------
def forward(params, input_nchw, target_nchw, opt, arch):
    x = jnp.transpose(input_nchw.astype(jnp.float32), (0, 2, 3, 1))   # NCHW -> NHWC
    t = jnp.transpose(target_nchw.astype(jnp.float32), (0, 2, 3, 1))

    def run_enc(h, layers):
        for (wm, b, g, be), (k, s, p) in zip(layers, arch["enc"]):
            h = conv_block(h, wm, b, k, s, p, gamma=g, beta=be, act="relu")
        return h

    def run_dec_head(h, layers):
        for (wm, b, g, be), (k, s, p) in zip(layers[:2], arch["dec"][:2]):
            h = convT_block(h, wm, b, k, s, p, gamma=g, beta=be, act="relu")
        return h

    # ----- g network; the final deconv kernel also emits r = target - g_pred
    # (r uses Variable(g_pred.data) in PyTorch; forward values are identical).
    h = run_enc(x, params["g_enc"])
    h = run_dec_head(h, params["g_dec"])
    wm_g, b_g = params["g_dec"][2]
    k, s, p = arch["dec"][2]
    t_flat = t.reshape(-1, t.shape[-1])
    g_pred, r = convT_block(h, wm_g, b_g, k, s, p, act="none", sub_from=t_flat)

    # ----- phi network on the residual
    ph = r
    for (wm, b, g, be), (k, s, p) in zip(params["phi_conv"], arch["phi"]):
        ph = conv_block(ph, wm, b, k, s, p, gamma=g, beta=be, act="relu")
    feat = jnp.transpose(ph, (0, 3, 1, 2)).reshape(opt.batch_size, -1)  # torch .view (C,H,W) order
    z, z_emb = phi_head(feat, params["phi_fc"], params["enc_lat"])

    # ----- f network; z_emb broadcast-add fused into the last f_enc kernel's epilogue
    h = x
    for idx, ((wm, b, g, be), (k, s, p)) in enumerate(zip(params["f_enc"], arch["enc"])):
        if idx < 2:
            h = conv_block(h, wm, b, k, s, p, gamma=g, beta=be, act="relu")
        else:
            B, H2, W2, _ = h.shape
            Ho = (H2 + 2 * p - k) // s + 1
            Wo = (W2 + 2 * p - k) // s + 1
            nf = z_emb.shape[-1]
            add = jnp.broadcast_to(z_emb[:, None, :], (B, Ho * Wo, nf)).reshape(B * Ho * Wo, nf)
            h = conv_block(h, wm, b, k, s, p, gamma=g, beta=be, act="relu", extra_add=add)

    h = run_dec_head(h, params["f_dec"])
    wm_f, b_f = params["f_dec"][2]
    k, s, p = arch["dec"][2]
    pred_f = convT_block(h, wm_f, b_f, k, s, p, act="none")

    return (jnp.transpose(pred_f, (0, 3, 1, 2)),                      # NHWC -> NCHW
            jnp.transpose(g_pred, (0, 3, 1, 2)),
            z)


# ----------------------------------------------------------------------------
# Main
# ----------------------------------------------------------------------------
if __name__ == "__main__":
    opt = SimpleNamespace(
        batch_size=2, ncond=2, npred=2, nc=2,
        height=16, width=16,
        nfeature=8, n_latent=4,
        task="other",
        phi_fc_size=1,           # 16 -> 8 -> 4 -> 2 -> 1 after 4 stride-2 convs
    )
    opt.n_in = opt.ncond * opt.nc      # 4
    opt.n_out = opt.npred * opt.nc     # 4

    arch = make_arch(opt)
    key = jax.random.PRNGKey(0)
    kp, ki, kt = jax.random.split(key, 3)
    raw_params = init_params(kp, opt, arch["k_dec"])
    params = prepare_params(raw_params)    # weight layout transforms hoisted out of forward

    x = jax.random.normal(ki, (opt.batch_size, opt.n_in, opt.height, opt.width), jnp.float32)
    target = jax.random.normal(kt, (opt.batch_size, opt.n_out, opt.height, opt.width), jnp.float32)

    fwd = jax.jit(functools.partial(forward, opt=opt, arch=arch))
    pred_f, g_pred, z = fwd(params, x, target)
    jax.block_until_ready((pred_f, g_pred, z))

    assert pred_f.shape == (opt.batch_size, opt.n_out, opt.height, opt.width)
    assert g_pred.shape == (opt.batch_size, opt.n_out, opt.height, opt.width)
    assert z.shape == (opt.batch_size, opt.n_latent)
    print("KERNEL_OK")
</pallas_src>

<mosaic_0001>
module attributes {stable_mosaic.version = 11 : i64} {
  func.func @kernel(%arg0: memref<128x196xf32, #tpu.memory_space<vmem>>, %arg1: memref<196x8xf32, #tpu.memory_space<vmem>>, %arg2: memref<1x8xf32, #tpu.memory_space<vmem>>, %arg3: memref<1x8xf32, #tpu.memory_space<vmem>>, %arg4: memref<1x8xf32, #tpu.memory_space<vmem>>, %arg5: memref<128x8xf32, #tpu.memory_space<vmem>>) attributes {dimension_semantics = [], scalar_prefetch = 0 : i64, scratch_operands = 0 : i64, tpu.core_type = #tpu.core_type<tc>} {
    %c0 = arith.constant 0 : index
    %c0_0 = arith.constant 0 : index
    %0 = vector.load %arg0[%c0, %c0_0] : memref<128x196xf32, #tpu.memory_space<vmem>>, vector<128x196xf32>
    %c0_1 = arith.constant 0 : index
    %c0_2 = arith.constant 0 : index
    %1 = vector.load %arg1[%c0_1, %c0_2] : memref<196x8xf32, #tpu.memory_space<vmem>>, vector<196x8xf32>
    %cst = arith.constant dense<0.000000e+00> : vector<128x8xf32>
    %2 = tpu.matmul %0, %1, %cst {dimension_numbers = #tpu.dot_dimension_numbers<[1], [0], [0], [1], [0, 0, 1, 1], [], []>} : vector<128x196xf32>, vector<196x8xf32>, vector<128x8xf32> -> vector<128x8xf32>
    %c0_3 = arith.constant 0 : index
    %c0_4 = arith.constant 0 : index
    %3 = vector.load %arg2[%c0_3, %c0_4] : memref<1x8xf32, #tpu.memory_space<vmem>>, vector<1x8xf32>
    %4 = vector.broadcast %3 : vector<1x8xf32> to vector<128x8xf32>
    %5 = arith.addf %2, %4 : vector<128x8xf32>
    %cst_5 = arith.constant dense<0.000000e+00> : vector<8xf32>
    %6 = vector.multi_reduction <add>, %5, %cst_5 [0] : vector<128x8xf32> to vector<8xf32>
    %7 = vector.shape_cast %6 : vector<8xf32> to vector<1x8xf32>
    %cst_6 = arith.constant 1.280000e+02 : f32
    %8 = vector.broadcast %cst_6 : f32 to vector<1x8xf32>
    %9 = arith.divf %7, %8 : vector<1x8xf32>
    %10 = vector.broadcast %9 : vector<1x8xf32> to vector<128x8xf32>
    %11 = arith.subf %5, %10 : vector<128x8xf32>
    %12 = arith.mulf %11, %11 : vector<128x8xf32>
    %cst_7 = arith.constant dense<0.000000e+00> : vector<8xf32>
    %13 = vector.multi_reduction <add>, %12, %cst_7 [0] : vector<128x8xf32> to vector<8xf32>
    %14 = vector.shape_cast %13 : vector<8xf32> to vector<1x8xf32>
    %cst_8 = arith.constant 1.280000e+02 : f32
    %15 = vector.broadcast %cst_8 : f32 to vector<1x8xf32>
    %16 = arith.divf %14, %15 : vector<1x8xf32>
    %c0_9 = arith.constant 0 : index
    %c0_10 = arith.constant 0 : index
    %17 = vector.load %arg3[%c0_9, %c0_10] : memref<1x8xf32, #tpu.memory_space<vmem>>, vector<1x8xf32>
    %cst_11 = arith.constant 9.99999974E-6 : f32
    %18 = vector.broadcast %cst_11 : f32 to vector<1x8xf32>
    %19 = arith.addf %16, %18 : vector<1x8xf32>
    %20 = math.rsqrt %19 : vector<1x8xf32>
    %21 = arith.mulf %17, %20 : vector<1x8xf32>
    %22 = vector.broadcast %21 : vector<1x8xf32> to vector<128x8xf32>
    %23 = arith.mulf %5, %22 : vector<128x8xf32>
    %c0_12 = arith.constant 0 : index
    %c0_13 = arith.constant 0 : index
    %24 = vector.load %arg4[%c0_12, %c0_13] : memref<1x8xf32, #tpu.memory_space<vmem>>, vector<1x8xf32>
    %25 = arith.mulf %9, %21 : vector<1x8xf32>
    %26 = arith.subf %24, %25 : vector<1x8xf32>
    %27 = vector.broadcast %26 : vector<1x8xf32> to vector<128x8xf32>
    %28 = arith.addf %23, %27 : vector<128x8xf32>
    %cst_14 = arith.constant 0.000000e+00 : f32
    %29 = vector.broadcast %cst_14 : f32 to vector<128x8xf32>
    %30 = arith.maximumf %28, %29 : vector<128x8xf32>
    %c0_15 = arith.constant 0 : index
    %c0_16 = arith.constant 0 : index
    %31 = vector.load %arg5[%c0_15, %c0_16] : memref<128x8xf32, #tpu.memory_space<vmem>>, vector<128x8xf32>
    tpu.vector_store %arg5[%c0_15, %c0_16], %30 {strides = array<i32>} : memref<128x8xf32, #tpu.memory_space<vmem>>, vector<128x8xf32>,
    return
  }
}

module attributes {stable_mosaic.version = 11 : i64} {
  func.func @kernel(%arg0: memref<32x200xf32, #tpu.memory_space<vmem>>, %arg1: memref<200x8xf32, #tpu.memory_space<vmem>>, %arg2: memref<1x8xf32, #tpu.memory_space<vmem>>, %arg3: memref<1x8xf32, #tpu.memory_space<vmem>>, %arg4: memref<1x8xf32, #tpu.memory_space<vmem>>, %arg5: memref<32x8xf32, #tpu.memory_space<vmem>>) attributes {dimension_semantics = [], scalar_prefetch = 0 : i64, scratch_operands = 0 : i64, tpu.core_type = #tpu.core_type<tc>} {
    %c0 = arith.constant 0 : index
    %c0_0 = arith.constant 0 : index
    %0 = vector.load %arg0[%c0, %c0_0] : memref<32x200xf32, #tpu.memory_space<vmem>>, vector<32x200xf32>
    %c0_1 = arith.constant 0 : index
    %c0_2 = arith.constant 0 : index
    %1 = vector.load %arg1[%c0_1, %c0_2] : memref<200x8xf32, #tpu.memory_space<vmem>>, vector<200x8xf32>
    %cst = arith.constant dense<0.000000e+00> : vector<32x8xf32>
    %2 = tpu.matmul %0, %1, %cst {dimension_numbers = #tpu.dot_dimension_numbers<[1], [0], [0], [1], [0, 0, 1, 1], [], []>} : vector<32x200xf32>, vector<200x8xf32>, vector<32x8xf32> -> vector<32x8xf32>
    %c0_3 = arith.constant 0 : index
    %c0_4 = arith.constant 0 : index
    %3 = vector.load %arg2[%c0_3, %c0_4] : memref<1x8xf32, #tpu.memory_space<vmem>>, vector<1x8xf32>
    %4 = vector.broadcast %3 : vector<1x8xf32> to vector<32x8xf32>
    %5 = arith.addf %2, %4 : vector<32x8xf32>
    %cst_5 = arith.constant dense<0.000000e+00> : vector<8xf32>
    %6 = vector.multi_reduction <add>, %5, %cst_5 [0] : vector<32x8xf32> to vector<8xf32>
    %7 = vector.shape_cast %6 : vector<8xf32> to vector<1x8xf32>
    %cst_6 = arith.constant 3.200000e+01 : f32
    %8 = vector.broadcast %cst_6 : f32 to vector<1x8xf32>
    %9 = arith.divf %7, %8 : vector<1x8xf32>
    %10 = vector.broadcast %9 : vector<1x8xf32> to vector<32x8xf32>
    %11 = arith.subf %5, %10 : vector<32x8xf32>
    %12 = arith.mulf %11, %11 : vector<32x8xf32>
    %cst_7 = arith.constant dense<0.000000e+00> : vector<8xf32>
    %13 = vector.multi_reduction <add>, %12, %cst_7 [0] : vector<32x8xf32> to vector<8xf32>
    %14 = vector.shape_cast %13 : vector<8xf32> to vector<1x8xf32>
    %cst_8 = arith.constant 3.200000e+01 : f32
    %15 = vector.broadcast %cst_8 : f32 to vector<1x8xf32>
    %16 = arith.divf %14, %15 : vector<1x8xf32>
    %c0_9 = arith.constant 0 : index
    %c0_10 = arith.constant 0 : index
    %17 = vector.load %arg3[%c0_9, %c0_10] : memref<1x8xf32, #tpu.memory_space<vmem>>, vector<1x8xf32>
    %cst_11 = arith.constant 9.99999974E-6 : f32
    %18 = vector.broadcast %cst_11 : f32 to vector<1x8xf32>
    %19 = arith.addf %16, %18 : vector<1x8xf32>
    %20 = math.rsqrt %19 : vector<1x8xf32>
    %21 = arith.mulf %17, %20 : vector<1x8xf32>
    %22 = vector.broadcast %21 : vector<1x8xf32> to vector<32x8xf32>
    %23 = arith.mulf %5, %22 : vector<32x8xf32>
    %c0_12 = arith.constant 0 : index
    %c0_13 = arith.constant 0 : index
    %24 = vector.load %arg4[%c0_12, %c0_13] : memref<1x8xf32, #tpu.memory_space<vmem>>, vector<1x8xf32>
    %25 = arith.mulf %9, %21 : vector<1x8xf32>
    %26 = arith.subf %24, %25 : vector<1x8xf32>
    %27 = vector.broadcast %26 : vector<1x8xf32> to vector<32x8xf32>
    %28 = arith.addf %23, %27 : vector<32x8xf32>
    %cst_14 = arith.constant 0.000000e+00 : f32
    %29 = vector.broadcast %cst_14 : f32 to vector<32x8xf32>
    %30 = arith.maximumf %28, %29 : vector<32x8xf32>
    %c0_15 = arith.constant 0 : index
    %c0_16 = arith.constant 0 : index
    %31 = vector.load %arg5[%c0_15, %c0_16] : memref<32x8xf32, #tpu.memory_space<vmem>>, vector<32x8xf32>
    tpu.vector_store %arg5[%c0_15, %c0_16], %30 {strides = array<i32>} : memref<32x8xf32, #tpu.memory_space<vmem>>, vector<32x8xf32>,
    return
  }
}

module attributes {stable_mosaic.version = 11 : i64} {
  func.func @kernel(%arg0: memref<8x200xf32, #tpu.memory_space<vmem>>, %arg1: memref<200x8xf32, #tpu.memory_space<vmem>>, %arg2: memref<1x8xf32, #tpu.memory_space<vmem>>, %arg3: memref<1x8xf32, #tpu.memory_space<vmem>>, %arg4: memref<1x8xf32, #tpu.memory_space<vmem>>, %arg5: memref<8x8xf32, #tpu.memory_space<vmem>>) attributes {dimension_semantics = [], scalar_prefetch = 0 : i64, scratch_operands = 0 : i64, tpu.core_type = #tpu.core_type<tc>} {
    %c0 = arith.constant 0 : index
    %c0_0 = arith.constant 0 : index
    %0 = vector.load %arg0[%c0, %c0_0] : memref<8x200xf32, #tpu.memory_space<vmem>>, vector<8x200xf32>
    %c0_1 = arith.constant 0 : index
    %c0_2 = arith.constant 0 : index
    %1 = vector.load %arg1[%c0_1, %c0_2] : memref<200x8xf32, #tpu.memory_space<vmem>>, vector<200x8xf32>
    %cst = arith.constant dense<0.000000e+00> : vector<8x8xf32>
    %2 = tpu.matmul %0, %1, %cst {dimension_numbers = #tpu.dot_dimension_numbers<[1], [0], [0], [1], [0, 0, 1, 1], [], []>} : vector<8x200xf32>, vector<200x8xf32>, vector<8x8xf32> -> vector<8x8xf32>
    %c0_3 = arith.constant 0 : index
    %c0_4 = arith.constant 0 : index
    %3 = vector.load %arg2[%c0_3, %c0_4] : memref<1x8xf32, #tpu.memory_space<vmem>>, vector<1x8xf32>
    %4 = vector.broadcast %3 : vector<1x8xf32> to vector<8x8xf32>
    %5 = arith.addf %2, %4 : vector<8x8xf32>
    %cst_5 = arith.constant dense<0.000000e+00> : vector<8xf32>
    %6 = vector.multi_reduction <add>, %5, %cst_5 [0] : vector<8x8xf32> to vector<8xf32>
    %7 = vector.shape_cast %6 : vector<8xf32> to vector<1x8xf32>
    %cst_6 = arith.constant 8.000000e+00 : f32
    %8 = vector.broadcast %cst_6 : f32 to vector<1x8xf32>
    %9 = arith.divf %7, %8 : vector<1x8xf32>
    %10 = vector.broadcast %9 : vector<1x8xf32> to vector<8x8xf32>
    %11 = arith.subf %5, %10 : vector<8x8xf32>
    %12 = arith.mulf %11, %11 : vector<8x8xf32>
    %cst_7 = arith.constant dense<0.000000e+00> : vector<8xf32>
    %13 = vector.multi_reduction <add>, %12, %cst_7 [0] : vector<8x8xf32> to vector<8xf32>
    %14 = vector.shape_cast %13 : vector<8xf32> to vector<1x8xf32>
    %cst_8 = arith.constant 8.000000e+00 : f32
    %15 = vector.broadcast %cst_8 : f32 to vector<1x8xf32>
    %16 = arith.divf %14, %15 : vector<1x8xf32>
    %c0_9 = arith.constant 0 : index
    %c0_10 = arith.constant 0 : index
    %17 = vector.load %arg3[%c0_9, %c0_10] : memref<1x8xf32, #tpu.memory_space<vmem>>, vector<1x8xf32>
    %cst_11 = arith.constant 9.99999974E-6 : f32
    %18 = vector.broadcast %cst_11 : f32 to vector<1x8xf32>
    %19 = arith.addf %16, %18 : vector<1x8xf32>
    %20 = math.rsqrt %19 : vector<1x8xf32>
    %21 = arith.mulf %17, %20 : vector<1x8xf32>
    %22 = vector.broadcast %21 : vector<1x8xf32> to vector<8x8xf32>
    %23 = arith.mulf %5, %22 : vector<8x8xf32>
    %c0_12 = arith.constant 0 : index
    %c0_13 = arith.constant 0 : index
    %24 = vector.load %arg4[%c0_12, %c0_13] : memref<1x8xf32, #tpu.memory_space<vmem>>, vector<1x8xf32>
    %25 = arith.mulf %9, %21 : vector<1x8xf32>
    %26 = arith.subf %24, %25 : vector<1x8xf32>
    %27 = vector.broadcast %26 : vector<1x8xf32> to vector<8x8xf32>
    %28 = arith.addf %23, %27 : vector<8x8xf32>
    %cst_14 = arith.constant 0.000000e+00 : f32
    %29 = vector.broadcast %cst_14 : f32 to vector<8x8xf32>
    %30 = arith.maximumf %28, %29 : vector<8x8xf32>
    %c0_15 = arith.constant 0 : index
    %c0_16 = arith.constant 0 : index
    %31 = vector.load %arg5[%c0_15, %c0_16] : memref<8x8xf32, #tpu.memory_space<vmem>>, vector<8x8xf32>
    tpu.vector_store %arg5[%c0_15, %c0_16], %30 {strides = array<i32>} : memref<8x8xf32, #tpu.memory_space<vmem>>, vector<8x8xf32>,
    return
  }
}

module attributes {stable_mosaic.version = 11 : i64} {
  func.func @kernel(%arg0: memref<32x128xf32, #tpu.memory_space<vmem>>, %arg1: memref<128x8xf32, #tpu.memory_space<vmem>>, %arg2: memref<1x8xf32, #tpu.memory_space<vmem>>, %arg3: memref<1x8xf32, #tpu.memory_space<vmem>>, %arg4: memref<1x8xf32, #tpu.memory_space<vmem>>, %arg5: memref<32x8xf32, #tpu.memory_space<vmem>>) attributes {dimension_semantics = [], scalar_prefetch = 0 : i64, scratch_operands = 0 : i64, tpu.core_type = #tpu.core_type<tc>} {
    %c0 = arith.constant 0 : index
    %c0_0 = arith.constant 0 : index
    %0 = vector.load %arg0[%c0, %c0_0] : memref<32x128xf32, #tpu.memory_space<vmem>>, vector<32x128xf32>
    %c0_1 = arith.constant 0 : index
    %c0_2 = arith.constant 0 : index
    %1 = vector.load %arg1[%c0_1, %c0_2] : memref<128x8xf32, #tpu.memory_space<vmem>>, vector<128x8xf32>
    %cst = arith.constant dense<0.000000e+00> : vector<32x8xf32>
    %2 = tpu.matmul %0, %1, %cst {dimension_numbers = #tpu.dot_dimension_numbers<[1], [0], [0], [1], [0, 0, 1, 1], [], []>} : vector<32x128xf32>, vector<128x8xf32>, vector<32x8xf32> -> vector<32x8xf32>
    %c0_3 = arith.constant 0 : index
    %c0_4 = arith.constant 0 : index
    %3 = vector.load %arg2[%c0_3, %c0_4] : memref<1x8xf32, #tpu.memory_space<vmem>>, vector<1x8xf32>
    %4 = vector.broadcast %3 : vector<1x8xf32> to vector<32x8xf32>
    %5 = arith.addf %2, %4 : vector<32x8xf32>
    %cst_5 = arith.constant dense<0.000000e+00> : vector<8xf32>
    %6 = vector.multi_reduction <add>, %5, %cst_5 [0] : vector<32x8xf32> to vector<8xf32>
    %7 = vector.shape_cast %6 : vector<8xf32> to vector<1x8xf32>
    %cst_6 = arith.constant 3.200000e+01 : f32
    %8 = vector.broadcast %cst_6 : f32 to vector<1x8xf32>
    %9 = arith.divf %7, %8 : vector<1x8xf32>
    %10 = vector.broadcast %9 : vector<1x8xf32> to vector<32x8xf32>
    %11 = arith.subf %5, %10 : vector<32x8xf32>
    %12 = arith.mulf %11, %11 : vector<32x8xf32>
    %cst_7 = arith.constant dense<0.000000e+00> : vector<8xf32>
    %13 = vector.multi_reduction <add>, %12, %cst_7 [0] : vector<32x8xf32> to vector<8xf32>
    %14 = vector.shape_cast %13 : vector<8xf32> to vector<1x8xf32>
    %cst_8 = arith.constant 3.200000e+01 : f32
    %15 = vector.broadcast %cst_8 : f32 to vector<1x8xf32>
    %16 = arith.divf %14, %15 : vector<1x8xf32>
    %c0_9 = arith.constant 0 : index
    %c0_10 = arith.constant 0 : index
    %17 = vector.load %arg3[%c0_9, %c0_10] : memref<1x8xf32, #tpu.memory_space<vmem>>, vector<1x8xf32>
    %cst_11 = arith.constant 9.99999974E-6 : f32
    %18 = vector.broadcast %cst_11 : f32 to vector<1x8xf32>
    %19 = arith.addf %16, %18 : vector<1x8xf32>
    %20 = math.rsqrt %19 : vector<1x8xf32>
    %21 = arith.mulf %17, %20 : vector<1x8xf32>
    %22 = vector.broadcast %21 : vector<1x8xf32> to vector<32x8xf32>
    %23 = arith.mulf %5, %22 : vector<32x8xf32>
    %c0_12 = arith.constant 0 : index
    %c0_13 = arith.constant 0 : index
    %24 = vector.load %arg4[%c0_12, %c0_13] : memref<1x8xf32, #tpu.memory_space<vmem>>, vector<1x8xf32>
    %25 = arith.mulf %9, %21 : vector<1x8xf32>
    %26 = arith.subf %24, %25 : vector<1x8xf32>
    %27 = vector.broadcast %26 : vector<1x8xf32> to vector<32x8xf32>
    %28 = arith.addf %23, %27 : vector<32x8xf32>
    %cst_14 = arith.constant 0.000000e+00 : f32
    %29 = vector.broadcast %cst_14 : f32 to vector<32x8xf32>
    %30 = arith.maximumf %28, %29 : vector<32x8xf32>
    %c0_15 = arith.constant 0 : index
    %c0_16 = arith.constant 0 : index
    %31 = vector.load %arg5[%c0_15, %c0_16] : memref<32x8xf32, #tpu.memory_space<vmem>>, vector<32x8xf32>
    tpu.vector_store %arg5[%c0_15, %c0_16], %30 {strides = array<i32>} : memref<32x8xf32, #tpu.memory_space<vmem>>, vector<32x8xf32>,
    return
  }
}

module attributes {stable_mosaic.version = 11 : i64} {
  func.func @kernel(%arg0: memref<128x128xf32, #tpu.memory_space<vmem>>, %arg1: memref<128x8xf32, #tpu.memory_space<vmem>>, %arg2: memref<1x8xf32, #tpu.memory_space<vmem>>, %arg3: memref<1x8xf32, #tpu.memory_space<vmem>>, %arg4: memref<1x8xf32, #tpu.memory_space<vmem>>, %arg5: memref<128x8xf32, #tpu.memory_space<vmem>>) attributes {dimension_semantics = [], scalar_prefetch = 0 : i64, scratch_operands = 0 : i64, tpu.core_type = #tpu.core_type<tc>} {
    %c0 = arith.constant 0 : index
    %c0_0 = arith.constant 0 : index
    %0 = vector.load %arg0[%c0, %c0_0] : memref<128x128xf32, #tpu.memory_space<vmem>>, vector<128x128xf32>
    %c0_1 = arith.constant 0 : index
    %c0_2 = arith.constant 0 : index
    %1 = vector.load %arg1[%c0_1, %c0_2] : memref<128x8xf32, #tpu.memory_space<vmem>>, vector<128x8xf32>
    %cst = arith.constant dense<0.000000e+00> : vector<128x8xf32>
    %2 = tpu.matmul %0, %1, %cst {dimension_numbers = #tpu.dot_dimension_numbers<[1], [0], [0], [1], [0, 0, 1, 1], [], []>} : vector<128x128xf32>, vector<128x8xf32>, vector<128x8xf32> -> vector<128x8xf32>
    %c0_3 = arith.constant 0 : index
    %c0_4 = arith.constant 0 : index
    %3 = vector.load %arg2[%c0_3, %c0_4] : memref<1x8xf32, #tpu.memory_space<vmem>>, vector<1x8xf32>
    %4 = vector.broadcast %3 : vector<1x8xf32> to vector<128x8xf32>
    %5 = arith.addf %2, %4 : vector<128x8xf32>
    %cst_5 = arith.constant dense<0.000000e+00> : vector<8xf32>
    %6 = vector.multi_reduction <add>, %5, %cst_5 [0] : vector<128x8xf32> to vector<8xf32>
    %7 = vector.shape_cast %6 : vector<8xf32> to vector<1x8xf32>
    %cst_6 = arith.constant 1.280000e+02 : f32
    %8 = vector.broadcast %cst_6 : f32 to vector<1x8xf32>
    %9 = arith.divf %7, %8 : vector<1x8xf32>
    %10 = vector.broadcast %9 : vector<1x8xf32> to vector<128x8xf32>
    %11 = arith.subf %5, %10 : vector<128x8xf32>
    %12 = arith.mulf %11, %11 : vector<128x8xf32>
    %cst_7 = arith.constant dense<0.000000e+00> : vector<8xf32>
    %13 = vector.multi_reduction <add>, %12, %cst_7 [0] : vector<128x8xf32> to vector<8xf32>
    %14 = vector.shape_cast %13 : vector<8xf32> to vector<1x8xf32>
    %cst_8 = arith.constant 1.280000e+02 : f32
    %15 = vector.broadcast %cst_8 : f32 to vector<1x8xf32>
    %16 = arith.divf %14, %15 : vector<1x8xf32>
    %c0_9 = arith.constant 0 : index
    %c0_10 = arith.constant 0 : index
    %17 = vector.load %arg3[%c0_9, %c0_10] : memref<1x8xf32, #tpu.memory_space<vmem>>, vector<1x8xf32>
    %cst_11 = arith.constant 9.99999974E-6 : f32
    %18 = vector.broadcast %cst_11 : f32 to vector<1x8xf32>
    %19 = arith.addf %16, %18 : vector<1x8xf32>
    %20 = math.rsqrt %19 : vector<1x8xf32>
    %21 = arith.mulf %17, %20 : vector<1x8xf32>
    %22 = vector.broadcast %21 : vector<1x8xf32> to vector<128x8xf32>
    %23 = arith.mulf %5, %22 : vector<128x8xf32>
    %c0_12 = arith.constant 0 : index
    %c0_13 = arith.constant 0 : index
    %24 = vector.load %arg4[%c0_12, %c0_13] : memref<1x8xf32, #tpu.memory_space<vmem>>, vector<1x8xf32>
    %25 = arith.mulf %9, %21 : vector<1x8xf32>
    %26 = arith.subf %24, %25 : vector<1x8xf32>
    %27 = vector.broadcast %26 : vector<1x8xf32> to vector<128x8xf32>
    %28 = arith.addf %23, %27 : vector<128x8xf32>
    %cst_14 = arith.constant 0.000000e+00 : f32
    %29 = vector.broadcast %cst_14 : f32 to vector<128x8xf32>
    %30 = arith.maximumf %28, %29 : vector<128x8xf32>
    %c0_15 = arith.constant 0 : index
    %c0_16 = arith.constant 0 : index
    %31 = vector.load %arg5[%c0_15, %c0_16] : memref<128x8xf32, #tpu.memory_space<vmem>>, vector<128x8xf32>
    tpu.vector_store %arg5[%c0_15, %c0_16], %30 {strides = array<i32>} : memref<128x8xf32, #tpu.memory_space<vmem>>, vector<128x8xf32>,
    return
  }
}

module attributes {stable_mosaic.version = 11 : i64} {
  func.func @kernel(%arg0: memref<512x128xf32, #tpu.memory_space<vmem>>, %arg1: memref<128x4xf32, #tpu.memory_space<vmem>>, %arg2: memref<1x4xf32, #tpu.memory_space<vmem>>, %arg3: memref<512x4xf32, #tpu.memory_space<vmem>>, %arg4: memref<512x4xf32, #tpu.memory_space<vmem>>, %arg5: memref<512x4xf32, #tpu.memory_space<vmem>>) attributes {dimension_semantics = [], scalar_prefetch = 0 : i64, scratch_operands = 0 : i64, tpu.core_type = #tpu.core_type<tc>} {
    %c0 = arith.constant 0 : index
    %c0_0 = arith.constant 0 : index
    %0 = vector.load %arg0[%c0, %c0_0] : memref<512x128xf32, #tpu.memory_space<vmem>>, vector<512x128xf32>
    %c0_1 = arith.constant 0 : index
    %c0_2 = arith.constant 0 : index
    %1 = vector.load %arg1[%c0_1, %c0_2] : memref<128x4xf32, #tpu.memory_space<vmem>>, vector<128x4xf32>
    %cst = arith.constant dense<0.000000e+00> : vector<512x4xf32>
    %2 = tpu.matmul %0, %1, %cst {dimension_numbers = #tpu.dot_dimension_numbers<[1], [0], [0], [1], [0, 0, 1, 1], [], []>} : vector<512x128xf32>, vector<128x4xf32>, vector<512x4xf32> -> vector<512x4xf32>
    %c0_3 = arith.constant 0 : index
    %c0_4 = arith.constant 0 : index
    %3 = vector.load %arg2[%c0_3, %c0_4] : memref<1x4xf32, #tpu.memory_space<vmem>>, vector<1x4xf32>
    %4 = vector.broadcast %3 : vector<1x4xf32> to vector<512x4xf32>
    %5 = arith.addf %2, %4 : vector<512x4xf32>
    %c0_5 = arith.constant 0 : index
    %c0_6 = arith.constant 0 : index
    %6 = vector.load %arg4[%c0_5, %c0_6] : memref<512x4xf32, #tpu.memory_space<vmem>>, vector<512x4xf32>
    tpu.vector_store %arg4[%c0_5, %c0_6], %5 {strides = array<i32>} : memref<512x4xf32, #tpu.memory_space<vmem>>, vector<512x4xf32>,
    %c0_7 = arith.constant 0 : index
    %c0_8 = arith.constant 0 : index
    %7 = vector.load %arg3[%c0_7, %c0_8] : memref<512x4xf32, #tpu.memory_space<vmem>>, vector<512x4xf32>
    %8 = arith.subf %7, %5 : vector<512x4xf32>
    %c0_9 = arith.constant 0 : index
    %c0_10 = arith.constant 0 : index
    %9 = vector.load %arg5[%c0_9, %c0_10] : memref<512x4xf32, #tpu.memory_space<vmem>>, vector<512x4xf32>
    tpu.vector_store %arg5[%c0_9, %c0_10], %8 {strides = array<i32>} : memref<512x4xf32, #tpu.memory_space<vmem>>, vector<512x4xf32>,
    return
  }
}

module attributes {stable_mosaic.version = 11 : i64} {
  func.func @kernel(%arg0: memref<2x200xf32, #tpu.memory_space<vmem>>, %arg1: memref<200x8xf32, #tpu.memory_space<vmem>>, %arg2: memref<1x8xf32, #tpu.memory_space<vmem>>, %arg3: memref<1x8xf32, #tpu.memory_space<vmem>>, %arg4: memref<1x8xf32, #tpu.memory_space<vmem>>, %arg5: memref<2x8xf32, #tpu.memory_space<vmem>>) attributes {dimension_semantics = [], scalar_prefetch = 0 : i64, scratch_operands = 0 : i64, tpu.core_type = #tpu.core_type<tc>} {
    %c0 = arith.constant 0 : index
    %c0_0 = arith.constant 0 : index
    %0 = vector.load %arg0[%c0, %c0_0] : memref<2x200xf32, #tpu.memory_space<vmem>>, vector<2x200xf32>
    %c0_1 = arith.constant 0 : index
    %c0_2 = arith.constant 0 : index
    %1 = vector.load %arg1[%c0_1, %c0_2] : memref<200x8xf32, #tpu.memory_space<vmem>>, vector<200x8xf32>
    %cst = arith.constant dense<0.000000e+00> : vector<2x8xf32>
    %2 = tpu.matmul %0, %1, %cst {dimension_numbers = #tpu.dot_dimension_numbers<[1], [0], [0], [1], [0, 0, 1, 1], [], []>} : vector<2x200xf32>, vector<200x8xf32>, vector<2x8xf32> -> vector<2x8xf32>
    %c0_3 = arith.constant 0 : index
    %c0_4 = arith.constant 0 : index
    %3 = vector.load %arg2[%c0_3, %c0_4] : memref<1x8xf32, #tpu.memory_space<vmem>>, vector<1x8xf32>
    %4 = vector.broadcast %3 : vector<1x8xf32> to vector<2x8xf32>
    %5 = arith.addf %2, %4 : vector<2x8xf32>
    %cst_5 = arith.constant dense<0.000000e+00> : vector<8xf32>
    %6 = vector.multi_reduction <add>, %5, %cst_5 [0] : vector<2x8xf32> to vector<8xf32>
    %7 = vector.shape_cast %6 : vector<8xf32> to vector<1x8xf32>
    %cst_6 = arith.constant 2.000000e+00 : f32
    %8 = vector.broadcast %cst_6 : f32 to vector<1x8xf32>
    %9 = arith.divf %7, %8 : vector<1x8xf32>
    %10 = vector.broadcast %9 : vector<1x8xf32> to vector<2x8xf32>
    %11 = arith.subf %5, %10 : vector<2x8xf32>
    %12 = arith.mulf %11, %11 : vector<2x8xf32>
    %cst_7 = arith.constant dense<0.000000e+00> : vector<8xf32>
    %13 = vector.multi_reduction <add>, %12, %cst_7 [0] : vector<2x8xf32> to vector<8xf32>
    %14 = vector.shape_cast %13 : vector<8xf32> to vector<1x8xf32>
    %cst_8 = arith.constant 2.000000e+00 : f32
    %15 = vector.broadcast %cst_8 : f32 to vector<1x8xf32>
    %16 = arith.divf %14, %15 : vector<1x8xf32>
    %c0_9 = arith.constant 0 : index
    %c0_10 = arith.constant 0 : index
    %17 = vector.load %arg3[%c0_9, %c0_10] : memref<1x8xf32, #tpu.memory_space<vmem>>, vector<1x8xf32>
    %cst_11 = arith.constant 9.99999974E-6 : f32
    %18 = vector.broadcast %cst_11 : f32 to vector<1x8xf32>
    %19 = arith.addf %16, %18 : vector<1x8xf32>
    %20 = math.rsqrt %19 : vector<1x8xf32>
    %21 = arith.mulf %17, %20 : vector<1x8xf32>
    %22 = vector.broadcast %21 : vector<1x8xf32> to vector<2x8xf32>
    %23 = arith.mulf %5, %22 : vector<2x8xf32>
    %c0_12 = arith.constant 0 : index
    %c0_13 = arith.constant 0 : index
    %24 = vector.load %arg4[%c0_12, %c0_13] : memref<1x8xf32, #tpu.memory_space<vmem>>, vector<1x8xf32>
    %25 = arith.mulf %9, %21 : vector<1x8xf32>
    %26 = arith.subf %24, %25 : vector<1x8xf32>
    %27 = vector.broadcast %26 : vector<1x8xf32> to vector<2x8xf32>
    %28 = arith.addf %23, %27 : vector<2x8xf32>
    %cst_14 = arith.constant 0.000000e+00 : f32
    %29 = vector.broadcast %cst_14 : f32 to vector<2x8xf32>
    %30 = arith.maximumf %28, %29 : vector<2x8xf32>
    %c0_15 = arith.constant 0 : index
    %c0_16 = arith.constant 0 : index
    %31 = vector.load %arg5[%c0_15, %c0_16] : memref<2x8xf32, #tpu.memory_space<vmem>>, vector<2x8xf32>
    tpu.vector_store %arg5[%c0_15, %c0_16], %30 {strides = array<i32>} : memref<2x8xf32, #tpu.memory_space<vmem>>, vector<2x8xf32>,
    return
  }
}

module attributes {stable_mosaic.version = 11 : i64} {
  func.func @kernel(%arg0: memref<2x8xf32, #tpu.memory_space<vmem>>, %arg1: memref<8x1000xf32, #tpu.memory_space<vmem>>, %arg2: memref<1x1000xf32, #tpu.memory_space<vmem>>, %arg3: memref<1x1000xf32, #tpu.memory_space<vmem>>, %arg4: memref<1x1000xf32, #tpu.memory_space<vmem>>, %arg5: memref<1000x1000xf32, #tpu.memory_space<vmem>>, %arg6: memref<1x1000xf32, #tpu.memory_space<vmem>>, %arg7: memref<1x1000xf32, #tpu.memory_space<vmem>>, %arg8: memref<1x1000xf32, #tpu.memory_space<vmem>>, %arg9: memref<1000x4xf32, #tpu.memory_space<vmem>>, %arg10: memref<1x4xf32, #tpu.memory_space<vmem>>, %arg11: memref<4x8xf32, #tpu.memory_space<vmem>>, %arg12: memref<1x8xf32, #tpu.memory_space<vmem>>, %arg13: memref<2x4xf32, #tpu.memory_space<vmem>>, %arg14: memref<2x8xf32, #tpu.memory_space<vmem>>) attributes {dimension_semantics = [], scalar_prefetch = 0 : i64, scratch_operands = 0 : i64, tpu.core_type = #tpu.core_type<tc>} {
    %c0 = arith.constant 0 : index
    %c0_0 = arith.constant 0 : index
    %0 = vector.load %arg0[%c0, %c0_0] : memref<2x8xf32, #tpu.memory_space<vmem>>, vector<2x8xf32>
    %c0_1 = arith.constant 0 : index
    %c0_2 = arith.constant 0 : index
    %1 = vector.load %arg1[%c0_1, %c0_2] : memref<8x1000xf32, #tpu.memory_space<vmem>>, vector<8x1000xf32>
    %cst = arith.constant dense<0.000000e+00> : vector<2x1000xf32>
    %2 = tpu.matmul %0, %1, %cst {dimension_numbers = #tpu.dot_dimension_numbers<[1], [0], [0], [1], [0, 0, 1, 1], [], []>} : vector<2x8xf32>, vector<8x1000xf32>, vector<2x1000xf32> -> vector<2x1000xf32>
    %c0_3 = arith.constant 0 : index
    %c0_4 = arith.constant 0 : index
    %3 = vector.load %arg2[%c0_3, %c0_4] : memref<1x1000xf32, #tpu.memory_space<vmem>>, vector<1x1000xf32>
    %4 = vector.broadcast %3 : vector<1x1000xf32> to vector<2x1000xf32>
    %5 = arith.addf %2, %4 : vector<2x1000xf32>
    %c0_5 = arith.constant 0 : index
    %c0_6 = arith.constant 0 : index
    %6 = vector.load %arg3[%c0_5, %c0_6] : memref<1x1000xf32, #tpu.memory_space<vmem>>, vector<1x1000xf32>
    %c0_7 = arith.constant 0 : index
    %c0_8 = arith.constant 0 : index
    %7 = vector.load %arg4[%c0_7, %c0_8] : memref<1x1000xf32, #tpu.memory_space<vmem>>, vector<1x1000xf32>
    %cst_9 = arith.constant dense<0.000000e+00> : vector<1000xf32>
    %8 = vector.multi_reduction <add>, %5, %cst_9 [0] : vector<2x1000xf32> to vector<1000xf32>
    %9 = vector.shape_cast %8 : vector<1000xf32> to vector<1x1000xf32>
    %cst_10 = arith.constant 2.000000e+00 : f32
    %10 = vector.broadcast %cst_10 : f32 to vector<1x1000xf32>
    %11 = arith.divf %9, %10 : vector<1x1000xf32>
    %12 = vector.broadcast %11 : vector<1x1000xf32> to vector<2x1000xf32>
    %13 = arith.subf %5, %12 : vector<2x1000xf32>
    %14 = arith.mulf %13, %13 : vector<2x1000xf32>
    %cst_11 = arith.constant dense<0.000000e+00> : vector<1000xf32>
    %15 = vector.multi_reduction <add>, %14, %cst_11 [0] : vector<2x1000xf32> to vector<1000xf32>
    %16 = vector.shape_cast %15 : vector<1000xf32> to vector<1x1000xf32>
    %cst_12 = arith.constant 2.000000e+00 : f32
    %17 = vector.broadcast %cst_12 : f32 to vector<1x1000xf32>
    %18 = arith.divf %16, %17 : vector<1x1000xf32>
    %cst_13 = arith.constant 9.99999974E-6 : f32
    %19 = vector.broadcast %cst_13 : f32 to vector<1x1000xf32>
    %20 = arith.addf %18, %19 : vector<1x1000xf32>
    %21 = math.rsqrt %20 : vector<1x1000xf32>
    %22 = arith.mulf %6, %21 : vector<1x1000xf32>
    %23 = vector.broadcast %22 : vector<1x1000xf32> to vector<2x1000xf32>
    %24 = arith.mulf %5, %23 : vector<2x1000xf32>
    %25 = arith.mulf %11, %22 : vector<1x1000xf32>
    %26 = arith.subf %7, %25 : vector<1x1000xf32>
    %27 = vector.broadcast %26 : vector<1x1000xf32> to vector<2x1000xf32>
    %28 = arith.addf %24, %27 : vector<2x1000xf32>
    %cst_14 = arith.constant 0.000000e+00 : f32
    %29 = vector.broadcast %cst_14 : f32 to vector<2x1000xf32>
    %30 = arith.maximumf %28, %29 : vector<2x1000xf32>
    %c0_15 = arith.constant 0 : index
    %c0_16 = arith.constant 0 : index
    %31 = vector.load %arg5[%c0_15, %c0_16] : memref<1000x1000xf32, #tpu.memory_space<vmem>>, vector<1000x1000xf32>
    %cst_17 = arith.constant dense<0.000000e+00> : vector<2x1000xf32>
    %32 = tpu.matmul %30, %31, %cst_17 {dimension_numbers = #tpu.dot_dimension_numbers<[1], [0], [0], [1], [0, 0, 1, 1], [], []>} : vector<2x1000xf32>, vector<1000x1000xf32>, vector<2x1000xf32> -> vector<2x1000xf32>
    %c0_18 = arith.constant 0 : index
    %c0_19 = arith.constant 0 : index
    %33 = vector.load %arg6[%c0_18, %c0_19] : memref<1x1000xf32, #tpu.memory_space<vmem>>, vector<1x1000xf32>
    %34 = vector.broadcast %33 : vector<1x1000xf32> to vector<2x1000xf32>
    %35 = arith.addf %32, %34 : vector<2x1000xf32>
    %c0_20 = arith.constant 0 : index
    %c0_21 = arith.constant 0 : index
    %36 = vector.load %arg7[%c0_20, %c0_21] : memref<1x1000xf32, #tpu.memory_space<vmem>>, vector<1x1000xf32>
    %c0_22 = arith.constant 0 : index
    %c0_23 = arith.constant 0 : index
    %37 = vector.load %arg8[%c0_22, %c0_23] : memref<1x1000xf32, #tpu.memory_space<vmem>>, vector<1x1000xf32>
    %cst_24 = arith.constant dense<0.000000e+00> : vector<1000xf32>
    %38 = vector.multi_reduction <add>, %35, %cst_24 [0] : vector<2x1000xf32> to vector<1000xf32>
    %39 = vector.shape_cast %38 : vector<1000xf32> to vector<1x1000xf32>
    %cst_25 = arith.constant 2.000000e+00 : f32
    %40 = vector.broadcast %cst_25 : f32 to vector<1x1000xf32>
    %41 = arith.divf %39, %40 : vector<1x1000xf32>
    %42 = vector.broadcast %41 : vector<1x1000xf32> to vector<2x1000xf32>
    %43 = arith.subf %35, %42 : vector<2x1000xf32>
    %44 = arith.mulf %43, %43 : vector<2x1000xf32>
    %cst_26 = arith.constant dense<0.000000e+00> : vector<1000xf32>
    %45 = vector.multi_reduction <add>, %44, %cst_26 [0] : vector<2x1000xf32> to vector<1000xf32>
    %46 = vector.shape_cast %45 : vector<1000xf32> to vector<1x1000xf32>
    %cst_27 = arith.constant 2.000000e+00 : f32
    %47 = vector.broadcast %cst_27 : f32 to vector<1x1000xf32>
    %48 = arith.divf %46, %47 : vector<1x1000xf32>
    %cst_28 = arith.constant 9.99999974E-6 : f32
    %49 = vector.broadcast %cst_28 : f32 to vector<1x1000xf32>
    %50 = arith.addf %48, %49 : vector<1x1000xf32>
    %51 = math.rsqrt %50 : vector<1x1000xf32>
    %52 = arith.mulf %36, %51 : vector<1x1000xf32>
    %53 = vector.broadcast %52 : vector<1x1000xf32> to vector<2x1000xf32>
    %54 = arith.mulf %35, %53 : vector<2x1000xf32>
    %55 = arith.mulf %41, %52 : vector<1x1000xf32>
    %56 = arith.subf %37, %55 : vector<1x1000xf32>
    %57 = vector.broadcast %56 : vector<1x1000xf32> to vector<2x1000xf32>
    %58 = arith.addf %54, %57 : vector<2x1000xf32>
    %cst_29 = arith.constant 0.000000e+00 : f32
    %59 = vector.broadcast %cst_29 : f32 to vector<2x1000xf32>
    %60 = arith.maximumf %58, %59 : vector<2x1000xf32>
    %c0_30 = arith.constant 0 : index
    %c0_31 = arith.constant 0 : index
    %61 = vector.load %arg9[%c0_30, %c0_31] : memref<1000x4xf32, #tpu.memory_space<vmem>>, vector<1000x4xf32>
    %cst_32 = arith.constant dense<0.000000e+00> : vector<2x4xf32>
    %62 = tpu.matmul %60, %61, %cst_32 {dimension_numbers = #tpu.dot_dimension_numbers<[1], [0], [0], [1], [0, 0, 1, 1], [], []>} : vector<2x1000xf32>, vector<1000x4xf32>, vector<2x4xf32> -> vector<2x4xf32>
    %c0_33 = arith.constant 0 : index
    %c0_34 = arith.constant 0 : index
    %63 = vector.load %arg10[%c0_33, %c0_34] : memref<1x4xf32, #tpu.memory_space<vmem>>, vector<1x4xf32>
    %64 = vector.broadcast %63 : vector<1x4xf32> to vector<2x4xf32>
    %65 = arith.addf %62, %64 : vector<2x4xf32>
    %66 = math.tanh %65 : vector<2x4xf32>
    %c0_35 = arith.constant 0 : index
    %c0_36 = arith.constant 0 : index
    %67 = vector.load %arg13[%c0_35, %c0_36] : memref<2x4xf32, #tpu.memory_space<vmem>>, vector<2x4xf32>
    tpu.vector_store %arg13[%c0_35, %c0_36], %66 {strides = array<i32>} : memref<2x4xf32, #tpu.memory_space<vmem>>, vector<2x4xf32>,
    %c0_37 = arith.constant 0 : index
    %c0_38 = arith.constant 0 : index
    %68 = vector.load %arg11[%c0_37, %c0_38] : memref<4x8xf32, #tpu.memory_space<vmem>>, vector<4x8xf32>
    %cst_39 = arith.constant dense<0.000000e+00> : vector<2x8xf32>
    %69 = tpu.matmul %66, %68, %cst_39 {dimension_numbers = #tpu.dot_dimension_numbers<[1], [0], [0], [1], [0, 0, 1, 1], [], []>} : vector<2x4xf32>, vector<4x8xf32>, vector<2x8xf32> -> vector<2x8xf32>
    %c0_40 = arith.constant 0 : index
    %c0_41 = arith.constant 0 : index
    %70 = vector.load %arg12[%c0_40, %c0_41] : memref<1x8xf32, #tpu.memory_space<vmem>>, vector<1x8xf32>
    %71 = vector.broadcast %70 : vector<1x8xf32> to vector<2x8xf32>
    %72 = arith.addf %69, %71 : vector<2x8xf32>
    %c0_42 = arith.constant 0 : index
    %c0_43 = arith.constant 0 : index
    %73 = vector.load %arg14[%c0_42, %c0_43] : memref<2x8xf32, #tpu.memory_space<vmem>>, vector<2x8xf32>
    tpu.vector_store %arg14[%c0_42, %c0_43], %72 {strides = array<i32>} : memref<2x8xf32, #tpu.memory_space<vmem>>, vector<2x8xf32>,
    return
  }
}

module attributes {stable_mosaic.version = 11 : i64} {
  func.func @kernel(%arg0: memref<8x200xf32, #tpu.memory_space<vmem>>, %arg1: memref<200x8xf32, #tpu.memory_space<vmem>>, %arg2: memref<1x8xf32, #tpu.memory_space<vmem>>, %arg3: memref<1x8xf32, #tpu.memory_space<vmem>>, %arg4: memref<1x8xf32, #tpu.memory_space<vmem>>, %arg5: memref<8x8xf32, #tpu.memory_space<vmem>>, %arg6: memref<8x8xf32, #tpu.memory_space<vmem>>) attributes {dimension_semantics = [], scalar_prefetch = 0 : i64, scratch_operands = 0 : i64, tpu.core_type = #tpu.core_type<tc>} {
    %c0 = arith.constant 0 : index
    %c0_0 = arith.constant 0 : index
    %0 = vector.load %arg0[%c0, %c0_0] : memref<8x200xf32, #tpu.memory_space<vmem>>, vector<8x200xf32>
    %c0_1 = arith.constant 0 : index
    %c0_2 = arith.constant 0 : index
    %1 = vector.load %arg1[%c0_1, %c0_2] : memref<200x8xf32, #tpu.memory_space<vmem>>, vector<200x8xf32>
    %cst = arith.constant dense<0.000000e+00> : vector<8x8xf32>
    %2 = tpu.matmul %0, %1, %cst {dimension_numbers = #tpu.dot_dimension_numbers<[1], [0], [0], [1], [0, 0, 1, 1], [], []>} : vector<8x200xf32>, vector<200x8xf32>, vector<8x8xf32> -> vector<8x8xf32>
    %c0_3 = arith.constant 0 : index
    %c0_4 = arith.constant 0 : index
    %3 = vector.load %arg2[%c0_3, %c0_4] : memref<1x8xf32, #tpu.memory_space<vmem>>, vector<1x8xf32>
    %4 = vector.broadcast %3 : vector<1x8xf32> to vector<8x8xf32>
    %5 = arith.addf %2, %4 : vector<8x8xf32>
    %cst_5 = arith.constant dense<0.000000e+00> : vector<8xf32>
    %6 = vector.multi_reduction <add>, %5, %cst_5 [0] : vector<8x8xf32> to vector<8xf32>
    %7 = vector.shape_cast %6 : vector<8xf32> to vector<1x8xf32>
    %cst_6 = arith.constant 8.000000e+00 : f32
    %8 = vector.broadcast %cst_6 : f32 to vector<1x8xf32>
    %9 = arith.divf %7, %8 : vector<1x8xf32>
    %10 = vector.broadcast %9 : vector<1x8xf32> to vector<8x8xf32>
    %11 = arith.subf %5, %10 : vector<8x8xf32>
    %12 = arith.mulf %11, %11 : vector<8x8xf32>
    %cst_7 = arith.constant dense<0.000000e+00> : vector<8xf32>
    %13 = vector.multi_reduction <add>, %12, %cst_7 [0] : vector<8x8xf32> to vector<8xf32>
    %14 = vector.shape_cast %13 : vector<8xf32> to vector<1x8xf32>
    %cst_8 = arith.constant 8.000000e+00 : f32
    %15 = vector.broadcast %cst_8 : f32 to vector<1x8xf32>
    %16 = arith.divf %14, %15 : vector<1x8xf32>
    %c0_9 = arith.constant 0 : index
    %c0_10 = arith.constant 0 : index
    %17 = vector.load %arg3[%c0_9, %c0_10] : memref<1x8xf32, #tpu.memory_space<vmem>>, vector<1x8xf32>
    %cst_11 = arith.constant 9.99999974E-6 : f32
    %18 = vector.broadcast %cst_11 : f32 to vector<1x8xf32>
    %19 = arith.addf %16, %18 : vector<1x8xf32>
    %20 = math.rsqrt %19 : vector<1x8xf32>
    %21 = arith.mulf %17, %20 : vector<1x8xf32>
    %22 = vector.broadcast %21 : vector<1x8xf32> to vector<8x8xf32>
    %23 = arith.mulf %5, %22 : vector<8x8xf32>
    %c0_12 = arith.constant 0 : index
    %c0_13 = arith.constant 0 : index
    %24 = vector.load %arg4[%c0_12, %c0_13] : memref<1x8xf32, #tpu.memory_space<vmem>>, vector<1x8xf32>
    %25 = arith.mulf %9, %21 : vector<1x8xf32>
    %26 = arith.subf %24, %25 : vector<1x8xf32>
    %27 = vector.broadcast %26 : vector<1x8xf32> to vector<8x8xf32>
    %28 = arith.addf %23, %27 : vector<8x8xf32>
    %cst_14 = arith.constant 0.000000e+00 : f32
    %29 = vector.broadcast %cst_14 : f32 to vector<8x8xf32>
    %30 = arith.maximumf %28, %29 : vector<8x8xf32>
    %c0_15 = arith.constant 0 : index
    %c0_16 = arith.constant 0 : index
    %31 = vector.load %arg5[%c0_15, %c0_16] : memref<8x8xf32, #tpu.memory_space<vmem>>, vector<8x8xf32>
    %32 = arith.addf %30, %31 : vector<8x8xf32>
    %c0_17 = arith.constant 0 : index
    %c0_18 = arith.constant 0 : index
    %33 = vector.load %arg6[%c0_17, %c0_18] : memref<8x8xf32, #tpu.memory_space<vmem>>, vector<8x8xf32>
    tpu.vector_store %arg6[%c0_17, %c0_18], %32 {strides = array<i32>} : memref<8x8xf32, #tpu.memory_space<vmem>>, vector<8x8xf32>,
    return
  }
}

module attributes {stable_mosaic.version = 11 : i64} {
  func.func @kernel(%arg0: memref<512x128xf32, #tpu.memory_space<vmem>>, %arg1: memref<128x4xf32, #tpu.memory_space<vmem>>, %arg2: memref<1x4xf32, #tpu.memory_space<vmem>>, %arg3: memref<512x4xf32, #tpu.memory_space<vmem>>) attributes {dimension_semantics = [], scalar_prefetch = 0 : i64, scratch_operands = 0 : i64, tpu.core_type = #tpu.core_type<tc>} {
    %c0 = arith.constant 0 : index
    %c0_0 = arith.constant 0 : index
    %0 = vector.load %arg0[%c0, %c0_0] : memref<512x128xf32, #tpu.memory_space<vmem>>, vector<512x128xf32>
    %c0_1 = arith.constant 0 : index
    %c0_2 = arith.constant 0 : index
    %1 = vector.load %arg1[%c0_1, %c0_2] : memref<128x4xf32, #tpu.memory_space<vmem>>, vector<128x4xf32>
    %cst = arith.constant dense<0.000000e+00> : vector<512x4xf32>
    %2 = tpu.matmul %0, %1, %cst {dimension_numbers = #tpu.dot_dimension_numbers<[1], [0], [0], [1], [0, 0, 1, 1], [], []>} : vector<512x128xf32>, vector<128x4xf32>, vector<512x4xf32> -> vector<512x4xf32>
    %c0_3 = arith.constant 0 : index
    %c0_4 = arith.constant 0 : index
    %3 = vector.load %arg2[%c0_3, %c0_4] : memref<1x4xf32, #tpu.memory_space<vmem>>, vector<1x4xf32>
    %4 = vector.broadcast %3 : vector<1x4xf32> to vector<512x4xf32>
    %5 = arith.addf %2, %4 : vector<512x4xf32>
    %c0_5 = arith.constant 0 : index
    %c0_6 = arith.constant 0 : index
    %6 = vector.load %arg3[%c0_5, %c0_6] : memref<512x4xf32, #tpu.memory_space<vmem>>, vector<512x4xf32>
    tpu.vector_store %arg3[%c0_5, %c0_6], %5 {strides = array<i32>} : memref<512x4xf32, #tpu.memory_space<vmem>>, vector<512x4xf32>,
    return
  }
}

</mosaic_0001>

<bundles_post_ra>
// kernel: forward.17
= control target key start
LH: loop header
LB: loop body
LE: loop exit
PB: predicated region body
PF: predicated region fallthrough
CT: control target
= control target key end

     0   :  { %v563_v0 = vmov 0.0|0.0   ;;  %vm84_vm0 = vcmask 556032   ;;  %v564_v39 = vmov 0.0   ;;  %vm133_vm1 = vcmask 1043456   ;;  %s1010_s1 = inlined_call_operand.vmem [shape: f32[196,8], index: 1, kind: input, shape index: {}]   ;;  %s1011_s0 = inlined_call_operand.vmem [shape: f32[128,196], index: 0, kind: input, shape index: {}]   ;;  %s1012_s2 = inlined_call_operand.vmem [shape: f32[1,8], index: 2, kind: input, shape index: {}]   ;;  %s1013_s3 = inlined_call_operand.vmem [shape: f32[1,8], index: 3, kind: input, shape index: {}]   ;;  %s1014_s4 = inlined_call_operand.vmem [shape: f32[1,8], index: 4, kind: input, shape index: {}]   ;;  %s1015_s5 = inlined_call_operand.vmem [shape: f32[128,8], index: 5, kind: output, shape index: {}]  }
   0x1   :  { %497 = vmatprep.subr.bf16.mxu0 %v563_v0  ;;  %v52_v1 = vld [vmem:[%s1010_s1] sm:$0xff]  ;;  %v53_v2 = vld [vmem:[%s1010_s1 + $0x8] sm:$0xff]  ;;  %v54_v3 = vld [vmem:[%s1010_s1 + $0x10] sm:$0xff]  ;;  %533 = vmatprep.subr.bf16.mxu1 %v563_v0  ;;  %vm282_vm2 = vcmask 64512  }
   0x2   :  { %v498_v4 = vpack.c.bf16 %v53_v2, %v52_v1  ;;  %v55_v5 = vld [vmem:[%s1010_s1 + $0x18] sm:$0xff]  ;;  %v56_v7 = vld [vmem:[%s1010_s1 + $0x20] sm:$0xff]  ;;  %v57_v8 = vld [vmem:[%s1010_s1 + $0x28] sm:$0xff] }
   0x3   :  { %v501_v6 = vpack.c.bf16 %v55_v5, %v54_v3  ;;  %v504_v9 = vpack.c.bf16 %v57_v8, %v56_v7  ;;  %v58_v10 = vld [vmem:[%s1010_s1 + $0x30] sm:$0xff]  ;;  %v59_v11 = vld [vmem:[%s1010_s1 + $0x38] sm:$0xff]  ;;  %v21_v12 = vld [vmem:[%s1011_s0 + $0x8] sm:$0xff] }
   0x4   :  { %499 = vmatpush1.bf16.msra.mxu0 %v498_v4  ;;  %546 = vmatpush1.bf16.msra.mxu1 %v498_v4  ;;  %v507_v13 = vpack.c.bf16 %v59_v11, %v58_v10  ;;  %v37_v14 = vld [vmem:[%s1011_s0 + $0x88] sm:$0xff]  ;;  %v60_v15 = vld [vmem:[%s1010_s1 + $0x40] sm:$0xff]  ;;  %v62_v18 = vld [vmem:[%s1010_s1 + $0x50] sm:$0xff] }
   0x5   :  { %500 = vmatprep.subr.bf16.mxu0 %v563_v0  ;;  %534 = vmatprep.subr.bf16.mxu1 %v563_v0  ;;  %v61_v16 = vld [vmem:[%s1010_s1 + $0x48] sm:$0xff]  ;;  %v63_v19 = vld [vmem:[%s1010_s1 + $0x58] sm:$0xff]  ;;  %v64_v21 = vld [vmem:[%s1010_s1 + $0x60] sm:$0xff] }
   0x6   :  { %481 = vmatprep.mubr.msk.f32.mxu0 %vm84_vm0, %v21_v12  ;;  %489 = vmatprep.mubr.msk.f32.mxu1 %vm84_vm0, %v37_v14  ;;  %v510_v17 = vpack.c.bf16 %v61_v16, %v60_v15  ;;  %v513_v20 = vpack.c.bf16 %v63_v19, %v62_v18  ;;  %v65_v22 = vld [vmem:[%s1010_s1 + $0x68] sm:$0xff]  ;;  %v66_v24 = vld [vmem:[%s1010_s1 + $0x70] sm:$0xff]  ;;  %v67_v25 = vld [vmem:[%s1010_s1 + $0x78] sm:$0xff] }
   0x7   :  { %v516_v23 = vpack.c.bf16 %v65_v22, %v64_v21  ;;  %v519_v26 = vpack.c.bf16 %v67_v25, %v66_v24  ;;  %v68_v27 = vld [vmem:[%s1010_s1 + $0x80] sm:$0xff]  ;;  %v69_v28 = vld [vmem:[%s1010_s1 + $0x88] sm:$0xff]  ;;  %v70_v30 = vld [vmem:[%s1010_s1 + $0x90] sm:$0xff] }
   0x8   :  { %502 = vmatpush1.bf16.msra.mxu0 %v501_v6  ;;  %547 = vmatpush1.bf16.msra.mxu1 %v501_v6  ;;  %v522_v29 = vpack.c.bf16 %v69_v28, %v68_v27  ;;  %v71_v31 = vld [vmem:[%s1010_s1 + $0x98] sm:$0xff]  ;;  %v72_v33 = vld [vmem:[%s1010_s1 + $0xa0] sm:$0xff]  ;;  %v73_v34 = vld [vmem:[%s1010_s1 + $0xa8] sm:$0xff] }
   0x9   :  { %503 = vmatprep.subr.bf16.mxu0 %v563_v0  ;;  %535 = vmatprep.subr.bf16.mxu1 %v563_v0  ;;  %v525_v32 = vpack.c.bf16 %v71_v31, %v70_v30  ;;  %v528_v35 = vpack.c.bf16 %v73_v34, %v72_v33  ;;  %v74_v36 = vld [vmem:[%s1010_s1 + $0xb0] sm:$0xff]  ;;  %v75_v37 = vld [vmem:[%s1010_s1 + $0xb8] sm:$0xff]  ;;  %v76_v40 = vld [vmem:[%s1010_s1 + $0xc0] sm:$0xf] }
   0xa   :  { %v531_v38 = vpack.c.bf16 %v75_v37, %v74_v36  ;;  %v20_v41 = vld [vmem:[%s1011_s0] sm:$0xff]  ;;  %v23_v43 = vld [vmem:[%s1011_s0 + $0x18] sm:$0xff]  ;;  %v22_v45 = vld [vmem:[%s1011_s0 + $0x10] sm:$0xff] }
   0xb   :  { %v36_v42 = vld [vmem:[%s1011_s0 + $0x80] sm:$0xff]  ;;  %v39_v44 = vld [vmem:[%s1011_s0 + $0x98] sm:$0xff]  ;;  %v38_v46 = vld [vmem:[%s1011_s0 + $0x90] sm:$0xff] }
   0xc   :  { %505 = vmatpush1.bf16.msra.mxu0 %v504_v9  ;;  %548 = vmatpush1.bf16.msra.mxu1 %v504_v9  ;;  %v25_v47 = vld [vmem:[%s1011_s0 + $0x28] sm:$0xff]  ;;  %v24_v49 = vld [vmem:[%s1011_s0 + $0x20] sm:$0xff]  ;;  %v27_v51 = vld [vmem:[%s1011_s0 + $0x38] sm:$0xff] }
   0xd   :  { %506 = vmatprep.subr.bf16.mxu0 %v563_v0  ;;  %536 = vmatprep.subr.bf16.mxu1 %v563_v0  ;;  %v41_v48 = vld [vmem:[%s1011_s0 + $0xa8] sm:$0xff]  ;;  %v40_v50 = vld [vmem:[%s1011_s0 + $0xa0] sm:$0xff]  ;;  %v43_v52 = vld [vmem:[%s1011_s0 + $0xb8] sm:$0xff] }
   0xe   :  { %v26_v53 = vld [vmem:[%s1011_s0 + $0x30] sm:$0xff]  ;;  %v29_v55 = vld [vmem:[%s1011_s0 + $0x48] sm:$0xff]  ;;  %v28_v57 = vld [vmem:[%s1011_s0 + $0x40] sm:$0xff] }
   0xf   :  { %v42_v54 = vld [vmem:[%s1011_s0 + $0xb0] sm:$0xff]  ;;  %v45_v56 = vld [vmem:[%s1011_s0 + $0xc8] sm:$0xff]  ;;  %v44_v58 = vld [vmem:[%s1011_s0 + $0xc0] sm:$0xff] }
  0x10   :  { %508 = vmatpush1.bf16.msra.mxu0 %v507_v13  ;;  %549 = vmatpush1.bf16.msra.mxu1 %v507_v13  ;;  %v31_v59 = vld [vmem:[%s1011_s0 + $0x58] sm:$0xff]  ;;  %v30_v61 = vld [vmem:[%s1011_s0 + $0x50] sm:$0xff]  ;;  %v33_v63 = vld [vmem:[%s1011_s0 + $0x68] sm:$0xff] }
  0x11   :  { %509 = vmatprep.subr.bf16.mxu0 %v563_v0  ;;  %537 = vmatprep.subr.bf16.mxu1 %v563_v0  ;;  %v47_v60 = vld [vmem:[%s1011_s0 + $0xd8] sm:$0xff]  ;;  %v46_v62 = vld [vmem:[%s1011_s0 + $0xd0] sm:$0xff]  ;;  %v32_v1 = vld [vmem:[%s1011_s0 + $0x60] sm:$0xff] }
  0x12   :  { %v48_v2 = vld [vmem:[%s1011_s0 + $0xe0] sm:$0xff]  ;;  %v35_v3 = vld [vmem:[%s1011_s0 + $0x78] sm:$0xff]  ;;  %v34_v5 = vld [vmem:[%s1011_s0 + $0x70] sm:$0xff] }
  0x13   :  { %v51_v4 = vld [vmem:[%s1011_s0 + $0xf8] sm:$0xff]  ;;  %v50_v6 = vld [vmem:[%s1011_s0 + $0xf0] sm:$0xff]  ;;  %v479_v19 = vld [vmem:[%s1012_s2] ss:$0 sm:$0xff] }
  0x14   :  { %511 = vmatpush1.bf16.msra.mxu0 %v510_v17  ;;  %550 = vmatpush1.bf16.msra.mxu1 %v510_v17 }
  0x15   :  { %512 = vmatprep.subr.bf16.mxu0 %v563_v0  ;;  %538 = vmatprep.subr.bf16.mxu1 %v563_v0 }
  0x18   :  { %514 = vmatpush1.bf16.msra.mxu0 %v513_v20  ;;  %551 = vmatpush1.bf16.msra.mxu1 %v513_v20 }
  0x19   :  { %515 = vmatprep.subr.bf16.mxu0 %v563_v0  ;;  %539 = vmatprep.subr.bf16.mxu1 %v563_v0 }
  0x1c   :  { %517 = vmatpush1.bf16.msra.mxu0 %v516_v23  ;;  %552 = vmatpush1.bf16.msra.mxu1 %v516_v23 }
  0x1d   :  { %518 = vmatprep.subr.bf16.mxu0 %v563_v0  ;;  %540 = vmatprep.subr.bf16.mxu1 %v563_v0 }
  0x20   :  { %520 = vmatpush1.bf16.msra.mxu0 %v519_v26  ;;  %553 = vmatpush1.bf16.msra.mxu1 %v519_v26 }
  0x21   :  { %521 = vmatprep.subr.bf16.mxu0 %v563_v0  ;;  %541 = vmatprep.subr.bf16.mxu1 %v563_v0 }
  0x24   :  { %523 = vmatpush1.bf16.msra.mxu0 %v522_v29  ;;  %554 = vmatpush1.bf16.msra.mxu1 %v522_v29 }
  0x25   :  { %524 = vmatprep.subr.bf16.mxu0 %v563_v0  ;;  %542 = vmatprep.subr.bf16.mxu1 %v563_v0 }
  0x28   :  { %526 = vmatpush1.bf16.msra.mxu0 %v525_v32  ;;  %555 = vmatpush1.bf16.msra.mxu1 %v525_v32 }
  0x29   :  { %527 = vmatprep.subr.bf16.mxu0 %v563_v0  ;;  %543 = vmatprep.subr.bf16.mxu1 %v563_v0 }
  0x2c   :  { %529 = vmatpush1.bf16.msra.mxu0 %v528_v35  ;;  %556 = vmatpush1.bf16.msra.mxu1 %v528_v35 }
  0x2d   :  { %530 = vmatprep.subr.bf16.mxu0 %v563_v0  ;;  %544 = vmatprep.subr.bf16.mxu1 %v563_v0  ;;  %v49_v0 = vld [vmem:[%s1011_s0 + $0xe8] sm:$0xff] }
  0x30   :  { %532 = vmatpush1.bf16.msra.mxu0 %v531_v38  ;;  %557 = vmatpush1.bf16.msra.mxu1 %v531_v38 }
  0x31   :  { %185 = vmatprep.subr.mxu0 %v564_v39  ;;  %545 = vmatprep.subr.mxu1 %v564_v39 }
  0x34   :  { %480 = vmatpush1.msk.msra.mxu0 %vm133_vm1, %v76_v40  ;;  %558 = vmatpush1.msk.msra.mxu1 %vm133_vm1, %v76_v40 }
  0x35   :  { %202 = vmatmul.mubr.f32.vlgmr.msra.gmra.mrb[0].mxu0 %v20_v41  ;;  %242 = vmatmul.mubr.f32.vlgmr.msra.gmra.mrb[0].mxu1 %v36_v42 }
  0x36   :  { %482 = vmatprep.mubr.msk.f32.mxu0 %vm84_vm0, %v23_v43  ;;  %490 = vmatprep.mubr.msk.f32.mxu1 %vm84_vm0, %v39_v44 }
  0x39   :  { %207 = vmatmul.mubr.f32.gmra.mrb[2].mxu0 %v22_v45  ;;  %247 = vmatmul.mubr.f32.gmra.mrb[2].mxu1 %v38_v46 }
  0x3a   :  { %483 = vmatprep.mubr.msk.f32.mxu0 %vm84_vm0, %v25_v47  ;;  %491 = vmatprep.mubr.msk.f32.mxu1 %vm84_vm0, %v41_v48 }
  0x3d   :  { %212 = vmatmul.mubr.f32.gmra.mrb[4].mxu0 %v24_v49  ;;  %252 = vmatmul.mubr.f32.gmra.mrb[4].mxu1 %v40_v50 }
  0x3e   :  { %484 = vmatprep.mubr.msk.f32.mxu0 %vm84_vm0, %v27_v51  ;;  %492 = vmatprep.mubr.msk.f32.mxu1 %vm84_vm0, %v43_v52 }
  0x41   :  { %217 = vmatmul.mubr.f32.gmra.mrb[6].mxu0 %v26_v53  ;;  %257 = vmatmul.mubr.f32.gmra.mrb[6].mxu1 %v42_v54 }
  0x42   :  { %485 = vmatprep.mubr.msk.f32.mxu0 %vm84_vm0, %v29_v55  ;;  %493 = vmatprep.mubr.msk.f32.mxu1 %vm84_vm0, %v45_v56 }
  0x45   :  { %222 = vmatmul.mubr.f32.gmra.mrb[8].mxu0 %v28_v57  ;;  %262 = vmatmul.mubr.f32.gmra.mrb[8].mxu1 %v44_v58 }
  0x46   :  { %486 = vmatprep.mubr.msk.f32.mxu0 %vm84_vm0, %v31_v59  ;;  %494 = vmatprep.mubr.msk.f32.mxu1 %vm84_vm0, %v47_v60 }
  0x49   :  { %227 = vmatmul.mubr.f32.gmra.mrb[10].mxu0 %v30_v61  ;;  %267 = vmatmul.mubr.f32.gmra.mrb[10].mxu1 %v46_v62 }
  0x4a   :  { %487 = vmatprep.mubr.msk.f32.mxu0 %vm84_vm0, %v33_v63  ;;  %495 = vmatprep.mubr.msk.f32.mxu1 %vm84_vm0, %v49_v0 }
  0x4d   :  { %232 = vmatmul.mubr.f32.gmra.mrb[12].mxu0 %v32_v1  ;;  %272 = vmatmul.mubr.f32.gmra.mrb[12].mxu1 %v48_v2 }
  0x4e   :  { %488 = vmatprep.mubr.msk.f32.mxu0 %vm84_vm0, %v35_v3  ;;  %496 = vmatprep.mubr.msk.f32.mxu1 %vm84_vm0, %v51_v4 }
  0x51   :  { %237 = vmatmul.mubr.f32.gmra.mrb[14].mxu0 %v34_v5  ;;  %277 = vmatmul.mubr.f32.gmra.mrb[14].mxu1 %v50_v6 }
 0x108   :  { %v203_v7 = vpop.f32.mrb[0].mxu0  ;;  %v243_v8 = vpop.f32.mrb[0].mxu1 }
 0x109   :  { %v205_v9 = vpop.f32.mrb[1].mxu0  ;;  %v245_v10 = vpop.f32.mrb[1].mxu1  ;;  %v811_v25 = vadd.f32 %v479_v19, %v203_v7  ;;  %v837_v57 = vadd.f32 %v479_v19, %v243_v8 }
 0x10b   :  { %v283_v33 = vsel %vm282_vm2, %v811_v25, 0.0  ;;  %v298_v1 = vsel %vm282_vm2, %v837_v57, 0.0 }
 0x10c   :  { %v208_v11 = vpop.f32.mrb[2].mxu0  ;;  %v248_v12 = vpop.f32.mrb[2].mxu1 }
 0x10d   :  { %v210_v13 = vpop.f32.mrb[3].mxu0  ;;  %v250_v14 = vpop.f32.mrb[3].mxu1  ;;  %v809_v22 = vadd.f32 %v479_v19, %v208_v11  ;;  %v841_v62 = vadd.f32 %v479_v19, %v248_v12 }
 0x10f   :  { %v284_v29 = vsel %vm282_vm2, %v809_v22, 0.0  ;;  %v300_v4 = vsel %vm282_vm2, %v841_v62, 0.0 }
 0x110   :  { %v213_v15 = vpop.f32.mrb[4].mxu0  ;;  %v253_v16 = vpop.f32.mrb[4].mxu1  ;;  %v285_v36 = vadd.f32 %v284_v29, %v283_v33 }
 0x111   :  { %v215_v17 = vpop.f32.mrb[5].mxu0  ;;  %v255_v18 = vpop.f32.mrb[5].mxu1  ;;  %v813_v26 = vadd.f32 %v479_v19, %v213_v15  ;;  %v847_v2 = vadd.f32 %v479_v19, %v253_v16 }
 0x113   :  { %v286_v34 = vsel %vm282_vm2, %v813_v26, 0.0  ;;  %v302_v7 = vsel %vm282_vm2, %v847_v2, 0.0 }
 0x114   :  { %v218_v20 = vpop.f32.mrb[6].mxu0  ;;  %v258_v21 = vpop.f32.mrb[6].mxu1  ;;  %v287_v43 = vadd.f32 %v286_v34, %v285_v36 }
 0x115   :  { %v220_v23 = vpop.f32.mrb[7].mxu0  ;;  %v260_v24 = vpop.f32.mrb[7].mxu1  ;;  %v817_v30 = vadd.f32 %v479_v19, %v218_v20  ;;  %v851_v5 = vadd.f32 %v479_v19, %v258_v21 }
 0x117   :  { %v288_v39 = vsel %vm282_vm2, %v817_v30, 0.0  ;;  %v304_v10 = vsel %vm282_vm2, %v851_v5, 0.0 }
 0x118   :  { %v223_v27 = vpop.f32.mrb[8].mxu0  ;;  %v263_v28 = vpop.f32.mrb[8].mxu1  ;;  %v289_v45 = vadd.f32 %v288_v39, %v287_v43 }
 0x119   :  { %v225_v31 = vpop.f32.mrb[9].mxu0  ;;  %v265_v32 = vpop.f32.mrb[9].mxu1  ;;  %v823_v35 = vadd.f32 %v479_v19, %v223_v27  ;;  %v855_v8 = vadd.f32 %v479_v19, %v263_v28 }
 0x11b   :  { %v290_v44 = vsel %vm282_vm2, %v823_v35, 0.0  ;;  %v306_v13 = vsel %vm282_vm2, %v855_v8, 0.0 }
 0x11c   :  { %v228_v37 = vpop.f32.mrb[10].mxu0  ;;  %v268_v38 = vpop.f32.mrb[10].mxu1  ;;  %v291_v52 = vadd.f32 %v290_v44, %v289_v45 }
 0x11d   :  { %v827_v40 = vadd.f32 %v479_v19, %v228_v37  ;;  %v230_v41 = vpop.f32.mrb[11].mxu0  ;;  %v270_v42 = vpop.f32.mrb[11].mxu1  ;;  %v859_v11 = vadd.f32 %v479_v19, %v268_v38 }
 0x11f   :  { %v292_v48 = vsel %vm282_vm2, %v827_v40, 0.0  ;;  %v308_v17 = vsel %vm282_vm2, %v859_v11, 0.0 }
 0x120   :  { %v233_v46 = vpop.f32.mrb[12].mxu0  ;;  %v273_v47 = vpop.f32.mrb[12].mxu1  ;;  %v293_v54 = vadd.f32 %v292_v48, %v291_v52 }
 0x121   :  { %v833_v49 = vadd.f32 %v479_v19, %v233_v46  ;;  %v235_v50 = vpop.f32.mrb[13].mxu0  ;;  %v275_v51 = vpop.f32.mrb[13].mxu1  ;;  %v863_v14 = vadd.f32 %v479_v19, %v273_v47 }
 0x123   :  { %v294_v53 = vsel %vm282_vm2, %v833_v49, 0.0  ;;  %v310_v20 = vsel %vm282_vm2, %v863_v14, 0.0 }
 0x124   :  { %v238_v55 = vpop.f32.mrb[14].mxu0  ;;  %v278_v56 = vpop.f32.mrb[14].mxu1  ;;  %v295_v61 = vadd.f32 %v294_v53, %v293_v54 }
 0x125   :  { %v839_v58 = vadd.f32 %v479_v19, %v238_v55  ;;  %v240_v59 = vpop.f32.mrb[15].mxu0  ;;  %v280_v60 = vpop.f32.mrb[15].mxu1  ;;  %v865_v15 = vadd.f32 %v479_v19, %v278_v56 }
 0x127   :  { %v296_v63 = vsel %vm282_vm2, %v839_v58, 0.0  ;;  %v312_v21 = vsel %vm282_vm2, %v865_v15, 0.0 }
 0x128   :  { %v297_v0 = vadd.f32 %v296_v63, %v295_v61 }
 0x12a   :  { %v299_v3 = vadd.f32 %v298_v1, %v297_v0 }
 0x12c   :  { %v301_v6 = vadd.f32 %v300_v4, %v299_v3 }
 0x12e   :  { %v303_v9 = vadd.f32 %v302_v7, %v301_v6 }
 0x130   :  { %v305_v12 = vadd.f32 %v304_v10, %v303_v9 }
 0x132   :  { %v307_v16 = vadd.f32 %v306_v13, %v305_v12 }
 0x134   :  { %v309_v18 = vadd.f32 %v308_v17, %v307_v16 }
 0x136   :  { %v311_v23 = vadd.f32 %v310_v20, %v309_v18 }
 0x138   :  { %v313_v24 = vadd.f32 %v312_v21, %v311_v23 }
 0x13a   :  { %v314_v27 = vrot.slane %v313_v24, 4 }
 0x13c   :  { %v315_v28 = vadd.f32 %v314_v27, %v313_v24 }
 0x13e   :  { %v316_v29 = vrot.slane %v315_v28, 2 }
 0x140   :  { %v317_v31 = vadd.f32 %v316_v29, %v315_v28 }
 0x142   :  { %v318_v32 = vrot.slane %v317_v31, 1 }
 0x144   :  { %v319_v19 = vadd.f32 %v318_v32, %v317_v31 }
 0x146   :  { %v873_v33 = vmul.f32 0.0078125, %v319_v19 }
 0x148   :  { %v322_v34 = vsub.f32 %v811_v25, %v873_v33  ;;  %v323_v36 = vsub.f32 %v809_v22, %v873_v33  ;;  %v324_v37 = vsub.f32 %v813_v26, %v873_v33  ;;  %v325_v38 = vsub.f32 %v817_v30, %v873_v33 }
 0x149   :  { %v326_v42 = vsub.f32 %v823_v35, %v873_v33  ;;  %v327_v44 = vsub.f32 %v827_v40, %v873_v33  ;;  %v328_v50 = vsub.f32 %v833_v49, %v873_v33  ;;  %v329_v54 = vsub.f32 %v839_v58, %v873_v33 }
 0x14a   :  { %v338_v39 = vmul.f32 %v322_v34, %v322_v34  ;;  %v339_v41 = vmul.f32 %v323_v36, %v323_v36  ;;  %v340_v43 = vmul.f32 %v324_v37, %v324_v37  ;;  %v341_v45 = vmul.f32 %v325_v38, %v325_v38 }
 0x14b   :  { %v342_v51 = vmul.f32 %v326_v42, %v326_v42  ;;  %v343_v55 = vmul.f32 %v327_v44, %v327_v44  ;;  %v330_v60 = vsub.f32 %v837_v57, %v873_v33  ;;  %v344_v61 = vmul.f32 %v328_v50, %v328_v50 }
 0x14c   :  { %v354_v46 = vsel %vm282_vm2, %v338_v39, 0.0  ;;  %v355_v47 = vsel %vm282_vm2, %v339_v41, 0.0  ;;  %v357_v52 = vsel %vm282_vm2, %v340_v43, 0.0  ;;  %v359_v56 = vsel %vm282_vm2, %v341_v45, 0.0 }
 0x14d   :  { %v356_v48 = vadd.f32 %v355_v47, %v354_v46  ;;  %v361_v63 = vsel %vm282_vm2, %v342_v51, 0.0  ;;  %v331_v1 = vsub.f32 %v841_v62, %v873_v33  ;;  %v345_v3 = vmul.f32 %v329_v54, %v329_v54 }
 0x14e   :  { %v363_v4 = vsel %vm282_vm2, %v343_v55, 0.0  ;;  %v332_v7 = vsub.f32 %v847_v2, %v873_v33  ;;  %v346_v9 = vmul.f32 %v330_v60, %v330_v60  ;;  %v365_v10 = vsel %vm282_vm2, %v344_v61, 0.0 }
 0x14f   :  { %v358_v53 = vadd.f32 %v357_v52, %v356_v48  ;;  %v333_v13 = vsub.f32 %v851_v5, %v873_v33  ;;  %v347_v16 = vmul.f32 %v331_v1, %v331_v1  ;;  %v367_v17 = vsel %vm282_vm2, %v345_v3, 0.0  ;;  %v392_v3 = vld [vmem:[%s1013_s3] sm:$0x1] }
 0x150   :  { %v334_v20 = vsub.f32 %v855_v8, %v873_v33  ;;  %v348_v21 = vmul.f32 %v332_v7, %v332_v7  ;;  %v369_v23 = vsel %vm282_vm2, %v346_v9, 0.0  ;;  %v335_v27 = vsub.f32 %v859_v11, %v873_v33 }
 0x151   :  { %v360_v59 = vadd.f32 %v359_v56, %v358_v53  ;;  %v349_v28 = vmul.f32 %v333_v13, %v333_v13  ;;  %v371_v29 = vsel %vm282_vm2, %v347_v16, 0.0  ;;  %v336_v32 = vsub.f32 %v863_v14, %v873_v33 }
 0x152   :  { %v350_v19 = vmul.f32 %v334_v20, %v334_v20  ;;  %v373_v34 = vsel %vm282_vm2, %v348_v21, 0.0  ;;  %v337_v37 = vsub.f32 %v865_v15, %v873_v33  ;;  %v351_v38 = vmul.f32 %v335_v27, %v335_v27 }
 0x153   :  { %v362_v0 = vadd.f32 %v361_v63, %v360_v59  ;;  %v375_v39 = vsel %vm282_vm2, %v349_v28, 0.0  ;;  %v352_v42 = vmul.f32 %v336_v32, %v336_v32 }
 0x154   :  { %v377_v43 = vsel %vm282_vm2, %v350_v19, 0.0  ;;  %v353_v45 = vmul.f32 %v337_v37, %v337_v37  ;;  %v379_v46 = vsel %vm282_vm2, %v351_v38, 0.0 }
 0x155   :  { %v364_v6 = vadd.f32 %v363_v4, %v362_v0  ;;  %v381_v48 = vsel %vm282_vm2, %v352_v42, 0.0  ;;  %v397_v0 = vlaneseq }
 0x156   :  { %v383_v51 = vsel %vm282_vm2, %v353_v45, 0.0 }
 0x157   :  { %v366_v12 = vadd.f32 %v365_v10, %v364_v6  ;;  %v398_v1 = vshrl.u32 %v397_v0, 7 }
 0x159   :  { %v368_v18 = vadd.f32 %v367_v17, %v366_v12  ;;  %v399_v6 = vsub.s32 0, %v398_v1  ;;  %v418_v12 = vld [vmem:[%s1014_s4] sm:$0x1] }
 0x15b   :  { %v370_v24 = vadd.f32 %v369_v23, %v368_v18 }
 0x15d   :  { %v372_v31 = vadd.f32 %v371_v29, %v370_v24 }
 0x15f   :  { %v374_v36 = vadd.f32 %v373_v34, %v372_v31 }
 0x161   :  { %v376_v41 = vadd.f32 %v375_v39, %v374_v36 }
 0x163   :  { %v378_v44 = vadd.f32 %v377_v43, %v376_v41 }
 0x165   :  { %v380_v47 = vadd.f32 %v379_v46, %v378_v44 }
 0x167   :  { %v382_v50 = vadd.f32 %v381_v48, %v380_v47 }
 0x169   :  { %v384_v52 = vadd.f32 %v383_v51, %v382_v50 }
 0x16b   :  { %v385_v53 = vrot.slane %v384_v52, 4 }
 0x16d   :  { %v386_v54 = vadd.f32 %v385_v53, %v384_v52 }
 0x16f   :  { %v387_v55 = vrot.slane %v386_v54, 2 }
 0x171   :  { %v388_v56 = vadd.f32 %v387_v55, %v386_v54 }
 0x173   :  { %v389_v59 = vrot.slane %v388_v56, 1 }
 0x175   :  { %v390_v60 = vadd.f32 %v389_v59, %v388_v56 }
 0x177   :  { %v391_v61 = vmul.f32 0.0078125, %v390_v60 }
 0x179   :  { %v393_v63 = vadd.f32 1e-05, %v391_v61 }
 0x17b   :  { %561 = vrsqrt.f32 %v393_v63 }
 0x185   :  { %v562_v4 = vpop.eup %561 }
 0x186   :  { %v395_v7 = vmul.f32 %v562_v4, %v392_v3 }
 0x188   :  { %v400_v9 = vrot.slane %v395_v7, %v399_v6  ;;  %v419_v10 = vmul.f32 %v395_v7, %v873_v33 }
 0x18a   :  { %v402_v13 = vmul.f32 %v400_v9, %v811_v25  ;;  %v403_v16 = vmul.f32 %v400_v9, %v809_v22  ;;  %v404_v17 = vmul.f32 %v400_v9, %v813_v26  ;;  %v405_v18 = vmul.f32 %v400_v9, %v817_v30 }
 0x18b   :  { %v406_v20 = vmul.f32 %v400_v9, %v823_v35  ;;  %v420_v21 = vsub.f32 %v418_v12, %v419_v10  ;;  %v407_v23 = vmul.f32 %v400_v9, %v827_v40  ;;  %v408_v24 = vmul.f32 %v400_v9, %v833_v49 }
 0x18c   :  { %v409_v33 = vmul.f32 %v400_v9, %v839_v58  ;;  %v410_v27 = vmul.f32 %v400_v9, %v837_v57  ;;  %v411_v28 = vmul.f32 %v400_v9, %v841_v62  ;;  %v412_v25 = vmul.f32 %v400_v9, %v847_v2 }
 0x18d   :  { %v413_v22 = vmul.f32 %v400_v9, %v851_v5  ;;  %v425_v26 = vrot.slane %v420_v21, %v399_v6  ;;  %v414_v30 = vmul.f32 %v400_v9, %v855_v8  ;;  %v415_v35 = vmul.f32 %v400_v9, %v859_v11 }
 0x18e   :  { %v416_v29 = vmul.f32 %v400_v9, %v863_v14  ;;  %v417_v40 = vmul.f32 %v400_v9, %v865_v15 }
 0x18f   :  { %v427_v49 = vadd.f32 %v425_v26, %v402_v13  ;;  %v428_v31 = vadd.f32 %v425_v26, %v403_v16  ;;  %v429_v58 = vadd.f32 %v425_v26, %v404_v17  ;;  %v430_v32 = vadd.f32 %v425_v26, %v405_v18 }
 0x190   :  { %v431_v57 = vadd.f32 %v425_v26, %v406_v20  ;;  %v432_v19 = vadd.f32 %v425_v26, %v407_v23  ;;  %v433_v62 = vadd.f32 %v425_v26, %v408_v24  ;;  %v434_v34 = vadd.f32 %v425_v26, %v409_v33 }
 0x191   :  { %v435_v2 = vadd.f32 %v425_v26, %v410_v27  ;;  %v436_v36 = vadd.f32 %v425_v26, %v411_v28  ;;  %v437_v5 = vadd.f32 %v425_v26, %v412_v25  ;;  %v438_v37 = vadd.f32 %v425_v26, %v413_v22 }
 0x192   :  { %v439_v38 = vadd.f32 %v425_v26, %v414_v30  ;;  %v440_v8 = vadd.f32 %v425_v26, %v415_v35  ;;  %v441_v39 = vadd.f32 %v425_v26, %v416_v29  ;;  %v442_v11 = vadd.f32 %v425_v26, %v417_v40 }
 0x193   :  { %v443_v41 = vmax.f32 %v427_v49, 0.0  ;;  %v444_v14 = vmax.f32 %v428_v31, 0.0  ;;  %v445_v42 = vmax.f32 %v429_v58, 0.0  ;;  %v446_v15 = vmax.f32 %v430_v32, 0.0 }
 0x194   :  { %v447_v43 = vmax.f32 %v431_v57, 0.0  ;;  %v448_v44 = vmax.f32 %v432_v19, 0.0  ;;  %v449_v45 = vmax.f32 %v433_v62, 0.0  ;;  %v450_v46 = vmax.f32 %v434_v34, 0.0 }
 0x195   :  { %v451_v47 = vmax.f32 %v435_v2, 0.0  ;;  %v452_v48 = vmax.f32 %v436_v36, 0.0  ;;  %v453_v50 = vmax.f32 %v437_v5, 0.0  ;;  %v454_v51 = vmax.f32 %v438_v37, 0.0  ;;  %459 = vst.msk [vmem:[%s1015_s5] sm:$0xff] %vm282_vm2, %v443_v41  ;;  %460 = vst.msk [vmem:[%s1015_s5 + $0x8] sm:$0xff] %vm282_vm2, %v444_v14 }
 0x196   :  { %461 = vst.msk [vmem:[%s1015_s5 + $0x10] sm:$0xff] %vm282_vm2, %v445_v42  ;;  %462 = vst.msk [vmem:[%s1015_s5 + $0x18] sm:$0xff] %vm282_vm2, %v446_v15  ;;  %v455_v52 = vmax.f32 %v439_v38, 0.0  ;;  %v456_v53 = vmax.f32 %v440_v8, 0.0  ;;  %v457_v54 = vmax.f32 %v441_v39, 0.0  ;;  %v458_v55 = vmax.f32 %v442_v11, 0.0 }
 0x197   :  { %463 = vst.msk [vmem:[%s1015_s5 + $0x20] sm:$0xff] %vm282_vm2, %v447_v43  ;;  %464 = vst.msk [vmem:[%s1015_s5 + $0x28] sm:$0xff] %vm282_vm2, %v448_v44 }
 0x198   :  { %465 = vst.msk [vmem:[%s1015_s5 + $0x30] sm:$0xff] %vm282_vm2, %v449_v45  ;;  %466 = vst.msk [vmem:[%s1015_s5 + $0x38] sm:$0xff] %vm282_vm2, %v450_v46 }
 0x199   :  { %467 = vst.msk [vmem:[%s1015_s5 + $0x40] sm:$0xff] %vm282_vm2, %v451_v47  ;;  %468 = vst.msk [vmem:[%s1015_s5 + $0x48] sm:$0xff] %vm282_vm2, %v452_v48 }
 0x19a   :  { %469 = vst.msk [vmem:[%s1015_s5 + $0x50] sm:$0xff] %vm282_vm2, %v453_v50  ;;  %470 = vst.msk [vmem:[%s1015_s5 + $0x58] sm:$0xff] %vm282_vm2, %v454_v51 }
 0x19b   :  { %471 = vst.msk [vmem:[%s1015_s5 + $0x60] sm:$0xff] %vm282_vm2, %v455_v52  ;;  %472 = vst.msk [vmem:[%s1015_s5 + $0x68] sm:$0xff] %vm282_vm2, %v456_v53 }
 0x19c   :  { %473 = vst.msk [vmem:[%s1015_s5 + $0x70] sm:$0xff] %vm282_vm2, %v457_v54  ;;  %474 = vst.msk [vmem:[%s1015_s5 + $0x78] sm:$0xff] %vm282_vm2, %v458_v55 }

// kernel: forward.18
= control target key start
LH: loop header
LB: loop body
LE: loop exit
PB: predicated region body
PF: predicated region fallthrough
CT: control target
= control target key end

     0   :  { %v306_v0 = vmov 0.0|0.0   ;;  %vm60_vm0 = vcmask 588800   ;;  %v307_v39 = vmov 0.0   ;;  %vm158_vm1 = vcmask 64512   ;;  %s498_s1 = inlined_call_operand.vmem [shape: f32[200,8], index: 1, kind: input, shape index: {}]   ;;  %s499_s0 = inlined_call_operand.vmem [shape: f32[32,200], index: 0, kind: input, shape index: {}]   ;;  %s500_s2 = inlined_call_operand.vmem [shape: f32[1,8], index: 2, kind: input, shape index: {}]   ;;  %s501_s3 = inlined_call_operand.vmem [shape: f32[1,8], index: 3, kind: input, shape index: {}]   ;;  %s502_s4 = inlined_call_operand.vmem [shape: f32[1,8], index: 4, kind: input, shape index: {}]   ;;  %s503_s5 = inlined_call_operand.vmem [shape: f32[32,8], index: 5, kind: output, shape index: {}]  }
   0x1   :  { %240 = vmatprep.subr.bf16.mxu0 %v306_v0  ;;  %v28_v1 = vld [vmem:[%s498_s1] sm:$0xff]  ;;  %v29_v2 = vld [vmem:[%s498_s1 + $0x8] sm:$0xff]  ;;  %276 = vmatprep.subr.bf16.mxu1 %v306_v0  ;;  %v30_v3 = vld [vmem:[%s498_s1 + $0x10] sm:$0xff] }
   0x2   :  { %v241_v4 = vpack.c.bf16 %v29_v2, %v28_v1  ;;  %v31_v5 = vld [vmem:[%s498_s1 + $0x18] sm:$0xff]  ;;  %v32_v7 = vld [vmem:[%s498_s1 + $0x20] sm:$0xff]  ;;  %v33_v8 = vld [vmem:[%s498_s1 + $0x28] sm:$0xff] }
   0x3   :  { %v244_v6 = vpack.c.bf16 %v31_v5, %v30_v3  ;;  %v247_v9 = vpack.c.bf16 %v33_v8, %v32_v7  ;;  %v34_v10 = vld [vmem:[%s498_s1 + $0x30] sm:$0xff]  ;;  %v35_v11 = vld [vmem:[%s498_s1 + $0x38] sm:$0xff]  ;;  %v21_v12 = vld [vmem:[%s499_s0 + $0x8] sm:$0xff] }
   0x4   :  { %242 = vmatpush1.bf16.msra.mxu0 %v241_v4  ;;  %289 = vmatpush1.bf16.msra.mxu1 %v241_v4  ;;  %v25_v13 = vld [vmem:[%s499_s0 + $0x28] sm:$0xff]  ;;  %v250_v14 = vpack.c.bf16 %v35_v11, %v34_v10  ;;  %v36_v15 = vld [vmem:[%s498_s1 + $0x40] sm:$0xff]  ;;  %v38_v18 = vld [vmem:[%s498_s1 + $0x50] sm:$0xff] }
   0x5   :  { %243 = vmatprep.subr.bf16.mxu0 %v306_v0  ;;  %277 = vmatprep.subr.bf16.mxu1 %v306_v0  ;;  %v37_v16 = vld [vmem:[%s498_s1 + $0x48] sm:$0xff]  ;;  %v39_v19 = vld [vmem:[%s498_s1 + $0x58] sm:$0xff]  ;;  %v40_v21 = vld [vmem:[%s498_s1 + $0x60] sm:$0xff] }
   0x6   :  { %236 = vmatprep.mubr.msk.f32.mxu0 %vm60_vm0, %v21_v12  ;;  %238 = vmatprep.mubr.msk.f32.mxu1 %vm60_vm0, %v25_v13  ;;  %v253_v17 = vpack.c.bf16 %v37_v16, %v36_v15  ;;  %v256_v20 = vpack.c.bf16 %v39_v19, %v38_v18  ;;  %v41_v22 = vld [vmem:[%s498_s1 + $0x68] sm:$0xff]  ;;  %v42_v24 = vld [vmem:[%s498_s1 + $0x70] sm:$0xff]  ;;  %v43_v25 = vld [vmem:[%s498_s1 + $0x78] sm:$0xff] }
   0x7   :  { %v259_v23 = vpack.c.bf16 %v41_v22, %v40_v21  ;;  %v262_v26 = vpack.c.bf16 %v43_v25, %v42_v24  ;;  %v44_v27 = vld [vmem:[%s498_s1 + $0x80] sm:$0xff]  ;;  %v45_v28 = vld [vmem:[%s498_s1 + $0x88] sm:$0xff]  ;;  %v46_v30 = vld [vmem:[%s498_s1 + $0x90] sm:$0xff] }
   0x8   :  { %245 = vmatpush1.bf16.msra.mxu0 %v244_v6  ;;  %290 = vmatpush1.bf16.msra.mxu1 %v244_v6  ;;  %v265_v29 = vpack.c.bf16 %v45_v28, %v44_v27  ;;  %v47_v31 = vld [vmem:[%s498_s1 + $0x98] sm:$0xff]  ;;  %v48_v33 = vld [vmem:[%s498_s1 + $0xa0] sm:$0xff]  ;;  %v49_v34 = vld [vmem:[%s498_s1 + $0xa8] sm:$0xff] }
   0x9   :  { %246 = vmatprep.subr.bf16.mxu0 %v306_v0  ;;  %278 = vmatprep.subr.bf16.mxu1 %v306_v0  ;;  %v268_v32 = vpack.c.bf16 %v47_v31, %v46_v30  ;;  %v271_v35 = vpack.c.bf16 %v49_v34, %v48_v33  ;;  %v50_v36 = vld [vmem:[%s498_s1 + $0xb0] sm:$0xff]  ;;  %v51_v37 = vld [vmem:[%s498_s1 + $0xb8] sm:$0xff]  ;;  %v52_v40 = vld [vmem:[%s498_s1 + $0xc0] sm:$0xff]  ;;  %v201_v33 = vlaneseq }
   0xa   :  { %v274_v38 = vpack.c.bf16 %v51_v37, %v50_v36  ;;  %v20_v41 = vld [vmem:[%s499_s0] sm:$0xff]  ;;  %v23_v43 = vld [vmem:[%s499_s0 + $0x18] sm:$0xff]  ;;  %v22_v45 = vld [vmem:[%s499_s0 + $0x10] sm:$0xff] }
   0xb   :  { %v24_v42 = vld [vmem:[%s499_s0 + $0x20] sm:$0xff]  ;;  %v27_v44 = vld [vmem:[%s499_s0 + $0x38] sm:$0xff]  ;;  %v26_v46 = vld [vmem:[%s499_s0 + $0x30] sm:$0xff]  ;;  %v202_v34 = vshrl.u32 %v201_v33, 7 }
   0xc   :  { %248 = vmatpush1.bf16.msra.mxu0 %v247_v9  ;;  %291 = vmatpush1.bf16.msra.mxu1 %v247_v9  ;;  %v235_v47 = vld [vmem:[%s500_s2] ss:$0 sm:$0xff] }
   0xd   :  { %249 = vmatprep.subr.bf16.mxu0 %v306_v0  ;;  %279 = vmatprep.subr.bf16.mxu1 %v306_v0  ;;  %v203_v36 = vsub.s32 0, %v202_v34 }
  0x10   :  { %251 = vmatpush1.bf16.msra.mxu0 %v250_v14  ;;  %292 = vmatpush1.bf16.msra.mxu1 %v250_v14 }
  0x11   :  { %252 = vmatprep.subr.bf16.mxu0 %v306_v0  ;;  %280 = vmatprep.subr.bf16.mxu1 %v306_v0 }
  0x14   :  { %254 = vmatpush1.bf16.msra.mxu0 %v253_v17  ;;  %293 = vmatpush1.bf16.msra.mxu1 %v253_v17 }
  0x15   :  { %255 = vmatprep.subr.bf16.mxu0 %v306_v0  ;;  %281 = vmatprep.subr.bf16.mxu1 %v306_v0 }
  0x18   :  { %257 = vmatpush1.bf16.msra.mxu0 %v256_v20  ;;  %294 = vmatpush1.bf16.msra.mxu1 %v256_v20 }
  0x19   :  { %258 = vmatprep.subr.bf16.mxu0 %v306_v0  ;;  %282 = vmatprep.subr.bf16.mxu1 %v306_v0 }
  0x1c   :  { %260 = vmatpush1.bf16.msra.mxu0 %v259_v23  ;;  %295 = vmatpush1.bf16.msra.mxu1 %v259_v23 }
  0x1d   :  { %261 = vmatprep.subr.bf16.mxu0 %v306_v0  ;;  %283 = vmatprep.subr.bf16.mxu1 %v306_v0 }
  0x20   :  { %263 = vmatpush1.bf16.msra.mxu0 %v262_v26  ;;  %296 = vmatpush1.bf16.msra.mxu1 %v262_v26 }
  0x21   :  { %264 = vmatprep.subr.bf16.mxu0 %v306_v0  ;;  %284 = vmatprep.subr.bf16.mxu1 %v306_v0 }
  0x24   :  { %266 = vmatpush1.bf16.msra.mxu0 %v265_v29  ;;  %297 = vmatpush1.bf16.msra.mxu1 %v265_v29 }
  0x25   :  { %267 = vmatprep.subr.bf16.mxu0 %v306_v0  ;;  %285 = vmatprep.subr.bf16.mxu1 %v306_v0 }
  0x28   :  { %269 = vmatpush1.bf16.msra.mxu0 %v268_v32  ;;  %298 = vmatpush1.bf16.msra.mxu1 %v268_v32 }
  0x29   :  { %270 = vmatprep.subr.bf16.mxu0 %v306_v0  ;;  %286 = vmatprep.subr.bf16.mxu1 %v306_v0 }
  0x2c   :  { %272 = vmatpush1.bf16.msra.mxu0 %v271_v35  ;;  %299 = vmatpush1.bf16.msra.mxu1 %v271_v35  ;;  %v196_v35 = vld [vmem:[%s501_s3] sm:$0x1] }
  0x2d   :  { %273 = vmatprep.subr.bf16.mxu0 %v306_v0  ;;  %287 = vmatprep.subr.bf16.mxu1 %v306_v0 }
  0x30   :  { %275 = vmatpush1.bf16.msra.mxu0 %v274_v38  ;;  %300 = vmatpush1.bf16.msra.mxu1 %v274_v38 }
  0x31   :  { %121 = vmatprep.subr.mxu0 %v307_v39  ;;  %288 = vmatprep.subr.mxu1 %v307_v39 }
  0x34   :  { %122 = vmatpush1.msra.mxu0 %v52_v40  ;;  %301 = vmatpush1.msra.mxu1 %v52_v40  ;;  %v210_v40 = vld [vmem:[%s502_s4] sm:$0x1] }
  0x35   :  { %138 = vmatmul.mubr.f32.vlgmr.msra.gmra.mrb[0].mxu0 %v20_v41  ;;  %148 = vmatmul.mubr.f32.vlgmr.msra.gmra.mrb[0].mxu1 %v24_v42 }
  0x36   :  { %237 = vmatprep.mubr.msk.f32.mxu0 %vm60_vm0, %v23_v43  ;;  %239 = vmatprep.mubr.msk.f32.mxu1 %vm60_vm0, %v27_v44 }
  0x39   :  { %143 = vmatmul.mubr.f32.gmra.mrb[2].mxu0 %v22_v45  ;;  %153 = vmatmul.mubr.f32.gmra.mrb[2].mxu1 %v26_v46 }
 0x108   :  { %v139_v48 = vpop.f32.mrb[0].mxu0  ;;  %v149_v49 = vpop.f32.mrb[0].mxu1 }
 0x109   :  { %v141_v50 = vpop.f32.mrb[1].mxu0  ;;  %v151_v51 = vpop.f32.mrb[1].mxu1  ;;  %v140_v52 = vadd.f32 %v235_v47, %v139_v48  ;;  %v150_v55 = vadd.f32 %v235_v47, %v149_v49 }
 0x10b   :  { %v159_v60 = vsel %vm158_vm1, %v140_v52, 0.0  ;;  %v162_v63 = vsel %vm158_vm1, %v150_v55, 0.0 }
 0x10c   :  { %v144_v53 = vpop.f32.mrb[2].mxu0  ;;  %v154_v54 = vpop.f32.mrb[2].mxu1 }
 0x10d   :  { %v145_v56 = vadd.f32 %v235_v47, %v144_v53  ;;  %v146_v57 = vpop.f32.mrb[3].mxu0  ;;  %v155_v58 = vadd.f32 %v235_v47, %v154_v54  ;;  %v156_v59 = vpop.f32.mrb[3].mxu1 }
 0x10f   :  { %v160_v61 = vsel %vm158_vm1, %v145_v56, 0.0  ;;  %v164_v0 = vsel %vm158_vm1, %v155_v58, 0.0 }
 0x110   :  { %v161_v62 = vadd.f32 %v160_v61, %v159_v60 }
 0x112   :  { %v163_v1 = vadd.f32 %v162_v63, %v161_v62 }
 0x114   :  { %v165_v2 = vadd.f32 %v164_v0, %v163_v1 }
 0x116   :  { %v166_v3 = vrot.slane %v165_v2, 4 }
 0x118   :  { %v167_v4 = vadd.f32 %v166_v3, %v165_v2 }
 0x11a   :  { %v168_v5 = vrot.slane %v167_v4, 2 }
 0x11c   :  { %v169_v6 = vadd.f32 %v168_v5, %v167_v4 }
 0x11e   :  { %v170_v7 = vrot.slane %v169_v6, 1 }
 0x120   :  { %v171_v8 = vadd.f32 %v170_v7, %v169_v6 }
 0x122   :  { %v173_v9 = vmul.f32 0.03125, %v171_v8 }
 0x124   :  { %v174_v10 = vsub.f32 %v140_v52, %v173_v9  ;;  %v175_v11 = vsub.f32 %v145_v56, %v173_v9  ;;  %v176_v12 = vsub.f32 %v150_v55, %v173_v9  ;;  %v177_v13 = vsub.f32 %v155_v58, %v173_v9 }
 0x126   :  { %v178_v14 = vmul.f32 %v174_v10, %v174_v10  ;;  %v179_v15 = vmul.f32 %v175_v11, %v175_v11  ;;  %v180_v16 = vmul.f32 %v176_v12, %v176_v12  ;;  %v181_v17 = vmul.f32 %v177_v13, %v177_v13 }
 0x128   :  { %v182_v18 = vsel %vm158_vm1, %v178_v14, 0.0  ;;  %v183_v19 = vsel %vm158_vm1, %v179_v15, 0.0  ;;  %v185_v21 = vsel %vm158_vm1, %v180_v16, 0.0  ;;  %v187_v23 = vsel %vm158_vm1, %v181_v17, 0.0 }
 0x129   :  { %v184_v20 = vadd.f32 %v183_v19, %v182_v18 }
 0x12b   :  { %v186_v22 = vadd.f32 %v185_v21, %v184_v20 }
 0x12d   :  { %v188_v24 = vadd.f32 %v187_v23, %v186_v22 }
 0x12f   :  { %v189_v25 = vrot.slane %v188_v24, 4 }
 0x131   :  { %v190_v26 = vadd.f32 %v189_v25, %v188_v24 }
 0x133   :  { %v191_v27 = vrot.slane %v190_v26, 2 }
 0x135   :  { %v192_v28 = vadd.f32 %v191_v27, %v190_v26 }
 0x137   :  { %v193_v29 = vrot.slane %v192_v28, 1 }
 0x139   :  { %v194_v30 = vadd.f32 %v193_v29, %v192_v28 }
 0x13b   :  { %v195_v31 = vmul.f32 0.03125, %v194_v30 }
 0x13d   :  { %v197_v32 = vadd.f32 1e-05, %v195_v31 }
 0x13f   :  { %304 = vrsqrt.f32 %v197_v32 }
 0x149   :  { %v305_v37 = vpop.eup %304 }
 0x14a   :  { %v199_v38 = vmul.f32 %v305_v37, %v196_v35 }
 0x14c   :  { %v204_v39 = vrot.slane %v199_v38, %v203_v36  ;;  %v211_v41 = vmul.f32 %v199_v38, %v173_v9 }
 0x14e   :  { %v207_v42 = vmul.f32 %v204_v39, %v145_v56  ;;  %v208_v43 = vmul.f32 %v204_v39, %v150_v55  ;;  %v209_v44 = vmul.f32 %v204_v39, %v155_v58  ;;  %v212_v45 = vsub.f32 %v210_v40, %v211_v41 }
 0x14f   :  { %v206_v46 = vmul.f32 %v204_v39, %v140_v52 }
 0x150   :  { %v217_v47 = vrot.slane %v212_v45, %v203_v36 }
 0x152   :  { %v219_v48 = vadd.f32 %v217_v47, %v206_v46  ;;  %v220_v49 = vadd.f32 %v217_v47, %v207_v42  ;;  %v221_v50 = vadd.f32 %v217_v47, %v208_v43  ;;  %v222_v51 = vadd.f32 %v217_v47, %v209_v44 }
 0x154   :  { %v223_v53 = vmax.f32 %v219_v48, 0.0  ;;  %v224_v54 = vmax.f32 %v220_v49, 0.0  ;;  %v225_v57 = vmax.f32 %v221_v50, 0.0  ;;  %v226_v59 = vmax.f32 %v222_v51, 0.0 }
 0x156   :  { %227 = vst.msk [vmem:[%s503_s5] sm:$0xff] %vm158_vm1, %v223_v53  ;;  %228 = vst.msk [vmem:[%s503_s5 + $0x8] sm:$0xff] %vm158_vm1, %v224_v54 }
 0x157   :  { %229 = vst.msk [vmem:[%s503_s5 + $0x10] sm:$0xff] %vm158_vm1, %v225_v57  ;;  %230 = vst.msk [vmem:[%s503_s5 + $0x18] sm:$0xff] %vm158_vm1, %v226_v59 }

// kernel: forward.19
= control target key start
LH: loop header
LB: loop body
LE: loop exit
PB: predicated region body
PF: predicated region fallthrough
CT: control target
= control target key end

     0   :  { %v217_v0 = vmov 0.0|0.0   ;;  %vm54_vm0 = vcmask 588800   ;;  %v218_v38 = vmov 0.0   ;;  %vm128_vm1 = vcmask 64512   ;;  %s357_s1 = inlined_call_operand.vmem [shape: f32[200,8], index: 1, kind: input, shape index: {}]   ;;  %s358_s0 = inlined_call_operand.vmem [shape: f32[8,200], index: 0, kind: input, shape index: {}]   ;;  %s359_s2 = inlined_call_operand.vmem [shape: f32[1,8], index: 2, kind: input, shape index: {}]   ;;  %s360_s3 = inlined_call_operand.vmem [shape: f32[1,8], index: 3, kind: input, shape index: {}]   ;;  %s361_s4 = inlined_call_operand.vmem [shape: f32[1,8], index: 4, kind: input, shape index: {}]   ;;  %s362_s5 = inlined_call_operand.vmem [shape: f32[8,8], index: 5, kind: output, shape index: {}]  }
   0x1   :  { %177 = vmatprep.subr.bf16.mxu0 %v217_v0  ;;  %v22_v1 = vld [vmem:[%s357_s1] sm:$0xff]  ;;  %v23_v2 = vld [vmem:[%s357_s1 + $0x8] sm:$0xff]  ;;  %v24_v3 = vld [vmem:[%s357_s1 + $0x10] sm:$0xff] }
   0x2   :  { %v178_v4 = vpack.c.bf16 %v23_v2, %v22_v1  ;;  %v25_v5 = vld [vmem:[%s357_s1 + $0x18] sm:$0xff]  ;;  %v26_v7 = vld [vmem:[%s357_s1 + $0x20] sm:$0xff]  ;;  %v27_v8 = vld [vmem:[%s357_s1 + $0x28] sm:$0xff] }
   0x3   :  { %v181_v6 = vpack.c.bf16 %v25_v5, %v24_v3  ;;  %v184_v9 = vpack.c.bf16 %v27_v8, %v26_v7  ;;  %v28_v10 = vld [vmem:[%s357_s1 + $0x30] sm:$0xff]  ;;  %v29_v11 = vld [vmem:[%s357_s1 + $0x38] sm:$0xff]  ;;  %v21_v12 = vld [vmem:[%s358_s0 + $0x8] sm:$0xff] }
   0x4   :  { %179 = vmatpush1.bf16.msra.mxu0 %v178_v4  ;;  %176 = vmatprep.mubr.msk.f32.mxu0 %vm54_vm0, %v21_v12  ;;  %v187_v13 = vpack.c.bf16 %v29_v11, %v28_v10  ;;  %v30_v14 = vld [vmem:[%s357_s1 + $0x40] sm:$0xff]  ;;  %v31_v15 = vld [vmem:[%s357_s1 + $0x48] sm:$0xff]  ;;  %v32_v17 = vld [vmem:[%s357_s1 + $0x50] sm:$0xff] }
   0x5   :  { %180 = vmatprep.subr.bf16.mxu0 %v217_v0  ;;  %v190_v16 = vpack.c.bf16 %v31_v15, %v30_v14  ;;  %v33_v18 = vld [vmem:[%s357_s1 + $0x58] sm:$0xff]  ;;  %v34_v20 = vld [vmem:[%s357_s1 + $0x60] sm:$0xff]  ;;  %v35_v21 = vld [vmem:[%s357_s1 + $0x68] sm:$0xff] }
   0x6   :  { %v193_v19 = vpack.c.bf16 %v33_v18, %v32_v17  ;;  %v196_v22 = vpack.c.bf16 %v35_v21, %v34_v20  ;;  %v36_v23 = vld [vmem:[%s357_s1 + $0x70] sm:$0xff]  ;;  %v37_v24 = vld [vmem:[%s357_s1 + $0x78] sm:$0xff]  ;;  %v38_v26 = vld [vmem:[%s357_s1 + $0x80] sm:$0xff] }
   0x7   :  { %v199_v25 = vpack.c.bf16 %v37_v24, %v36_v23  ;;  %v39_v27 = vld [vmem:[%s357_s1 + $0x88] sm:$0xff]  ;;  %v40_v29 = vld [vmem:[%s357_s1 + $0x90] sm:$0xff]  ;;  %v41_v30 = vld [vmem:[%s357_s1 + $0x98] sm:$0xff] }
   0x8   :  { %182 = vmatpush1.bf16.msra.mxu0 %v181_v6  ;;  %v202_v28 = vpack.c.bf16 %v39_v27, %v38_v26  ;;  %v205_v31 = vpack.c.bf16 %v41_v30, %v40_v29  ;;  %v42_v32 = vld [vmem:[%s357_s1 + $0xa0] sm:$0xff]  ;;  %v43_v33 = vld [vmem:[%s357_s1 + $0xa8] sm:$0xff]  ;;  %v44_v35 = vld [vmem:[%s357_s1 + $0xb0] sm:$0xff] }
   0x9   :  { %183 = vmatprep.subr.bf16.mxu0 %v217_v0  ;;  %v208_v34 = vpack.c.bf16 %v43_v33, %v42_v32  ;;  %v45_v36 = vld [vmem:[%s357_s1 + $0xb8] sm:$0xff]  ;;  %v46_v39 = vld [vmem:[%s357_s1 + $0xc0] sm:$0xff] }
   0xa   :  { %v211_v37 = vpack.c.bf16 %v45_v36, %v44_v35  ;;  %v20_v40 = vld [vmem:[%s358_s0] sm:$0xff] }
   0xb   :  { %v175_v41 = vld [vmem:[%s359_s2] ss:$0 sm:$0xff] }
   0xc   :  { %185 = vmatpush1.bf16.msra.mxu0 %v184_v9  ;;  %v148_v2 = vld [vmem:[%s360_s3] sm:$0x1] }
   0xd   :  { %186 = vmatprep.subr.bf16.mxu0 %v217_v0  ;;  %v159_v6 = vld [vmem:[%s361_s4] sm:$0x1] }
  0x10   :  { %188 = vmatpush1.bf16.msra.mxu0 %v187_v13 }
  0x11   :  { %189 = vmatprep.subr.bf16.mxu0 %v217_v0 }
  0x14   :  { %191 = vmatpush1.bf16.msra.mxu0 %v190_v16 }
  0x15   :  { %192 = vmatprep.subr.bf16.mxu0 %v217_v0 }
  0x18   :  { %194 = vmatpush1.bf16.msra.mxu0 %v193_v19 }
  0x19   :  { %195 = vmatprep.subr.bf16.mxu0 %v217_v0 }
  0x1c   :  { %197 = vmatpush1.bf16.msra.mxu0 %v196_v22 }
  0x1d   :  { %198 = vmatprep.subr.bf16.mxu0 %v217_v0 }
  0x20   :  { %200 = vmatpush1.bf16.msra.mxu0 %v199_v25 }
  0x21   :  { %201 = vmatprep.subr.bf16.mxu0 %v217_v0 }
  0x24   :  { %203 = vmatpush1.bf16.msra.mxu0 %v202_v28 }
  0x25   :  { %204 = vmatprep.subr.bf16.mxu0 %v217_v0 }
  0x28   :  { %206 = vmatpush1.bf16.msra.mxu0 %v205_v31 }
  0x29   :  { %207 = vmatprep.subr.bf16.mxu0 %v217_v0 }
  0x2c   :  { %209 = vmatpush1.bf16.msra.mxu0 %v208_v34 }
  0x2d   :  { %210 = vmatprep.subr.bf16.mxu0 %v217_v0  ;;  %v153_v0 = vlaneseq }
  0x2f   :  { %v154_v1 = vshrl.u32 %v153_v0, 7 }
  0x30   :  { %212 = vmatpush1.bf16.msra.mxu0 %v211_v37 }
  0x31   :  { %106 = vmatprep.subr.mxu0 %v218_v38  ;;  %v155_v3 = vsub.s32 0, %v154_v1 }
  0x34   :  { %107 = vmatpush1.msra.mxu0 %v46_v39 }
  0x35   :  { %123 = vmatmul.mubr.f32.vlgmr.msra.gmra.mrb[0].mxu0 %v20_v40 }
 0x108   :  { %v124_v42 = vpop.f32.mrb[0].mxu0 }
 0x109   :  { %v125_v43 = vadd.f32 %v175_v41, %v124_v42  ;;  %v126_v44 = vpop.f32.mrb[1].mxu0 }
 0x10b   :  { %v129_v45 = vsel %vm128_vm1, %v125_v43, 0.0 }
 0x10c   :  { %v130_v46 = vrot.slane %v129_v45, 4 }
 0x10e   :  { %v131_v47 = vadd.f32 %v130_v46, %v129_v45 }
 0x110   :  { %v132_v48 = vrot.slane %v131_v47, 2 }
 0x112   :  { %v133_v49 = vadd.f32 %v132_v48, %v131_v47 }
 0x114   :  { %v134_v50 = vrot.slane %v133_v49, 1 }
 0x116   :  { %v135_v51 = vadd.f32 %v134_v50, %v133_v49 }
 0x118   :  { %v137_v52 = vmul.f32 0.125, %v135_v51 }
 0x11a   :  { %v138_v53 = vsub.f32 %v125_v43, %v137_v52 }
 0x11c   :  { %v139_v54 = vmul.f32 %v138_v53, %v138_v53 }
 0x11e   :  { %v140_v55 = vsel %vm128_vm1, %v139_v54, 0.0 }
 0x11f   :  { %v141_v56 = vrot.slane %v140_v55, 4 }
 0x121   :  { %v142_v57 = vadd.f32 %v141_v56, %v140_v55 }
 0x123   :  { %v143_v58 = vrot.slane %v142_v57, 2 }
 0x125   :  { %v144_v59 = vadd.f32 %v143_v58, %v142_v57 }
 0x127   :  { %v145_v60 = vrot.slane %v144_v59, 1 }
 0x129   :  { %v146_v61 = vadd.f32 %v145_v60, %v144_v59 }
 0x12b   :  { %v147_v62 = vmul.f32 0.125, %v146_v61 }
 0x12d   :  { %v149_v63 = vadd.f32 1e-05, %v147_v62 }
 0x12f   :  { %215 = vrsqrt.f32 %v149_v63 }
 0x139   :  { %v216_v4 = vpop.eup %215 }
 0x13a   :  { %v151_v5 = vmul.f32 %v216_v4, %v148_v2 }
 0x13c   :  { %v156_v7 = vrot.slane %v151_v5, %v155_v3  ;;  %v160_v8 = vmul.f32 %v151_v5, %v137_v52 }
 0x13e   :  { %v161_v9 = vsub.f32 %v159_v6, %v160_v8  ;;  %v158_v10 = vmul.f32 %v156_v7, %v125_v43 }
 0x140   :  { %v166_v11 = vrot.slane %v161_v9, %v155_v3 }
 0x142   :  { %v168_v12 = vadd.f32 %v166_v11, %v158_v10 }
 0x144   :  { %v169_v13 = vmax.f32 %v168_v12, 0.0 }
 0x146   :  { %170 = vst.msk [vmem:[%s362_s5] sm:$0xff] %vm128_vm1, %v169_v13 }

// kernel: forward.20
= control target key start
LH: loop header
LB: loop body
LE: loop exit
PB: predicated region body
PF: predicated region fallthrough
CT: control target
= control target key end

     0   :  { %vm132_vm0 = vcmask 64512   ;;  %s441_s1 = inlined_call_operand.vmem [shape: f32[128,8], index: 1, kind: input, shape index: {}]   ;;  %s442_s0 = inlined_call_operand.vmem [shape: f32[32,128], index: 0, kind: input, shape index: {}]   ;;  %s443_s2 = inlined_call_operand.vmem [shape: f32[1,8], index: 2, kind: input, shape index: {}]   ;;  %s444_s3 = inlined_call_operand.vmem [shape: f32[1,8], index: 3, kind: input, shape index: {}]   ;;  %s445_s4 = inlined_call_operand.vmem [shape: f32[1,8], index: 4, kind: input, shape index: {}]   ;;  %s446_s5 = inlined_call_operand.vmem [shape: f32[32,8], index: 5, kind: output, shape index: {}]  }
   0x1   :  { %v24_v0 = vld [vmem:[%s441_s1] sm:$0xff]  ;;  %v25_v1 = vld [vmem:[%s441_s1 + $0x8] sm:$0xff]  ;;  %v26_v2 = vld [vmem:[%s441_s1 + $0x10] sm:$0xff] }
   0x2   :  { %v268_v3 = vpack.c.bf16 %v25_v1, %v24_v0  ;;  %v27_v4 = vld [vmem:[%s441_s1 + $0x18] sm:$0xff]  ;;  %v28_v6 = vld [vmem:[%s441_s1 + $0x20] sm:$0xff]  ;;  %v29_v7 = vld [vmem:[%s441_s1 + $0x28] sm:$0xff] }
   0x3   :  { %v272_v5 = vpack.c.bf16 %v27_v4, %v26_v2  ;;  %v276_v8 = vpack.c.bf16 %v29_v7, %v28_v6  ;;  %v20_v9 = vld [vmem:[%s442_s0] sm:$0xff]  ;;  %v30_v10 = vld [vmem:[%s441_s1 + $0x30] sm:$0xff]  ;;  %v31_v11 = vld [vmem:[%s441_s1 + $0x38] sm:$0xff] }
   0x4   :  { %269 = vmatprep.subr.bf16.mxu0 %v268_v3  ;;  %300 = vmatprep.subr.bf16.mxu1 %v268_v3  ;;  %v22_v12 = vld [vmem:[%s442_s0 + $0x10] sm:$0xff]  ;;  %v280_v13 = vpack.c.bf16 %v31_v11, %v30_v10  ;;  %v32_v14 = vld [vmem:[%s441_s1 + $0x40] sm:$0xff]  ;;  %v33_v15 = vld [vmem:[%s441_s1 + $0x48] sm:$0xff]  ;;  %v175_v10 = vlaneseq }
   0x5   :  { %271 = vmatpush3.bf16.msra.mxu0 %v268_v3  ;;  %308 = vmatpush3.bf16.msra.mxu1 %v268_v3  ;;  %v284_v16 = vpack.c.bf16 %v33_v15, %v32_v14  ;;  %v34_v17 = vld [vmem:[%s441_s1 + $0x50] sm:$0xff]  ;;  %v35_v18 = vld [vmem:[%s441_s1 + $0x58] sm:$0xff]  ;;  %v36_v20 = vld [vmem:[%s441_s1 + $0x60] sm:$0xff] }
   0x6   :  { %273 = vmatprep.subr.bf16.mxu0 %v272_v5  ;;  %301 = vmatprep.subr.bf16.mxu1 %v272_v5  ;;  %v288_v19 = vpack.c.bf16 %v35_v18, %v34_v17  ;;  %v37_v21 = vld [vmem:[%s441_s1 + $0x68] sm:$0xff]  ;;  %v38_v23 = vld [vmem:[%s441_s1 + $0x70] sm:$0xff]  ;;  %v39_v24 = vld [vmem:[%s441_s1 + $0x78] sm:$0xff]  ;;  %v176_v11 = vshrl.u32 %v175_v10, 7 }
   0x7   :  { %262 = vmatprep.mubr.f32.mxu0 %v20_v9  ;;  %265 = vmatprep.mubr.f32.mxu1 %v22_v12  ;;  %v292_v22 = vpack.c.bf16 %v37_v21, %v36_v20  ;;  %v296_v25 = vpack.c.bf16 %v39_v24, %v38_v23  ;;  %v21_v26 = vld [vmem:[%s442_s0 + $0x8] sm:$0xff]  ;;  %v23_v27 = vld [vmem:[%s442_s0 + $0x18] sm:$0xff]  ;;  %v209_v28 = vld [vmem:[%s443_s2] ss:$0 sm:$0xff] }
   0x8   :  { %v170_v12 = vld [vmem:[%s444_s3] sm:$0x1] }
   0x9   :  { %275 = vmatpush3.bf16.msra.mxu0 %v272_v5  ;;  %309 = vmatpush3.bf16.msra.mxu1 %v272_v5  ;;  %v184_v17 = vld [vmem:[%s445_s4] sm:$0x1] }
   0xa   :  { %277 = vmatprep.subr.bf16.mxu0 %v276_v8  ;;  %302 = vmatprep.subr.bf16.mxu1 %v276_v8 }
   0xd   :  { %279 = vmatpush3.bf16.msra.mxu0 %v276_v8  ;;  %310 = vmatpush3.bf16.msra.mxu1 %v276_v8 }
   0xe   :  { %281 = vmatprep.subr.bf16.mxu0 %v280_v13  ;;  %303 = vmatprep.subr.bf16.mxu1 %v280_v13 }
  0x11   :  { %283 = vmatpush3.bf16.msra.mxu0 %v280_v13  ;;  %311 = vmatpush3.bf16.msra.mxu1 %v280_v13  ;;  %v177_v13 = vsub.s32 0, %v176_v11 }
  0x12   :  { %285 = vmatprep.subr.bf16.mxu0 %v284_v16  ;;  %304 = vmatprep.subr.bf16.mxu1 %v284_v16 }
  0x15   :  { %287 = vmatpush3.bf16.msra.mxu0 %v284_v16  ;;  %312 = vmatpush3.bf16.msra.mxu1 %v284_v16 }
  0x16   :  { %289 = vmatprep.subr.bf16.mxu0 %v288_v19  ;;  %305 = vmatprep.subr.bf16.mxu1 %v288_v19 }
  0x19   :  { %291 = vmatpush3.bf16.msra.mxu0 %v288_v19  ;;  %313 = vmatpush3.bf16.msra.mxu1 %v288_v19 }
  0x1a   :  { %293 = vmatprep.subr.bf16.mxu0 %v292_v22  ;;  %306 = vmatprep.subr.bf16.mxu1 %v292_v22 }
  0x1d   :  { %295 = vmatpush3.bf16.msra.mxu0 %v292_v22  ;;  %314 = vmatpush3.bf16.msra.mxu1 %v292_v22 }
  0x1e   :  { %297 = vmatprep.subr.bf16.mxu0 %v296_v25  ;;  %307 = vmatprep.subr.bf16.mxu1 %v296_v25 }
  0x21   :  { %299 = vmatpush3.bf16.msra.mxu0 %v296_v25  ;;  %315 = vmatpush3.bf16.msra.mxu1 %v296_v25 }
  0x24   :  { %263 = vmatmul.mubr.f32.vlgmr.msra.gmra.mrb[0].mxu0 %v21_v26  ;;  %266 = vmatmul.mubr.f32.vlgmr.msra.gmra.mrb[0].mxu1 %v23_v27 }
  0xf7   :  { %v264_v29 = vpop.f32.mrb[0].mxu0  ;;  %v267_v30 = vpop.f32.mrb[0].mxu1 }
  0xf8   :  { %v119_v31 = vadd.f32 %v264_v29, %v209_v28  ;;  %v113_v32 = vpop.f32.mrb[1].mxu0  ;;  %v123_v33 = vpop.f32.mrb[1].mxu1  ;;  %v129_v38 = vadd.f32 %v267_v30, %v209_v28 }
  0xf9   :  { %v114_v34 = vadd.f32 %v209_v28, %v113_v32  ;;  %v124_v35 = vadd.f32 %v209_v28, %v123_v33 }
  0xfa   :  { %v134_v36 = vsel %vm132_vm0, %v119_v31, 0.0  ;;  %v138_v42 = vsel %vm132_vm0, %v129_v38, 0.0 }
  0xfb   :  { %v133_v37 = vsel %vm132_vm0, %v114_v34, 0.0  ;;  %v136_v39 = vsel %vm132_vm0, %v124_v35, 0.0 }
  0xfc   :  { %v135_v40 = vadd.f32 %v134_v36, %v133_v37 }
  0xfe   :  { %v137_v41 = vadd.f32 %v136_v39, %v135_v40 }
 0x100   :  { %v139_v43 = vadd.f32 %v138_v42, %v137_v41 }
 0x102   :  { %v140_v44 = vrot.slane %v139_v43, 4 }
 0x104   :  { %v141_v45 = vadd.f32 %v140_v44, %v139_v43 }
 0x106   :  { %v142_v46 = vrot.slane %v141_v45, 2 }
 0x108   :  { %v143_v47 = vadd.f32 %v142_v46, %v141_v45 }
 0x10a   :  { %v144_v48 = vrot.slane %v143_v47, 1 }
 0x10c   :  { %v145_v49 = vadd.f32 %v144_v48, %v143_v47 }
 0x10e   :  { %v147_v50 = vmul.f32 0.03125, %v145_v49 }
 0x110   :  { %v148_v51 = vsub.f32 %v114_v34, %v147_v50  ;;  %v149_v52 = vsub.f32 %v119_v31, %v147_v50  ;;  %v150_v53 = vsub.f32 %v124_v35, %v147_v50  ;;  %v151_v54 = vsub.f32 %v129_v38, %v147_v50 }
 0x112   :  { %v152_v55 = vmul.f32 %v148_v51, %v148_v51  ;;  %v153_v56 = vmul.f32 %v149_v52, %v149_v52  ;;  %v154_v57 = vmul.f32 %v150_v53, %v150_v53  ;;  %v155_v58 = vmul.f32 %v151_v54, %v151_v54 }
 0x114   :  { %v156_v59 = vsel %vm132_vm0, %v152_v55, 0.0  ;;  %v157_v60 = vsel %vm132_vm0, %v153_v56, 0.0  ;;  %v159_v62 = vsel %vm132_vm0, %v154_v57, 0.0  ;;  %v161_v0 = vsel %vm132_vm0, %v155_v58, 0.0 }
 0x115   :  { %v158_v61 = vadd.f32 %v157_v60, %v156_v59 }
 0x117   :  { %v160_v63 = vadd.f32 %v159_v62, %v158_v61 }
 0x119   :  { %v162_v1 = vadd.f32 %v161_v0, %v160_v63 }
 0x11b   :  { %v163_v2 = vrot.slane %v162_v1, 4 }
 0x11d   :  { %v164_v3 = vadd.f32 %v163_v2, %v162_v1 }
 0x11f   :  { %v165_v4 = vrot.slane %v164_v3, 2 }
 0x121   :  { %v166_v5 = vadd.f32 %v165_v4, %v164_v3 }
 0x123   :  { %v167_v6 = vrot.slane %v166_v5, 1 }
 0x125   :  { %v168_v7 = vadd.f32 %v167_v6, %v166_v5 }
 0x127   :  { %v169_v8 = vmul.f32 0.03125, %v168_v7 }
 0x129   :  { %v171_v9 = vadd.f32 1e-05, %v169_v8 }
 0x12b   :  { %316 = vrsqrt.f32 %v171_v9 }
 0x135   :  { %v317_v14 = vpop.eup %316 }
 0x136   :  { %v173_v15 = vmul.f32 %v317_v14, %v170_v12 }
 0x138   :  { %v178_v16 = vrot.slane %v173_v15, %v177_v13  ;;  %v185_v18 = vmul.f32 %v173_v15, %v147_v50 }
 0x13a   :  { %v180_v19 = vmul.f32 %v178_v16, %v114_v34  ;;  %v181_v20 = vmul.f32 %v178_v16, %v119_v31  ;;  %v182_v21 = vmul.f32 %v178_v16, %v124_v35  ;;  %v183_v22 = vmul.f32 %v178_v16, %v129_v38 }
 0x13b   :  { %v186_v23 = vsub.f32 %v184_v17, %v185_v18 }
 0x13d   :  { %v191_v24 = vrot.slane %v186_v23, %v177_v13 }
 0x13f   :  { %v193_v25 = vadd.f32 %v191_v24, %v180_v19  ;;  %v194_v26 = vadd.f32 %v191_v24, %v181_v20  ;;  %v195_v27 = vadd.f32 %v191_v24, %v182_v21  ;;  %v196_v28 = vadd.f32 %v191_v24, %v183_v22 }
 0x141   :  { %v197_v29 = vmax.f32 %v193_v25, 0.0  ;;  %v198_v30 = vmax.f32 %v194_v26, 0.0  ;;  %v199_v32 = vmax.f32 %v195_v27, 0.0  ;;  %v200_v33 = vmax.f32 %v196_v28, 0.0 }
 0x143   :  { %201 = vst.msk [vmem:[%s446_s5] sm:$0xff] %vm132_vm0, %v197_v29  ;;  %202 = vst.msk [vmem:[%s446_s5 + $0x8] sm:$0xff] %vm132_vm0, %v198_v30 }
 0x144   :  { %203 = vst.msk [vmem:[%s446_s5 + $0x10] sm:$0xff] %vm132_vm0, %v199_v32  ;;  %204 = vst.msk [vmem:[%s446_s5 + $0x18] sm:$0xff] %vm132_vm0, %v200_v33 }

// kernel: forward.21
= control target key start
LH: loop header
LB: loop body
LE: loop exit
PB: predicated region body
PF: predicated region fallthrough
CT: control target
= control target key end

     0   :  { %vm204_vm0 = vcmask 64512   ;;  %s870_s1 = inlined_call_operand.vmem [shape: f32[128,8], index: 1, kind: input, shape index: {}]   ;;  %s871_s0 = inlined_call_operand.vmem [shape: f32[128,128], index: 0, kind: input, shape index: {}]   ;;  %s872_s2 = inlined_call_operand.vmem [shape: f32[1,8], index: 2, kind: input, shape index: {}]   ;;  %s873_s3 = inlined_call_operand.vmem [shape: f32[1,8], index: 3, kind: input, shape index: {}]   ;;  %s874_s4 = inlined_call_operand.vmem [shape: f32[1,8], index: 4, kind: input, shape index: {}]   ;;  %s875_s5 = inlined_call_operand.vmem [shape: f32[128,8], index: 5, kind: output, shape index: {}]  }
   0x1   :  { %v36_v0 = vld [vmem:[%s870_s1] sm:$0xff]  ;;  %v37_v1 = vld [vmem:[%s870_s1 + $0x8] sm:$0xff]  ;;  %v38_v2 = vld [vmem:[%s870_s1 + $0x10] sm:$0xff] }
   0x2   :  { %v490_v3 = vpack.c.bf16 %v37_v1, %v36_v0  ;;  %v39_v4 = vld [vmem:[%s870_s1 + $0x18] sm:$0xff]  ;;  %v40_v6 = vld [vmem:[%s870_s1 + $0x20] sm:$0xff]  ;;  %v41_v7 = vld [vmem:[%s870_s1 + $0x28] sm:$0xff] }
   0x3   :  { %v494_v5 = vpack.c.bf16 %v39_v4, %v38_v2  ;;  %v498_v8 = vpack.c.bf16 %v41_v7, %v40_v6  ;;  %v20_v9 = vld [vmem:[%s871_s0] sm:$0xff]  ;;  %v42_v10 = vld [vmem:[%s870_s1 + $0x30] sm:$0xff]  ;;  %v43_v11 = vld [vmem:[%s870_s1 + $0x38] sm:$0xff] }
   0x4   :  { %491 = vmatprep.subr.bf16.mxu0 %v490_v3  ;;  %522 = vmatprep.subr.bf16.mxu1 %v490_v3  ;;  %v28_v12 = vld [vmem:[%s871_s0 + $0x40] sm:$0xff]  ;;  %v502_v13 = vpack.c.bf16 %v43_v11, %v42_v10  ;;  %v45_v15 = vld [vmem:[%s870_s1 + $0x48] sm:$0xff]  ;;  %v46_v17 = vld [vmem:[%s870_s1 + $0x50] sm:$0xff] }
   0x5   :  { %493 = vmatpush3.bf16.msra.mxu0 %v490_v3  ;;  %530 = vmatpush3.bf16.msra.mxu1 %v490_v3  ;;  %v44_v14 = vld [vmem:[%s870_s1 + $0x40] sm:$0xff]  ;;  %v47_v18 = vld [vmem:[%s870_s1 + $0x58] sm:$0xff]  ;;  %v49_v21 = vld [vmem:[%s870_s1 + $0x68] sm:$0xff] }
   0x6   :  { %495 = vmatprep.subr.bf16.mxu0 %v494_v5  ;;  %523 = vmatprep.subr.bf16.mxu1 %v494_v5  ;;  %v506_v16 = vpack.c.bf16 %v45_v15, %v44_v14  ;;  %v510_v19 = vpack.c.bf16 %v47_v18, %v46_v17  ;;  %v48_v20 = vld [vmem:[%s870_s1 + $0x60] sm:$0xff]  ;;  %v50_v23 = vld [vmem:[%s870_s1 + $0x70] sm:$0xff]  ;;  %v51_v24 = vld [vmem:[%s870_s1 + $0x78] sm:$0xff] }
   0x7   :  { %466 = vmatprep.mubr.f32.mxu0 %v20_v9  ;;  %478 = vmatprep.mubr.f32.mxu1 %v28_v12  ;;  %v514_v22 = vpack.c.bf16 %v49_v21, %v48_v20  ;;  %v518_v25 = vpack.c.bf16 %v51_v24, %v50_v23  ;;  %v21_v26 = vld [vmem:[%s871_s0 + $0x8] sm:$0xff]  ;;  %v22_v28 = vld [vmem:[%s871_s0 + $0x10] sm:$0xff]  ;;  %v23_v30 = vld [vmem:[%s871_s0 + $0x18] sm:$0xff] }
   0x8   :  { %v29_v27 = vld [vmem:[%s871_s0 + $0x48] sm:$0xff]  ;;  %v30_v29 = vld [vmem:[%s871_s0 + $0x50] sm:$0xff]  ;;  %v31_v31 = vld [vmem:[%s871_s0 + $0x58] sm:$0xff] }
   0x9   :  { %497 = vmatpush3.bf16.msra.mxu0 %v494_v5  ;;  %531 = vmatpush3.bf16.msra.mxu1 %v494_v5  ;;  %v24_v32 = vld [vmem:[%s871_s0 + $0x20] sm:$0xff]  ;;  %v25_v34 = vld [vmem:[%s871_s0 + $0x28] sm:$0xff]  ;;  %v26_v36 = vld [vmem:[%s871_s0 + $0x30] sm:$0xff] }
   0xa   :  { %499 = vmatprep.subr.bf16.mxu0 %v498_v8  ;;  %524 = vmatprep.subr.bf16.mxu1 %v498_v8  ;;  %v32_v33 = vld [vmem:[%s871_s0 + $0x60] sm:$0xff]  ;;  %v33_v35 = vld [vmem:[%s871_s0 + $0x68] sm:$0xff]  ;;  %v34_v37 = vld [vmem:[%s871_s0 + $0x70] sm:$0xff] }
   0xb   :  { %v27_v38 = vld [vmem:[%s871_s0 + $0x38] sm:$0xff]  ;;  %v401_v40 = vld [vmem:[%s872_s2] ss:$0 sm:$0xff] }
   0xc   :  { %v35_v39 = vld [vmem:[%s871_s0 + $0x78] sm:$0xff] }
   0xd   :  { %501 = vmatpush3.bf16.msra.mxu0 %v498_v8  ;;  %532 = vmatpush3.bf16.msra.mxu1 %v498_v8 }
   0xe   :  { %503 = vmatprep.subr.bf16.mxu0 %v502_v13  ;;  %525 = vmatprep.subr.bf16.mxu1 %v502_v13 }
  0x11   :  { %505 = vmatpush3.bf16.msra.mxu0 %v502_v13  ;;  %533 = vmatpush3.bf16.msra.mxu1 %v502_v13 }
  0x12   :  { %507 = vmatprep.subr.bf16.mxu0 %v506_v16  ;;  %526 = vmatprep.subr.bf16.mxu1 %v506_v16 }
  0x15   :  { %509 = vmatpush3.bf16.msra.mxu0 %v506_v16  ;;  %534 = vmatpush3.bf16.msra.mxu1 %v506_v16 }
  0x16   :  { %511 = vmatprep.subr.bf16.mxu0 %v510_v19  ;;  %527 = vmatprep.subr.bf16.mxu1 %v510_v19 }
  0x19   :  { %513 = vmatpush3.bf16.msra.mxu0 %v510_v19  ;;  %535 = vmatpush3.bf16.msra.mxu1 %v510_v19 }
  0x1a   :  { %515 = vmatprep.subr.bf16.mxu0 %v514_v22  ;;  %528 = vmatprep.subr.bf16.mxu1 %v514_v22 }
  0x1d   :  { %517 = vmatpush3.bf16.msra.mxu0 %v514_v22  ;;  %536 = vmatpush3.bf16.msra.mxu1 %v514_v22 }
  0x1e   :  { %519 = vmatprep.subr.bf16.mxu0 %v518_v25  ;;  %529 = vmatprep.subr.bf16.mxu1 %v518_v25 }
  0x21   :  { %521 = vmatpush3.bf16.msra.mxu0 %v518_v25  ;;  %537 = vmatpush3.bf16.msra.mxu1 %v518_v25 }
  0x24   :  { %467 = vmatmul.mubr.f32.vlgmr.msra.gmra.mrb[0].mxu0 %v21_v26  ;;  %479 = vmatmul.mubr.f32.vlgmr.msra.gmra.mrb[0].mxu1 %v29_v27 }
  0x25   :  { %469 = vmatprep.mubr.f32.mxu0 %v22_v28  ;;  %481 = vmatprep.mubr.f32.mxu1 %v30_v29 }
  0x28   :  { %470 = vmatmul.mubr.f32.gmra.mrb[2].mxu0 %v23_v30  ;;  %482 = vmatmul.mubr.f32.gmra.mrb[2].mxu1 %v31_v31 }
  0x29   :  { %472 = vmatprep.mubr.f32.mxu0 %v24_v32  ;;  %484 = vmatprep.mubr.f32.mxu1 %v32_v33 }
  0x2c   :  { %473 = vmatmul.mubr.f32.gmra.mrb[4].mxu0 %v25_v34  ;;  %485 = vmatmul.mubr.f32.gmra.mrb[4].mxu1 %v33_v35 }
  0x2d   :  { %475 = vmatprep.mubr.f32.mxu0 %v26_v36  ;;  %487 = vmatprep.mubr.f32.mxu1 %v34_v37 }
  0x30   :  { %476 = vmatmul.mubr.f32.gmra.mrb[6].mxu0 %v27_v38  ;;  %488 = vmatmul.mubr.f32.gmra.mrb[6].mxu1 %v35_v39 }
  0xf7   :  { %v468_v41 = vpop.f32.mrb[0].mxu0  ;;  %v480_v42 = vpop.f32.mrb[0].mxu1 }
  0xf8   :  { %v669_v43 = vadd.f32 %v468_v41, %v401_v40  ;;  %v125_v44 = vpop.f32.mrb[1].mxu0  ;;  %v165_v45 = vpop.f32.mrb[1].mxu1  ;;  %v703_v16 = vadd.f32 %v480_v42, %v401_v40 }
  0xf9   :  { %v671_v46 = vadd.f32 %v401_v40, %v125_v44  ;;  %v697_v11 = vadd.f32 %v401_v40, %v165_v45 }
  0xfa   :  { %v206_v47 = vsel %vm204_vm0, %v669_v43, 0.0  ;;  %v222_v21 = vsel %vm204_vm0, %v703_v16, 0.0 }
  0xfb   :  { %v205_v48 = vsel %vm204_vm0, %v671_v46, 0.0  ;;  %v471_v49 = vpop.f32.mrb[2].mxu0  ;;  %v483_v50 = vpop.f32.mrb[2].mxu1  ;;  %v220_v17 = vsel %vm204_vm0, %v697_v11, 0.0 }
  0xfc   :  { %v135_v51 = vpop.f32.mrb[3].mxu0  ;;  %v175_v52 = vpop.f32.mrb[3].mxu1  ;;  %v677_v53 = vadd.f32 %v471_v49, %v401_v40  ;;  %v207_v55 = vadd.f32 %v206_v47, %v205_v48  ;;  %v711_v22 = vadd.f32 %v483_v50, %v401_v40 }
  0xfd   :  { %v679_v54 = vadd.f32 %v401_v40, %v135_v51  ;;  %v707_v18 = vadd.f32 %v401_v40, %v175_v52 }
  0xfe   :  { %v210_v62 = vsel %vm204_vm0, %v677_v53, 0.0  ;;  %v226_v27 = vsel %vm204_vm0, %v711_v22, 0.0 }
  0xff   :  { %v208_v56 = vsel %vm204_vm0, %v679_v54, 0.0  ;;  %v474_v57 = vpop.f32.mrb[4].mxu0  ;;  %v486_v58 = vpop.f32.mrb[4].mxu1  ;;  %v224_v23 = vsel %vm204_vm0, %v707_v18, 0.0 }
 0x100   :  { %v209_v59 = vadd.f32 %v208_v56, %v207_v55  ;;  %v145_v60 = vpop.f32.mrb[5].mxu0  ;;  %v185_v61 = vpop.f32.mrb[5].mxu1  ;;  %v685_v63 = vadd.f32 %v474_v57, %v401_v40  ;;  %v719_v28 = vadd.f32 %v486_v58, %v401_v40 }
 0x101   :  { %v687_v0 = vadd.f32 %v401_v40, %v145_v60  ;;  %v715_v24 = vadd.f32 %v401_v40, %v185_v61 }
 0x102   :  { %v211_v1 = vadd.f32 %v210_v62, %v209_v59  ;;  %v214_v8 = vsel %vm204_vm0, %v685_v63, 0.0  ;;  %v230_v33 = vsel %vm204_vm0, %v719_v28, 0.0 }
 0x103   :  { %v212_v2 = vsel %vm204_vm0, %v687_v0, 0.0  ;;  %v477_v3 = vpop.f32.mrb[6].mxu0  ;;  %v489_v4 = vpop.f32.mrb[6].mxu1  ;;  %v228_v29 = vsel %vm204_vm0, %v715_v24, 0.0 }
 0x104   :  { %v213_v5 = vadd.f32 %v212_v2, %v211_v1  ;;  %v155_v6 = vpop.f32.mrb[7].mxu0  ;;  %v195_v7 = vpop.f32.mrb[7].mxu1  ;;  %v693_v9 = vadd.f32 %v477_v3, %v401_v40  ;;  %v727_v34 = vadd.f32 %v489_v4, %v401_v40 }
 0x105   :  { %v695_v10 = vadd.f32 %v401_v40, %v155_v6  ;;  %v723_v30 = vadd.f32 %v401_v40, %v195_v7 }
 0x106   :  { %v215_v12 = vadd.f32 %v214_v8, %v213_v5  ;;  %v218_v15 = vsel %vm204_vm0, %v693_v9, 0.0  ;;  %v234_v38 = vsel %vm204_vm0, %v727_v34, 0.0 }
 0x107   :  { %v216_v13 = vsel %vm204_vm0, %v695_v10, 0.0  ;;  %v232_v35 = vsel %vm204_vm0, %v723_v30, 0.0 }
 0x108   :  { %v217_v14 = vadd.f32 %v216_v13, %v215_v12 }
 0x10a   :  { %v219_v19 = vadd.f32 %v218_v15, %v217_v14 }
 0x10c   :  { %v221_v20 = vadd.f32 %v220_v17, %v219_v19 }
 0x10e   :  { %v223_v25 = vadd.f32 %v222_v21, %v221_v20 }
 0x110   :  { %v225_v26 = vadd.f32 %v224_v23, %v223_v25 }
 0x112   :  { %v227_v31 = vadd.f32 %v226_v27, %v225_v26 }
 0x114   :  { %v229_v32 = vadd.f32 %v228_v29, %v227_v31 }
 0x116   :  { %v231_v36 = vadd.f32 %v230_v33, %v229_v32 }
 0x118   :  { %v233_v37 = vadd.f32 %v232_v35, %v231_v36 }
 0x11a   :  { %v235_v39 = vadd.f32 %v234_v38, %v233_v37 }
 0x11c   :  { %v236_v41 = vrot.slane %v235_v39, 4 }
 0x11e   :  { %v237_v42 = vadd.f32 %v236_v41, %v235_v39 }
 0x120   :  { %v238_v44 = vrot.slane %v237_v42, 2 }
 0x122   :  { %v239_v45 = vadd.f32 %v238_v44, %v237_v42 }
 0x124   :  { %v240_v47 = vrot.slane %v239_v45, 1 }
 0x126   :  { %v241_v48 = vadd.f32 %v240_v47, %v239_v45 }
 0x128   :  { %v733_v49 = vmul.f32 0.0078125, %v241_v48 }
 0x12a   :  { %v244_v40 = vsub.f32 %v671_v46, %v733_v49  ;;  %v245_v50 = vsub.f32 %v669_v43, %v733_v49  ;;  %v246_v51 = vsub.f32 %v679_v54, %v733_v49  ;;  %v247_v52 = vsub.f32 %v677_v53, %v733_v49 }
 0x12b   :  { %v248_v57 = vsub.f32 %v687_v0, %v733_v49  ;;  %v249_v59 = vsub.f32 %v685_v63, %v733_v49  ;;  %v250_v2 = vsub.f32 %v695_v10, %v733_v49  ;;  %v251_v6 = vsub.f32 %v693_v9, %v733_v49 }
 0x12c   :  { %v260_v55 = vmul.f32 %v244_v40, %v244_v40  ;;  %v261_v56 = vmul.f32 %v245_v50, %v245_v50  ;;  %v262_v58 = vmul.f32 %v246_v51, %v246_v51  ;;  %v263_v60 = vmul.f32 %v247_v52, %v247_v52 }
 0x12d   :  { %v264_v3 = vmul.f32 %v248_v57, %v248_v57  ;;  %v265_v7 = vmul.f32 %v249_v59, %v249_v59  ;;  %v252_v13 = vsub.f32 %v697_v11, %v733_v49  ;;  %v266_v14 = vmul.f32 %v250_v2, %v250_v2 }
 0x12e   :  { %v276_v61 = vsel %vm204_vm0, %v260_v55, 0.0  ;;  %v277_v62 = vsel %vm204_vm0, %v261_v56, 0.0  ;;  %v279_v4 = vsel %vm204_vm0, %v262_v58, 0.0  ;;  %v281_v8 = vsel %vm204_vm0, %v263_v60, 0.0 }
 0x12f   :  { %v278_v1 = vadd.f32 %v277_v62, %v276_v61  ;;  %v283_v15 = vsel %vm204_vm0, %v264_v3, 0.0  ;;  %v253_v19 = vsub.f32 %v703_v16, %v733_v49  ;;  %v267_v20 = vmul.f32 %v251_v6, %v251_v6 }
 0x130   :  { %v285_v21 = vsel %vm204_vm0, %v265_v7, 0.0  ;;  %v254_v25 = vsub.f32 %v707_v18, %v733_v49  ;;  %v268_v26 = vmul.f32 %v252_v13, %v252_v13  ;;  %v287_v27 = vsel %vm204_vm0, %v266_v14, 0.0 }
 0x131   :  { %v280_v5 = vadd.f32 %v279_v4, %v278_v1  ;;  %v255_v31 = vsub.f32 %v711_v22, %v733_v49  ;;  %v269_v32 = vmul.f32 %v253_v19, %v253_v19  ;;  %v289_v33 = vsel %vm204_vm0, %v267_v20, 0.0  ;;  %v314_v20 = vld [vmem:[%s873_s3] sm:$0x1] }
 0x132   :  { %v256_v36 = vsub.f32 %v715_v24, %v733_v49  ;;  %v270_v37 = vmul.f32 %v254_v25, %v254_v25  ;;  %v291_v38 = vsel %vm204_vm0, %v268_v26, 0.0  ;;  %v257_v41 = vsub.f32 %v719_v28, %v733_v49 }
 0x133   :  { %v282_v12 = vadd.f32 %v281_v8, %v280_v5  ;;  %v271_v42 = vmul.f32 %v255_v31, %v255_v31  ;;  %v293_v44 = vsel %vm204_vm0, %v269_v32, 0.0  ;;  %v258_v47 = vsub.f32 %v723_v30, %v733_v49 }
 0x134   :  { %v272_v48 = vmul.f32 %v256_v36, %v256_v36  ;;  %v295_v40 = vsel %vm204_vm0, %v270_v37, 0.0  ;;  %v259_v51 = vsub.f32 %v727_v34, %v733_v49  ;;  %v273_v52 = vmul.f32 %v257_v41, %v257_v41 }
 0x135   :  { %v284_v17 = vadd.f32 %v283_v15, %v282_v12  ;;  %v297_v55 = vsel %vm204_vm0, %v271_v42, 0.0  ;;  %v274_v57 = vmul.f32 %v258_v47, %v258_v47 }
 0x136   :  { %v299_v58 = vsel %vm204_vm0, %v272_v48, 0.0  ;;  %v275_v60 = vmul.f32 %v259_v51, %v259_v51  ;;  %v301_v61 = vsel %vm204_vm0, %v273_v52, 0.0 }
 0x137   :  { %v286_v23 = vadd.f32 %v285_v21, %v284_v17  ;;  %v303_v1 = vsel %vm204_vm0, %v274_v57, 0.0  ;;  %v319_v17 = vlaneseq }
 0x138   :  { %v305_v3 = vsel %vm204_vm0, %v275_v60, 0.0 }
 0x139   :  { %v288_v29 = vadd.f32 %v287_v27, %v286_v23  ;;  %v320_v19 = vshrl.u32 %v319_v17, 7 }
 0x13b   :  { %v290_v35 = vadd.f32 %v289_v33, %v288_v29  ;;  %v321_v23 = vsub.s32 0, %v320_v19  ;;  %v340_v29 = vld [vmem:[%s874_s4] sm:$0x1] }
 0x13d   :  { %v292_v39 = vadd.f32 %v291_v38, %v290_v35 }
 0x13f   :  { %v294_v45 = vadd.f32 %v293_v44, %v292_v39 }
 0x141   :  { %v296_v50 = vadd.f32 %v295_v40, %v294_v45 }
 0x143   :  { %v298_v56 = vadd.f32 %v297_v55, %v296_v50 }
 0x145   :  { %v300_v59 = vadd.f32 %v299_v58, %v298_v56 }
 0x147   :  { %v302_v62 = vadd.f32 %v301_v61, %v300_v59 }
 0x149   :  { %v304_v2 = vadd.f32 %v303_v1, %v302_v62 }
 0x14b   :  { %v306_v4 = vadd.f32 %v305_v3, %v304_v2 }
 0x14d   :  { %v307_v5 = vrot.slane %v306_v4, 4 }
 0x14f   :  { %v308_v6 = vadd.f32 %v307_v5, %v306_v4 }
 0x151   :  { %v309_v7 = vrot.slane %v308_v6, 2 }
 0x153   :  { %v310_v8 = vadd.f32 %v309_v7, %v308_v6 }
 0x155   :  { %v311_v12 = vrot.slane %v310_v8, 1 }
 0x157   :  { %v312_v13 = vadd.f32 %v311_v12, %v310_v8 }
 0x159   :  { %v313_v14 = vmul.f32 0.0078125, %v312_v13 }
 0x15b   :  { %v315_v15 = vadd.f32 1e-05, %v313_v14 }
 0x15d   :  { %538 = vrsqrt.f32 %v315_v15 }
 0x167   :  { %v539_v21 = vpop.eup %538 }
 0x168   :  { %v317_v25 = vmul.f32 %v539_v21, %v314_v20 }
 0x16a   :  { %v322_v26 = vrot.slane %v317_v25, %v321_v23  ;;  %v341_v27 = vmul.f32 %v317_v25, %v733_v49 }
 0x16c   :  { %v324_v31 = vmul.f32 %v322_v26, %v671_v46  ;;  %v325_v32 = vmul.f32 %v322_v26, %v669_v43  ;;  %v326_v33 = vmul.f32 %v322_v26, %v679_v54  ;;  %v327_v35 = vmul.f32 %v322_v26, %v677_v53 }
 0x16d   :  { %v328_v36 = vmul.f32 %v322_v26, %v687_v0  ;;  %v342_v37 = vsub.f32 %v340_v29, %v341_v27  ;;  %v329_v38 = vmul.f32 %v322_v26, %v685_v63  ;;  %v330_v39 = vmul.f32 %v322_v26, %v695_v10 }
 0x16e   :  { %v331_v49 = vmul.f32 %v322_v26, %v693_v9  ;;  %v332_v41 = vmul.f32 %v322_v26, %v697_v11  ;;  %v333_v42 = vmul.f32 %v322_v26, %v703_v16  ;;  %v334_v46 = vmul.f32 %v322_v26, %v707_v18 }
 0x16f   :  { %v335_v43 = vmul.f32 %v322_v26, %v711_v22  ;;  %v347_v54 = vrot.slane %v342_v37, %v321_v23  ;;  %v336_v53 = vmul.f32 %v322_v26, %v715_v24  ;;  %v337_v0 = vmul.f32 %v322_v26, %v719_v28 }
 0x170   :  { %v338_v44 = vmul.f32 %v322_v26, %v723_v30  ;;  %v339_v63 = vmul.f32 %v322_v26, %v727_v34 }
 0x171   :  { %v349_v10 = vadd.f32 %v347_v54, %v324_v31  ;;  %v350_v45 = vadd.f32 %v347_v54, %v325_v32  ;;  %v351_v9 = vadd.f32 %v347_v54, %v326_v33  ;;  %v352_v47 = vadd.f32 %v347_v54, %v327_v35 }
 0x172   :  { %v353_v11 = vadd.f32 %v347_v54, %v328_v36  ;;  %v354_v48 = vadd.f32 %v347_v54, %v329_v38  ;;  %v355_v16 = vadd.f32 %v347_v54, %v330_v39  ;;  %v356_v40 = vadd.f32 %v347_v54, %v331_v49 }
 0x173   :  { %v357_v18 = vadd.f32 %v347_v54, %v332_v41  ;;  %v358_v50 = vadd.f32 %v347_v54, %v333_v42  ;;  %v359_v22 = vadd.f32 %v347_v54, %v334_v46  ;;  %v360_v51 = vadd.f32 %v347_v54, %v335_v43 }
 0x174   :  { %v361_v52 = vadd.f32 %v347_v54, %v336_v53  ;;  %v362_v24 = vadd.f32 %v347_v54, %v337_v0  ;;  %v363_v55 = vadd.f32 %v347_v54, %v338_v44  ;;  %v364_v28 = vadd.f32 %v347_v54, %v339_v63 }
 0x175   :  { %v365_v56 = vmax.f32 %v349_v10, 0.0  ;;  %v366_v30 = vmax.f32 %v350_v45, 0.0  ;;  %v367_v57 = vmax.f32 %v351_v9, 0.0  ;;  %v368_v34 = vmax.f32 %v352_v47, 0.0 }
 0x176   :  { %v369_v58 = vmax.f32 %v353_v11, 0.0  ;;  %v370_v59 = vmax.f32 %v354_v48, 0.0  ;;  %v371_v60 = vmax.f32 %v355_v16, 0.0  ;;  %v372_v61 = vmax.f32 %v356_v40, 0.0 }
 0x177   :  { %v373_v62 = vmax.f32 %v357_v18, 0.0  ;;  %v374_v1 = vmax.f32 %v358_v50, 0.0  ;;  %v375_v2 = vmax.f32 %v359_v22, 0.0  ;;  %v376_v3 = vmax.f32 %v360_v51, 0.0  ;;  %381 = vst.msk [vmem:[%s875_s5] sm:$0xff] %vm204_vm0, %v365_v56  ;;  %382 = vst.msk [vmem:[%s875_s5 + $0x8] sm:$0xff] %vm204_vm0, %v366_v30 }
 0x178   :  { %383 = vst.msk [vmem:[%s875_s5 + $0x10] sm:$0xff] %vm204_vm0, %v367_v57  ;;  %384 = vst.msk [vmem:[%s875_s5 + $0x18] sm:$0xff] %vm204_vm0, %v368_v34  ;;  %v377_v4 = vmax.f32 %v361_v52, 0.0  ;;  %v378_v5 = vmax.f32 %v362_v24, 0.0  ;;  %v379_v6 = vmax.f32 %v363_v55, 0.0  ;;  %v380_v7 = vmax.f32 %v364_v28, 0.0 }
 0x179   :  { %385 = vst.msk [vmem:[%s875_s5 + $0x20] sm:$0xff] %vm204_vm0, %v369_v58  ;;  %386 = vst.msk [vmem:[%s875_s5 + $0x28] sm:$0xff] %vm204_vm0, %v370_v59 }
 0x17a   :  { %387 = vst.msk [vmem:[%s875_s5 + $0x30] sm:$0xff] %vm204_vm0, %v371_v60  ;;  %388 = vst.msk [vmem:[%s875_s5 + $0x38] sm:$0xff] %vm204_vm0, %v372_v61 }
 0x17b   :  { %389 = vst.msk [vmem:[%s875_s5 + $0x40] sm:$0xff] %vm204_vm0, %v373_v62  ;;  %390 = vst.msk [vmem:[%s875_s5 + $0x48] sm:$0xff] %vm204_vm0, %v374_v1 }
 0x17c   :  { %391 = vst.msk [vmem:[%s875_s5 + $0x50] sm:$0xff] %vm204_vm0, %v375_v2  ;;  %392 = vst.msk [vmem:[%s875_s5 + $0x58] sm:$0xff] %vm204_vm0, %v376_v3 }
 0x17d   :  { %393 = vst.msk [vmem:[%s875_s5 + $0x60] sm:$0xff] %vm204_vm0, %v377_v4  ;;  %394 = vst.msk [vmem:[%s875_s5 + $0x68] sm:$0xff] %vm204_vm0, %v378_v5 }
 0x17e   :  { %395 = vst.msk [vmem:[%s875_s5 + $0x70] sm:$0xff] %vm204_vm0, %v379_v6  ;;  %396 = vst.msk [vmem:[%s875_s5 + $0x78] sm:$0xff] %vm204_vm0, %v380_v7 }

// kernel: forward.22
= control target key start
LH: loop header
LB: loop body
LE: loop exit
PB: predicated region body
PF: predicated region fallthrough
CT: control target
= control target key end

     0   :  { %vm491_vm0 = vcmask 31744   ;;  %s2056_s1 = inlined_call_operand.vmem [shape: f32[128,4], index: 1, kind: input, shape index: {}]   ;;  %s2057_s0 = inlined_call_operand.vmem [shape: f32[512,128], index: 0, kind: input, shape index: {}]   ;;  %s2058_s2 = inlined_call_operand.vmem [shape: f32[1,4], index: 2, kind: input, shape index: {}]   ;;  %s2059_s3 = inlined_call_operand.vmem [shape: f32[512,4], index: 3, kind: input, shape index: {}]   ;;  %s2060_s4 = inlined_call_operand.vmem [shape: f32[512,4], index: 4, kind: output, shape index: {0}]   ;;  %s2061_s5 = inlined_call_operand.vmem [shape: f32[512,4], index: 5, kind: output, shape index: {1}]  }
   0x1   :  { %v83_v0 = vld [vmem:[%s2056_s1] sm:$0xff]  ;;  %v84_v1 = vld [vmem:[%s2056_s1 + $0x8] sm:$0xff]  ;;  %v85_v2 = vld [vmem:[%s2056_s1 + $0x10] sm:$0xff] }
   0x2   :  { %v965_v3 = vpack.c.bf16 %v84_v1, %v83_v0  ;;  %v86_v4 = vld [vmem:[%s2056_s1 + $0x18] sm:$0xff]  ;;  %v87_v6 = vld [vmem:[%s2056_s1 + $0x20] sm:$0xff]  ;;  %v88_v7 = vld [vmem:[%s2056_s1 + $0x28] sm:$0xff] }
   0x3   :  { %v969_v5 = vpack.c.bf16 %v86_v4, %v85_v2  ;;  %v973_v8 = vpack.c.bf16 %v88_v7, %v87_v6  ;;  %v19_v9 = vld [vmem:[%s2057_s0] sm:$0xff]  ;;  %v89_v11 = vld [vmem:[%s2056_s1 + $0x30] sm:$0xff]  ;;  %v90_v12 = vld [vmem:[%s2056_s1 + $0x38] sm:$0xff] }
   0x4   :  { %966 = vmatprep.subr.bf16.mxu0 %v965_v3  ;;  %997 = vmatprep.subr.bf16.mxu1 %v965_v3  ;;  %v51_v10 = vld [vmem:[%s2057_s0 + $0x100] sm:$0xff]  ;;  %v977_v13 = vpack.c.bf16 %v90_v12, %v89_v11  ;;  %v92_v15 = vld [vmem:[%s2056_s1 + $0x48] sm:$0xff]  ;;  %v93_v17 = vld [vmem:[%s2056_s1 + $0x50] sm:$0xff] }
   0x5   :  { %968 = vmatpush3.bf16.msra.mxu0 %v965_v3  ;;  %1005 = vmatpush3.bf16.msra.mxu1 %v965_v3  ;;  %v91_v14 = vld [vmem:[%s2056_s1 + $0x40] sm:$0xff]  ;;  %v94_v18 = vld [vmem:[%s2056_s1 + $0x58] sm:$0xff]  ;;  %v96_v21 = vld [vmem:[%s2056_s1 + $0x68] sm:$0xff] }
   0x6   :  { %970 = vmatprep.subr.bf16.mxu0 %v969_v5  ;;  %998 = vmatprep.subr.bf16.mxu1 %v969_v5  ;;  %v981_v16 = vpack.c.bf16 %v92_v15, %v91_v14  ;;  %v985_v19 = vpack.c.bf16 %v94_v18, %v93_v17  ;;  %v95_v20 = vld [vmem:[%s2056_s1 + $0x60] sm:$0xff]  ;;  %v97_v23 = vld [vmem:[%s2056_s1 + $0x70] sm:$0xff]  ;;  %v98_v24 = vld [vmem:[%s2056_s1 + $0x78] sm:$0xff] }
   0x7   :  { %869 = vmatprep.mubr.f32.mxu0 %v19_v9  ;;  %917 = vmatprep.mubr.f32.mxu1 %v51_v10  ;;  %v989_v22 = vpack.c.bf16 %v96_v21, %v95_v20  ;;  %v993_v25 = vpack.c.bf16 %v98_v24, %v97_v23  ;;  %v20_v26 = vld [vmem:[%s2057_s0 + $0x8] sm:$0xff]  ;;  %v21_v28 = vld [vmem:[%s2057_s0 + $0x10] sm:$0xff]  ;;  %v22_v30 = vld [vmem:[%s2057_s0 + $0x18] sm:$0xff] }
   0x8   :  { %v52_v27 = vld [vmem:[%s2057_s0 + $0x108] sm:$0xff]  ;;  %v53_v29 = vld [vmem:[%s2057_s0 + $0x110] sm:$0xff]  ;;  %v54_v31 = vld [vmem:[%s2057_s0 + $0x118] sm:$0xff] }
   0x9   :  { %972 = vmatpush3.bf16.msra.mxu0 %v969_v5  ;;  %1006 = vmatpush3.bf16.msra.mxu1 %v969_v5  ;;  %v23_v32 = vld [vmem:[%s2057_s0 + $0x20] sm:$0xff]  ;;  %v24_v34 = vld [vmem:[%s2057_s0 + $0x28] sm:$0xff]  ;;  %v25_v36 = vld [vmem:[%s2057_s0 + $0x30] sm:$0xff] }
   0xa   :  { %974 = vmatprep.subr.bf16.mxu0 %v973_v8  ;;  %999 = vmatprep.subr.bf16.mxu1 %v973_v8  ;;  %v55_v33 = vld [vmem:[%s2057_s0 + $0x120] sm:$0xff]  ;;  %v56_v35 = vld [vmem:[%s2057_s0 + $0x128] sm:$0xff]  ;;  %v57_v37 = vld [vmem:[%s2057_s0 + $0x130] sm:$0xff] }
   0xb   :  { %v26_v38 = vld [vmem:[%s2057_s0 + $0x38] sm:$0xff]  ;;  %v27_v40 = vld [vmem:[%s2057_s0 + $0x40] sm:$0xff]  ;;  %v28_v42 = vld [vmem:[%s2057_s0 + $0x48] sm:$0xff] }
   0xc   :  { %v58_v39 = vld [vmem:[%s2057_s0 + $0x138] sm:$0xff]  ;;  %v59_v41 = vld [vmem:[%s2057_s0 + $0x140] sm:$0xff]  ;;  %v60_v43 = vld [vmem:[%s2057_s0 + $0x148] sm:$0xff] }
   0xd   :  { %976 = vmatpush3.bf16.msra.mxu0 %v973_v8  ;;  %1007 = vmatpush3.bf16.msra.mxu1 %v973_v8  ;;  %v29_v44 = vld [vmem:[%s2057_s0 + $0x50] sm:$0xff]  ;;  %v30_v46 = vld [vmem:[%s2057_s0 + $0x58] sm:$0xff]  ;;  %v31_v48 = vld [vmem:[%s2057_s0 + $0x60] sm:$0xff] }
   0xe   :  { %978 = vmatprep.subr.bf16.mxu0 %v977_v13  ;;  %1000 = vmatprep.subr.bf16.mxu1 %v977_v13  ;;  %v61_v45 = vld [vmem:[%s2057_s0 + $0x150] sm:$0xff]  ;;  %v62_v47 = vld [vmem:[%s2057_s0 + $0x158] sm:$0xff]  ;;  %v63_v49 = vld [vmem:[%s2057_s0 + $0x160] sm:$0xff] }
   0xf   :  { %v32_v50 = vld [vmem:[%s2057_s0 + $0x68] sm:$0xff]  ;;  %v33_v52 = vld [vmem:[%s2057_s0 + $0x70] sm:$0xff]  ;;  %v34_v54 = vld [vmem:[%s2057_s0 + $0x78] sm:$0xff] }
  0x10   :  { %v64_v51 = vld [vmem:[%s2057_s0 + $0x168] sm:$0xff]  ;;  %v65_v53 = vld [vmem:[%s2057_s0 + $0x170] sm:$0xff]  ;;  %v66_v55 = vld [vmem:[%s2057_s0 + $0x178] sm:$0xff] }
  0x11   :  { %980 = vmatpush3.bf16.msra.mxu0 %v977_v13  ;;  %1008 = vmatpush3.bf16.msra.mxu1 %v977_v13  ;;  %v35_v56 = vld [vmem:[%s2057_s0 + $0x80] sm:$0xff]  ;;  %v36_v58 = vld [vmem:[%s2057_s0 + $0x88] sm:$0xff]  ;;  %v37_v60 = vld [vmem:[%s2057_s0 + $0x90] sm:$0xff] }
  0x12   :  { %982 = vmatprep.subr.bf16.mxu0 %v981_v16  ;;  %1001 = vmatprep.subr.bf16.mxu1 %v981_v16  ;;  %v67_v57 = vld [vmem:[%s2057_s0 + $0x180] sm:$0xff]  ;;  %v68_v59 = vld [vmem:[%s2057_s0 + $0x188] sm:$0xff]  ;;  %v69_v61 = vld [vmem:[%s2057_s0 + $0x190] sm:$0xff] }
  0x13   :  { %v38_v62 = vld [vmem:[%s2057_s0 + $0x98] sm:$0xff]  ;;  %v39_v0 = vld [vmem:[%s2057_s0 + $0xa0] sm:$0xff]  ;;  %v40_v2 = vld [vmem:[%s2057_s0 + $0xa8] sm:$0xff] }
  0x14   :  { %v70_v63 = vld [vmem:[%s2057_s0 + $0x198] sm:$0xff]  ;;  %v71_v1 = vld [vmem:[%s2057_s0 + $0x1a0] sm:$0xff]  ;;  %v72_v3 = vld [vmem:[%s2057_s0 + $0x1a8] sm:$0xff] }
  0x15   :  { %984 = vmatpush3.bf16.msra.mxu0 %v981_v16  ;;  %1009 = vmatpush3.bf16.msra.mxu1 %v981_v16  ;;  %v41_v4 = vld [vmem:[%s2057_s0 + $0xb0] sm:$0xff]  ;;  %v42_v6 = vld [vmem:[%s2057_s0 + $0xb8] sm:$0xff]  ;;  %v43_v8 = vld [vmem:[%s2057_s0 + $0xc0] sm:$0xff] }
  0x16   :  { %986 = vmatprep.subr.bf16.mxu0 %v985_v19  ;;  %1002 = vmatprep.subr.bf16.mxu1 %v985_v19  ;;  %v73_v5 = vld [vmem:[%s2057_s0 + $0x1b0] sm:$0xff]  ;;  %v74_v7 = vld [vmem:[%s2057_s0 + $0x1b8] sm:$0xff]  ;;  %v75_v9 = vld [vmem:[%s2057_s0 + $0x1c0] sm:$0xff] }
  0x17   :  { %v44_v10 = vld [vmem:[%s2057_s0 + $0xc8] sm:$0xff]  ;;  %v45_v12 = vld [vmem:[%s2057_s0 + $0xd0] sm:$0xff]  ;;  %v46_v14 = vld [vmem:[%s2057_s0 + $0xd8] sm:$0xff] }
  0x18   :  { %v76_v11 = vld [vmem:[%s2057_s0 + $0x1c8] sm:$0xff]  ;;  %v77_v13 = vld [vmem:[%s2057_s0 + $0x1d0] sm:$0xff]  ;;  %v78_v15 = vld [vmem:[%s2057_s0 + $0x1d8] sm:$0xff] }
  0x19   :  { %988 = vmatpush3.bf16.msra.mxu0 %v985_v19  ;;  %1010 = vmatpush3.bf16.msra.mxu1 %v985_v19  ;;  %v47_v16 = vld [vmem:[%s2057_s0 + $0xe0] sm:$0xff]  ;;  %v48_v18 = vld [vmem:[%s2057_s0 + $0xe8] sm:$0xff]  ;;  %v49_v20 = vld [vmem:[%s2057_s0 + $0xf0] sm:$0xff] }
  0x1a   :  { %990 = vmatprep.subr.bf16.mxu0 %v989_v22  ;;  %1003 = vmatprep.subr.bf16.mxu1 %v989_v22  ;;  %v79_v17 = vld [vmem:[%s2057_s0 + $0x1e0] sm:$0xff]  ;;  %v80_v19 = vld [vmem:[%s2057_s0 + $0x1e8] sm:$0xff]  ;;  %v81_v21 = vld [vmem:[%s2057_s0 + $0x1f0] sm:$0xff] }
  0x1b   :  { %v82_v23 = vld [vmem:[%s2057_s0 + $0x1f8] sm:$0xff]  ;;  %v1286_v24 = vld [vmem:[%s2058_s2] ss:$0 sm:$0xff] }
  0x1d   :  { %992 = vmatpush3.bf16.msra.mxu0 %v989_v22  ;;  %1011 = vmatpush3.bf16.msra.mxu1 %v989_v22  ;;  %v50_v22 = vld [vmem:[%s2057_s0 + $0xf8] sm:$0xff] }
  0x1e   :  { %994 = vmatprep.subr.bf16.mxu0 %v993_v25  ;;  %1004 = vmatprep.subr.bf16.mxu1 %v993_v25 }
  0x21   :  { %996 = vmatpush3.bf16.msra.mxu0 %v993_v25  ;;  %1012 = vmatpush3.bf16.msra.mxu1 %v993_v25 }
  0x24   :  { %870 = vmatmul.mubr.f32.vlgmr.msra.gmra.mrb[0].mxu0 %v20_v26  ;;  %918 = vmatmul.mubr.f32.vlgmr.msra.gmra.mrb[0].mxu1 %v52_v27  ;;  %v557_v26 = vld [vmem:[%s2059_s3 + $0x8] sm:$0xff] }
  0x25   :  { %872 = vmatprep.mubr.f32.mxu0 %v21_v28  ;;  %920 = vmatprep.mubr.f32.mxu1 %v53_v29  ;;  %v589_v28 = vld [vmem:[%s2059_s3 + $0x108] sm:$0xff] }
  0x28   :  { %873 = vmatmul.mubr.f32.gmra.mrb[2].mxu0 %v22_v30  ;;  %921 = vmatmul.mubr.f32.gmra.mrb[2].mxu1 %v54_v31 }
  0x29   :  { %875 = vmatprep.mubr.f32.mxu0 %v23_v32  ;;  %923 = vmatprep.mubr.f32.mxu1 %v55_v33  ;;  %v556_v32 = vld [vmem:[%s2059_s3] sm:$0xff] }
  0x2c   :  { %876 = vmatmul.mubr.f32.gmra.mrb[4].mxu0 %v24_v34  ;;  %924 = vmatmul.mubr.f32.gmra.mrb[4].mxu1 %v56_v35  ;;  %v588_v34 = vld [vmem:[%s2059_s3 + $0x100] sm:$0xff] }
  0x2d   :  { %878 = vmatprep.mubr.f32.mxu0 %v25_v36  ;;  %926 = vmatprep.mubr.f32.mxu1 %v57_v37 }
  0x30   :  { %879 = vmatmul.mubr.f32.gmra.mrb[6].mxu0 %v26_v38  ;;  %927 = vmatmul.mubr.f32.gmra.mrb[6].mxu1 %v58_v39 }
  0x31   :  { %881 = vmatprep.mubr.f32.mxu0 %v27_v40  ;;  %929 = vmatprep.mubr.f32.mxu1 %v59_v41 }
  0x34   :  { %882 = vmatmul.mubr.f32.gmra.mrb[8].mxu0 %v28_v42  ;;  %930 = vmatmul.mubr.f32.gmra.mrb[8].mxu1 %v60_v43  ;;  %v559_v42 = vld [vmem:[%s2059_s3 + $0x18] sm:$0xff] }
  0x35   :  { %884 = vmatprep.mubr.f32.mxu0 %v29_v44  ;;  %932 = vmatprep.mubr.f32.mxu1 %v61_v45  ;;  %v591_v44 = vld [vmem:[%s2059_s3 + $0x118] sm:$0xff] }
  0x38   :  { %885 = vmatmul.mubr.f32.gmra.mrb[10].mxu0 %v30_v46  ;;  %933 = vmatmul.mubr.f32.gmra.mrb[10].mxu1 %v62_v47 }
  0x39   :  { %887 = vmatprep.mubr.f32.mxu0 %v31_v48  ;;  %935 = vmatprep.mubr.f32.mxu1 %v63_v49  ;;  %v558_v48 = vld [vmem:[%s2059_s3 + $0x10] sm:$0xff] }
  0x3c   :  { %888 = vmatmul.mubr.f32.gmra.mrb[12].mxu0 %v32_v50  ;;  %936 = vmatmul.mubr.f32.gmra.mrb[12].mxu1 %v64_v51  ;;  %v590_v50 = vld [vmem:[%s2059_s3 + $0x110] sm:$0xff] }
  0x3d   :  { %890 = vmatprep.mubr.f32.mxu0 %v33_v52  ;;  %938 = vmatprep.mubr.f32.mxu1 %v65_v53 }
  0x40   :  { %891 = vmatmul.mubr.f32.gmra.mrb[14].mxu0 %v34_v54  ;;  %939 = vmatmul.mubr.f32.gmra.mrb[14].mxu1 %v66_v55 }
  0x41   :  { %893 = vmatprep.mubr.f32.mxu0 %v35_v56  ;;  %941 = vmatprep.mubr.f32.mxu1 %v67_v57 }
  0x44   :  { %894 = vmatmul.mubr.f32.gmra.mrb[16].mxu0 %v36_v58  ;;  %942 = vmatmul.mubr.f32.gmra.mrb[16].mxu1 %v68_v59  ;;  %v561_v58 = vld [vmem:[%s2059_s3 + $0x28] sm:$0xff] }
  0x45   :  { %896 = vmatprep.mubr.f32.mxu0 %v37_v60  ;;  %944 = vmatprep.mubr.f32.mxu1 %v69_v61  ;;  %v593_v60 = vld [vmem:[%s2059_s3 + $0x128] sm:$0xff] }
  0x48   :  { %897 = vmatmul.mubr.f32.gmra.mrb[18].mxu0 %v38_v62  ;;  %945 = vmatmul.mubr.f32.gmra.mrb[18].mxu1 %v70_v63 }
  0x49   :  { %899 = vmatprep.mubr.f32.mxu0 %v39_v0  ;;  %947 = vmatprep.mubr.f32.mxu1 %v71_v1  ;;  %v560_v0 = vld [vmem:[%s2059_s3 + $0x20] sm:$0xff] }
  0x4c   :  { %900 = vmatmul.mubr.f32.gmra.mrb[20].mxu0 %v40_v2  ;;  %948 = vmatmul.mubr.f32.gmra.mrb[20].mxu1 %v72_v3  ;;  %v592_v2 = vld [vmem:[%s2059_s3 + $0x120] sm:$0xff] }
  0x4d   :  { %902 = vmatprep.mubr.f32.mxu0 %v41_v4  ;;  %950 = vmatprep.mubr.f32.mxu1 %v73_v5 }
  0x50   :  { %903 = vmatmul.mubr.f32.gmra.mrb[22].mxu0 %v42_v6  ;;  %951 = vmatmul.mubr.f32.gmra.mrb[22].mxu1 %v74_v7 }
  0x51   :  { %905 = vmatprep.mubr.f32.mxu0 %v43_v8  ;;  %953 = vmatprep.mubr.f32.mxu1 %v75_v9 }
  0x54   :  { %906 = vmatmul.mubr.f32.gmra.mrb[24].mxu0 %v44_v10  ;;  %954 = vmatmul.mubr.f32.gmra.mrb[24].mxu1 %v76_v11  ;;  %v563_v10 = vld [vmem:[%s2059_s3 + $0x38] sm:$0xff] }
  0x55   :  { %908 = vmatprep.mubr.f32.mxu0 %v45_v12  ;;  %956 = vmatprep.mubr.f32.mxu1 %v77_v13  ;;  %v595_v12 = vld [vmem:[%s2059_s3 + $0x138] sm:$0xff] }
  0x58   :  { %909 = vmatmul.mubr.f32.gmra.mrb[26].mxu0 %v46_v14  ;;  %957 = vmatmul.mubr.f32.gmra.mrb[26].mxu1 %v78_v15 }
  0x59   :  { %911 = vmatprep.mubr.f32.mxu0 %v47_v16  ;;  %959 = vmatprep.mubr.f32.mxu1 %v79_v17  ;;  %v562_v16 = vld [vmem:[%s2059_s3 + $0x30] sm:$0xff] }
  0x5c   :  { %912 = vmatmul.mubr.f32.gmra.mrb[28].mxu0 %v48_v18  ;;  %960 = vmatmul.mubr.f32.gmra.mrb[28].mxu1 %v80_v19  ;;  %v594_v18 = vld [vmem:[%s2059_s3 + $0x130] sm:$0xff] }
  0x5d   :  { %914 = vmatprep.mubr.f32.mxu0 %v49_v20  ;;  %962 = vmatprep.mubr.f32.mxu1 %v81_v21 }
  0x60   :  { %915 = vmatmul.mubr.f32.gmra.mrb[30].mxu0 %v50_v22  ;;  %963 = vmatmul.mubr.f32.gmra.mrb[30].mxu1 %v82_v23 }
  0xf7   :  { %v871_v25 = vpop.f32.mrb[0].mxu0  ;;  %v919_v27 = vpop.f32.mrb[0].mxu1 }
  0xf8   :  { %v178_v29 = vadd.f32 %v871_v25, %v1286_v24  ;;  %v338_v30 = vadd.f32 %v919_v27, %v1286_v24  ;;  %v172_v31 = vpop.f32.mrb[1].mxu0  ;;  %v332_v33 = vpop.f32.mrb[1].mxu1  ;;  %v565_v27 = vld [vmem:[%s2059_s3 + $0x48] sm:$0xff] }
  0xf9   :  { %v173_v35 = vadd.f32 %v1286_v24, %v172_v31  ;;  %v333_v36 = vadd.f32 %v1286_v24, %v332_v33  ;;  %v564_v33 = vld [vmem:[%s2059_s3 + $0x40] sm:$0xff] }
  0xfa   :  { %493 = vst.msk [vmem:[%s2060_s4 + $0x8] sm:$0xff] %vm491_vm0, %v178_v29  ;;  %v621_v37 = vsub.f32 %v557_v26, %v178_v29  ;;  %525 = vst.msk [vmem:[%s2060_s4 + $0x108] sm:$0xff] %vm491_vm0, %v338_v30  ;;  %v653_v38 = vsub.f32 %v589_v28, %v338_v30  ;;  %v597_v29 = vld [vmem:[%s2059_s3 + $0x148] sm:$0xff] }
  0xfb   :  { %492 = vst.msk [vmem:[%s2060_s4] sm:$0xff] %vm491_vm0, %v173_v35  ;;  %v620_v39 = vsub.f32 %v556_v32, %v173_v35  ;;  %524 = vst.msk [vmem:[%s2060_s4 + $0x100] sm:$0xff] %vm491_vm0, %v333_v36  ;;  %v652_v40 = vsub.f32 %v588_v34, %v333_v36  ;;  %v874_v41 = vpop.f32.mrb[2].mxu0  ;;  %v922_v43 = vpop.f32.mrb[2].mxu1  ;;  %v596_v35 = vld [vmem:[%s2059_s3 + $0x140] sm:$0xff] }
  0xfc   :  { %685 = vst.msk [vmem:[%s2061_s5 + $0x8] sm:$0xff] %vm491_vm0, %v621_v37  ;;  %717 = vst.msk [vmem:[%s2061_s5 + $0x108] sm:$0xff] %vm491_vm0, %v653_v38  ;;  %v188_v45 = vadd.f32 %v874_v41, %v1286_v24  ;;  %v348_v46 = vadd.f32 %v922_v43, %v1286_v24  ;;  %v182_v47 = vpop.f32.mrb[3].mxu0  ;;  %v342_v49 = vpop.f32.mrb[3].mxu1  ;;  %v567_v43 = vld [vmem:[%s2059_s3 + $0x58] sm:$0xff] }
  0xfd   :  { %684 = vst.msk [vmem:[%s2061_s5] sm:$0xff] %vm491_vm0, %v620_v39  ;;  %716 = vst.msk [vmem:[%s2061_s5 + $0x100] sm:$0xff] %vm491_vm0, %v652_v40  ;;  %v183_v51 = vadd.f32 %v1286_v24, %v182_v47  ;;  %v343_v52 = vadd.f32 %v1286_v24, %v342_v49  ;;  %v566_v49 = vld [vmem:[%s2059_s3 + $0x50] sm:$0xff] }
  0xfe   :  { %495 = vst.msk [vmem:[%s2060_s4 + $0x18] sm:$0xff] %vm491_vm0, %v188_v45  ;;  %v623_v53 = vsub.f32 %v559_v42, %v188_v45  ;;  %527 = vst.msk [vmem:[%s2060_s4 + $0x118] sm:$0xff] %vm491_vm0, %v348_v46  ;;  %v655_v54 = vsub.f32 %v591_v44, %v348_v46  ;;  %v599_v45 = vld [vmem:[%s2059_s3 + $0x158] sm:$0xff] }
  0xff   :  { %494 = vst.msk [vmem:[%s2060_s4 + $0x10] sm:$0xff] %vm491_vm0, %v183_v51  ;;  %v622_v55 = vsub.f32 %v558_v48, %v183_v51  ;;  %526 = vst.msk [vmem:[%s2060_s4 + $0x110] sm:$0xff] %vm491_vm0, %v343_v52  ;;  %v654_v56 = vsub.f32 %v590_v50, %v343_v52  ;;  %v877_v57 = vpop.f32.mrb[4].mxu0  ;;  %v925_v59 = vpop.f32.mrb[4].mxu1  ;;  %v598_v51 = vld [vmem:[%s2059_s3 + $0x150] sm:$0xff] }
 0x100   :  { %687 = vst.msk [vmem:[%s2061_s5 + $0x18] sm:$0xff] %vm491_vm0, %v623_v53  ;;  %719 = vst.msk [vmem:[%s2061_s5 + $0x118] sm:$0xff] %vm491_vm0, %v655_v54  ;;  %v198_v61 = vadd.f32 %v877_v57, %v1286_v24  ;;  %v358_v62 = vadd.f32 %v925_v59, %v1286_v24  ;;  %v192_v63 = vpop.f32.mrb[5].mxu0  ;;  %v352_v1 = vpop.f32.mrb[5].mxu1  ;;  %v569_v59 = vld [vmem:[%s2059_s3 + $0x68] sm:$0xff] }
 0x101   :  { %686 = vst.msk [vmem:[%s2061_s5 + $0x10] sm:$0xff] %vm491_vm0, %v622_v55  ;;  %718 = vst.msk [vmem:[%s2061_s5 + $0x110] sm:$0xff] %vm491_vm0, %v654_v56  ;;  %v193_v3 = vadd.f32 %v1286_v24, %v192_v63  ;;  %v353_v4 = vadd.f32 %v1286_v24, %v352_v1  ;;  %v568_v1 = vld [vmem:[%s2059_s3 + $0x60] sm:$0xff] }
 0x102   :  { %497 = vst.msk [vmem:[%s2060_s4 + $0x28] sm:$0xff] %vm491_vm0, %v198_v61  ;;  %v625_v5 = vsub.f32 %v561_v58, %v198_v61  ;;  %529 = vst.msk [vmem:[%s2060_s4 + $0x128] sm:$0xff] %vm491_vm0, %v358_v62  ;;  %v657_v6 = vsub.f32 %v593_v60, %v358_v62  ;;  %v601_v61 = vld [vmem:[%s2059_s3 + $0x168] sm:$0xff] }
 0x103   :  { %496 = vst.msk [vmem:[%s2060_s4 + $0x20] sm:$0xff] %vm491_vm0, %v193_v3  ;;  %v624_v7 = vsub.f32 %v560_v0, %v193_v3  ;;  %528 = vst.msk [vmem:[%s2060_s4 + $0x120] sm:$0xff] %vm491_vm0, %v353_v4  ;;  %v656_v8 = vsub.f32 %v592_v2, %v353_v4  ;;  %v880_v9 = vpop.f32.mrb[6].mxu0  ;;  %v928_v11 = vpop.f32.mrb[6].mxu1  ;;  %v600_v3 = vld [vmem:[%s2059_s3 + $0x160] sm:$0xff] }
 0x104   :  { %689 = vst.msk [vmem:[%s2061_s5 + $0x28] sm:$0xff] %vm491_vm0, %v625_v5  ;;  %721 = vst.msk [vmem:[%s2061_s5 + $0x128] sm:$0xff] %vm491_vm0, %v657_v6  ;;  %v208_v13 = vadd.f32 %v880_v9, %v1286_v24  ;;  %v368_v14 = vadd.f32 %v928_v11, %v1286_v24  ;;  %v202_v15 = vpop.f32.mrb[7].mxu0  ;;  %v362_v17 = vpop.f32.mrb[7].mxu1  ;;  %v571_v11 = vld [vmem:[%s2059_s3 + $0x78] sm:$0xff] }
 0x105   :  { %688 = vst.msk [vmem:[%s2061_s5 + $0x20] sm:$0xff] %vm491_vm0, %v624_v7  ;;  %720 = vst.msk [vmem:[%s2061_s5 + $0x120] sm:$0xff] %vm491_vm0, %v656_v8  ;;  %v203_v19 = vadd.f32 %v1286_v24, %v202_v15  ;;  %v363_v20 = vadd.f32 %v1286_v24, %v362_v17  ;;  %v570_v17 = vld [vmem:[%s2059_s3 + $0x70] sm:$0xff] }
 0x106   :  { %499 = vst.msk [vmem:[%s2060_s4 + $0x38] sm:$0xff] %vm491_vm0, %v208_v13  ;;  %v627_v21 = vsub.f32 %v563_v10, %v208_v13  ;;  %531 = vst.msk [vmem:[%s2060_s4 + $0x138] sm:$0xff] %vm491_vm0, %v368_v14  ;;  %v659_v22 = vsub.f32 %v595_v12, %v368_v14  ;;  %v603_v13 = vld [vmem:[%s2059_s3 + $0x178] sm:$0xff] }
 0x107   :  { %498 = vst.msk [vmem:[%s2060_s4 + $0x30] sm:$0xff] %vm491_vm0, %v203_v19  ;;  %v626_v23 = vsub.f32 %v562_v16, %v203_v19  ;;  %530 = vst.msk [vmem:[%s2060_s4 + $0x130] sm:$0xff] %vm491_vm0, %v363_v20  ;;  %v658_v25 = vsub.f32 %v594_v18, %v363_v20  ;;  %v883_v26 = vpop.f32.mrb[8].mxu0  ;;  %v931_v28 = vpop.f32.mrb[8].mxu1  ;;  %v602_v19 = vld [vmem:[%s2059_s3 + $0x170] sm:$0xff] }
 0x108   :  { %691 = vst.msk [vmem:[%s2061_s5 + $0x38] sm:$0xff] %vm491_vm0, %v627_v21  ;;  %723 = vst.msk [vmem:[%s2061_s5 + $0x138] sm:$0xff] %vm491_vm0, %v659_v22  ;;  %v218_v30 = vadd.f32 %v883_v26, %v1286_v24  ;;  %v378_v31 = vadd.f32 %v931_v28, %v1286_v24  ;;  %v212_v32 = vpop.f32.mrb[9].mxu0  ;;  %v372_v34 = vpop.f32.mrb[9].mxu1  ;;  %v573_v28 = vld [vmem:[%s2059_s3 + $0x88] sm:$0xff] }
 0x109   :  { %690 = vst.msk [vmem:[%s2061_s5 + $0x30] sm:$0xff] %vm491_vm0, %v626_v23  ;;  %722 = vst.msk [vmem:[%s2061_s5 + $0x130] sm:$0xff] %vm491_vm0, %v658_v25  ;;  %v213_v36 = vadd.f32 %v1286_v24, %v212_v32  ;;  %v373_v37 = vadd.f32 %v1286_v24, %v372_v34  ;;  %v572_v34 = vld [vmem:[%s2059_s3 + $0x80] sm:$0xff] }
 0x10a   :  { %501 = vst.msk [vmem:[%s2060_s4 + $0x48] sm:$0xff] %vm491_vm0, %v218_v30  ;;  %v629_v38 = vsub.f32 %v565_v27, %v218_v30  ;;  %533 = vst.msk [vmem:[%s2060_s4 + $0x148] sm:$0xff] %vm491_vm0, %v378_v31  ;;  %v661_v39 = vsub.f32 %v597_v29, %v378_v31  ;;  %v605_v30 = vld [vmem:[%s2059_s3 + $0x188] sm:$0xff] }
 0x10b   :  { %500 = vst.msk [vmem:[%s2060_s4 + $0x40] sm:$0xff] %vm491_vm0, %v213_v36  ;;  %v628_v40 = vsub.f32 %v564_v33, %v213_v36  ;;  %532 = vst.msk [vmem:[%s2060_s4 + $0x140] sm:$0xff] %vm491_vm0, %v373_v37  ;;  %v660_v41 = vsub.f32 %v596_v35, %v373_v37  ;;  %v886_v42 = vpop.f32.mrb[10].mxu0  ;;  %v934_v44 = vpop.f32.mrb[10].mxu1  ;;  %v604_v36 = vld [vmem:[%s2059_s3 + $0x180] sm:$0xff] }
 0x10c   :  { %693 = vst.msk [vmem:[%s2061_s5 + $0x48] sm:$0xff] %vm491_vm0, %v629_v38  ;;  %725 = vst.msk [vmem:[%s2061_s5 + $0x148] sm:$0xff] %vm491_vm0, %v661_v39  ;;  %v228_v46 = vadd.f32 %v886_v42, %v1286_v24  ;;  %v388_v47 = vadd.f32 %v934_v44, %v1286_v24  ;;  %v222_v48 = vpop.f32.mrb[11].mxu0  ;;  %v382_v50 = vpop.f32.mrb[11].mxu1  ;;  %v575_v44 = vld [vmem:[%s2059_s3 + $0x98] sm:$0xff] }
 0x10d   :  { %692 = vst.msk [vmem:[%s2061_s5 + $0x40] sm:$0xff] %vm491_vm0, %v628_v40  ;;  %724 = vst.msk [vmem:[%s2061_s5 + $0x140] sm:$0xff] %vm491_vm0, %v660_v41  ;;  %v223_v52 = vadd.f32 %v1286_v24, %v222_v48  ;;  %v383_v53 = vadd.f32 %v1286_v24, %v382_v50  ;;  %v574_v50 = vld [vmem:[%s2059_s3 + $0x90] sm:$0xff] }
 0x10e   :  { %503 = vst.msk [vmem:[%s2060_s4 + $0x58] sm:$0xff] %vm491_vm0, %v228_v46  ;;  %v631_v54 = vsub.f32 %v567_v43, %v228_v46  ;;  %535 = vst.msk [vmem:[%s2060_s4 + $0x158] sm:$0xff] %vm491_vm0, %v388_v47  ;;  %v663_v55 = vsub.f32 %v599_v45, %v388_v47  ;;  %v607_v46 = vld [vmem:[%s2059_s3 + $0x198] sm:$0xff] }
 0x10f   :  { %502 = vst.msk [vmem:[%s2060_s4 + $0x50] sm:$0xff] %vm491_vm0, %v223_v52  ;;  %v630_v56 = vsub.f32 %v566_v49, %v223_v52  ;;  %534 = vst.msk [vmem:[%s2060_s4 + $0x150] sm:$0xff] %vm491_vm0, %v383_v53  ;;  %v662_v57 = vsub.f32 %v598_v51, %v383_v53  ;;  %v889_v58 = vpop.f32.mrb[12].mxu0  ;;  %v937_v60 = vpop.f32.mrb[12].mxu1  ;;  %v606_v52 = vld [vmem:[%s2059_s3 + $0x190] sm:$0xff] }
 0x110   :  { %695 = vst.msk [vmem:[%s2061_s5 + $0x58] sm:$0xff] %vm491_vm0, %v631_v54  ;;  %727 = vst.msk [vmem:[%s2061_s5 + $0x158] sm:$0xff] %vm491_vm0, %v663_v55  ;;  %v238_v62 = vadd.f32 %v889_v58, %v1286_v24  ;;  %v398_v63 = vadd.f32 %v937_v60, %v1286_v24  ;;  %v232_v0 = vpop.f32.mrb[13].mxu0  ;;  %v392_v2 = vpop.f32.mrb[13].mxu1  ;;  %v577_v60 = vld [vmem:[%s2059_s3 + $0xa8] sm:$0xff] }
 0x111   :  { %694 = vst.msk [vmem:[%s2061_s5 + $0x50] sm:$0xff] %vm491_vm0, %v630_v56  ;;  %726 = vst.msk [vmem:[%s2061_s5 + $0x150] sm:$0xff] %vm491_vm0, %v662_v57  ;;  %v233_v4 = vadd.f32 %v1286_v24, %v232_v0  ;;  %v393_v5 = vadd.f32 %v1286_v24, %v392_v2  ;;  %v576_v2 = vld [vmem:[%s2059_s3 + $0xa0] sm:$0xff] }
 0x112   :  { %505 = vst.msk [vmem:[%s2060_s4 + $0x68] sm:$0xff] %vm491_vm0, %v238_v62  ;;  %v633_v6 = vsub.f32 %v569_v59, %v238_v62  ;;  %537 = vst.msk [vmem:[%s2060_s4 + $0x168] sm:$0xff] %vm491_vm0, %v398_v63  ;;  %v665_v7 = vsub.f32 %v601_v61, %v398_v63  ;;  %v609_v62 = vld [vmem:[%s2059_s3 + $0x1a8] sm:$0xff] }
 0x113   :  { %504 = vst.msk [vmem:[%s2060_s4 + $0x60] sm:$0xff] %vm491_vm0, %v233_v4  ;;  %v632_v8 = vsub.f32 %v568_v1, %v233_v4  ;;  %536 = vst.msk [vmem:[%s2060_s4 + $0x160] sm:$0xff] %vm491_vm0, %v393_v5  ;;  %v664_v9 = vsub.f32 %v600_v3, %v393_v5  ;;  %v892_v10 = vpop.f32.mrb[14].mxu0  ;;  %v940_v12 = vpop.f32.mrb[14].mxu1  ;;  %v608_v4 = vld [vmem:[%s2059_s3 + $0x1a0] sm:$0xff] }
 0x114   :  { %697 = vst.msk [vmem:[%s2061_s5 + $0x68] sm:$0xff] %vm491_vm0, %v633_v6  ;;  %729 = vst.msk [vmem:[%s2061_s5 + $0x168] sm:$0xff] %vm491_vm0, %v665_v7  ;;  %v248_v14 = vadd.f32 %v892_v10, %v1286_v24  ;;  %v408_v15 = vadd.f32 %v940_v12, %v1286_v24  ;;  %v242_v16 = vpop.f32.mrb[15].mxu0  ;;  %v402_v18 = vpop.f32.mrb[15].mxu1  ;;  %v579_v12 = vld [vmem:[%s2059_s3 + $0xb8] sm:$0xff] }
 0x115   :  { %696 = vst.msk [vmem:[%s2061_s5 + $0x60] sm:$0xff] %vm491_vm0, %v632_v8  ;;  %728 = vst.msk [vmem:[%s2061_s5 + $0x160] sm:$0xff] %vm491_vm0, %v664_v9  ;;  %v243_v20 = vadd.f32 %v1286_v24, %v242_v16  ;;  %v403_v21 = vadd.f32 %v1286_v24, %v402_v18  ;;  %v578_v18 = vld [vmem:[%s2059_s3 + $0xb0] sm:$0xff] }
 0x116   :  { %507 = vst.msk [vmem:[%s2060_s4 + $0x78] sm:$0xff] %vm491_vm0, %v248_v14  ;;  %v635_v22 = vsub.f32 %v571_v11, %v248_v14  ;;  %539 = vst.msk [vmem:[%s2060_s4 + $0x178] sm:$0xff] %vm491_vm0, %v408_v15  ;;  %v667_v23 = vsub.f32 %v603_v13, %v408_v15  ;;  %v611_v14 = vld [vmem:[%s2059_s3 + $0x1b8] sm:$0xff] }
 0x117   :  { %506 = vst.msk [vmem:[%s2060_s4 + $0x70] sm:$0xff] %vm491_vm0, %v243_v20  ;;  %v634_v25 = vsub.f32 %v570_v17, %v243_v20  ;;  %538 = vst.msk [vmem:[%s2060_s4 + $0x170] sm:$0xff] %vm491_vm0, %v403_v21  ;;  %v666_v26 = vsub.f32 %v602_v19, %v403_v21  ;;  %v895_v27 = vpop.f32.mrb[16].mxu0  ;;  %v943_v29 = vpop.f32.mrb[16].mxu1  ;;  %v610_v20 = vld [vmem:[%s2059_s3 + $0x1b0] sm:$0xff] }
 0x118   :  { %699 = vst.msk [vmem:[%s2061_s5 + $0x78] sm:$0xff] %vm491_vm0, %v635_v22  ;;  %731 = vst.msk [vmem:[%s2061_s5 + $0x178] sm:$0xff] %vm491_vm0, %v667_v23  ;;  %v258_v31 = vadd.f32 %v895_v27, %v1286_v24  ;;  %v418_v32 = vadd.f32 %v943_v29, %v1286_v24  ;;  %v252_v33 = vpop.f32.mrb[17].mxu0  ;;  %v412_v35 = vpop.f32.mrb[17].mxu1  ;;  %v581_v29 = vld [vmem:[%s2059_s3 + $0xc8] sm:$0xff] }
 0x119   :  { %698 = vst.msk [vmem:[%s2061_s5 + $0x70] sm:$0xff] %vm491_vm0, %v634_v25  ;;  %730 = vst.msk [vmem:[%s2061_s5 + $0x170] sm:$0xff] %vm491_vm0, %v666_v26  ;;  %v253_v37 = vadd.f32 %v1286_v24, %v252_v33  ;;  %v413_v38 = vadd.f32 %v1286_v24, %v412_v35  ;;  %v580_v35 = vld [vmem:[%s2059_s3 + $0xc0] sm:$0xff] }
 0x11a   :  { %509 = vst.msk [vmem:[%s2060_s4 + $0x88] sm:$0xff] %vm491_vm0, %v258_v31  ;;  %v637_v39 = vsub.f32 %v573_v28, %v258_v31  ;;  %541 = vst.msk [vmem:[%s2060_s4 + $0x188] sm:$0xff] %vm491_vm0, %v418_v32  ;;  %v669_v40 = vsub.f32 %v605_v30, %v418_v32  ;;  %v613_v31 = vld [vmem:[%s2059_s3 + $0x1c8] sm:$0xff] }
 0x11b   :  { %508 = vst.msk [vmem:[%s2060_s4 + $0x80] sm:$0xff] %vm491_vm0, %v253_v37  ;;  %v636_v41 = vsub.f32 %v572_v34, %v253_v37  ;;  %540 = vst.msk [vmem:[%s2060_s4 + $0x180] sm:$0xff] %vm491_vm0, %v413_v38  ;;  %v668_v42 = vsub.f32 %v604_v36, %v413_v38  ;;  %v898_v43 = vpop.f32.mrb[18].mxu0  ;;  %v946_v45 = vpop.f32.mrb[18].mxu1  ;;  %v612_v37 = vld [vmem:[%s2059_s3 + $0x1c0] sm:$0xff] }
 0x11c   :  { %701 = vst.msk [vmem:[%s2061_s5 + $0x88] sm:$0xff] %vm491_vm0, %v637_v39  ;;  %733 = vst.msk [vmem:[%s2061_s5 + $0x188] sm:$0xff] %vm491_vm0, %v669_v40  ;;  %v268_v47 = vadd.f32 %v898_v43, %v1286_v24  ;;  %v428_v48 = vadd.f32 %v946_v45, %v1286_v24  ;;  %v262_v49 = vpop.f32.mrb[19].mxu0  ;;  %v422_v51 = vpop.f32.mrb[19].mxu1  ;;  %v583_v45 = vld [vmem:[%s2059_s3 + $0xd8] sm:$0xff] }
 0x11d   :  { %700 = vst.msk [vmem:[%s2061_s5 + $0x80] sm:$0xff] %vm491_vm0, %v636_v41  ;;  %732 = vst.msk [vmem:[%s2061_s5 + $0x180] sm:$0xff] %vm491_vm0, %v668_v42  ;;  %v263_v53 = vadd.f32 %v1286_v24, %v262_v49  ;;  %v423_v54 = vadd.f32 %v1286_v24, %v422_v51  ;;  %v582_v51 = vld [vmem:[%s2059_s3 + $0xd0] sm:$0xff] }
 0x11e   :  { %511 = vst.msk [vmem:[%s2060_s4 + $0x98] sm:$0xff] %vm491_vm0, %v268_v47  ;;  %v639_v55 = vsub.f32 %v575_v44, %v268_v47  ;;  %543 = vst.msk [vmem:[%s2060_s4 + $0x198] sm:$0xff] %vm491_vm0, %v428_v48  ;;  %v671_v56 = vsub.f32 %v607_v46, %v428_v48  ;;  %v615_v47 = vld [vmem:[%s2059_s3 + $0x1d8] sm:$0xff] }
 0x11f   :  { %510 = vst.msk [vmem:[%s2060_s4 + $0x90] sm:$0xff] %vm491_vm0, %v263_v53  ;;  %v638_v57 = vsub.f32 %v574_v50, %v263_v53  ;;  %542 = vst.msk [vmem:[%s2060_s4 + $0x190] sm:$0xff] %vm491_vm0, %v423_v54  ;;  %v670_v58 = vsub.f32 %v606_v52, %v423_v54  ;;  %v901_v59 = vpop.f32.mrb[20].mxu0  ;;  %v949_v61 = vpop.f32.mrb[20].mxu1  ;;  %v614_v53 = vld [vmem:[%s2059_s3 + $0x1d0] sm:$0xff] }
 0x120   :  { %703 = vst.msk [vmem:[%s2061_s5 + $0x98] sm:$0xff] %vm491_vm0, %v639_v55  ;;  %735 = vst.msk [vmem:[%s2061_s5 + $0x198] sm:$0xff] %vm491_vm0, %v671_v56  ;;  %v278_v63 = vadd.f32 %v901_v59, %v1286_v24  ;;  %v438_v0 = vadd.f32 %v949_v61, %v1286_v24  ;;  %v272_v1 = vpop.f32.mrb[21].mxu0  ;;  %v432_v3 = vpop.f32.mrb[21].mxu1  ;;  %v585_v61 = vld [vmem:[%s2059_s3 + $0xe8] sm:$0xff] }
 0x121   :  { %702 = vst.msk [vmem:[%s2061_s5 + $0x90] sm:$0xff] %vm491_vm0, %v638_v57  ;;  %734 = vst.msk [vmem:[%s2061_s5 + $0x190] sm:$0xff] %vm491_vm0, %v670_v58  ;;  %v273_v5 = vadd.f32 %v1286_v24, %v272_v1  ;;  %v433_v6 = vadd.f32 %v1286_v24, %v432_v3  ;;  %v584_v3 = vld [vmem:[%s2059_s3 + $0xe0] sm:$0xff] }
 0x122   :  { %513 = vst.msk [vmem:[%s2060_s4 + $0xa8] sm:$0xff] %vm491_vm0, %v278_v63  ;;  %v641_v7 = vsub.f32 %v577_v60, %v278_v63  ;;  %545 = vst.msk [vmem:[%s2060_s4 + $0x1a8] sm:$0xff] %vm491_vm0, %v438_v0  ;;  %v673_v8 = vsub.f32 %v609_v62, %v438_v0  ;;  %v617_v63 = vld [vmem:[%s2059_s3 + $0x1e8] sm:$0xff] }
 0x123   :  { %512 = vst.msk [vmem:[%s2060_s4 + $0xa0] sm:$0xff] %vm491_vm0, %v273_v5  ;;  %v640_v9 = vsub.f32 %v576_v2, %v273_v5  ;;  %544 = vst.msk [vmem:[%s2060_s4 + $0x1a0] sm:$0xff] %vm491_vm0, %v433_v6  ;;  %v672_v10 = vsub.f32 %v608_v4, %v433_v6  ;;  %v904_v11 = vpop.f32.mrb[22].mxu0  ;;  %v952_v13 = vpop.f32.mrb[22].mxu1  ;;  %v616_v5 = vld [vmem:[%s2059_s3 + $0x1e0] sm:$0xff] }
 0x124   :  { %705 = vst.msk [vmem:[%s2061_s5 + $0xa8] sm:$0xff] %vm491_vm0, %v641_v7  ;;  %737 = vst.msk [vmem:[%s2061_s5 + $0x1a8] sm:$0xff] %vm491_vm0, %v673_v8  ;;  %v288_v15 = vadd.f32 %v904_v11, %v1286_v24  ;;  %v448_v16 = vadd.f32 %v952_v13, %v1286_v24  ;;  %v282_v17 = vpop.f32.mrb[23].mxu0  ;;  %v442_v19 = vpop.f32.mrb[23].mxu1  ;;  %v587_v13 = vld [vmem:[%s2059_s3 + $0xf8] sm:$0xff] }
 0x125   :  { %704 = vst.msk [vmem:[%s2061_s5 + $0xa0] sm:$0xff] %vm491_vm0, %v640_v9  ;;  %736 = vst.msk [vmem:[%s2061_s5 + $0x1a0] sm:$0xff] %vm491_vm0, %v672_v10  ;;  %v283_v21 = vadd.f32 %v1286_v24, %v282_v17  ;;  %v443_v22 = vadd.f32 %v1286_v24, %v442_v19  ;;  %v586_v19 = vld [vmem:[%s2059_s3 + $0xf0] sm:$0xff] }
 0x126   :  { %515 = vst.msk [vmem:[%s2060_s4 + $0xb8] sm:$0xff] %vm491_vm0, %v288_v15  ;;  %v643_v23 = vsub.f32 %v579_v12, %v288_v15  ;;  %547 = vst.msk [vmem:[%s2060_s4 + $0x1b8] sm:$0xff] %vm491_vm0, %v448_v16  ;;  %v675_v25 = vsub.f32 %v611_v14, %v448_v16  ;;  %v619_v15 = vld [vmem:[%s2059_s3 + $0x1f8] sm:$0xff] }
 0x127   :  { %514 = vst.msk [vmem:[%s2060_s4 + $0xb0] sm:$0xff] %vm491_vm0, %v283_v21  ;;  %v642_v26 = vsub.f32 %v578_v18, %v283_v21  ;;  %546 = vst.msk [vmem:[%s2060_s4 + $0x1b0] sm:$0xff] %vm491_vm0, %v443_v22  ;;  %v674_v27 = vsub.f32 %v610_v20, %v443_v22  ;;  %v907_v28 = vpop.f32.mrb[24].mxu0  ;;  %v955_v30 = vpop.f32.mrb[24].mxu1  ;;  %v618_v21 = vld [vmem:[%s2059_s3 + $0x1f0] sm:$0xff] }
 0x128   :  { %707 = vst.msk [vmem:[%s2061_s5 + $0xb8] sm:$0xff] %vm491_vm0, %v643_v23  ;;  %739 = vst.msk [vmem:[%s2061_s5 + $0x1b8] sm:$0xff] %vm491_vm0, %v675_v25  ;;  %v298_v32 = vadd.f32 %v907_v28, %v1286_v24  ;;  %v458_v33 = vadd.f32 %v955_v30, %v1286_v24  ;;  %v292_v34 = vpop.f32.mrb[25].mxu0  ;;  %v452_v36 = vpop.f32.mrb[25].mxu1 }
 0x129   :  { %706 = vst.msk [vmem:[%s2061_s5 + $0xb0] sm:$0xff] %vm491_vm0, %v642_v26  ;;  %738 = vst.msk [vmem:[%s2061_s5 + $0x1b0] sm:$0xff] %vm491_vm0, %v674_v27  ;;  %v293_v38 = vadd.f32 %v1286_v24, %v292_v34  ;;  %v453_v39 = vadd.f32 %v1286_v24, %v452_v36 }
 0x12a   :  { %517 = vst.msk [vmem:[%s2060_s4 + $0xc8] sm:$0xff] %vm491_vm0, %v298_v32  ;;  %v645_v40 = vsub.f32 %v581_v29, %v298_v32  ;;  %549 = vst.msk [vmem:[%s2060_s4 + $0x1c8] sm:$0xff] %vm491_vm0, %v458_v33  ;;  %v677_v41 = vsub.f32 %v613_v31, %v458_v33 }
 0x12b   :  { %516 = vst.msk [vmem:[%s2060_s4 + $0xc0] sm:$0xff] %vm491_vm0, %v293_v38  ;;  %v644_v42 = vsub.f32 %v580_v35, %v293_v38  ;;  %548 = vst.msk [vmem:[%s2060_s4 + $0x1c0] sm:$0xff] %vm491_vm0, %v453_v39  ;;  %v676_v43 = vsub.f32 %v612_v37, %v453_v39  ;;  %v910_v44 = vpop.f32.mrb[26].mxu0  ;;  %v958_v46 = vpop.f32.mrb[26].mxu1 }
 0x12c   :  { %709 = vst.msk [vmem:[%s2061_s5 + $0xc8] sm:$0xff] %vm491_vm0, %v645_v40  ;;  %741 = vst.msk [vmem:[%s2061_s5 + $0x1c8] sm:$0xff] %vm491_vm0, %v677_v41  ;;  %v308_v48 = vadd.f32 %v910_v44, %v1286_v24  ;;  %v468_v49 = vadd.f32 %v958_v46, %v1286_v24  ;;  %v302_v50 = vpop.f32.mrb[27].mxu0  ;;  %v462_v52 = vpop.f32.mrb[27].mxu1 }
 0x12d   :  { %708 = vst.msk [vmem:[%s2061_s5 + $0xc0] sm:$0xff] %vm491_vm0, %v644_v42  ;;  %740 = vst.msk [vmem:[%s2061_s5 + $0x1c0] sm:$0xff] %vm491_vm0, %v676_v43  ;;  %v303_v54 = vadd.f32 %v1286_v24, %v302_v50  ;;  %v463_v55 = vadd.f32 %v1286_v24, %v462_v52 }
 0x12e   :  { %519 = vst.msk [vmem:[%s2060_s4 + $0xd8] sm:$0xff] %vm491_vm0, %v308_v48  ;;  %v647_v56 = vsub.f32 %v583_v45, %v308_v48  ;;  %551 = vst.msk [vmem:[%s2060_s4 + $0x1d8] sm:$0xff] %vm491_vm0, %v468_v49  ;;  %v679_v57 = vsub.f32 %v615_v47, %v468_v49 }
 0x12f   :  { %518 = vst.msk [vmem:[%s2060_s4 + $0xd0] sm:$0xff] %vm491_vm0, %v303_v54  ;;  %v646_v58 = vsub.f32 %v582_v51, %v303_v54  ;;  %550 = vst.msk [vmem:[%s2060_s4 + $0x1d0] sm:$0xff] %vm491_vm0, %v463_v55  ;;  %v678_v59 = vsub.f32 %v614_v53, %v463_v55  ;;  %v913_v60 = vpop.f32.mrb[28].mxu0  ;;  %v961_v62 = vpop.f32.mrb[28].mxu1 }
 0x130   :  { %711 = vst.msk [vmem:[%s2061_s5 + $0xd8] sm:$0xff] %vm491_vm0, %v647_v56  ;;  %743 = vst.msk [vmem:[%s2061_s5 + $0x1d8] sm:$0xff] %vm491_vm0, %v679_v57  ;;  %v318_v0 = vadd.f32 %v913_v60, %v1286_v24  ;;  %v478_v1 = vadd.f32 %v961_v62, %v1286_v24  ;;  %v312_v2 = vpop.f32.mrb[29].mxu0  ;;  %v472_v4 = vpop.f32.mrb[29].mxu1 }
 0x131   :  { %710 = vst.msk [vmem:[%s2061_s5 + $0xd0] sm:$0xff] %vm491_vm0, %v646_v58  ;;  %742 = vst.msk [vmem:[%s2061_s5 + $0x1d0] sm:$0xff] %vm491_vm0, %v678_v59  ;;  %v313_v6 = vadd.f32 %v1286_v24, %v312_v2  ;;  %v473_v7 = vadd.f32 %v1286_v24, %v472_v4 }
 0x132   :  { %521 = vst.msk [vmem:[%s2060_s4 + $0xe8] sm:$0xff] %vm491_vm0, %v318_v0  ;;  %v649_v8 = vsub.f32 %v585_v61, %v318_v0  ;;  %553 = vst.msk [vmem:[%s2060_s4 + $0x1e8] sm:$0xff] %vm491_vm0, %v478_v1  ;;  %v681_v9 = vsub.f32 %v617_v63, %v478_v1 }
 0x133   :  { %520 = vst.msk [vmem:[%s2060_s4 + $0xe0] sm:$0xff] %vm491_vm0, %v313_v6  ;;  %v648_v10 = vsub.f32 %v584_v3, %v313_v6  ;;  %552 = vst.msk [vmem:[%s2060_s4 + $0x1e0] sm:$0xff] %vm491_vm0, %v473_v7  ;;  %v680_v11 = vsub.f32 %v616_v5, %v473_v7  ;;  %v916_v12 = vpop.f32.mrb[30].mxu0  ;;  %v964_v14 = vpop.f32.mrb[30].mxu1 }
 0x134   :  { %713 = vst.msk [vmem:[%s2061_s5 + $0xe8] sm:$0xff] %vm491_vm0, %v649_v8  ;;  %745 = vst.msk [vmem:[%s2061_s5 + $0x1e8] sm:$0xff] %vm491_vm0, %v681_v9  ;;  %v328_v16 = vadd.f32 %v916_v12, %v1286_v24  ;;  %v488_v17 = vadd.f32 %v964_v14, %v1286_v24  ;;  %v322_v18 = vpop.f32.mrb[31].mxu0  ;;  %v482_v20 = vpop.f32.mrb[31].mxu1 }
 0x135   :  { %712 = vst.msk [vmem:[%s2061_s5 + $0xe0] sm:$0xff] %vm491_vm0, %v648_v10  ;;  %744 = vst.msk [vmem:[%s2061_s5 + $0x1e0] sm:$0xff] %vm491_vm0, %v680_v11  ;;  %v323_v22 = vadd.f32 %v1286_v24, %v322_v18  ;;  %v483_v23 = vadd.f32 %v1286_v24, %v482_v20 }
 0x136   :  { %523 = vst.msk [vmem:[%s2060_s4 + $0xf8] sm:$0xff] %vm491_vm0, %v328_v16  ;;  %v651_v25 = vsub.f32 %v587_v13, %v328_v16  ;;  %555 = vst.msk [vmem:[%s2060_s4 + $0x1f8] sm:$0xff] %vm491_vm0, %v488_v17  ;;  %v683_v26 = vsub.f32 %v619_v15, %v488_v17 }
 0x137   :  { %522 = vst.msk [vmem:[%s2060_s4 + $0xf0] sm:$0xff] %vm491_vm0, %v323_v22  ;;  %v650_v27 = vsub.f32 %v586_v19, %v323_v22  ;;  %554 = vst.msk [vmem:[%s2060_s4 + $0x1f0] sm:$0xff] %vm491_vm0, %v483_v23  ;;  %v682_v24 = vsub.f32 %v618_v21, %v483_v23 }
 0x138   :  { %715 = vst.msk [vmem:[%s2061_s5 + $0xf8] sm:$0xff] %vm491_vm0, %v651_v25  ;;  %747 = vst.msk [vmem:[%s2061_s5 + $0x1f8] sm:$0xff] %vm491_vm0, %v683_v26 }
 0x139   :  { %714 = vst.msk [vmem:[%s2061_s5 + $0xf0] sm:$0xff] %vm491_vm0, %v650_v27  ;;  %746 = vst.msk [vmem:[%s2061_s5 + $0x1f0] sm:$0xff] %vm491_vm0, %v682_v24 }

// kernel: forward.26
= control target key start
LH: loop header
LB: loop body
LE: loop exit
PB: predicated region body
PF: predicated region fallthrough
CT: control target
= control target key end

     0   :  { %v226_v0 = vmov 0.0|0.0   ;;  %vm63_vm0 = vcmask 588800   ;;  %v227_v39 = vmov 0.0   ;;  %vm136_vm1 = vcmask 58368   ;;  %s363_s1 = inlined_call_operand.vmem [shape: f32[200,8], index: 1, kind: input, shape index: {}]   ;;  %s364_s0 = inlined_call_operand.vmem [shape: f32[2,200], index: 0, kind: input, shape index: {}]   ;;  %s365_s2 = inlined_call_operand.vmem [shape: f32[1,8], index: 2, kind: input, shape index: {}]   ;;  %s366_s3 = inlined_call_operand.vmem [shape: f32[1,8], index: 3, kind: input, shape index: {}]   ;;  %s367_s4 = inlined_call_operand.vmem [shape: f32[1,8], index: 4, kind: input, shape index: {}]   ;;  %s368_s5 = inlined_call_operand.vmem [shape: f32[2,8], index: 5, kind: output, shape index: {}]  }
   0x1   :  { %186 = vmatprep.subr.bf16.mxu0 %v226_v0  ;;  %v21_v1 = vld [vmem:[%s363_s1] sm:$0xff]  ;;  %v22_v2 = vld [vmem:[%s363_s1 + $0x8] sm:$0xff]  ;;  %v23_v3 = vld [vmem:[%s363_s1 + $0x10] sm:$0xff] }
   0x2   :  { %v187_v4 = vpack.c.bf16 %v22_v2, %v21_v1  ;;  %v24_v5 = vld [vmem:[%s363_s1 + $0x18] sm:$0xff]  ;;  %v25_v7 = vld [vmem:[%s363_s1 + $0x20] sm:$0xff]  ;;  %v26_v8 = vld [vmem:[%s363_s1 + $0x28] sm:$0xff] }
   0x3   :  { %v190_v6 = vpack.c.bf16 %v24_v5, %v23_v3  ;;  %v193_v9 = vpack.c.bf16 %v26_v8, %v25_v7  ;;  %v27_v10 = vld [vmem:[%s363_s1 + $0x30] sm:$0xff]  ;;  %v28_v11 = vld [vmem:[%s363_s1 + $0x38] sm:$0xff]  ;;  %v184_v12 = vld.sshfl [vmem:[%s364_s0] sm:$0x33 pattern:$0x76325410] }
   0x4   :  { %188 = vmatpush1.bf16.msra.mxu0 %v187_v4  ;;  %v61_v13 = vcombine.high %v184_v12, %v184_v12  ;;  %v196_v14 = vpack.c.bf16 %v28_v11, %v27_v10  ;;  %v29_v15 = vld [vmem:[%s363_s1 + $0x40] sm:$0xff]  ;;  %v30_v16 = vld [vmem:[%s363_s1 + $0x48] sm:$0xff]  ;;  %v31_v18 = vld [vmem:[%s363_s1 + $0x50] sm:$0xff] }
   0x5   :  { %189 = vmatprep.subr.bf16.mxu0 %v226_v0  ;;  %v199_v17 = vpack.c.bf16 %v30_v16, %v29_v15  ;;  %v32_v19 = vld [vmem:[%s363_s1 + $0x58] sm:$0xff]  ;;  %v33_v21 = vld [vmem:[%s363_s1 + $0x60] sm:$0xff]  ;;  %v34_v22 = vld [vmem:[%s363_s1 + $0x68] sm:$0xff] }
   0x6   :  { %185 = vmatprep.mubr.msk.f32.mxu0 %vm63_vm0, %v61_v13  ;;  %v202_v20 = vpack.c.bf16 %v32_v19, %v31_v18  ;;  %v205_v23 = vpack.c.bf16 %v34_v22, %v33_v21  ;;  %v35_v24 = vld [vmem:[%s363_s1 + $0x70] sm:$0xff]  ;;  %v36_v25 = vld [vmem:[%s363_s1 + $0x78] sm:$0xff]  ;;  %v37_v27 = vld [vmem:[%s363_s1 + $0x80] sm:$0xff] }
   0x7   :  { %v208_v26 = vpack.c.bf16 %v36_v25, %v35_v24  ;;  %v38_v28 = vld [vmem:[%s363_s1 + $0x88] sm:$0xff]  ;;  %v39_v30 = vld [vmem:[%s363_s1 + $0x90] sm:$0xff]  ;;  %v40_v31 = vld [vmem:[%s363_s1 + $0x98] sm:$0xff] }
   0x8   :  { %191 = vmatpush1.bf16.msra.mxu0 %v190_v6  ;;  %v211_v29 = vpack.c.bf16 %v38_v28, %v37_v27  ;;  %v214_v32 = vpack.c.bf16 %v40_v31, %v39_v30  ;;  %v41_v33 = vld [vmem:[%s363_s1 + $0xa0] sm:$0xff]  ;;  %v42_v34 = vld [vmem:[%s363_s1 + $0xa8] sm:$0xff]  ;;  %v43_v36 = vld [vmem:[%s363_s1 + $0xb0] sm:$0xff] }
   0x9   :  { %192 = vmatprep.subr.bf16.mxu0 %v226_v0  ;;  %v217_v35 = vpack.c.bf16 %v42_v34, %v41_v33  ;;  %v44_v37 = vld [vmem:[%s363_s1 + $0xb8] sm:$0xff]  ;;  %v45_v40 = vld [vmem:[%s363_s1 + $0xc0] sm:$0xff] }
   0xa   :  { %v220_v38 = vpack.c.bf16 %v44_v37, %v43_v36  ;;  %v183_v41 = vld [vmem:[%s365_s2] ss:$0 sm:$0xff] }
   0xb   :  { %v156_v2 = vld [vmem:[%s366_s3] sm:$0x1] }
   0xc   :  { %194 = vmatpush1.bf16.msra.mxu0 %v193_v9  ;;  %v167_v6 = vld [vmem:[%s367_s4] sm:$0x1] }
   0xd   :  { %195 = vmatprep.subr.bf16.mxu0 %v226_v0 }
  0x10   :  { %197 = vmatpush1.bf16.msra.mxu0 %v196_v14 }
  0x11   :  { %198 = vmatprep.subr.bf16.mxu0 %v226_v0 }
  0x14   :  { %200 = vmatpush1.bf16.msra.mxu0 %v199_v17 }
  0x15   :  { %201 = vmatprep.subr.bf16.mxu0 %v226_v0 }
  0x18   :  { %203 = vmatpush1.bf16.msra.mxu0 %v202_v20 }
  0x19   :  { %204 = vmatprep.subr.bf16.mxu0 %v226_v0 }
  0x1c   :  { %206 = vmatpush1.bf16.msra.mxu0 %v205_v23 }
  0x1d   :  { %207 = vmatprep.subr.bf16.mxu0 %v226_v0 }
  0x20   :  { %209 = vmatpush1.bf16.msra.mxu0 %v208_v26 }
  0x21   :  { %210 = vmatprep.subr.bf16.mxu0 %v226_v0 }
  0x24   :  { %212 = vmatpush1.bf16.msra.mxu0 %v211_v29 }
  0x25   :  { %213 = vmatprep.subr.bf16.mxu0 %v226_v0 }
  0x28   :  { %215 = vmatpush1.bf16.msra.mxu0 %v214_v32 }
  0x29   :  { %216 = vmatprep.subr.bf16.mxu0 %v226_v0 }
  0x2c   :  { %218 = vmatpush1.bf16.msra.mxu0 %v217_v35 }
  0x2d   :  { %219 = vmatprep.subr.bf16.mxu0 %v226_v0  ;;  %v161_v0 = vlaneseq }
  0x2f   :  { %v162_v1 = vshrl.u32 %v161_v0, 7 }
  0x30   :  { %221 = vmatpush1.bf16.msra.mxu0 %v220_v38 }
  0x31   :  { %114 = vmatprep.subr.mxu0 %v227_v39  ;;  %v163_v3 = vsub.s32 0, %v162_v1 }
  0x34   :  { %115 = vmatpush1.msra.mxu0 %v45_v40 }
  0x35   :  { %131 = vmatmul.mubr.f32.vlgmr.msra.gmra.mrb[0].mxu0 %v184_v12 }
 0x108   :  { %v132_v42 = vpop.f32.mrb[0].mxu0 }
 0x109   :  { %v133_v43 = vadd.f32 %v183_v41, %v132_v42  ;;  %v134_v44 = vpop.f32.mrb[1].mxu0 }
 0x10b   :  { %v137_v45 = vsel %vm136_vm1, %v133_v43, 0.0 }
 0x10c   :  { %v138_v46 = vrot.slane %v137_v45, 4 }
 0x10e   :  { %v139_v47 = vadd.f32 %v138_v46, %v137_v45 }
 0x110   :  { %v140_v48 = vrot.slane %v139_v47, 2 }
 0x112   :  { %v141_v49 = vadd.f32 %v140_v48, %v139_v47 }
 0x114   :  { %v142_v50 = vrot.slane %v141_v49, 1 }
 0x116   :  { %v143_v51 = vadd.f32 %v142_v50, %v141_v49 }
 0x118   :  { %v145_v52 = vmul.f32 0.5, %v143_v51 }
 0x11a   :  { %v146_v53 = vsub.f32 %v133_v43, %v145_v52 }
 0x11c   :  { %v147_v54 = vmul.f32 %v146_v53, %v146_v53 }
 0x11e   :  { %v148_v55 = vsel %vm136_vm1, %v147_v54, 0.0 }
 0x11f   :  { %v149_v56 = vrot.slane %v148_v55, 4 }
 0x121   :  { %v150_v57 = vadd.f32 %v149_v56, %v148_v55 }
 0x123   :  { %v151_v58 = vrot.slane %v150_v57, 2 }
 0x125   :  { %v152_v59 = vadd.f32 %v151_v58, %v150_v57 }
 0x127   :  { %v153_v60 = vrot.slane %v152_v59, 1 }
 0x129   :  { %v154_v61 = vadd.f32 %v153_v60, %v152_v59 }
 0x12b   :  { %v155_v62 = vmul.f32 0.5, %v154_v61 }
 0x12d   :  { %v157_v63 = vadd.f32 1e-05, %v155_v62 }
 0x12f   :  { %224 = vrsqrt.f32 %v157_v63 }
 0x139   :  { %v225_v4 = vpop.eup %224 }
 0x13a   :  { %v159_v5 = vmul.f32 %v225_v4, %v156_v2 }
 0x13c   :  { %v164_v7 = vrot.slane %v159_v5, %v163_v3  ;;  %v168_v8 = vmul.f32 %v159_v5, %v145_v52 }
 0x13e   :  { %v169_v9 = vsub.f32 %v167_v6, %v168_v8  ;;  %v166_v10 = vmul.f32 %v164_v7, %v133_v43 }
 0x140   :  { %v174_v11 = vrot.slane %v169_v9, %v163_v3 }
 0x142   :  { %v176_v12 = vadd.f32 %v174_v11, %v166_v10 }
 0x144   :  { %v177_v13 = vmax.f32 %v176_v12, 0.0 }
 0x146   :  { %178 = vst.msk [vmem:[%s368_s5] sm:$0x3] %vm136_vm1, %v177_v13 }

// kernel: forward.30
= control target key start
LH: loop header
LB: loop body
LE: loop exit
PB: predicated region body
PF: predicated region fallthrough
CT: control target
= control target key end

     0   :  { %v222_v0 = vmov 0.0|0.0   ;;  %vm57_vm0 = vcmask 588800   ;;  %v223_v38 = vmov 0.0   ;;  %vm131_vm1 = vcmask 64512   ;;  %s370_s1 = inlined_call_operand.vmem [shape: f32[200,8], index: 1, kind: input, shape index: {}]   ;;  %s371_s0 = inlined_call_operand.vmem [shape: f32[8,200], index: 0, kind: input, shape index: {}]   ;;  %s372_s2 = inlined_call_operand.vmem [shape: f32[1,8], index: 2, kind: input, shape index: {}]   ;;  %s373_s3 = inlined_call_operand.vmem [shape: f32[1,8], index: 3, kind: input, shape index: {}]   ;;  %s374_s4 = inlined_call_operand.vmem [shape: f32[1,8], index: 4, kind: input, shape index: {}]   ;;  %s375_s5 = inlined_call_operand.vmem [shape: f32[8,8], index: 5, kind: input, shape index: {}]   ;;  %s376_s6 = inlined_call_operand.vmem [shape: f32[8,8], index: 6, kind: output, shape index: {}]  }
   0x1   :  { %182 = vmatprep.subr.bf16.mxu0 %v222_v0  ;;  %v25_v1 = vld [vmem:[%s370_s1] sm:$0xff]  ;;  %v26_v2 = vld [vmem:[%s370_s1 + $0x8] sm:$0xff]  ;;  %v27_v3 = vld [vmem:[%s370_s1 + $0x10] sm:$0xff] }
   0x2   :  { %v183_v4 = vpack.c.bf16 %v26_v2, %v25_v1  ;;  %v28_v5 = vld [vmem:[%s370_s1 + $0x18] sm:$0xff]  ;;  %v29_v7 = vld [vmem:[%s370_s1 + $0x20] sm:$0xff]  ;;  %v30_v8 = vld [vmem:[%s370_s1 + $0x28] sm:$0xff] }
   0x3   :  { %v186_v6 = vpack.c.bf16 %v28_v5, %v27_v3  ;;  %v189_v9 = vpack.c.bf16 %v30_v8, %v29_v7  ;;  %v31_v10 = vld [vmem:[%s370_s1 + $0x30] sm:$0xff]  ;;  %v32_v11 = vld [vmem:[%s370_s1 + $0x38] sm:$0xff]  ;;  %v24_v12 = vld [vmem:[%s371_s0 + $0x8] sm:$0xff] }
   0x4   :  { %184 = vmatpush1.bf16.msra.mxu0 %v183_v4  ;;  %181 = vmatprep.mubr.msk.f32.mxu0 %vm57_vm0, %v24_v12  ;;  %v192_v13 = vpack.c.bf16 %v32_v11, %v31_v10  ;;  %v33_v14 = vld [vmem:[%s370_s1 + $0x40] sm:$0xff]  ;;  %v34_v15 = vld [vmem:[%s370_s1 + $0x48] sm:$0xff]  ;;  %v35_v17 = vld [vmem:[%s370_s1 + $0x50] sm:$0xff] }
   0x5   :  { %185 = vmatprep.subr.bf16.mxu0 %v222_v0  ;;  %v195_v16 = vpack.c.bf16 %v34_v15, %v33_v14  ;;  %v36_v18 = vld [vmem:[%s370_s1 + $0x58] sm:$0xff]  ;;  %v37_v20 = vld [vmem:[%s370_s1 + $0x60] sm:$0xff]  ;;  %v38_v21 = vld [vmem:[%s370_s1 + $0x68] sm:$0xff] }
   0x6   :  { %v198_v19 = vpack.c.bf16 %v36_v18, %v35_v17  ;;  %v201_v22 = vpack.c.bf16 %v38_v21, %v37_v20  ;;  %v39_v23 = vld [vmem:[%s370_s1 + $0x70] sm:$0xff]  ;;  %v40_v24 = vld [vmem:[%s370_s1 + $0x78] sm:$0xff]  ;;  %v41_v26 = vld [vmem:[%s370_s1 + $0x80] sm:$0xff] }
   0x7   :  { %v204_v25 = vpack.c.bf16 %v40_v24, %v39_v23  ;;  %v42_v27 = vld [vmem:[%s370_s1 + $0x88] sm:$0xff]  ;;  %v43_v29 = vld [vmem:[%s370_s1 + $0x90] sm:$0xff]  ;;  %v44_v30 = vld [vmem:[%s370_s1 + $0x98] sm:$0xff] }
   0x8   :  { %187 = vmatpush1.bf16.msra.mxu0 %v186_v6  ;;  %v207_v28 = vpack.c.bf16 %v42_v27, %v41_v26  ;;  %v210_v31 = vpack.c.bf16 %v44_v30, %v43_v29  ;;  %v45_v32 = vld [vmem:[%s370_s1 + $0xa0] sm:$0xff]  ;;  %v46_v33 = vld [vmem:[%s370_s1 + $0xa8] sm:$0xff]  ;;  %v47_v35 = vld [vmem:[%s370_s1 + $0xb0] sm:$0xff] }
   0x9   :  { %188 = vmatprep.subr.bf16.mxu0 %v222_v0  ;;  %v213_v34 = vpack.c.bf16 %v46_v33, %v45_v32  ;;  %v48_v36 = vld [vmem:[%s370_s1 + $0xb8] sm:$0xff]  ;;  %v49_v39 = vld [vmem:[%s370_s1 + $0xc0] sm:$0xff] }
   0xa   :  { %v216_v37 = vpack.c.bf16 %v48_v36, %v47_v35  ;;  %v23_v40 = vld [vmem:[%s371_s0] sm:$0xff] }
   0xb   :  { %v180_v41 = vld [vmem:[%s372_s2] ss:$0 sm:$0xff] }
   0xc   :  { %190 = vmatpush1.bf16.msra.mxu0 %v189_v9  ;;  %v151_v2 = vld [vmem:[%s373_s3] sm:$0x1] }
   0xd   :  { %191 = vmatprep.subr.bf16.mxu0 %v222_v0  ;;  %v162_v6 = vld [vmem:[%s374_s4] sm:$0x1] }
  0x10   :  { %193 = vmatpush1.bf16.msra.mxu0 %v192_v13  ;;  %v173_v13 = vld [vmem:[%s375_s5] sm:$0xff] }
  0x11   :  { %194 = vmatprep.subr.bf16.mxu0 %v222_v0 }
  0x14   :  { %196 = vmatpush1.bf16.msra.mxu0 %v195_v16 }
  0x15   :  { %197 = vmatprep.subr.bf16.mxu0 %v222_v0 }
  0x18   :  { %199 = vmatpush1.bf16.msra.mxu0 %v198_v19 }
  0x19   :  { %200 = vmatprep.subr.bf16.mxu0 %v222_v0 }
  0x1c   :  { %202 = vmatpush1.bf16.msra.mxu0 %v201_v22 }
  0x1d   :  { %203 = vmatprep.subr.bf16.mxu0 %v222_v0 }
  0x20   :  { %205 = vmatpush1.bf16.msra.mxu0 %v204_v25 }
  0x21   :  { %206 = vmatprep.subr.bf16.mxu0 %v222_v0 }
  0x24   :  { %208 = vmatpush1.bf16.msra.mxu0 %v207_v28 }
  0x25   :  { %209 = vmatprep.subr.bf16.mxu0 %v222_v0 }
  0x28   :  { %211 = vmatpush1.bf16.msra.mxu0 %v210_v31 }
  0x29   :  { %212 = vmatprep.subr.bf16.mxu0 %v222_v0 }
  0x2c   :  { %214 = vmatpush1.bf16.msra.mxu0 %v213_v34 }
  0x2d   :  { %215 = vmatprep.subr.bf16.mxu0 %v222_v0  ;;  %v156_v0 = vlaneseq }
  0x2f   :  { %v157_v1 = vshrl.u32 %v156_v0, 7 }
  0x30   :  { %217 = vmatpush1.bf16.msra.mxu0 %v216_v37 }
  0x31   :  { %109 = vmatprep.subr.mxu0 %v223_v38  ;;  %v158_v3 = vsub.s32 0, %v157_v1 }
  0x34   :  { %110 = vmatpush1.msra.mxu0 %v49_v39 }
  0x35   :  { %126 = vmatmul.mubr.f32.vlgmr.msra.gmra.mrb[0].mxu0 %v23_v40 }
 0x108   :  { %v127_v42 = vpop.f32.mrb[0].mxu0 }
 0x109   :  { %v128_v43 = vadd.f32 %v180_v41, %v127_v42  ;;  %v129_v44 = vpop.f32.mrb[1].mxu0 }
 0x10b   :  { %v132_v45 = vsel %vm131_vm1, %v128_v43, 0.0 }
 0x10c   :  { %v133_v46 = vrot.slane %v132_v45, 4 }
 0x10e   :  { %v134_v47 = vadd.f32 %v133_v46, %v132_v45 }
 0x110   :  { %v135_v48 = vrot.slane %v134_v47, 2 }
 0x112   :  { %v136_v49 = vadd.f32 %v135_v48, %v134_v47 }
 0x114   :  { %v137_v50 = vrot.slane %v136_v49, 1 }
 0x116   :  { %v138_v51 = vadd.f32 %v137_v50, %v136_v49 }
 0x118   :  { %v140_v52 = vmul.f32 0.125, %v138_v51 }
 0x11a   :  { %v141_v53 = vsub.f32 %v128_v43, %v140_v52 }
 0x11c   :  { %v142_v54 = vmul.f32 %v141_v53, %v141_v53 }
 0x11e   :  { %v143_v55 = vsel %vm131_vm1, %v142_v54, 0.0 }
 0x11f   :  { %v144_v56 = vrot.slane %v143_v55, 4 }
 0x121   :  { %v145_v57 = vadd.f32 %v144_v56, %v143_v55 }
 0x123   :  { %v146_v58 = vrot.slane %v145_v57, 2 }
 0x125   :  { %v147_v59 = vadd.f32 %v146_v58, %v145_v57 }
 0x127   :  { %v148_v60 = vrot.slane %v147_v59, 1 }
 0x129   :  { %v149_v61 = vadd.f32 %v148_v60, %v147_v59 }
 0x12b   :  { %v150_v62 = vmul.f32 0.125, %v149_v61 }
 0x12d   :  { %v152_v63 = vadd.f32 1e-05, %v150_v62 }
 0x12f   :  { %220 = vrsqrt.f32 %v152_v63 }
 0x139   :  { %v221_v4 = vpop.eup %220 }
 0x13a   :  { %v154_v5 = vmul.f32 %v221_v4, %v151_v2 }
 0x13c   :  { %v159_v7 = vrot.slane %v154_v5, %v158_v3  ;;  %v163_v8 = vmul.f32 %v154_v5, %v140_v52 }
 0x13e   :  { %v164_v9 = vsub.f32 %v162_v6, %v163_v8  ;;  %v161_v10 = vmul.f32 %v159_v7, %v128_v43 }
 0x140   :  { %v169_v11 = vrot.slane %v164_v9, %v158_v3 }
 0x142   :  { %v171_v12 = vadd.f32 %v169_v11, %v161_v10 }
 0x144   :  { %v172_v14 = vmax.f32 %v171_v12, 0.0 }
 0x146   :  { %v174_v15 = vadd.f32 %v173_v13, %v172_v14 }
 0x148   :  { %175 = vst.msk [vmem:[%s376_s6] sm:$0xff] %vm131_vm1, %v174_v15 }

// kernel: forward.33
= control target key start
LH: loop header
LB: loop body
LE: loop exit
PB: predicated region body
PF: predicated region fallthrough
CT: control target
= control target key end

     0   :  { %vm486_vm0 = vcmask 31744   ;;  %s1397_s1 = inlined_call_operand.vmem [shape: f32[128,4], index: 1, kind: input, shape index: {}]   ;;  %s1398_s0 = inlined_call_operand.vmem [shape: f32[512,128], index: 0, kind: input, shape index: {}]   ;;  %s1399_s2 = inlined_call_operand.vmem [shape: f32[1,4], index: 2, kind: input, shape index: {}]   ;;  %s1400_s3 = inlined_call_operand.vmem [shape: f32[512,4], index: 3, kind: output, shape index: {}]  }
   0x1   :  { %v78_v0 = vld [vmem:[%s1397_s1] sm:$0xff]  ;;  %v79_v1 = vld [vmem:[%s1397_s1 + $0x8] sm:$0xff]  ;;  %v80_v2 = vld [vmem:[%s1397_s1 + $0x10] sm:$0xff] }
   0x2   :  { %v764_v3 = vpack.c.bf16 %v79_v1, %v78_v0  ;;  %v81_v4 = vld [vmem:[%s1397_s1 + $0x18] sm:$0xff]  ;;  %v82_v6 = vld [vmem:[%s1397_s1 + $0x20] sm:$0xff]  ;;  %v83_v7 = vld [vmem:[%s1397_s1 + $0x28] sm:$0xff] }
   0x3   :  { %v768_v5 = vpack.c.bf16 %v81_v4, %v80_v2  ;;  %v772_v8 = vpack.c.bf16 %v83_v7, %v82_v6  ;;  %v14_v9 = vld [vmem:[%s1398_s0] sm:$0xff]  ;;  %v84_v11 = vld [vmem:[%s1397_s1 + $0x30] sm:$0xff]  ;;  %v85_v12 = vld [vmem:[%s1397_s1 + $0x38] sm:$0xff] }
   0x4   :  { %765 = vmatprep.subr.bf16.mxu0 %v764_v3  ;;  %796 = vmatprep.subr.bf16.mxu1 %v764_v3  ;;  %v46_v10 = vld [vmem:[%s1398_s0 + $0x100] sm:$0xff]  ;;  %v776_v13 = vpack.c.bf16 %v85_v12, %v84_v11  ;;  %v87_v15 = vld [vmem:[%s1397_s1 + $0x48] sm:$0xff]  ;;  %v88_v17 = vld [vmem:[%s1397_s1 + $0x50] sm:$0xff] }
   0x5   :  { %767 = vmatpush3.bf16.msra.mxu0 %v764_v3  ;;  %804 = vmatpush3.bf16.msra.mxu1 %v764_v3  ;;  %v86_v14 = vld [vmem:[%s1397_s1 + $0x40] sm:$0xff]  ;;  %v89_v18 = vld [vmem:[%s1397_s1 + $0x58] sm:$0xff]  ;;  %v91_v21 = vld [vmem:[%s1397_s1 + $0x68] sm:$0xff] }
   0x6   :  { %769 = vmatprep.subr.bf16.mxu0 %v768_v5  ;;  %797 = vmatprep.subr.bf16.mxu1 %v768_v5  ;;  %v780_v16 = vpack.c.bf16 %v87_v15, %v86_v14  ;;  %v784_v19 = vpack.c.bf16 %v89_v18, %v88_v17  ;;  %v90_v20 = vld [vmem:[%s1397_s1 + $0x60] sm:$0xff]  ;;  %v92_v23 = vld [vmem:[%s1397_s1 + $0x70] sm:$0xff]  ;;  %v93_v24 = vld [vmem:[%s1397_s1 + $0x78] sm:$0xff] }
   0x7   :  { %668 = vmatprep.mubr.f32.mxu0 %v14_v9  ;;  %716 = vmatprep.mubr.f32.mxu1 %v46_v10  ;;  %v788_v22 = vpack.c.bf16 %v91_v21, %v90_v20  ;;  %v792_v25 = vpack.c.bf16 %v93_v24, %v92_v23  ;;  %v15_v26 = vld [vmem:[%s1398_s0 + $0x8] sm:$0xff]  ;;  %v16_v28 = vld [vmem:[%s1398_s0 + $0x10] sm:$0xff]  ;;  %v17_v30 = vld [vmem:[%s1398_s0 + $0x18] sm:$0xff] }
   0x8   :  { %v47_v27 = vld [vmem:[%s1398_s0 + $0x108] sm:$0xff]  ;;  %v48_v29 = vld [vmem:[%s1398_s0 + $0x110] sm:$0xff]  ;;  %v49_v31 = vld [vmem:[%s1398_s0 + $0x118] sm:$0xff] }
   0x9   :  { %771 = vmatpush3.bf16.msra.mxu0 %v768_v5  ;;  %805 = vmatpush3.bf16.msra.mxu1 %v768_v5  ;;  %v18_v32 = vld [vmem:[%s1398_s0 + $0x20] sm:$0xff]  ;;  %v19_v34 = vld [vmem:[%s1398_s0 + $0x28] sm:$0xff]  ;;  %v20_v36 = vld [vmem:[%s1398_s0 + $0x30] sm:$0xff] }
   0xa   :  { %773 = vmatprep.subr.bf16.mxu0 %v772_v8  ;;  %798 = vmatprep.subr.bf16.mxu1 %v772_v8  ;;  %v50_v33 = vld [vmem:[%s1398_s0 + $0x120] sm:$0xff]  ;;  %v51_v35 = vld [vmem:[%s1398_s0 + $0x128] sm:$0xff]  ;;  %v52_v37 = vld [vmem:[%s1398_s0 + $0x130] sm:$0xff] }
   0xb   :  { %v21_v38 = vld [vmem:[%s1398_s0 + $0x38] sm:$0xff]  ;;  %v22_v40 = vld [vmem:[%s1398_s0 + $0x40] sm:$0xff]  ;;  %v23_v42 = vld [vmem:[%s1398_s0 + $0x48] sm:$0xff] }
   0xc   :  { %v53_v39 = vld [vmem:[%s1398_s0 + $0x138] sm:$0xff]  ;;  %v54_v41 = vld [vmem:[%s1398_s0 + $0x140] sm:$0xff]  ;;  %v55_v43 = vld [vmem:[%s1398_s0 + $0x148] sm:$0xff] }
   0xd   :  { %775 = vmatpush3.bf16.msra.mxu0 %v772_v8  ;;  %806 = vmatpush3.bf16.msra.mxu1 %v772_v8  ;;  %v24_v44 = vld [vmem:[%s1398_s0 + $0x50] sm:$0xff]  ;;  %v25_v46 = vld [vmem:[%s1398_s0 + $0x58] sm:$0xff]  ;;  %v26_v48 = vld [vmem:[%s1398_s0 + $0x60] sm:$0xff] }
   0xe   :  { %777 = vmatprep.subr.bf16.mxu0 %v776_v13  ;;  %799 = vmatprep.subr.bf16.mxu1 %v776_v13  ;;  %v56_v45 = vld [vmem:[%s1398_s0 + $0x150] sm:$0xff]  ;;  %v57_v47 = vld [vmem:[%s1398_s0 + $0x158] sm:$0xff]  ;;  %v58_v49 = vld [vmem:[%s1398_s0 + $0x160] sm:$0xff] }
   0xf   :  { %v27_v50 = vld [vmem:[%s1398_s0 + $0x68] sm:$0xff]  ;;  %v28_v52 = vld [vmem:[%s1398_s0 + $0x70] sm:$0xff]  ;;  %v29_v54 = vld [vmem:[%s1398_s0 + $0x78] sm:$0xff] }
  0x10   :  { %v59_v51 = vld [vmem:[%s1398_s0 + $0x168] sm:$0xff]  ;;  %v60_v53 = vld [vmem:[%s1398_s0 + $0x170] sm:$0xff]  ;;  %v61_v55 = vld [vmem:[%s1398_s0 + $0x178] sm:$0xff] }
  0x11   :  { %779 = vmatpush3.bf16.msra.mxu0 %v776_v13  ;;  %807 = vmatpush3.bf16.msra.mxu1 %v776_v13  ;;  %v30_v56 = vld [vmem:[%s1398_s0 + $0x80] sm:$0xff]  ;;  %v31_v58 = vld [vmem:[%s1398_s0 + $0x88] sm:$0xff]  ;;  %v32_v60 = vld [vmem:[%s1398_s0 + $0x90] sm:$0xff] }
  0x12   :  { %781 = vmatprep.subr.bf16.mxu0 %v780_v16  ;;  %800 = vmatprep.subr.bf16.mxu1 %v780_v16  ;;  %v62_v57 = vld [vmem:[%s1398_s0 + $0x180] sm:$0xff]  ;;  %v63_v59 = vld [vmem:[%s1398_s0 + $0x188] sm:$0xff]  ;;  %v64_v61 = vld [vmem:[%s1398_s0 + $0x190] sm:$0xff] }
  0x13   :  { %v33_v62 = vld [vmem:[%s1398_s0 + $0x98] sm:$0xff]  ;;  %v34_v0 = vld [vmem:[%s1398_s0 + $0xa0] sm:$0xff]  ;;  %v35_v2 = vld [vmem:[%s1398_s0 + $0xa8] sm:$0xff] }
  0x14   :  { %v65_v63 = vld [vmem:[%s1398_s0 + $0x198] sm:$0xff]  ;;  %v66_v1 = vld [vmem:[%s1398_s0 + $0x1a0] sm:$0xff]  ;;  %v67_v3 = vld [vmem:[%s1398_s0 + $0x1a8] sm:$0xff] }
  0x15   :  { %783 = vmatpush3.bf16.msra.mxu0 %v780_v16  ;;  %808 = vmatpush3.bf16.msra.mxu1 %v780_v16  ;;  %v36_v4 = vld [vmem:[%s1398_s0 + $0xb0] sm:$0xff]  ;;  %v37_v6 = vld [vmem:[%s1398_s0 + $0xb8] sm:$0xff]  ;;  %v38_v8 = vld [vmem:[%s1398_s0 + $0xc0] sm:$0xff] }
  0x16   :  { %785 = vmatprep.subr.bf16.mxu0 %v784_v19  ;;  %801 = vmatprep.subr.bf16.mxu1 %v784_v19  ;;  %v68_v5 = vld [vmem:[%s1398_s0 + $0x1b0] sm:$0xff]  ;;  %v69_v7 = vld [vmem:[%s1398_s0 + $0x1b8] sm:$0xff]  ;;  %v70_v9 = vld [vmem:[%s1398_s0 + $0x1c0] sm:$0xff] }
  0x17   :  { %v39_v10 = vld [vmem:[%s1398_s0 + $0xc8] sm:$0xff]  ;;  %v40_v12 = vld [vmem:[%s1398_s0 + $0xd0] sm:$0xff]  ;;  %v41_v14 = vld [vmem:[%s1398_s0 + $0xd8] sm:$0xff] }
  0x18   :  { %v71_v11 = vld [vmem:[%s1398_s0 + $0x1c8] sm:$0xff]  ;;  %v72_v13 = vld [vmem:[%s1398_s0 + $0x1d0] sm:$0xff]  ;;  %v73_v15 = vld [vmem:[%s1398_s0 + $0x1d8] sm:$0xff] }
  0x19   :  { %787 = vmatpush3.bf16.msra.mxu0 %v784_v19  ;;  %809 = vmatpush3.bf16.msra.mxu1 %v784_v19  ;;  %v42_v16 = vld [vmem:[%s1398_s0 + $0xe0] sm:$0xff]  ;;  %v43_v18 = vld [vmem:[%s1398_s0 + $0xe8] sm:$0xff]  ;;  %v44_v20 = vld [vmem:[%s1398_s0 + $0xf0] sm:$0xff] }
  0x1a   :  { %789 = vmatprep.subr.bf16.mxu0 %v788_v22  ;;  %802 = vmatprep.subr.bf16.mxu1 %v788_v22  ;;  %v74_v17 = vld [vmem:[%s1398_s0 + $0x1e0] sm:$0xff]  ;;  %v75_v19 = vld [vmem:[%s1398_s0 + $0x1e8] sm:$0xff]  ;;  %v76_v21 = vld [vmem:[%s1398_s0 + $0x1f0] sm:$0xff] }
  0x1b   :  { %v77_v23 = vld [vmem:[%s1398_s0 + $0x1f8] sm:$0xff]  ;;  %v1075_v24 = vld [vmem:[%s1399_s2] ss:$0 sm:$0xff] }
  0x1d   :  { %791 = vmatpush3.bf16.msra.mxu0 %v788_v22  ;;  %810 = vmatpush3.bf16.msra.mxu1 %v788_v22  ;;  %v45_v22 = vld [vmem:[%s1398_s0 + $0xf8] sm:$0xff] }
  0x1e   :  { %793 = vmatprep.subr.bf16.mxu0 %v792_v25  ;;  %803 = vmatprep.subr.bf16.mxu1 %v792_v25 }
  0x21   :  { %795 = vmatpush3.bf16.msra.mxu0 %v792_v25  ;;  %811 = vmatpush3.bf16.msra.mxu1 %v792_v25 }
  0x24   :  { %669 = vmatmul.mubr.f32.vlgmr.msra.gmra.mrb[0].mxu0 %v15_v26  ;;  %717 = vmatmul.mubr.f32.vlgmr.msra.gmra.mrb[0].mxu1 %v47_v27 }
  0x25   :  { %671 = vmatprep.mubr.f32.mxu0 %v16_v28  ;;  %719 = vmatprep.mubr.f32.mxu1 %v48_v29 }
  0x28   :  { %672 = vmatmul.mubr.f32.gmra.mrb[2].mxu0 %v17_v30  ;;  %720 = vmatmul.mubr.f32.gmra.mrb[2].mxu1 %v49_v31 }
  0x29   :  { %674 = vmatprep.mubr.f32.mxu0 %v18_v32  ;;  %722 = vmatprep.mubr.f32.mxu1 %v50_v33 }
  0x2c   :  { %675 = vmatmul.mubr.f32.gmra.mrb[4].mxu0 %v19_v34  ;;  %723 = vmatmul.mubr.f32.gmra.mrb[4].mxu1 %v51_v35 }
  0x2d   :  { %677 = vmatprep.mubr.f32.mxu0 %v20_v36  ;;  %725 = vmatprep.mubr.f32.mxu1 %v52_v37 }
  0x30   :  { %678 = vmatmul.mubr.f32.gmra.mrb[6].mxu0 %v21_v38  ;;  %726 = vmatmul.mubr.f32.gmra.mrb[6].mxu1 %v53_v39 }
  0x31   :  { %680 = vmatprep.mubr.f32.mxu0 %v22_v40  ;;  %728 = vmatprep.mubr.f32.mxu1 %v54_v41 }
  0x34   :  { %681 = vmatmul.mubr.f32.gmra.mrb[8].mxu0 %v23_v42  ;;  %729 = vmatmul.mubr.f32.gmra.mrb[8].mxu1 %v55_v43 }
  0x35   :  { %683 = vmatprep.mubr.f32.mxu0 %v24_v44  ;;  %731 = vmatprep.mubr.f32.mxu1 %v56_v45 }
  0x38   :  { %684 = vmatmul.mubr.f32.gmra.mrb[10].mxu0 %v25_v46  ;;  %732 = vmatmul.mubr.f32.gmra.mrb[10].mxu1 %v57_v47 }
  0x39   :  { %686 = vmatprep.mubr.f32.mxu0 %v26_v48  ;;  %734 = vmatprep.mubr.f32.mxu1 %v58_v49 }
  0x3c   :  { %687 = vmatmul.mubr.f32.gmra.mrb[12].mxu0 %v27_v50  ;;  %735 = vmatmul.mubr.f32.gmra.mrb[12].mxu1 %v59_v51 }
  0x3d   :  { %689 = vmatprep.mubr.f32.mxu0 %v28_v52  ;;  %737 = vmatprep.mubr.f32.mxu1 %v60_v53 }
  0x40   :  { %690 = vmatmul.mubr.f32.gmra.mrb[14].mxu0 %v29_v54  ;;  %738 = vmatmul.mubr.f32.gmra.mrb[14].mxu1 %v61_v55 }
  0x41   :  { %692 = vmatprep.mubr.f32.mxu0 %v30_v56  ;;  %740 = vmatprep.mubr.f32.mxu1 %v62_v57 }
  0x44   :  { %693 = vmatmul.mubr.f32.gmra.mrb[16].mxu0 %v31_v58  ;;  %741 = vmatmul.mubr.f32.gmra.mrb[16].mxu1 %v63_v59 }
  0x45   :  { %695 = vmatprep.mubr.f32.mxu0 %v32_v60  ;;  %743 = vmatprep.mubr.f32.mxu1 %v64_v61 }
  0x48   :  { %696 = vmatmul.mubr.f32.gmra.mrb[18].mxu0 %v33_v62  ;;  %744 = vmatmul.mubr.f32.gmra.mrb[18].mxu1 %v65_v63 }
  0x49   :  { %698 = vmatprep.mubr.f32.mxu0 %v34_v0  ;;  %746 = vmatprep.mubr.f32.mxu1 %v66_v1 }
  0x4c   :  { %699 = vmatmul.mubr.f32.gmra.mrb[20].mxu0 %v35_v2  ;;  %747 = vmatmul.mubr.f32.gmra.mrb[20].mxu1 %v67_v3 }
  0x4d   :  { %701 = vmatprep.mubr.f32.mxu0 %v36_v4  ;;  %749 = vmatprep.mubr.f32.mxu1 %v68_v5 }
  0x50   :  { %702 = vmatmul.mubr.f32.gmra.mrb[22].mxu0 %v37_v6  ;;  %750 = vmatmul.mubr.f32.gmra.mrb[22].mxu1 %v69_v7 }
  0x51   :  { %704 = vmatprep.mubr.f32.mxu0 %v38_v8  ;;  %752 = vmatprep.mubr.f32.mxu1 %v70_v9 }
  0x54   :  { %705 = vmatmul.mubr.f32.gmra.mrb[24].mxu0 %v39_v10  ;;  %753 = vmatmul.mubr.f32.gmra.mrb[24].mxu1 %v71_v11 }
  0x55   :  { %707 = vmatprep.mubr.f32.mxu0 %v40_v12  ;;  %755 = vmatprep.mubr.f32.mxu1 %v72_v13 }
  0x58   :  { %708 = vmatmul.mubr.f32.gmra.mrb[26].mxu0 %v41_v14  ;;  %756 = vmatmul.mubr.f32.gmra.mrb[26].mxu1 %v73_v15 }
  0x59   :  { %710 = vmatprep.mubr.f32.mxu0 %v42_v16  ;;  %758 = vmatprep.mubr.f32.mxu1 %v74_v17 }
  0x5c   :  { %711 = vmatmul.mubr.f32.gmra.mrb[28].mxu0 %v43_v18  ;;  %759 = vmatmul.mubr.f32.gmra.mrb[28].mxu1 %v75_v19 }
  0x5d   :  { %713 = vmatprep.mubr.f32.mxu0 %v44_v20  ;;  %761 = vmatprep.mubr.f32.mxu1 %v76_v21 }
  0x60   :  { %714 = vmatmul.mubr.f32.gmra.mrb[30].mxu0 %v45_v22  ;;  %762 = vmatmul.mubr.f32.gmra.mrb[30].mxu1 %v77_v23 }
  0xf7   :  { %v670_v25 = vpop.f32.mrb[0].mxu0  ;;  %v718_v26 = vpop.f32.mrb[0].mxu1 }
  0xf8   :  { %v173_v27 = vadd.f32 %v670_v25, %v1075_v24  ;;  %v333_v28 = vadd.f32 %v718_v26, %v1075_v24  ;;  %v167_v29 = vpop.f32.mrb[1].mxu0  ;;  %v327_v30 = vpop.f32.mrb[1].mxu1 }
  0xf9   :  { %v168_v31 = vadd.f32 %v1075_v24, %v167_v29  ;;  %v328_v32 = vadd.f32 %v1075_v24, %v327_v30 }
  0xfa   :  { %488 = vst.msk [vmem:[%s1400_s3 + $0x8] sm:$0xff] %vm486_vm0, %v173_v27  ;;  %520 = vst.msk [vmem:[%s1400_s3 + $0x108] sm:$0xff] %vm486_vm0, %v333_v28 }
  0xfb   :  { %487 = vst.msk [vmem:[%s1400_s3] sm:$0xff] %vm486_vm0, %v168_v31  ;;  %519 = vst.msk [vmem:[%s1400_s3 + $0x100] sm:$0xff] %vm486_vm0, %v328_v32  ;;  %v673_v33 = vpop.f32.mrb[2].mxu0  ;;  %v721_v34 = vpop.f32.mrb[2].mxu1 }
  0xfc   :  { %v183_v35 = vadd.f32 %v673_v33, %v1075_v24  ;;  %v343_v36 = vadd.f32 %v721_v34, %v1075_v24  ;;  %v177_v37 = vpop.f32.mrb[3].mxu0  ;;  %v337_v38 = vpop.f32.mrb[3].mxu1 }
  0xfd   :  { %v178_v39 = vadd.f32 %v1075_v24, %v177_v37  ;;  %v338_v40 = vadd.f32 %v1075_v24, %v337_v38 }
  0xfe   :  { %490 = vst.msk [vmem:[%s1400_s3 + $0x18] sm:$0xff] %vm486_vm0, %v183_v35  ;;  %522 = vst.msk [vmem:[%s1400_s3 + $0x118] sm:$0xff] %vm486_vm0, %v343_v36 }
  0xff   :  { %489 = vst.msk [vmem:[%s1400_s3 + $0x10] sm:$0xff] %vm486_vm0, %v178_v39  ;;  %521 = vst.msk [vmem:[%s1400_s3 + $0x110] sm:$0xff] %vm486_vm0, %v338_v40  ;;  %v676_v41 = vpop.f32.mrb[4].mxu0  ;;  %v724_v42 = vpop.f32.mrb[4].mxu1 }
 0x100   :  { %v193_v43 = vadd.f32 %v676_v41, %v1075_v24  ;;  %v353_v44 = vadd.f32 %v724_v42, %v1075_v24  ;;  %v187_v45 = vpop.f32.mrb[5].mxu0  ;;  %v347_v46 = vpop.f32.mrb[5].mxu1 }
 0x101   :  { %v188_v47 = vadd.f32 %v1075_v24, %v187_v45  ;;  %v348_v48 = vadd.f32 %v1075_v24, %v347_v46 }
 0x102   :  { %492 = vst.msk [vmem:[%s1400_s3 + $0x28] sm:$0xff] %vm486_vm0, %v193_v43  ;;  %524 = vst.msk [vmem:[%s1400_s3 + $0x128] sm:$0xff] %vm486_vm0, %v353_v44 }
 0x103   :  { %491 = vst.msk [vmem:[%s1400_s3 + $0x20] sm:$0xff] %vm486_vm0, %v188_v47  ;;  %523 = vst.msk [vmem:[%s1400_s3 + $0x120] sm:$0xff] %vm486_vm0, %v348_v48  ;;  %v679_v49 = vpop.f32.mrb[6].mxu0  ;;  %v727_v50 = vpop.f32.mrb[6].mxu1 }
 0x104   :  { %v203_v51 = vadd.f32 %v679_v49, %v1075_v24  ;;  %v363_v52 = vadd.f32 %v727_v50, %v1075_v24  ;;  %v197_v53 = vpop.f32.mrb[7].mxu0  ;;  %v357_v54 = vpop.f32.mrb[7].mxu1 }
 0x105   :  { %v198_v55 = vadd.f32 %v1075_v24, %v197_v53  ;;  %v358_v56 = vadd.f32 %v1075_v24, %v357_v54 }
 0x106   :  { %494 = vst.msk [vmem:[%s1400_s3 + $0x38] sm:$0xff] %vm486_vm0, %v203_v51  ;;  %526 = vst.msk [vmem:[%s1400_s3 + $0x138] sm:$0xff] %vm486_vm0, %v363_v52 }
 0x107   :  { %493 = vst.msk [vmem:[%s1400_s3 + $0x30] sm:$0xff] %vm486_vm0, %v198_v55  ;;  %525 = vst.msk [vmem:[%s1400_s3 + $0x130] sm:$0xff] %vm486_vm0, %v358_v56  ;;  %v682_v57 = vpop.f32.mrb[8].mxu0  ;;  %v730_v58 = vpop.f32.mrb[8].mxu1 }
 0x108   :  { %v213_v59 = vadd.f32 %v682_v57, %v1075_v24  ;;  %v373_v60 = vadd.f32 %v730_v58, %v1075_v24  ;;  %v207_v61 = vpop.f32.mrb[9].mxu0  ;;  %v367_v62 = vpop.f32.mrb[9].mxu1 }
 0x109   :  { %v208_v63 = vadd.f32 %v1075_v24, %v207_v61  ;;  %v368_v0 = vadd.f32 %v1075_v24, %v367_v62 }
 0x10a   :  { %496 = vst.msk [vmem:[%s1400_s3 + $0x48] sm:$0xff] %vm486_vm0, %v213_v59  ;;  %528 = vst.msk [vmem:[%s1400_s3 + $0x148] sm:$0xff] %vm486_vm0, %v373_v60 }
 0x10b   :  { %495 = vst.msk [vmem:[%s1400_s3 + $0x40] sm:$0xff] %vm486_vm0, %v208_v63  ;;  %527 = vst.msk [vmem:[%s1400_s3 + $0x140] sm:$0xff] %vm486_vm0, %v368_v0  ;;  %v685_v1 = vpop.f32.mrb[10].mxu0  ;;  %v733_v2 = vpop.f32.mrb[10].mxu1 }
 0x10c   :  { %v223_v3 = vadd.f32 %v685_v1, %v1075_v24  ;;  %v383_v4 = vadd.f32 %v733_v2, %v1075_v24  ;;  %v217_v5 = vpop.f32.mrb[11].mxu0  ;;  %v377_v6 = vpop.f32.mrb[11].mxu1 }
 0x10d   :  { %v218_v7 = vadd.f32 %v1075_v24, %v217_v5  ;;  %v378_v8 = vadd.f32 %v1075_v24, %v377_v6 }
 0x10e   :  { %498 = vst.msk [vmem:[%s1400_s3 + $0x58] sm:$0xff] %vm486_vm0, %v223_v3  ;;  %530 = vst.msk [vmem:[%s1400_s3 + $0x158] sm:$0xff] %vm486_vm0, %v383_v4 }
 0x10f   :  { %497 = vst.msk [vmem:[%s1400_s3 + $0x50] sm:$0xff] %vm486_vm0, %v218_v7  ;;  %529 = vst.msk [vmem:[%s1400_s3 + $0x150] sm:$0xff] %vm486_vm0, %v378_v8  ;;  %v688_v9 = vpop.f32.mrb[12].mxu0  ;;  %v736_v10 = vpop.f32.mrb[12].mxu1 }
 0x110   :  { %v233_v11 = vadd.f32 %v688_v9, %v1075_v24  ;;  %v393_v12 = vadd.f32 %v736_v10, %v1075_v24  ;;  %v227_v13 = vpop.f32.mrb[13].mxu0  ;;  %v387_v14 = vpop.f32.mrb[13].mxu1 }
 0x111   :  { %v228_v15 = vadd.f32 %v1075_v24, %v227_v13  ;;  %v388_v16 = vadd.f32 %v1075_v24, %v387_v14 }
 0x112   :  { %500 = vst.msk [vmem:[%s1400_s3 + $0x68] sm:$0xff] %vm486_vm0, %v233_v11  ;;  %532 = vst.msk [vmem:[%s1400_s3 + $0x168] sm:$0xff] %vm486_vm0, %v393_v12 }
 0x113   :  { %499 = vst.msk [vmem:[%s1400_s3 + $0x60] sm:$0xff] %vm486_vm0, %v228_v15  ;;  %531 = vst.msk [vmem:[%s1400_s3 + $0x160] sm:$0xff] %vm486_vm0, %v388_v16  ;;  %v691_v17 = vpop.f32.mrb[14].mxu0  ;;  %v739_v18 = vpop.f32.mrb[14].mxu1 }
 0x114   :  { %v243_v19 = vadd.f32 %v691_v17, %v1075_v24  ;;  %v403_v20 = vadd.f32 %v739_v18, %v1075_v24  ;;  %v237_v21 = vpop.f32.mrb[15].mxu0  ;;  %v397_v22 = vpop.f32.mrb[15].mxu1 }
 0x115   :  { %v238_v23 = vadd.f32 %v1075_v24, %v237_v21  ;;  %v398_v25 = vadd.f32 %v1075_v24, %v397_v22 }
 0x116   :  { %502 = vst.msk [vmem:[%s1400_s3 + $0x78] sm:$0xff] %vm486_vm0, %v243_v19  ;;  %534 = vst.msk [vmem:[%s1400_s3 + $0x178] sm:$0xff] %vm486_vm0, %v403_v20 }
 0x117   :  { %501 = vst.msk [vmem:[%s1400_s3 + $0x70] sm:$0xff] %vm486_vm0, %v238_v23  ;;  %533 = vst.msk [vmem:[%s1400_s3 + $0x170] sm:$0xff] %vm486_vm0, %v398_v25  ;;  %v694_v26 = vpop.f32.mrb[16].mxu0  ;;  %v742_v27 = vpop.f32.mrb[16].mxu1 }
 0x118   :  { %v253_v28 = vadd.f32 %v694_v26, %v1075_v24  ;;  %v413_v29 = vadd.f32 %v742_v27, %v1075_v24  ;;  %v247_v30 = vpop.f32.mrb[17].mxu0  ;;  %v407_v31 = vpop.f32.mrb[17].mxu1 }
 0x119   :  { %v248_v32 = vadd.f32 %v1075_v24, %v247_v30  ;;  %v408_v33 = vadd.f32 %v1075_v24, %v407_v31 }
 0x11a   :  { %504 = vst.msk [vmem:[%s1400_s3 + $0x88] sm:$0xff] %vm486_vm0, %v253_v28  ;;  %536 = vst.msk [vmem:[%s1400_s3 + $0x188] sm:$0xff] %vm486_vm0, %v413_v29 }
 0x11b   :  { %503 = vst.msk [vmem:[%s1400_s3 + $0x80] sm:$0xff] %vm486_vm0, %v248_v32  ;;  %535 = vst.msk [vmem:[%s1400_s3 + $0x180] sm:$0xff] %vm486_vm0, %v408_v33  ;;  %v697_v34 = vpop.f32.mrb[18].mxu0  ;;  %v745_v35 = vpop.f32.mrb[18].mxu1 }
 0x11c   :  { %v263_v36 = vadd.f32 %v697_v34, %v1075_v24  ;;  %v423_v37 = vadd.f32 %v745_v35, %v1075_v24  ;;  %v257_v38 = vpop.f32.mrb[19].mxu0  ;;  %v417_v39 = vpop.f32.mrb[19].mxu1 }
 0x11d   :  { %v258_v40 = vadd.f32 %v1075_v24, %v257_v38  ;;  %v418_v41 = vadd.f32 %v1075_v24, %v417_v39 }
 0x11e   :  { %506 = vst.msk [vmem:[%s1400_s3 + $0x98] sm:$0xff] %vm486_vm0, %v263_v36  ;;  %538 = vst.msk [vmem:[%s1400_s3 + $0x198] sm:$0xff] %vm486_vm0, %v423_v37 }
 0x11f   :  { %505 = vst.msk [vmem:[%s1400_s3 + $0x90] sm:$0xff] %vm486_vm0, %v258_v40  ;;  %537 = vst.msk [vmem:[%s1400_s3 + $0x190] sm:$0xff] %vm486_vm0, %v418_v41  ;;  %v700_v42 = vpop.f32.mrb[20].mxu0  ;;  %v748_v43 = vpop.f32.mrb[20].mxu1 }
 0x120   :  { %v273_v44 = vadd.f32 %v700_v42, %v1075_v24  ;;  %v433_v45 = vadd.f32 %v748_v43, %v1075_v24  ;;  %v267_v46 = vpop.f32.mrb[21].mxu0  ;;  %v427_v47 = vpop.f32.mrb[21].mxu1 }
 0x121   :  { %v268_v48 = vadd.f32 %v1075_v24, %v267_v46  ;;  %v428_v49 = vadd.f32 %v1075_v24, %v427_v47 }
 0x122   :  { %508 = vst.msk [vmem:[%s1400_s3 + $0xa8] sm:$0xff] %vm486_vm0, %v273_v44  ;;  %540 = vst.msk [vmem:[%s1400_s3 + $0x1a8] sm:$0xff] %vm486_vm0, %v433_v45 }
 0x123   :  { %507 = vst.msk [vmem:[%s1400_s3 + $0xa0] sm:$0xff] %vm486_vm0, %v268_v48  ;;  %539 = vst.msk [vmem:[%s1400_s3 + $0x1a0] sm:$0xff] %vm486_vm0, %v428_v49  ;;  %v703_v50 = vpop.f32.mrb[22].mxu0  ;;  %v751_v51 = vpop.f32.mrb[22].mxu1 }
 0x124   :  { %v283_v52 = vadd.f32 %v703_v50, %v1075_v24  ;;  %v443_v53 = vadd.f32 %v751_v51, %v1075_v24  ;;  %v277_v54 = vpop.f32.mrb[23].mxu0  ;;  %v437_v55 = vpop.f32.mrb[23].mxu1 }
 0x125   :  { %v278_v56 = vadd.f32 %v1075_v24, %v277_v54  ;;  %v438_v57 = vadd.f32 %v1075_v24, %v437_v55 }
 0x126   :  { %510 = vst.msk [vmem:[%s1400_s3 + $0xb8] sm:$0xff] %vm486_vm0, %v283_v52  ;;  %542 = vst.msk [vmem:[%s1400_s3 + $0x1b8] sm:$0xff] %vm486_vm0, %v443_v53 }
 0x127   :  { %509 = vst.msk [vmem:[%s1400_s3 + $0xb0] sm:$0xff] %vm486_vm0, %v278_v56  ;;  %541 = vst.msk [vmem:[%s1400_s3 + $0x1b0] sm:$0xff] %vm486_vm0, %v438_v57  ;;  %v706_v58 = vpop.f32.mrb[24].mxu0  ;;  %v754_v59 = vpop.f32.mrb[24].mxu1 }
 0x128   :  { %v293_v60 = vadd.f32 %v706_v58, %v1075_v24  ;;  %v453_v61 = vadd.f32 %v754_v59, %v1075_v24  ;;  %v287_v62 = vpop.f32.mrb[25].mxu0  ;;  %v447_v63 = vpop.f32.mrb[25].mxu1 }
 0x129   :  { %v288_v0 = vadd.f32 %v1075_v24, %v287_v62  ;;  %v448_v1 = vadd.f32 %v1075_v24, %v447_v63 }
 0x12a   :  { %512 = vst.msk [vmem:[%s1400_s3 + $0xc8] sm:$0xff] %vm486_vm0, %v293_v60  ;;  %544 = vst.msk [vmem:[%s1400_s3 + $0x1c8] sm:$0xff] %vm486_vm0, %v453_v61 }
 0x12b   :  { %511 = vst.msk [vmem:[%s1400_s3 + $0xc0] sm:$0xff] %vm486_vm0, %v288_v0  ;;  %543 = vst.msk [vmem:[%s1400_s3 + $0x1c0] sm:$0xff] %vm486_vm0, %v448_v1  ;;  %v709_v2 = vpop.f32.mrb[26].mxu0  ;;  %v757_v3 = vpop.f32.mrb[26].mxu1 }
 0x12c   :  { %v303_v4 = vadd.f32 %v709_v2, %v1075_v24  ;;  %v463_v5 = vadd.f32 %v757_v3, %v1075_v24  ;;  %v297_v6 = vpop.f32.mrb[27].mxu0  ;;  %v457_v7 = vpop.f32.mrb[27].mxu1 }
 0x12d   :  { %v298_v8 = vadd.f32 %v1075_v24, %v297_v6  ;;  %v458_v9 = vadd.f32 %v1075_v24, %v457_v7 }
 0x12e   :  { %514 = vst.msk [vmem:[%s1400_s3 + $0xd8] sm:$0xff] %vm486_vm0, %v303_v4  ;;  %546 = vst.msk [vmem:[%s1400_s3 + $0x1d8] sm:$0xff] %vm486_vm0, %v463_v5 }
 0x12f   :  { %513 = vst.msk [vmem:[%s1400_s3 + $0xd0] sm:$0xff] %vm486_vm0, %v298_v8  ;;  %545 = vst.msk [vmem:[%s1400_s3 + $0x1d0] sm:$0xff] %vm486_vm0, %v458_v9  ;;  %v712_v10 = vpop.f32.mrb[28].mxu0  ;;  %v760_v11 = vpop.f32.mrb[28].mxu1 }
 0x130   :  { %v313_v12 = vadd.f32 %v712_v10, %v1075_v24  ;;  %v473_v13 = vadd.f32 %v760_v11, %v1075_v24  ;;  %v307_v14 = vpop.f32.mrb[29].mxu0  ;;  %v467_v15 = vpop.f32.mrb[29].mxu1 }
 0x131   :  { %v308_v16 = vadd.f32 %v1075_v24, %v307_v14  ;;  %v468_v17 = vadd.f32 %v1075_v24, %v467_v15 }
 0x132   :  { %516 = vst.msk [vmem:[%s1400_s3 + $0xe8] sm:$0xff] %vm486_vm0, %v313_v12  ;;  %548 = vst.msk [vmem:[%s1400_s3 + $0x1e8] sm:$0xff] %vm486_vm0, %v473_v13 }
 0x133   :  { %515 = vst.msk [vmem:[%s1400_s3 + $0xe0] sm:$0xff] %vm486_vm0, %v308_v16  ;;  %547 = vst.msk [vmem:[%s1400_s3 + $0x1e0] sm:$0xff] %vm486_vm0, %v468_v17  ;;  %v715_v18 = vpop.f32.mrb[30].mxu0  ;;  %v763_v19 = vpop.f32.mrb[30].mxu1 }
 0x134   :  { %v323_v20 = vadd.f32 %v715_v18, %v1075_v24  ;;  %v483_v21 = vadd.f32 %v763_v19, %v1075_v24  ;;  %v317_v22 = vpop.f32.mrb[31].mxu0  ;;  %v477_v23 = vpop.f32.mrb[31].mxu1 }
 0x135   :  { %v318_v25 = vadd.f32 %v1075_v24, %v317_v22  ;;  %v478_v26 = vadd.f32 %v1075_v24, %v477_v23 }
 0x136   :  { %518 = vst.msk [vmem:[%s1400_s3 + $0xf8] sm:$0xff] %vm486_vm0, %v323_v20  ;;  %550 = vst.msk [vmem:[%s1400_s3 + $0x1f8] sm:$0xff] %vm486_vm0, %v483_v21 }
 0x137   :  { %517 = vst.msk [vmem:[%s1400_s3 + $0xf0] sm:$0xff] %vm486_vm0, %v318_v25  ;;  %549 = vst.msk [vmem:[%s1400_s3 + $0x1f0] sm:$0xff] %vm486_vm0, %v478_v26 }

// kernel: forward.27
= control target key start
LH: loop header
LB: loop body
LE: loop exit
PB: predicated region body
PF: predicated region fallthrough
CT: control target
= control target key end

     0   :  { %vm98_vm0 = vcmask 64512   ;;  %v5233_v3 = vmov 0.0   ;;  %s9170_s0 = inlined_call_operand.vmem [shape: f32[2,8], index: 0, kind: input, shape index: {}]   ;;  %s9171_s1 = inlined_call_operand.vmem [shape: f32[8,1000], index: 1, kind: input, shape index: {}]   ;;  %s9172_s2 = inlined_call_operand.vmem [shape: f32[1,1000], index: 2, kind: input, shape index: {}]   ;;  %s9173_s3 = inlined_call_operand.vmem [shape: f32[1,1000], index: 3, kind: input, shape index: {}]   ;;  %s9174_s4 = inlined_call_operand.vmem [shape: f32[1,1000], index: 4, kind: input, shape index: {}]   ;;  %s9175_s5 = inlined_call_operand.vmem [shape: f32[1000,1000], index: 5, kind: input, shape index: {}]   ;;  %s9176_s6 = inlined_call_operand.vmem [shape: f32[1,1000], index: 6, kind: input, shape index: {}]   ;;  %s9177_s7 = inlined_call_operand.vmem [shape: f32[1,1000], index: 7, kind: input, shape index: {}]   ;;  %s9178_s8 = inlined_call_operand.vmem [shape: f32[1,1000], index: 8, kind: input, shape index: {}]   ;;  %s9179_s9 = inlined_call_operand.vmem [shape: f32[1000,4], index: 9, kind: input, shape index: {}]   ;;  %s9180_s10 = inlined_call_operand.vmem [shape: f32[1,4], index: 10, kind: input, shape index: {}]   ;;  %s9181_s11 = inlined_call_operand.vmem [shape: f32[4,8], index: 11, kind: input, shape index: {}]   ;;  %s9182_s12 = inlined_call_operand.vmem [shape: f32[1,8], index: 12, kind: input, shape index: {}]   ;;  %s9183_s13 = inlined_call_operand.hbm [shape: f32[2,4], index: 13, kind: output, shape index: {0}]   ;;  %s9184_s14 = inlined_call_operand.vmem [shape: f32[2,8], index: 14, kind: output, shape index: {1}]  }
   0x1   :  { %v49_v0 = vld [vmem:[%s9171_s1 + $0x8] sm:$0xff]  ;;  %v48_v1 = vld [vmem:[%s9171_s1] sm:$0xff]  ;;  %166 = vmatprep.mubr.f32.mxu0 %v5233_v3  ;;  %v51_v4 = vld [vmem:[%s9171_s1 + $0x18] sm:$0xff] }
   0x2   :  { %v47_v2 = vld [vmem:[%s9170_s0] sm:$0x3]  ;;  %102 = vmatprep.subr.mxu0 %v49_v0  ;;  %v50_v5 = vld [vmem:[%s9171_s1 + $0x10] sm:$0xff]  ;;  %v53_v6 = vld [vmem:[%s9171_s1 + $0x28] sm:$0xff] }
   0x3   :  { %103 = vmatpush1.msra.mxu0 %v48_v1 }
   0x4   :  { %3883 = vmatmul.mubr.msk.f32.vlgmr.msra.gmra.mrb[0].mxu0 %vm98_vm0, %v47_v2  ;;  %173 = vmatprep.subr.mxu0 %v51_v4 }
   0x5   :  { %20 = vsyncpa [#allocation3], 0  ;;  %174 = vmatpush1.msra.mxu0 %v50_v5  ;;  %237 = vmatprep.mubr.f32.mxu0 %v5233_v3  ;;  %v52_v7 = vld [vmem:[%s9171_s1 + $0x20] sm:$0xff]  ;;  %v55_v8 = vld [vmem:[%s9171_s1 + $0x38] sm:$0xff]  ;;  %vm388_vm1 = vcmask 1041408   ;;  %vm438_vm2 = vcmask 844800  }
   0x6   :  { %244 = vmatprep.subr.mxu0 %v53_v6  ;;  %v54_v9 = vld [vmem:[%s9171_s1 + $0x30] sm:$0xff]  ;;  %v784_v10 = vld [vmem:[%s9175_s5 + $0x8] sm:$0xff]  ;;  %v786_v12 = vld [vmem:[%s9175_s5 + $0x18] sm:$0xff]  ;;  %vm1825_vm3 = vcmask 850944   ;;  %vm3789_vm4 = vcmask 1043456   ;;  %vm5236_vm5 = vmmov 0  }
   0x7   :  { %v792_v11 = vld [vmem:[%s9175_s5 + $0x48] sm:$0xff]  ;;  %v794_v14 = vld [vmem:[%s9175_s5 + $0x58] sm:$0xff]  ;;  %v783_v15 = vld [vmem:[%s9175_s5] sm:$0xff]  ;;  %vm3785_vm6 = vcmask 31744   ;;  %vm3775_vm7 = vcmask 25600  }
   0x8   :  { %3884 = vmatmul.mubr.msk.f32.vlgmr.msra.gmra.mrb[2].mxu0 %vm98_vm0, %v47_v2  ;;  %v4008_v13 = vpack.c.bf16 %v792_v11, %v784_v10  ;;  %v791_v16 = vld [vmem:[%s9175_s5 + $0x40] sm:$0xff]  ;;  %v4256_v17 = vpack.c.bf16 %v794_v14, %v786_v12  ;;  %v785_v19 = vld [vmem:[%s9175_s5 + $0x10] sm:$0xff]  ;;  %v800_v22 = vld [vmem:[%s9175_s5 + $0x88] sm:$0xff] }
   0x9   :  { %245 = vmatpush1.msra.mxu0 %v52_v7  ;;  %308 = vmatprep.mubr.f32.mxu0 %v5233_v3  ;;  %v4010_v18 = vpack.c.bf16 %v791_v16, %v783_v15  ;;  %v793_v20 = vld [vmem:[%s9175_s5 + $0x50] sm:$0xff]  ;;  %v808_v23 = vld [vmem:[%s9175_s5 + $0xc8] sm:$0xff]  ;;  %v802_v24 = vld [vmem:[%s9175_s5 + $0x98] sm:$0xff] }
   0xa   :  { %315 = vmatprep.subr.mxu0 %v55_v8  ;;  %v4258_v21 = vpack.c.bf16 %v793_v20, %v785_v19  ;;  %4257 = vmatprep.subr.bf16.mxu1 %v4256_v17  ;;  %v4012_v25 = vpack.c.bf16 %v808_v23, %v800_v22  ;;  %v810_v26 = vld [vmem:[%s9175_s5 + $0xd8] sm:$0xff]  ;;  %v799_v27 = vld [vmem:[%s9175_s5 + $0x80] sm:$0xff]  ;;  %v801_v31 = vld [vmem:[%s9175_s5 + $0x90] sm:$0xff] }
   0xb   :  { %v807_v28 = vld [vmem:[%s9175_s5 + $0xc0] sm:$0xff]  ;;  %v4260_v29 = vpack.c.bf16 %v810_v26, %v802_v24  ;;  %v809_v32 = vld [vmem:[%s9175_s5 + $0xd0] sm:$0xff]  ;;  %v816_v34 = vld [vmem:[%s9175_s5 + $0x108] sm:$0xff] }
   0xc   :  { %3885 = vmatmul.mubr.msk.f32.vlgmr.msra.gmra.mrb[4].mxu0 %vm98_vm0, %v47_v2  ;;  %4259 = vmatpush1.bf16.msra.mxu1 %v4258_v21  ;;  %v4014_v30 = vpack.c.bf16 %v807_v28, %v799_v27  ;;  %v4262_v33 = vpack.c.bf16 %v809_v32, %v801_v31  ;;  %v824_v35 = vld [vmem:[%s9175_s5 + $0x148] sm:$0xff]  ;;  %v818_v36 = vld [vmem:[%s9175_s5 + $0x118] sm:$0xff]  ;;  %v815_v39 = vld [vmem:[%s9175_s5 + $0x100] sm:$0xff] }
   0xd   :  { %316 = vmatpush1.msra.mxu0 %v54_v9  ;;  %379 = vmatprep.mubr.f32.mxu0 %v5233_v3  ;;  %v4016_v37 = vpack.c.bf16 %v824_v35, %v816_v34  ;;  %v826_v38 = vld [vmem:[%s9175_s5 + $0x158] sm:$0xff]  ;;  %v823_v40 = vld [vmem:[%s9175_s5 + $0x140] sm:$0xff]  ;;  %v817_v43 = vld [vmem:[%s9175_s5 + $0x110] sm:$0xff] }
   0xe   :  { %4009 = vmatprep.subr.bf16.mxu0 %v4008_v13  ;;  %4261 = vmatprep.subr.bf16.mxu1 %v4260_v29  ;;  %v4264_v41 = vpack.c.bf16 %v826_v38, %v818_v36  ;;  %v4018_v42 = vpack.c.bf16 %v823_v40, %v815_v39  ;;  %v825_v44 = vld [vmem:[%s9175_s5 + $0x150] sm:$0xff]  ;;  %v832_v46 = vld [vmem:[%s9175_s5 + $0x188] sm:$0xff]  ;;  %v834_v48 = vld [vmem:[%s9175_s5 + $0x198] sm:$0xff] }
   0xf   :  { %v4266_v45 = vpack.c.bf16 %v825_v44, %v817_v43  ;;  %v840_v47 = vld [vmem:[%s9175_s5 + $0x1c8] sm:$0xff]  ;;  %v842_v50 = vld [vmem:[%s9175_s5 + $0x1d8] sm:$0xff]  ;;  %v831_v51 = vld [vmem:[%s9175_s5 + $0x180] sm:$0xff] }
  0x10   :  { %3886 = vmatmul.mubr.msk.f32.vlgmr.msra.gmra.mrb[6].mxu0 %vm98_vm0, %v47_v2  ;;  %4263 = vmatpush1.bf16.msra.mxu1 %v4262_v33  ;;  %v4020_v49 = vpack.c.bf16 %v840_v47, %v832_v46  ;;  %v839_v52 = vld [vmem:[%s9175_s5 + $0x1c0] sm:$0xff]  ;;  %v4268_v53 = vpack.c.bf16 %v842_v50, %v834_v48  ;;  %v833_v55 = vld [vmem:[%s9175_s5 + $0x190] sm:$0xff]  ;;  %v848_v58 = vld [vmem:[%s9175_s5 + $0x208] sm:$0xff] }
  0x11   :  { %4011 = vmatpush1.bf16.msra.mxu0 %v4010_v18  ;;  %4265 = vmatprep.subr.bf16.mxu1 %v4264_v41  ;;  %v4022_v54 = vpack.c.bf16 %v839_v52, %v831_v51  ;;  %v841_v56 = vld [vmem:[%s9175_s5 + $0x1d0] sm:$0xff]  ;;  %v856_v59 = vld [vmem:[%s9175_s5 + $0x248] sm:$0xff]  ;;  %v850_v60 = vld [vmem:[%s9175_s5 + $0x218] sm:$0xff] }
  0x12   :  { %4013 = vmatprep.subr.bf16.mxu0 %v4012_v25  ;;  %v4270_v57 = vpack.c.bf16 %v841_v56, %v833_v55  ;;  %v4024_v61 = vpack.c.bf16 %v856_v59, %v848_v58  ;;  %v858_v62 = vld [vmem:[%s9175_s5 + $0x258] sm:$0xff]  ;;  %v847_v63 = vld [vmem:[%s9175_s5 + $0x200] sm:$0xff]  ;;  %v849_v4 = vld [vmem:[%s9175_s5 + $0x210] sm:$0xff] }
  0x13   :  { %v855_v0 = vld [vmem:[%s9175_s5 + $0x240] sm:$0xff]  ;;  %v4272_v1 = vpack.c.bf16 %v858_v62, %v850_v60  ;;  %v857_v5 = vld [vmem:[%s9175_s5 + $0x250] sm:$0xff]  ;;  %v864_v7 = vld [vmem:[%s9175_s5 + $0x288] sm:$0xff] }
  0x14   :  { %4267 = vmatpush1.bf16.msra.mxu1 %v4266_v45  ;;  %v4026_v2 = vpack.c.bf16 %v855_v0, %v847_v63  ;;  %v4274_v6 = vpack.c.bf16 %v857_v5, %v849_v4  ;;  %v872_v8 = vld [vmem:[%s9175_s5 + $0x2c8] sm:$0xff]  ;;  %v866_v9 = vld [vmem:[%s9175_s5 + $0x298] sm:$0xff]  ;;  %v863_v13 = vld [vmem:[%s9175_s5 + $0x280] sm:$0xff] }
  0x15   :  { %4015 = vmatpush1.bf16.msra.mxu0 %v4014_v30  ;;  %4269 = vmatprep.subr.bf16.mxu1 %v4268_v53  ;;  %v874_v10 = vld [vmem:[%s9175_s5 + $0x2d8] sm:$0xff]  ;;  %v4028_v11 = vpack.c.bf16 %v872_v8, %v864_v7  ;;  %v871_v14 = vld [vmem:[%s9175_s5 + $0x2c0] sm:$0xff]  ;;  %v865_v15 = vld [vmem:[%s9175_s5 + $0x290] sm:$0xff] }
  0x16   :  { %4017 = vmatprep.subr.bf16.mxu0 %v4016_v37  ;;  %v4276_v12 = vpack.c.bf16 %v874_v10, %v866_v9  ;;  %v4030_v16 = vpack.c.bf16 %v871_v14, %v863_v13  ;;  %v873_v17 = vld [vmem:[%s9175_s5 + $0x2d0] sm:$0xff]  ;;  %v880_v19 = vld [vmem:[%s9175_s5 + $0x308] sm:$0xff]  ;;  %v882_v21 = vld [vmem:[%s9175_s5 + $0x318] sm:$0xff] }
  0x17   :  { %v4278_v18 = vpack.c.bf16 %v873_v17, %v865_v15  ;;  %v888_v20 = vld [vmem:[%s9175_s5 + $0x348] sm:$0xff]  ;;  %v890_v23 = vld [vmem:[%s9175_s5 + $0x358] sm:$0xff]  ;;  %v879_v24 = vld [vmem:[%s9175_s5 + $0x300] sm:$0xff] }
  0x18   :  { %4271 = vmatpush1.bf16.msra.mxu1 %v4270_v57  ;;  %v4032_v22 = vpack.c.bf16 %v888_v20, %v880_v19  ;;  %v887_v25 = vld [vmem:[%s9175_s5 + $0x340] sm:$0xff]  ;;  %v4280_v26 = vpack.c.bf16 %v890_v23, %v882_v21  ;;  %v881_v28 = vld [vmem:[%s9175_s5 + $0x310] sm:$0xff]  ;;  %v896_v31 = vld [vmem:[%s9175_s5 + $0x388] sm:$0xff] }
  0x19   :  { %4019 = vmatpush1.bf16.msra.mxu0 %v4018_v42  ;;  %4273 = vmatprep.subr.bf16.mxu1 %v4272_v1  ;;  %v4034_v27 = vpack.c.bf16 %v887_v25, %v879_v24  ;;  %v889_v29 = vld [vmem:[%s9175_s5 + $0x350] sm:$0xff]  ;;  %v904_v32 = vld [vmem:[%s9175_s5 + $0x3c8] sm:$0xff]  ;;  %v898_v33 = vld [vmem:[%s9175_s5 + $0x398] sm:$0xff] }
  0x1a   :  { %4021 = vmatprep.subr.bf16.mxu0 %v4020_v49  ;;  %v4282_v30 = vpack.c.bf16 %v889_v29, %v881_v28  ;;  %v4036_v34 = vpack.c.bf16 %v904_v32, %v896_v31  ;;  %v906_v35 = vld [vmem:[%s9175_s5 + $0x3d8] sm:$0xff]  ;;  %v895_v36 = vld [vmem:[%s9175_s5 + $0x380] sm:$0xff]  ;;  %v897_v40 = vld [vmem:[%s9175_s5 + $0x390] sm:$0xff] }
  0x1b   :  { %v903_v37 = vld [vmem:[%s9175_s5 + $0x3c0] sm:$0xff]  ;;  %v4284_v38 = vpack.c.bf16 %v906_v35, %v898_v33  ;;  %v905_v41 = vld [vmem:[%s9175_s5 + $0x3d0] sm:$0xff]  ;;  %v912_v43 = vld [vmem:[%s9175_s5 + $0x408] sm:$0xff] }
  0x1c   :  { %4275 = vmatpush1.bf16.msra.mxu1 %v4274_v6  ;;  %v4038_v39 = vpack.c.bf16 %v903_v37, %v895_v36  ;;  %v4286_v42 = vpack.c.bf16 %v905_v41, %v897_v40  ;;  %v920_v44 = vld [vmem:[%s9175_s5 + $0x448] sm:$0xff]  ;;  %v914_v45 = vld [vmem:[%s9175_s5 + $0x418] sm:$0xff]  ;;  %v911_v48 = vld [vmem:[%s9175_s5 + $0x400] sm:$0xff] }
  0x1d   :  { %4023 = vmatpush1.bf16.msra.mxu0 %v4022_v54  ;;  %4277 = vmatprep.subr.bf16.mxu1 %v4276_v12  ;;  %v4040_v46 = vpack.c.bf16 %v920_v44, %v912_v43  ;;  %v922_v47 = vld [vmem:[%s9175_s5 + $0x458] sm:$0xff]  ;;  %v919_v49 = vld [vmem:[%s9175_s5 + $0x440] sm:$0xff]  ;;  %v913_v52 = vld [vmem:[%s9175_s5 + $0x410] sm:$0xff] }
  0x1e   :  { %4025 = vmatprep.subr.bf16.mxu0 %v4024_v61  ;;  %v4288_v50 = vpack.c.bf16 %v922_v47, %v914_v45  ;;  %v4042_v51 = vpack.c.bf16 %v919_v49, %v911_v48  ;;  %v921_v53 = vld [vmem:[%s9175_s5 + $0x450] sm:$0xff]  ;;  %v928_v55 = vld [vmem:[%s9175_s5 + $0x488] sm:$0xff]  ;;  %v930_v57 = vld [vmem:[%s9175_s5 + $0x498] sm:$0xff] }
  0x1f   :  { %v4290_v54 = vpack.c.bf16 %v921_v53, %v913_v52  ;;  %v936_v56 = vld [vmem:[%s9175_s5 + $0x4c8] sm:$0xff]  ;;  %v938_v59 = vld [vmem:[%s9175_s5 + $0x4d8] sm:$0xff]  ;;  %v927_v60 = vld [vmem:[%s9175_s5 + $0x480] sm:$0xff] }
  0x20   :  { %4279 = vmatpush1.bf16.msra.mxu1 %v4278_v18  ;;  %v4044_v58 = vpack.c.bf16 %v936_v56, %v928_v55  ;;  %v935_v61 = vld [vmem:[%s9175_s5 + $0x4c0] sm:$0xff]  ;;  %v4292_v62 = vpack.c.bf16 %v938_v59, %v930_v57  ;;  %v929_v0 = vld [vmem:[%s9175_s5 + $0x490] sm:$0xff]  ;;  %v944_v4 = vld [vmem:[%s9175_s5 + $0x508] sm:$0xff] }
  0x21   :  { %4027 = vmatpush1.bf16.msra.mxu0 %v4026_v2  ;;  %4281 = vmatprep.subr.bf16.mxu1 %v4280_v26  ;;  %v4046_v63 = vpack.c.bf16 %v935_v61, %v927_v60  ;;  %v937_v1 = vld [vmem:[%s9175_s5 + $0x4d0] sm:$0xff]  ;;  %v952_v5 = vld [vmem:[%s9175_s5 + $0x548] sm:$0xff]  ;;  %v946_v6 = vld [vmem:[%s9175_s5 + $0x518] sm:$0xff] }
  0x22   :  { %4029 = vmatprep.subr.bf16.mxu0 %v4028_v11  ;;  %v4294_v2 = vpack.c.bf16 %v937_v1, %v929_v0  ;;  %v4048_v7 = vpack.c.bf16 %v952_v5, %v944_v4  ;;  %v954_v8 = vld [vmem:[%s9175_s5 + $0x558] sm:$0xff]  ;;  %v943_v9 = vld [vmem:[%s9175_s5 + $0x500] sm:$0xff]  ;;  %v945_v13 = vld [vmem:[%s9175_s5 + $0x510] sm:$0xff] }
  0x23   :  { %v951_v10 = vld [vmem:[%s9175_s5 + $0x540] sm:$0xff]  ;;  %v4296_v11 = vpack.c.bf16 %v954_v8, %v946_v6  ;;  %v953_v14 = vld [vmem:[%s9175_s5 + $0x550] sm:$0xff]  ;;  %v968_v17 = vld [vmem:[%s9175_s5 + $0x5c8] sm:$0xff] }
  0x24   :  { %4283 = vmatpush1.bf16.msra.mxu1 %v4282_v30  ;;  %v4050_v12 = vpack.c.bf16 %v951_v10, %v943_v9  ;;  %v4298_v15 = vpack.c.bf16 %v953_v14, %v945_v13  ;;  %v962_v18 = vld [vmem:[%s9175_s5 + $0x598] sm:$0xff]  ;;  %v959_v21 = vld [vmem:[%s9175_s5 + $0x580] sm:$0xff]  ;;  %v961_v25 = vld [vmem:[%s9175_s5 + $0x590] sm:$0xff] }
  0x25   :  { %4031 = vmatpush1.bf16.msra.mxu0 %v4030_v16  ;;  %4285 = vmatprep.subr.bf16.mxu1 %v4284_v38  ;;  %v960_v16 = vld [vmem:[%s9175_s5 + $0x588] sm:$0xff]  ;;  %v970_v20 = vld [vmem:[%s9175_s5 + $0x5d8] sm:$0xff]  ;;  %v969_v26 = vld [vmem:[%s9175_s5 + $0x5d0] sm:$0xff] }
  0x26   :  { %4033 = vmatprep.subr.bf16.mxu0 %v4032_v22  ;;  %v4052_v19 = vpack.c.bf16 %v968_v17, %v960_v16  ;;  %v967_v22 = vld [vmem:[%s9175_s5 + $0x5c0] sm:$0xff]  ;;  %v4300_v23 = vpack.c.bf16 %v970_v20, %v962_v18  ;;  %v976_v28 = vld [vmem:[%s9175_s5 + $0x608] sm:$0xff]  ;;  %v978_v30 = vld [vmem:[%s9175_s5 + $0x618] sm:$0xff] }
  0x27   :  { %v4054_v24 = vpack.c.bf16 %v967_v22, %v959_v21  ;;  %v984_v29 = vld [vmem:[%s9175_s5 + $0x648] sm:$0xff]  ;;  %v986_v32 = vld [vmem:[%s9175_s5 + $0x658] sm:$0xff]  ;;  %v975_v33 = vld [vmem:[%s9175_s5 + $0x600] sm:$0xff] }
  0x28   :  { %4287 = vmatpush1.bf16.msra.mxu1 %v4286_v42  ;;  %v4056_v31 = vpack.c.bf16 %v984_v29, %v976_v28  ;;  %v4304_v35 = vpack.c.bf16 %v986_v32, %v978_v30  ;;  %v977_v37 = vld [vmem:[%s9175_s5 + $0x610] sm:$0xff]  ;;  %v992_v40 = vld [vmem:[%s9175_s5 + $0x688] sm:$0xff]  ;;  %v994_v42 = vld [vmem:[%s9175_s5 + $0x698] sm:$0xff] }
  0x29   :  { %4035 = vmatpush1.bf16.msra.mxu0 %v4034_v27  ;;  %4289 = vmatprep.subr.bf16.mxu1 %v4288_v50  ;;  %v4302_v27 = vpack.c.bf16 %v969_v26, %v961_v25  ;;  %v985_v38 = vld [vmem:[%s9175_s5 + $0x650] sm:$0xff]  ;;  %v1000_v41 = vld [vmem:[%s9175_s5 + $0x6c8] sm:$0xff]  ;;  %v1002_v44 = vld [vmem:[%s9175_s5 + $0x6d8] sm:$0xff] }
  0x2a   :  { %4037 = vmatprep.subr.bf16.mxu0 %v4036_v34  ;;  %v983_v34 = vld [vmem:[%s9175_s5 + $0x640] sm:$0xff]  ;;  %v4060_v43 = vpack.c.bf16 %v1000_v41, %v992_v40  ;;  %v4308_v47 = vpack.c.bf16 %v1002_v44, %v994_v42  ;;  %v993_v49 = vld [vmem:[%s9175_s5 + $0x690] sm:$0xff]  ;;  %v1008_v52 = vld [vmem:[%s9175_s5 + $0x708] sm:$0xff] }
  0x2b   :  { %v4058_v36 = vpack.c.bf16 %v983_v34, %v975_v33  ;;  %v991_v45 = vld [vmem:[%s9175_s5 + $0x680] sm:$0xff]  ;;  %v1001_v50 = vld [vmem:[%s9175_s5 + $0x6d0] sm:$0xff]  ;;  %v1016_v53 = vld [vmem:[%s9175_s5 + $0x748] sm:$0xff] }
  0x2c   :  { %4291 = vmatpush1.bf16.msra.mxu1 %v4290_v54  ;;  %v1010_v54 = vld [vmem:[%s9175_s5 + $0x718] sm:$0xff]  ;;  %v4064_v55 = vpack.c.bf16 %v1016_v53, %v1008_v52  ;;  %v1007_v57 = vld [vmem:[%s9175_s5 + $0x700] sm:$0xff]  ;;  %v1009_v61 = vld [vmem:[%s9175_s5 + $0x710] sm:$0xff] }
  0x2d   :  { %4039 = vmatpush1.bf16.msra.mxu0 %v4038_v39  ;;  %4293 = vmatprep.subr.bf16.mxu1 %v4292_v62  ;;  %v4306_v39 = vpack.c.bf16 %v985_v38, %v977_v37  ;;  %v1018_v56 = vld [vmem:[%s9175_s5 + $0x758] sm:$0xff]  ;;  %v1017_v62 = vld [vmem:[%s9175_s5 + $0x750] sm:$0xff]  ;;  %v1024_v0 = vld [vmem:[%s9175_s5 + $0x788] sm:$0xff] }
  0x2e   :  { %4041 = vmatprep.subr.bf16.mxu0 %v4040_v46  ;;  %v999_v46 = vld [vmem:[%s9175_s5 + $0x6c0] sm:$0xff]  ;;  %v4312_v59 = vpack.c.bf16 %v1018_v56, %v1010_v54  ;;  %v1032_v1 = vld [vmem:[%s9175_s5 + $0x7c8] sm:$0xff]  ;;  %v1034_v5 = vld [vmem:[%s9175_s5 + $0x7d8] sm:$0xff] }
  0x2f   :  { %v4062_v48 = vpack.c.bf16 %v999_v46, %v991_v45  ;;  %v4068_v4 = vpack.c.bf16 %v1032_v1, %v1024_v0  ;;  %v1023_v6 = vld [vmem:[%s9175_s5 + $0x780] sm:$0xff]  ;;  %v1025_v10 = vld [vmem:[%s9175_s5 + $0x790] sm:$0xff]  ;;  %v1040_v13 = vld [vmem:[%s9175_s5 + $0x808] sm:$0xff] }
  0x30   :  { %4295 = vmatpush1.bf16.msra.mxu1 %v4294_v2  ;;  %v1026_v2 = vld [vmem:[%s9175_s5 + $0x798] sm:$0xff]  ;;  %v1048_v14 = vld [vmem:[%s9175_s5 + $0x848] sm:$0xff]  ;;  %v56_v22 = vld [vmem:[%s9172_s2] sm:$0xff] }
  0x31   :  { %4043 = vmatpush1.bf16.msra.mxu0 %v4042_v51  ;;  %4297 = vmatprep.subr.bf16.mxu1 %v4296_v11  ;;  %v4310_v51 = vpack.c.bf16 %v1001_v50, %v993_v49  ;;  %v4316_v8 = vpack.c.bf16 %v1034_v5, %v1026_v2  ;;  %v1033_v11 = vld [vmem:[%s9175_s5 + $0x7d0] sm:$0xff]  ;;  %v4072_v16 = vpack.c.bf16 %v1048_v14, %v1040_v13  ;;  %v1050_v17 = vld [vmem:[%s9175_s5 + $0x858] sm:$0xff] }
  0x32   :  { %4045 = vmatprep.subr.bf16.mxu0 %v4044_v58  ;;  %v1015_v58 = vld [vmem:[%s9175_s5 + $0x740] sm:$0xff] }
  0x33   :  { %v4066_v60 = vpack.c.bf16 %v1015_v58, %v1007_v57 }
  0x34   :  { %4299 = vmatpush1.bf16.msra.mxu1 %v4298_v15  ;;  %v1042_v15 = vld [vmem:[%s9175_s5 + $0x818] sm:$0xff] }
  0x35   :  { %4047 = vmatpush1.bf16.msra.mxu0 %v4046_v63  ;;  %4301 = vmatprep.subr.bf16.mxu1 %v4300_v23  ;;  %v4314_v63 = vpack.c.bf16 %v1017_v62, %v1009_v61  ;;  %v4320_v18 = vpack.c.bf16 %v1050_v17, %v1042_v15 }
  0x36   :  { %4049 = vmatprep.subr.bf16.mxu0 %v4048_v7  ;;  %v1031_v7 = vld [vmem:[%s9175_s5 + $0x7c0] sm:$0xff] }
  0x37   :  { %v4070_v9 = vpack.c.bf16 %v1031_v7, %v1023_v6 }
  0x38   :  { %4303 = vmatpush1.bf16.msra.mxu1 %v4302_v27 }
  0x39   :  { %4051 = vmatpush1.bf16.msra.mxu0 %v4050_v12  ;;  %4305 = vmatprep.subr.bf16.mxu1 %v4304_v35  ;;  %v4318_v12 = vpack.c.bf16 %v1033_v11, %v1025_v10 }
  0x3a   :  { %4053 = vmatprep.subr.bf16.mxu0 %v4052_v19  ;;  %v58_v19 = vlaneseq }
  0x3c   :  { %4307 = vmatpush1.bf16.msra.mxu1 %v4306_v39  ;;  %v5744_v20 = vshrl.u32 %v58_v19, 7 }
  0x3d   :  { %4055 = vmatpush1.bf16.msra.mxu0 %v4054_v24  ;;  %4309 = vmatprep.subr.bf16.mxu1 %v4308_v47 }
  0x3e   :  { %4057 = vmatprep.subr.bf16.mxu0 %v4056_v31  ;;  %v5747_v21 = vsub.s32 0, %v5744_v20  ;;  %v5753_v23 = vsub.s32 1, %v5744_v20  ;;  %v5757_v25 = vsub.s32 2, %v5744_v20  ;;  %v5761_v27 = vsub.s32 3, %v5744_v20 }
  0x3f   :  { %v5767_v32 = vsub.s32 4, %v5744_v20  ;;  %v5773_v35 = vsub.s32 5, %v5744_v20  ;;  %v5783_v44 = vsub.s32 6, %v5744_v20 }
  0x40   :  { %4311 = vmatpush1.bf16.msra.mxu1 %v4310_v51  ;;  %v61_v24 = vrot.slane %v56_v22, %v5747_v21  ;;  %v65_v26 = vrot.slane %v56_v22, %v5753_v23  ;;  %v69_v31 = vrot.slane %v56_v22, %v5757_v25  ;;  %v73_v34 = vrot.slane %v56_v22, %v5761_v27 }
  0x41   :  { %4059 = vmatpush1.bf16.msra.mxu0 %v4058_v36  ;;  %4313 = vmatprep.subr.bf16.mxu1 %v4312_v59  ;;  %v81_v47 = vrot.slane %v56_v22, %v5773_v35  ;;  %v85_v59 = vrot.slane %v56_v22, %v5783_v44 }
  0x42   :  { %4061 = vmatprep.subr.bf16.mxu0 %v4060_v43  ;;  %v77_v43 = vrot.slane %v56_v22, %v5767_v32 }
  0x44   :  { %4315 = vmatpush1.bf16.msra.mxu1 %v4314_v63 }
  0x45   :  { %4063 = vmatpush1.bf16.msra.mxu0 %v4062_v48  ;;  %4317 = vmatprep.subr.bf16.mxu1 %v4316_v8  ;;  %v5789_v48 = vsub.s32 7, %v5744_v20 }
  0x46   :  { %4065 = vmatprep.subr.bf16.mxu0 %v4064_v55 }
  0x47   :  { %v89_v63 = vrot.slane %v56_v22, %v5789_v48 }
  0x48   :  { %4319 = vmatpush1.bf16.msra.mxu1 %v4318_v12 }
  0x49   :  { %4067 = vmatpush1.bf16.msra.mxu0 %v4066_v60  ;;  %4321 = vmatprep.subr.bf16.mxu1 %v4320_v18 }
  0x4a   :  { %4069 = vmatprep.subr.bf16.mxu0 %v4068_v4 }
  0x4d   :  { %4071 = vmatpush1.bf16.msra.mxu0 %v4070_v9 }
  0x4e   :  { %4073 = vmatprep.subr.bf16.mxu0 %v4072_v16 }
  0xd7   :  { %v168_v28 = vpop.f32.mrb[0].mxu0 }
  0xd8   :  { %v5763_v29 = vadd.f32 %v168_v28, %v61_v24  ;;  %v170_v30 = vpop.f32.mrb[1].mxu0 }
  0xd9   :  { %v5769_v33 = vadd.f32 %v170_v30, %v65_v26 }
  0xda   :  { %v389_v36 = vsel %vm388_vm1, %v5763_v29, 0.0 }
  0xdb   :  { %v390_v37 = vrot.slane %v389_v36, 4  ;;  %v396_v38 = vsel %vm388_vm1, %v5769_v33, 0.0  ;;  %v239_v39 = vpop.f32.mrb[2].mxu0 }
  0xdc   :  { %v397_v40 = vrot.slane %v396_v38, 4  ;;  %v5779_v41 = vadd.f32 %v239_v39, %v69_v31  ;;  %v241_v42 = vpop.f32.mrb[3].mxu0 }
  0xdd   :  { %v391_v45 = vadd.f32 %v390_v37, %v389_v36  ;;  %v5785_v46 = vadd.f32 %v241_v42, %v73_v34 }
  0xde   :  { %v398_v49 = vadd.f32 %v397_v40, %v396_v38  ;;  %v403_v50 = vsel %vm388_vm1, %v5779_v41, 0.0 }
  0xdf   :  { %v392_v51 = vrot.slane %v391_v45, 2  ;;  %v404_v52 = vrot.slane %v403_v50, 4  ;;  %v410_v53 = vsel %vm388_vm1, %v5785_v46, 0.0  ;;  %v310_v54 = vpop.f32.mrb[4].mxu0 }
  0xe0   :  { %v399_v55 = vrot.slane %v398_v49, 2  ;;  %v411_v56 = vrot.slane %v410_v53, 4  ;;  %v5795_v57 = vadd.f32 %v310_v54, %v77_v43  ;;  %v312_v58 = vpop.f32.mrb[5].mxu0 }
  0xe1   :  { %v393_v60 = vadd.f32 %v392_v51, %v391_v45  ;;  %v405_v61 = vadd.f32 %v404_v52, %v403_v50  ;;  %v5798_v62 = vadd.f32 %v312_v58, %v81_v47 }
  0xe2   :  { %v400_v0 = vadd.f32 %v399_v55, %v398_v49  ;;  %v412_v1 = vadd.f32 %v411_v56, %v410_v53  ;;  %v417_v2 = vsel %vm388_vm1, %v5795_v57, 0.0 }
  0xe3   :  { %v394_v4 = vrot.slane %v393_v60, 1  ;;  %v406_v5 = vrot.slane %v405_v61, 2  ;;  %v418_v6 = vrot.slane %v417_v2, 4  ;;  %v424_v7 = vsel %vm388_vm1, %v5798_v62, 0.0  ;;  %v381_v8 = vpop.f32.mrb[6].mxu0 }
  0xe4   :  { %v401_v9 = vrot.slane %v400_v0, 1  ;;  %v413_v10 = vrot.slane %v412_v1, 2  ;;  %v425_v11 = vrot.slane %v424_v7, 4  ;;  %v5805_v12 = vadd.f32 %v381_v8, %v85_v59  ;;  %v383_v13 = vpop.f32.mrb[7].mxu0 }
  0xe5   :  { %v395_v14 = vadd.f32 %v394_v4, %v393_v60  ;;  %v407_v15 = vadd.f32 %v406_v5, %v405_v61  ;;  %v419_v16 = vadd.f32 %v418_v6, %v417_v2  ;;  %v5807_v17 = vadd.f32 %v383_v13, %v89_v63 }
  0xe6   :  { %v402_v18 = vadd.f32 %v401_v9, %v400_v0  ;;  %v414_v19 = vadd.f32 %v413_v10, %v412_v1  ;;  %v426_v22 = vadd.f32 %v425_v11, %v424_v7  ;;  %v431_v24 = vsel %vm388_vm1, %v5805_v12, 0.0 }
  0xe7   :  { %v5811_v26 = vmul.f32 0.5, %v395_v14  ;;  %v408_v28 = vrot.slane %v407_v15, 1  ;;  %v420_v30 = vrot.slane %v419_v16, 2  ;;  %v432_v31 = vrot.slane %v431_v24, 4 }
  0xe8   :  { %v5813_v34 = vmul.f32 0.5, %v402_v18  ;;  %v415_v36 = vrot.slane %v414_v19, 1  ;;  %v427_v37 = vrot.slane %v426_v22, 2  ;;  %v439_v38 = vsel %vm438_vm2, %v5807_v17, 0.0 }
  0xe9   :  { %v455_v39 = vsub.f32 %v5763_v29, %v5811_v26  ;;  %v409_v40 = vadd.f32 %v408_v28, %v407_v15  ;;  %v421_v42 = vadd.f32 %v420_v30, %v419_v16  ;;  %v433_v43 = vadd.f32 %v432_v31, %v431_v24 }
  0xea   :  { %v456_v45 = vsub.f32 %v5769_v33, %v5813_v34  ;;  %v416_v47 = vadd.f32 %v415_v36, %v414_v19  ;;  %v428_v49 = vadd.f32 %v427_v37, %v426_v22  ;;  %v440_v50 = vrot.slane %v439_v38, 4 }
  0xeb   :  { %v463_v51 = vmul.f32 %v455_v39, %v455_v39  ;;  %v5821_v52 = vmul.f32 0.5, %v409_v40  ;;  %v422_v53 = vrot.slane %v421_v42, 1  ;;  %v434_v54 = vrot.slane %v433_v43, 2 }
  0xec   :  { %v464_v55 = vmul.f32 %v456_v45, %v456_v45  ;;  %v5823_v56 = vmul.f32 0.5, %v416_v47  ;;  %v429_v58 = vrot.slane %v428_v49, 1  ;;  %v441_v59 = vadd.f32 %v440_v50, %v439_v38 }
  0xed   :  { %v471_v60 = vsel %vm388_vm1, %v463_v51, 0.0  ;;  %v457_v61 = vsub.f32 %v5779_v41, %v5821_v52  ;;  %v423_v63 = vadd.f32 %v422_v53, %v421_v42  ;;  %v435_v0 = vadd.f32 %v434_v54, %v433_v43 }
  0xee   :  { %v472_v1 = vrot.slane %v471_v60, 4  ;;  %v478_v2 = vsel %vm388_vm1, %v464_v55, 0.0  ;;  %v458_v4 = vsub.f32 %v5785_v46, %v5823_v56  ;;  %v430_v5 = vadd.f32 %v429_v58, %v428_v49 }
  0xef   :  { %v479_v6 = vrot.slane %v478_v2, 4  ;;  %v465_v7 = vmul.f32 %v457_v61, %v457_v61  ;;  %v5831_v8 = vmul.f32 0.5, %v423_v63  ;;  %v436_v9 = vrot.slane %v435_v0, 1 }
  0xf0   :  { %v466_v10 = vmul.f32 %v458_v4, %v458_v4  ;;  %v5833_v11 = vmul.f32 0.5, %v430_v5  ;;  %v442_v13 = vrot.slane %v441_v59, 2  ;;  %v473_v14 = vadd.f32 %v472_v1, %v471_v60 }
  0xf1   :  { %v485_v15 = vsel %vm388_vm1, %v465_v7, 0.0  ;;  %v459_v16 = vsub.f32 %v5795_v57, %v5831_v8  ;;  %v437_v18 = vadd.f32 %v436_v9, %v435_v0  ;;  %v480_v19 = vadd.f32 %v479_v6, %v478_v2 }
  0xf2   :  { %v486_v22 = vrot.slane %v485_v15, 4  ;;  %v492_v24 = vsel %vm388_vm1, %v466_v10, 0.0  ;;  %v460_v28 = vsub.f32 %v5798_v62, %v5833_v11  ;;  %v443_v39 = vadd.f32 %v442_v13, %v441_v59 }
  0xf3   :  { %v493_v30 = vrot.slane %v492_v24, 4  ;;  %v467_v31 = vmul.f32 %v459_v16, %v459_v16  ;;  %v5841_v36 = vmul.f32 0.5, %v437_v18  ;;  %v474_v40 = vrot.slane %v473_v14, 2 }
  0xf4   :  { %v487_v37 = vadd.f32 %v486_v22, %v485_v15  ;;  %v468_v38 = vmul.f32 %v460_v28, %v460_v28  ;;  %v481_v47 = vrot.slane %v480_v19, 2  ;;  %v444_v61 = vrot.slane %v443_v39, 1 }
  0xf5   :  { %v494_v42 = vadd.f32 %v493_v30, %v492_v24  ;;  %v499_v43 = vsel %vm388_vm1, %v467_v31, 0.0  ;;  %v461_v45 = vsub.f32 %v5805_v12, %v5841_v36  ;;  %v475_v63 = vadd.f32 %v474_v40, %v473_v14 }
  0xf6   :  { %v488_v49 = vrot.slane %v487_v37, 2  ;;  %v500_v50 = vrot.slane %v499_v43, 4  ;;  %v506_v51 = vsel %vm388_vm1, %v468_v38, 0.0  ;;  %v482_v2 = vadd.f32 %v481_v47, %v480_v19 }
  0xf7   :  { %v495_v53 = vrot.slane %v494_v42, 2  ;;  %v507_v54 = vrot.slane %v506_v51, 4  ;;  %v469_v55 = vmul.f32 %v461_v45, %v461_v45  ;;  %v445_v9 = vadd.f32 %v444_v61, %v443_v39 }
  0xf8   :  { %v489_v58 = vadd.f32 %v488_v49, %v487_v37  ;;  %v501_v60 = vadd.f32 %v500_v50, %v499_v43  ;;  %v476_v16 = vrot.slane %v475_v63, 1  ;;  %v483_v24 = vrot.slane %v482_v2, 1 }
  0xf9   :  { %v496_v59 = vadd.f32 %v495_v53, %v494_v42  ;;  %v508_v0 = vadd.f32 %v507_v54, %v506_v51  ;;  %v513_v1 = vsel %vm388_vm1, %v469_v55, 0.0  ;;  %v5848_v22 = vmul.f32 0.5, %v445_v9 }
  0xfa   :  { %v502_v4 = vrot.slane %v501_v60, 2  ;;  %v514_v5 = vrot.slane %v513_v1, 4  ;;  %v490_v6 = vrot.slane %v489_v58, 1  ;;  %v477_v40 = vadd.f32 %v476_v16, %v475_v63 }
  0xfb   :  { %v509_v7 = vrot.slane %v508_v0, 2  ;;  %v497_v10 = vrot.slane %v496_v59, 1  ;;  %v462_v31 = vsub.f32 %v5807_v17, %v5848_v22  ;;  %v484_v39 = vadd.f32 %v483_v24, %v482_v2 }
  0xfc   :  { %v503_v13 = vadd.f32 %v502_v4, %v501_v60  ;;  %v515_v15 = vadd.f32 %v514_v5, %v513_v1  ;;  %v491_v14 = vadd.f32 %v490_v6, %v489_v58  ;;  %v527_v54 = vmul.f32 0.5, %v477_v40 }
  0xfd   :  { %v510_v18 = vadd.f32 %v509_v7, %v508_v0  ;;  %v498_v19 = vadd.f32 %v497_v10, %v496_v59  ;;  %v470_v42 = vmul.f32 %v462_v31, %v462_v31  ;;  %v528_v55 = vmul.f32 0.5, %v484_v39 }
  0xfe   :  { %v516_v28 = vrot.slane %v515_v15, 2  ;;  %v504_v30 = vrot.slane %v503_v13, 1  ;;  %v529_v45 = vmul.f32 0.5, %v491_v14  ;;  %v535_v63 = vadd.f32 1e-05, %v527_v54 }
  0xff   :  { %v511_v37 = vrot.slane %v510_v18, 1  ;;  %v520_v49 = vsel %vm438_vm2, %v470_v42, 0.0  ;;  %v530_v50 = vmul.f32 0.5, %v498_v19  ;;  %v536_v5 = vadd.f32 1e-05, %v528_v55 }
 0x100   :  { %v517_v38 = vadd.f32 %v516_v28, %v515_v15  ;;  %v505_v47 = vadd.f32 %v504_v30, %v503_v13  ;;  %v521_v53 = vrot.slane %v520_v49, 4  ;;  %v537_v61 = vadd.f32 1e-05, %v529_v45 }
 0x101   :  { %v512_v51 = vadd.f32 %v511_v37, %v510_v18  ;;  %v538_v59 = vadd.f32 1e-05, %v530_v50  ;;  %v5234_v24 = vmov 1966171168  }
 0x102   :  { %v518_v43 = vrot.slane %v517_v38, 1  ;;  %v522_v60 = vadd.f32 %v521_v53, %v520_v49  ;;  %v531_v0 = vmul.f32 0.5, %v505_v47  ;;  %5175 = vrsqrt.f32 %v537_v61 }
 0x103   :  { %v532_v1 = vmul.f32 0.5, %v512_v51  ;;  %5177 = vrsqrt.f32 %v538_v59  ;;  %v564_v28 = vunpack.c.l.s4 %v5234_v24 }
 0x104   :  { %v519_v58 = vadd.f32 %v518_v43, %v517_v38  ;;  %v523_v4 = vrot.slane %v522_v60, 2  ;;  %v539_v7 = vadd.f32 1e-05, %v531_v0  ;;  %5179 = vrsqrt.f32 %v535_v63  ;;  %v386_v0 = vld [vmem:[%s9173_s3] sm:$0xff] }
 0x105   :  { %v540_v9 = vadd.f32 1e-05, %v532_v1  ;;  %5181 = vrsqrt.f32 %v536_v5  ;;  %v565_v19 = vunpack.c.0.s8 %v564_v28 }
 0x106   :  { %v533_v2 = vmul.f32 0.5, %v519_v58  ;;  %v524_v6 = vadd.f32 %v523_v4, %v522_v60  ;;  %5183 = vrsqrt.f32 %v539_v7 }
 0x107   :  { %5185 = vrsqrt.f32 %v540_v9  ;;  %v5854_v39 = vsub.s32 %v565_v19, %v5744_v20 }
 0x108   :  { %v525_v10 = vrot.slane %v524_v6, 1  ;;  %v541_v13 = vadd.f32 1e-05, %v533_v2 }
 0x10a   :  { %v526_v15 = vadd.f32 %v525_v10, %v524_v6  ;;  %5187 = vrsqrt.f32 %v541_v13 }
 0x10c   :  { %v534_v16 = vmul.f32 0.5, %v526_v15  ;;  %v5176_v14 = vpop.eup %5175 }
 0x10d   :  { %v5178_v30 = vpop.eup %5177 }
 0x10e   :  { %v542_v18 = vadd.f32 1e-05, %v534_v16  ;;  %v5180_v31 = vpop.eup %5179  ;;  %v560_v40 = vcombine.low %v5176_v14, %v5178_v30 }
 0x10f   :  { %v5182_v37 = vpop.eup %5181 }
 0x110   :  { %5189 = vrsqrt.f32 %v542_v18  ;;  %v5184_v38 = vpop.eup %5183  ;;  %v559_v43 = vcombine.low %v5180_v31, %v5182_v37  ;;  %v576_v47 = vrot.slane %v560_v40, %v5854_v39 }
 0x111   :  { %v5186_v42 = vpop.eup %5185 }
 0x112   :  { %v561_v49 = vcombine.low %v5184_v38, %v5186_v42  ;;  %v569_v51 = vrot.slane %v559_v43, %v5854_v39 }
 0x114   :  { %v5188_v45 = vpop.eup %5187  ;;  %v591_v54 = vcombine.low %v569_v51, %v576_v47  ;;  %v583_v55 = vrot.slane %v561_v49, %v5854_v39 }
 0x116   :  { %v599_v61 = vrot.slane %v591_v54, %v5854_v39 }
 0x11a   :  { %v5190_v50 = vpop.eup %5189 }
 0x11b   :  { %v562_v53 = vcombine.low %v5188_v45, %v5190_v50 }
 0x11d   :  { %v590_v58 = vrot.slane %v562_v53, %v5854_v39 }
 0x11f   :  { %v592_v60 = vcombine.low %v583_v55, %v590_v58  ;;  %v1039_v58 = vld [vmem:[%s9175_s5 + $0x800] sm:$0xff] }
 0x121   :  { %v606_v20 = vrot.slane %v592_v60, %v5854_v39 }
 0x123   :  { %v607_v59 = vcombine.low %v599_v61, %v606_v20 }
 0x125   :  { %v609_v1 = vmul.f32 %v607_v59, %v386_v0 }
 0x127   :  { %v614_v4 = vrot.slane %v609_v1, %v5747_v21  ;;  %v618_v63 = vrot.slane %v609_v1, %v5753_v23  ;;  %v622_v5 = vrot.slane %v609_v1, %v5757_v25  ;;  %v626_v2 = vrot.slane %v609_v1, %v5761_v27 }
 0x128   :  { %v630_v6 = vrot.slane %v609_v1, %v5767_v32  ;;  %v634_v7 = vrot.slane %v609_v1, %v5773_v35  ;;  %v5872_v9 = vrot.slane %v609_v1, %v5783_v44  ;;  %v642_v10 = vrot.slane %v609_v1, %v5789_v48 }
 0x129   :  { %v659_v13 = vmul.f32 %v614_v4, %v5811_v26  ;;  %v660_v15 = vmul.f32 %v618_v63, %v5813_v34  ;;  %v661_v16 = vmul.f32 %v622_v5, %v5821_v52  ;;  %v662_v18 = vmul.f32 %v626_v2, %v5823_v56 }
 0x12a   :  { %v663_v24 = vmul.f32 %v630_v6, %v5831_v8  ;;  %v664_v28 = vmul.f32 %v634_v7, %v5833_v11  ;;  %v665_v14 = vmul.f32 %v5872_v9, %v5841_v36  ;;  %v666_v30 = vmul.f32 %v642_v10, %v5848_v22  ;;  %v387_v22 = vld [vmem:[%s9174_s4] sm:$0xff] }
 0x12b   :  { %v675_v31 = vcombine.low %v659_v13, %v660_v15  ;;  %v676_v19 = vcombine.low %v661_v16, %v662_v18  ;;  %v658_v43 = vmul.f32 %v642_v10, %v5807_v17  ;;  %v652_v47 = vmul.f32 %v618_v63, %v5769_v33  ;;  %v1041_v33 = vld [vmem:[%s9175_s5 + $0x810] sm:$0xff]  ;;  %v1064_v63 = vld [vmem:[%s9175_s5 + $0x8c8] sm:$0xff] }
 0x12c   :  { %v677_v37 = vcombine.low %v663_v24, %v664_v28  ;;  %v678_v38 = vcombine.low %v665_v14, %v666_v30  ;;  %v651_v49 = vmul.f32 %v614_v4, %v5763_v29  ;;  %v654_v50 = vmul.f32 %v626_v2, %v5785_v46  ;;  %v1047_v29 = vld [vmem:[%s9175_s5 + $0x840] sm:$0xff]  ;;  %v1056_v4 = vld [vmem:[%s9175_s5 + $0x888] sm:$0xff]  ;;  %v1066_v2 = vld [vmem:[%s9175_s5 + $0x8d8] sm:$0xff] }
 0x12d   :  { %v685_v26 = vrot.slane %v675_v31, %v5854_v39  ;;  %v692_v34 = vrot.slane %v676_v19, %v5854_v39  ;;  %v653_v51 = vmul.f32 %v622_v5, %v5779_v41  ;;  %v1049_v41 = vld [vmem:[%s9175_s5 + $0x850] sm:$0xff]  ;;  %v656_v60 = vmul.f32 %v634_v7, %v5798_v62  ;;  %v1058_v62 = vld [vmem:[%s9175_s5 + $0x898] sm:$0xff]  ;;  %v1055_v28 = vld [vmem:[%s9175_s5 + $0x880] sm:$0xff] }
 0x12e   :  { %v699_v52 = vrot.slane %v677_v37, %v5854_v39  ;;  %v706_v56 = vrot.slane %v678_v38, %v5854_v39  ;;  %v655_v13 = vmul.f32 %v630_v6, %v5795_v57  ;;  %v4074_v18 = vpack.c.bf16 %v1047_v29, %v1039_v58  ;;  %v1063_v14 = vld [vmem:[%s9175_s5 + $0x8c0] sm:$0xff]  ;;  %v1057_v31 = vld [vmem:[%s9175_s5 + $0x890] sm:$0xff]  ;;  %v1072_v6 = vld [vmem:[%s9175_s5 + $0x908] sm:$0xff] }
 0x12f   :  { %v707_v8 = vcombine.low %v685_v26, %v692_v34  ;;  %v4322_v24 = vpack.c.bf16 %v1049_v41, %v1041_v33  ;;  %v4076_v30 = vpack.c.bf16 %v1064_v63, %v1056_v4  ;;  %v1065_v57 = vld [vmem:[%s9175_s5 + $0x8d0] sm:$0xff]  ;;  %v4324_v37 = vpack.c.bf16 %v1066_v2, %v1058_v62  ;;  %v1080_v38 = vld [vmem:[%s9175_s5 + $0x948] sm:$0xff]  ;;  %v1074_v26 = vld [vmem:[%s9175_s5 + $0x918] sm:$0xff] }
 0x130   :  { %v708_v40 = vcombine.low %v699_v52, %v706_v56  ;;  %v1082_v34 = vld [vmem:[%s9175_s5 + $0x958] sm:$0xff]  ;;  %v657_v52 = vmul.f32 %v5872_v9, %v5805_v12  ;;  %v1079_v12 = vld [vmem:[%s9175_s5 + $0x940] sm:$0xff]  ;;  %v1089_v33 = vld [vmem:[%s9175_s5 + $0x990] sm:$0xff] }
 0x131   :  { %v715_v11 = vrot.slane %v707_v8, %v5854_v39  ;;  %v1095_v58 = vld [vmem:[%s9175_s5 + $0x9c0] sm:$0xff]  ;;  %v1097_v41 = vld [vmem:[%s9175_s5 + $0x9d0] sm:$0xff] }
 0x132   :  { %v722_v36 = vrot.slane %v708_v40, %v5854_v39  ;;  %v4078_v40 = vpack.c.bf16 %v1063_v14, %v1055_v28  ;;  %v1103_v4 = vld [vmem:[%s9175_s5 + $0xa00] sm:$0xff]  ;;  %v1105_v2 = vld [vmem:[%s9175_s5 + $0xa10] sm:$0xff]  ;;  %v1122_v28 = vld [vmem:[%s9175_s5 + $0xa98] sm:$0xff] }
 0x133   :  { %v1111_v63 = vld [vmem:[%s9175_s5 + $0xa40] sm:$0xff]  ;;  %v1130_v14 = vld [vmem:[%s9175_s5 + $0xad8] sm:$0xff] }
 0x134   :  { %v723_v42 = vcombine.low %v715_v11, %v722_v36  ;;  %v4326_v11 = vpack.c.bf16 %v1065_v57, %v1057_v31  ;;  %v1071_v36 = vld [vmem:[%s9175_s5 + $0x900] sm:$0xff] }
 0x135   :  { %v1119_v57 = vld [vmem:[%s9175_s5 + $0xa80] sm:$0xff] }
 0x136   :  { %v725_v45 = vsub.f32 %v387_v22, %v723_v42  ;;  %v4080_v22 = vpack.c.bf16 %v1080_v38, %v1072_v6  ;;  %v4328_v42 = vpack.c.bf16 %v1082_v34, %v1074_v26  ;;  %v1127_v6 = vld [vmem:[%s9175_s5 + $0xac0] sm:$0xff]  ;;  %v4340_v38 = vpack.c.bf16 %v1130_v14, %v1122_v28  ;;  %v1121_v26 = vld [vmem:[%s9175_s5 + $0xa90] sm:$0xff]  ;;  %v1184_v28 = vld [vmem:[%s9175_s5 + $0xc88] sm:$0xff] }
 0x137   :  { %v1129_v34 = vld [vmem:[%s9175_s5 + $0xad0] sm:$0xff]  ;;  %v1192_v14 = vld [vmem:[%s9175_s5 + $0xcc8] sm:$0xff] }
 0x138   :  { %v758_v53 = vrot.slane %v725_v45, %v5789_v48  ;;  %v734_v54 = vrot.slane %v725_v45, %v5753_v23  ;;  %v730_v55 = vrot.slane %v725_v45, %v5747_v21  ;;  %v742_v17 = vrot.slane %v725_v45, %v5761_v27 }
 0x139   :  { %v738_v46 = vrot.slane %v725_v45, %v5757_v25  ;;  %v750_v61 = vrot.slane %v725_v45, %v5773_v35  ;;  %v746_v20 = vrot.slane %v725_v45, %v5767_v32  ;;  %v754_v56 = vrot.slane %v725_v45, %v5783_v44  ;;  %v1081_v45 = vld [vmem:[%s9175_s5 + $0x950] sm:$0xff] }
 0x13a   :  { %v5918_v0 = vadd.f32 %v758_v53, %v658_v43  ;;  %v768_v59 = vadd.f32 %v734_v54, %v652_v47  ;;  %v767_v1 = vadd.f32 %v730_v55, %v651_v49  ;;  %v770_v5 = vadd.f32 %v742_v17, %v654_v50  ;;  %v1073_v43 = vld [vmem:[%s9175_s5 + $0x910] sm:$0xff]  ;;  %v1088_v47 = vld [vmem:[%s9175_s5 + $0x988] sm:$0xff]  ;;  %v1090_v50 = vld [vmem:[%s9175_s5 + $0x998] sm:$0xff] }
 0x13b   :  { %v5932_v7 = vadd.f32 %v738_v46, %v653_v51  ;;  %v5934_v10 = vadd.f32 %v750_v61, %v656_v60  ;;  %v5956_v19 = vadd.f32 %v746_v20, %v655_v13  ;;  %v5982_v9 = vadd.f32 %v754_v56, %v657_v52  ;;  %v1096_v49 = vld [vmem:[%s9175_s5 + $0x9c8] sm:$0xff]  ;;  %v1098_v51 = vld [vmem:[%s9175_s5 + $0x9d8] sm:$0xff]  ;;  %v1087_v55 = vld [vmem:[%s9175_s5 + $0x980] sm:$0xff] }
 0x13c   :  { %v5937_v15 = vmax.f32 %v768_v59, 0.0  ;;  %v5939_v16 = vmax.f32 %v767_v1, 0.0  ;;  %v5974_v8 = vmax.f32 %v770_v5, 0.0  ;;  %v4082_v53 = vpack.c.bf16 %v1079_v12, %v1071_v36  ;;  %v1104_v46 = vld [vmem:[%s9175_s5 + $0xa08] sm:$0xff]  ;;  %v1106_v61 = vld [vmem:[%s9175_s5 + $0xa18] sm:$0xff]  ;;  %v1113_v13 = vld [vmem:[%s9175_s5 + $0xa50] sm:$0xff] }
 0x13d   :  { %v4330_v54 = vpack.c.bf16 %v1081_v45, %v1073_v43  ;;  %v4084_v17 = vpack.c.bf16 %v1096_v49, %v1088_v47  ;;  %v4332_v29 = vpack.c.bf16 %v1098_v51, %v1090_v50  ;;  %v1112_v60 = vld [vmem:[%s9175_s5 + $0xa48] sm:$0xff]  ;;  %v1114_v20 = vld [vmem:[%s9175_s5 + $0xa58] sm:$0xff]  ;;  %v4086_v59 = vpack.c.bf16 %v1095_v58, %v1087_v55  ;;  %v1137_v47 = vld [vmem:[%s9175_s5 + $0xb10] sm:$0xff] }
 0x13e   :  { %1893 = vmatprep.mubr.f32.mxu0 %v5937_v15  ;;  %2177 = vmatprep.mubr.f32.mxu1 %v5937_v15  ;;  %v4334_v1 = vpack.c.bf16 %v1097_v41, %v1089_v33  ;;  %v4088_v5 = vpack.c.bf16 %v1112_v60, %v1104_v46  ;;  %v4336_v62 = vpack.c.bf16 %v1114_v20, %v1106_v61  ;;  %v1136_v52 = vld [vmem:[%s9175_s5 + $0xb08] sm:$0xff]  ;;  %v1145_v49 = vld [vmem:[%s9175_s5 + $0xb50] sm:$0xff] }
 0x13f   :  { %1894 = vmatmul.mubr.f32.vlgmr.msra.gmra.mrb[8].mxu0 %v5939_v16  ;;  %2178 = vmatmul.mubr.f32.vlgmr.msra.gmra.mrb[0].mxu1 %v5939_v16  ;;  %v4338_v31 = vpack.c.bf16 %v1113_v13, %v1105_v2  ;;  %v1144_v56 = vld [vmem:[%s9175_s5 + $0xb48] sm:$0xff]  ;;  %v4094_v36 = vpack.c.bf16 %v1127_v6, %v1119_v57  ;;  %v4342_v12 = vpack.c.bf16 %v1129_v34, %v1121_v26  ;;  %v1153_v46 = vld [vmem:[%s9175_s5 + $0xb90] sm:$0xff] }
 0x140   :  { %4075 = vmatpush1.bf16.msra.mxu0 %v4074_v18  ;;  %4323 = vmatpush1.bf16.msra.mxu1 %v4322_v24  ;;  %v1120_v18 = vld [vmem:[%s9175_s5 + $0xa88] sm:$0xff]  ;;  %v4096_v43 = vpack.c.bf16 %v1144_v56, %v1136_v52  ;;  %v4346_v58 = vpack.c.bf16 %v1145_v49, %v1137_v47  ;;  %v1161_v60 = vld [vmem:[%s9175_s5 + $0xbd0] sm:$0xff]  ;;  %v4108_v26 = vpack.c.bf16 %v1192_v14, %v1184_v28 }
 0x141   :  { %1964 = vmatprep.mubr.f32.mxu0 %v5974_v8  ;;  %2248 = vmatprep.mubr.f32.mxu1 %v5974_v8  ;;  %v1128_v24 = vld [vmem:[%s9175_s5 + $0xac8] sm:$0xff]  ;;  %v1185_v52 = vld [vmem:[%s9175_s5 + $0xc90] sm:$0xff] }
 0x142   :  { %4077 = vmatprep.subr.bf16.mxu0 %v4076_v30  ;;  %4325 = vmatprep.subr.bf16.mxu1 %v4324_v37  ;;  %v4090_v30 = vpack.c.bf16 %v1111_v63, %v1103_v4  ;;  %v4092_v37 = vpack.c.bf16 %v1128_v24, %v1120_v18  ;;  %v1152_v50 = vld [vmem:[%s9175_s5 + $0xb88] sm:$0xff]  ;;  %v4350_v63 = vpack.c.bf16 %v1161_v60, %v1153_v46  ;;  %v1169_v18 = vld [vmem:[%s9175_s5 + $0xc10] sm:$0xff] }
 0x143   :  { %v1160_v51 = vld [vmem:[%s9175_s5 + $0xbc8] sm:$0xff]  ;;  %v1177_v24 = vld [vmem:[%s9175_s5 + $0xc50] sm:$0xff] }
 0x144   :  { %4079 = vmatpush1.bf16.msra.mxu0 %v4078_v40  ;;  %4327 = vmatpush1.bf16.msra.mxu1 %v4326_v11  ;;  %v1138_v40 = vld [vmem:[%s9175_s5 + $0xb18] sm:$0xff]  ;;  %v4100_v33 = vpack.c.bf16 %v1160_v51, %v1152_v50  ;;  %v1168_v61 = vld [vmem:[%s9175_s5 + $0xc08] sm:$0xff]  ;;  %v4354_v6 = vpack.c.bf16 %v1177_v24, %v1169_v18  ;;  %v1193_v56 = vld [vmem:[%s9175_s5 + $0xcd0] sm:$0xff] }
 0x145   :  { %4081 = vmatprep.subr.bf16.mxu0 %v4080_v22  ;;  %4329 = vmatprep.subr.bf16.mxu1 %v4328_v42  ;;  %v1146_v11 = vld [vmem:[%s9175_s5 + $0xb58] sm:$0xff]  ;;  %v1135_v22 = vld [vmem:[%s9175_s5 + $0xb00] sm:$0xff]  ;;  %v1176_v20 = vld [vmem:[%s9175_s5 + $0xc48] sm:$0xff] }
 0x146   :  { %v1143_v42 = vld [vmem:[%s9175_s5 + $0xb40] sm:$0xff]  ;;  %v4344_v45 = vpack.c.bf16 %v1146_v11, %v1138_v40  ;;  %v4104_v2 = vpack.c.bf16 %v1176_v20, %v1168_v61  ;;  %v1200_v40 = vld [vmem:[%s9175_s5 + $0xd08] sm:$0xff]  ;;  %v1201_v50 = vld [vmem:[%s9175_s5 + $0xd10] sm:$0xff] }
 0x147   :  { %v4098_v55 = vpack.c.bf16 %v1143_v42, %v1135_v22  ;;  %v1208_v11 = vld [vmem:[%s9175_s5 + $0xd48] sm:$0xff]  ;;  %v4358_v42 = vpack.c.bf16 %v1193_v56, %v1185_v52  ;;  %v1209_v51 = vld [vmem:[%s9175_s5 + $0xd50] sm:$0xff] }
 0x148   :  { %4083 = vmatpush1.bf16.msra.mxu0 %v4082_v53  ;;  %4331 = vmatpush1.bf16.msra.mxu1 %v4330_v54  ;;  %v1154_v53 = vld [vmem:[%s9175_s5 + $0xb98] sm:$0xff]  ;;  %v4112_v47 = vpack.c.bf16 %v1208_v11, %v1200_v40  ;;  %v1217_v61 = vld [vmem:[%s9175_s5 + $0xd90] sm:$0xff] }
 0x149   :  { %4085 = vmatprep.subr.bf16.mxu0 %v4084_v17  ;;  %4333 = vmatprep.subr.bf16.mxu1 %v4332_v29  ;;  %v1162_v54 = vld [vmem:[%s9175_s5 + $0xbd8] sm:$0xff]  ;;  %v1151_v17 = vld [vmem:[%s9175_s5 + $0xb80] sm:$0xff]  ;;  %v1225_v20 = vld [vmem:[%s9175_s5 + $0xdd0] sm:$0xff] }
 0x14a   :  { %v1159_v29 = vld [vmem:[%s9175_s5 + $0xbc0] sm:$0xff]  ;;  %v4348_v41 = vpack.c.bf16 %v1162_v54, %v1154_v53  ;;  %v1216_v53 = vld [vmem:[%s9175_s5 + $0xd88] sm:$0xff]  ;;  %v1233_v28 = vld [vmem:[%s9175_s5 + $0xe10] sm:$0xff] }
 0x14b   :  { %v4102_v4 = vpack.c.bf16 %v1159_v29, %v1151_v17  ;;  %v1224_v54 = vld [vmem:[%s9175_s5 + $0xdc8] sm:$0xff]  ;;  %v4362_v29 = vpack.c.bf16 %v1209_v51, %v1201_v50  ;;  %v1241_v14 = vld [vmem:[%s9175_s5 + $0xe50] sm:$0xff] }
 0x14c   :  { %4087 = vmatpush1.bf16.msra.mxu0 %v4086_v59  ;;  %4335 = vmatpush1.bf16.msra.mxu1 %v4334_v1  ;;  %v1170_v59 = vld [vmem:[%s9175_s5 + $0xc18] sm:$0xff]  ;;  %v4116_v46 = vpack.c.bf16 %v1224_v54, %v1216_v53  ;;  %v1249_v40 = vld [vmem:[%s9175_s5 + $0xe90] sm:$0xff] }
 0x14d   :  { %4089 = vmatprep.subr.bf16.mxu0 %v4088_v5  ;;  %4337 = vmatprep.subr.bf16.mxu1 %v4336_v62  ;;  %v1178_v1 = vld [vmem:[%s9175_s5 + $0xc58] sm:$0xff]  ;;  %v1167_v5 = vld [vmem:[%s9175_s5 + $0xc00] sm:$0xff]  ;;  %v1257_v11 = vld [vmem:[%s9175_s5 + $0xed0] sm:$0xff] }
 0x14e   :  { %v1175_v62 = vld [vmem:[%s9175_s5 + $0xc40] sm:$0xff]  ;;  %v4352_v13 = vpack.c.bf16 %v1178_v1, %v1170_v59  ;;  %v1232_v59 = vld [vmem:[%s9175_s5 + $0xe08] sm:$0xff]  ;;  %v1265_v53 = vld [vmem:[%s9175_s5 + $0xf10] sm:$0xff] }
 0x14f   :  { %v4106_v57 = vpack.c.bf16 %v1175_v62, %v1167_v5  ;;  %v1240_v1 = vld [vmem:[%s9175_s5 + $0xe48] sm:$0xff]  ;;  %v4366_v62 = vpack.c.bf16 %v1225_v20, %v1217_v61  ;;  %v1273_v54 = vld [vmem:[%s9175_s5 + $0xf50] sm:$0xff] }
 0x150   :  { %4091 = vmatpush1.bf16.msra.mxu0 %v4090_v30  ;;  %4339 = vmatpush1.bf16.msra.mxu1 %v4338_v31  ;;  %v1186_v30 = vld [vmem:[%s9175_s5 + $0xc98] sm:$0xff]  ;;  %v4120_v18 = vpack.c.bf16 %v1240_v1, %v1232_v59  ;;  %v1281_v59 = vld [vmem:[%s9175_s5 + $0xf90] sm:$0xff] }
 0x151   :  { %4093 = vmatprep.subr.bf16.mxu0 %v4092_v37  ;;  %4341 = vmatprep.subr.bf16.mxu1 %v4340_v38  ;;  %v1194_v31 = vld [vmem:[%s9175_s5 + $0xcd8] sm:$0xff]  ;;  %v1183_v37 = vld [vmem:[%s9175_s5 + $0xc80] sm:$0xff]  ;;  %v1289_v1 = vld [vmem:[%s9175_s5 + $0xfd0] sm:$0xff] }
 0x152   :  { %v1191_v38 = vld [vmem:[%s9175_s5 + $0xcc0] sm:$0xff]  ;;  %v4356_v34 = vpack.c.bf16 %v1194_v31, %v1186_v30  ;;  %v1248_v30 = vld [vmem:[%s9175_s5 + $0xe88] sm:$0xff] }
 0x153   :  { %v4110_v22 = vpack.c.bf16 %v1191_v38, %v1183_v37  ;;  %v1256_v31 = vld [vmem:[%s9175_s5 + $0xec8] sm:$0xff]  ;;  %v4370_v38 = vpack.c.bf16 %v1241_v14, %v1233_v28  ;;  %v1295_v28 = vld [vmem:[%s9175_s5 + $0x1000] sm:$0xff] }
 0x154   :  { %4095 = vmatpush1.bf16.msra.mxu0 %v4094_v36  ;;  %4343 = vmatpush1.bf16.msra.mxu1 %v4342_v12  ;;  %v1202_v36 = vld [vmem:[%s9175_s5 + $0xd18] sm:$0xff]  ;;  %v4124_v52 = vpack.c.bf16 %v1256_v31, %v1248_v30  ;;  %v1303_v14 = vld [vmem:[%s9175_s5 + $0x1040] sm:$0xff]  ;;  %v1297_v30 = vld [vmem:[%s9175_s5 + $0x1010] sm:$0xff] }
 0x155   :  { %4097 = vmatprep.subr.bf16.mxu0 %v4096_v43  ;;  %4345 = vmatprep.subr.bf16.mxu1 %v4344_v45  ;;  %v1210_v12 = vld [vmem:[%s9175_s5 + $0xd58] sm:$0xff]  ;;  %v1199_v43 = vld [vmem:[%s9175_s5 + $0xd00] sm:$0xff]  ;;  %v1305_v31 = vld [vmem:[%s9175_s5 + $0x1050] sm:$0xff] }
 0x156   :  { %v1207_v45 = vld [vmem:[%s9175_s5 + $0xd40] sm:$0xff]  ;;  %v4360_v49 = vpack.c.bf16 %v1210_v12, %v1202_v36  ;;  %v1264_v36 = vld [vmem:[%s9175_s5 + $0xf08] sm:$0xff] }
 0x157   :  { %v4114_v17 = vpack.c.bf16 %v1207_v45, %v1199_v43  ;;  %v1272_v12 = vld [vmem:[%s9175_s5 + $0xf48] sm:$0xff]  ;;  %v4374_v45 = vpack.c.bf16 %v1257_v11, %v1249_v40  ;;  %v1319_v40 = vld [vmem:[%s9175_s5 + $0x10c0] sm:$0xff]  ;;  %v1313_v11 = vld [vmem:[%s9175_s5 + $0x1090] sm:$0xff] }
 0x158   :  { %4099 = vmatpush1.bf16.msra.mxu0 %v4098_v55  ;;  %4347 = vmatpush1.bf16.msra.mxu1 %v4346_v58  ;;  %v1218_v55 = vld [vmem:[%s9175_s5 + $0xd98] sm:$0xff]  ;;  %v4128_v50 = vpack.c.bf16 %v1272_v12, %v1264_v36  ;;  %v6353_v36 = vmax.f32 %v5934_v10, 0.0 }
 0x159   :  { %4101 = vmatprep.subr.bf16.mxu0 %v4100_v33  ;;  %4349 = vmatprep.subr.bf16.mxu1 %v4348_v41  ;;  %v1226_v58 = vld [vmem:[%s9175_s5 + $0xdd8] sm:$0xff]  ;;  %v1215_v33 = vld [vmem:[%s9175_s5 + $0xd80] sm:$0xff] }
 0x15a   :  { %v1223_v41 = vld [vmem:[%s9175_s5 + $0xdc0] sm:$0xff]  ;;  %v4364_v60 = vpack.c.bf16 %v1226_v58, %v1218_v55  ;;  %v1280_v55 = vld [vmem:[%s9175_s5 + $0xf88] sm:$0xff]  ;;  %v1330_v10 = vld [vmem:[%s9175_s5 + $0x1118] sm:$0xff] }
 0x15b   :  { %v4118_v5 = vpack.c.bf16 %v1223_v41, %v1215_v33  ;;  %v1288_v58 = vld [vmem:[%s9175_s5 + $0xfc8] sm:$0xff]  ;;  %v4378_v41 = vpack.c.bf16 %v1273_v54, %v1265_v53  ;;  %v1335_v53 = vld [vmem:[%s9175_s5 + $0x1140] sm:$0xff]  ;;  %v1329_v54 = vld [vmem:[%s9175_s5 + $0x1110] sm:$0xff] }
 0x15c   :  { %4103 = vmatpush1.bf16.msra.mxu0 %v4102_v4  ;;  %4351 = vmatpush1.bf16.msra.mxu1 %v4350_v63  ;;  %v1234_v4 = vld [vmem:[%s9175_s5 + $0xe18] sm:$0xff]  ;;  %v4132_v61 = vpack.c.bf16 %v1288_v58, %v1280_v55  ;;  %v1337_v58 = vld [vmem:[%s9175_s5 + $0x1150] sm:$0xff] }
 0x15d   :  { %4105 = vmatprep.subr.bf16.mxu0 %v4104_v2  ;;  %4353 = vmatprep.subr.bf16.mxu1 %v4352_v13  ;;  %v1242_v63 = vld [vmem:[%s9175_s5 + $0xe58] sm:$0xff]  ;;  %v1231_v2 = vld [vmem:[%s9175_s5 + $0xe00] sm:$0xff] }
 0x15e   :  { %v1239_v13 = vld [vmem:[%s9175_s5 + $0xe40] sm:$0xff]  ;;  %v4368_v24 = vpack.c.bf16 %v1242_v63, %v1234_v4  ;;  %v1296_v4 = vld [vmem:[%s9175_s5 + $0x1008] sm:$0xff] }
 0x15f   :  { %v4122_v37 = vpack.c.bf16 %v1239_v13, %v1231_v2  ;;  %v1304_v63 = vld [vmem:[%s9175_s5 + $0x1048] sm:$0xff]  ;;  %v4382_v13 = vpack.c.bf16 %v1289_v1, %v1281_v59  ;;  %v1351_v59 = vld [vmem:[%s9175_s5 + $0x11c0] sm:$0xff]  ;;  %v1345_v1 = vld [vmem:[%s9175_s5 + $0x1190] sm:$0xff] }
 0x160   :  { %4107 = vmatpush1.bf16.msra.mxu0 %v4106_v57  ;;  %4355 = vmatpush1.bf16.msra.mxu1 %v4354_v6  ;;  %v1250_v57 = vld [vmem:[%s9175_s5 + $0xe98] sm:$0xff] }
 0x161   :  { %4109 = vmatprep.subr.bf16.mxu0 %v4108_v26  ;;  %4357 = vmatprep.subr.bf16.mxu1 %v4356_v34  ;;  %v1258_v6 = vld [vmem:[%s9175_s5 + $0xed8] sm:$0xff]  ;;  %v1247_v26 = vld [vmem:[%s9175_s5 + $0xe80] sm:$0xff] }
 0x162   :  { %v1255_v34 = vld [vmem:[%s9175_s5 + $0xec0] sm:$0xff]  ;;  %v4372_v56 = vpack.c.bf16 %v1258_v6, %v1250_v57  ;;  %v1312_v57 = vld [vmem:[%s9175_s5 + $0x1088] sm:$0xff] }
 0x163   :  { %v4126_v43 = vpack.c.bf16 %v1255_v34, %v1247_v26  ;;  %v1320_v6 = vld [vmem:[%s9175_s5 + $0x10c8] sm:$0xff]  ;;  %v4138_v26 = vpack.c.bf16 %v1303_v14, %v1295_v28  ;;  %v6341_v34 = vmax.f32 %v5932_v7, 0.0  ;;  %v1359_v14 = vld [vmem:[%s9175_s5 + $0x1200] sm:$0xff] }
 0x164   :  { %4111 = vmatpush1.bf16.msra.mxu0 %v4110_v22  ;;  %4359 = vmatpush1.bf16.msra.mxu1 %v4358_v42  ;;  %v1266_v22 = vld [vmem:[%s9175_s5 + $0xf18] sm:$0xff]  ;;  %v4140_v7 = vpack.c.bf16 %v1320_v6, %v1312_v57  ;;  %v1369_v6 = vld [vmem:[%s9175_s5 + $0x1250] sm:$0xff] }
 0x165   :  { %4113 = vmatprep.subr.bf16.mxu0 %v4112_v47  ;;  %4361 = vmatprep.subr.bf16.mxu1 %v4360_v49  ;;  %v1274_v42 = vld [vmem:[%s9175_s5 + $0xf58] sm:$0xff]  ;;  %v1263_v47 = vld [vmem:[%s9175_s5 + $0xf00] sm:$0xff] }
 0x166   :  { %v1271_v49 = vld [vmem:[%s9175_s5 + $0xf40] sm:$0xff]  ;;  %v4376_v51 = vpack.c.bf16 %v1274_v42, %v1266_v22  ;;  %v1321_v22 = vld [vmem:[%s9175_s5 + $0x10d0] sm:$0xff]  ;;  %v1328_v42 = vld [vmem:[%s9175_s5 + $0x1108] sm:$0xff] }
 0x167   :  { %v4130_v33 = vpack.c.bf16 %v1271_v49, %v1263_v47  ;;  %v4390_v49 = vpack.c.bf16 %v1321_v22, %v1313_v11  ;;  %v1377_v22 = vld [vmem:[%s9175_s5 + $0x1290] sm:$0xff] }
 0x168   :  { %4115 = vmatpush1.bf16.msra.mxu0 %v4114_v17  ;;  %4363 = vmatpush1.bf16.msra.mxu1 %v4362_v29  ;;  %v1282_v17 = vld [vmem:[%s9175_s5 + $0xf98] sm:$0xff] }
 0x169   :  { %4117 = vmatprep.subr.bf16.mxu0 %v4116_v46  ;;  %4365 = vmatprep.subr.bf16.mxu1 %v4364_v60  ;;  %v1290_v29 = vld [vmem:[%s9175_s5 + $0xfd8] sm:$0xff]  ;;  %v1279_v46 = vld [vmem:[%s9175_s5 + $0xf80] sm:$0xff] }
 0x16a   :  { %v1287_v60 = vld [vmem:[%s9175_s5 + $0xfc0] sm:$0xff]  ;;  %v4380_v20 = vpack.c.bf16 %v1290_v29, %v1282_v17  ;;  %v1344_v17 = vld [vmem:[%s9175_s5 + $0x1188] sm:$0xff] }
 0x16b   :  { %v4134_v2 = vpack.c.bf16 %v1287_v60, %v1279_v46  ;;  %v1352_v29 = vld [vmem:[%s9175_s5 + $0x11c8] sm:$0xff]  ;;  %v4394_v60 = vpack.c.bf16 %v1337_v58, %v1329_v54  ;;  %v1391_v54 = vld [vmem:[%s9175_s5 + $0x1300] sm:$0xff]  ;;  %v1393_v58 = vld [vmem:[%s9175_s5 + $0x1310] sm:$0xff] }
 0x16c   :  { %4119 = vmatpush1.bf16.msra.mxu0 %v4118_v5  ;;  %4367 = vmatpush1.bf16.msra.mxu1 %v4366_v62  ;;  %v1298_v5 = vld [vmem:[%s9175_s5 + $0x1018] sm:$0xff] }
 0x16d   :  { %4121 = vmatprep.subr.bf16.mxu0 %v4120_v18  ;;  %4369 = vmatprep.subr.bf16.mxu1 %v4368_v24  ;;  %v1306_v62 = vld [vmem:[%s9175_s5 + $0x1058] sm:$0xff]  ;;  %v4136_v18 = vpack.c.bf16 %v1304_v63, %v1296_v4  ;;  %v1353_v63 = vld [vmem:[%s9175_s5 + $0x11d0] sm:$0xff] }
 0x16e   :  { %v4384_v24 = vpack.c.bf16 %v1306_v62, %v1298_v5  ;;  %v1360_v5 = vld [vmem:[%s9175_s5 + $0x1208] sm:$0xff] }
 0x16f   :  { %v1368_v62 = vld [vmem:[%s9175_s5 + $0x1248] sm:$0xff] }
 0x170   :  { %4123 = vmatpush1.bf16.msra.mxu0 %v4122_v37  ;;  %4371 = vmatpush1.bf16.msra.mxu1 %v4370_v38  ;;  %v1314_v37 = vld [vmem:[%s9175_s5 + $0x1098] sm:$0xff]  ;;  %v4152_v28 = vpack.c.bf16 %v1368_v62, %v1360_v5  ;;  %v1417_v62 = vld [vmem:[%s9175_s5 + $0x13d0] sm:$0xff] }
 0x171   :  { %4125 = vmatprep.subr.bf16.mxu0 %v4124_v52  ;;  %4373 = vmatprep.subr.bf16.mxu1 %v4372_v56  ;;  %v1322_v38 = vld [vmem:[%s9175_s5 + $0x10d8] sm:$0xff]  ;;  %v4386_v52 = vpack.c.bf16 %v1305_v31, %v1297_v30  ;;  %v1311_v56 = vld [vmem:[%s9175_s5 + $0x1080] sm:$0xff]  ;;  %v1361_v31 = vld [vmem:[%s9175_s5 + $0x1210] sm:$0xff] }
 0x172   :  { %v4388_v12 = vpack.c.bf16 %v1322_v38, %v1314_v37  ;;  %v4142_v47 = vpack.c.bf16 %v1319_v40, %v1311_v56  ;;  %v1367_v30 = vld [vmem:[%s9175_s5 + $0x1240] sm:$0xff]  ;;  %v1376_v37 = vld [vmem:[%s9175_s5 + $0x1288] sm:$0xff]  ;;  %v4402_v40 = vpack.c.bf16 %v1369_v6, %v1361_v31  ;;  %v1425_v6 = vld [vmem:[%s9175_s5 + $0x1410] sm:$0xff] }
 0x173   :  { %v1384_v38 = vld [vmem:[%s9175_s5 + $0x12c8] sm:$0xff]  ;;  %v4154_v56 = vpack.c.bf16 %v1367_v30, %v1359_v14  ;;  %v1423_v31 = vld [vmem:[%s9175_s5 + $0x1400] sm:$0xff] }
 0x174   :  { %4127 = vmatpush1.bf16.msra.mxu0 %v4126_v43  ;;  %4375 = vmatpush1.bf16.msra.mxu1 %v4374_v45  ;;  %v1336_v43 = vld [vmem:[%s9175_s5 + $0x1148] sm:$0xff]  ;;  %v1338_v45 = vld [vmem:[%s9175_s5 + $0x1158] sm:$0xff]  ;;  %v4156_v11 = vpack.c.bf16 %v1384_v38, %v1376_v37  ;;  %v1433_v38 = vld [vmem:[%s9175_s5 + $0x1450] sm:$0xff] }
 0x175   :  { %4129 = vmatprep.subr.bf16.mxu0 %v4128_v50  ;;  %4377 = vmatprep.subr.bf16.mxu1 %v4376_v51  ;;  %v4144_v50 = vpack.c.bf16 %v1336_v43, %v1328_v42  ;;  %v1327_v51 = vld [vmem:[%s9175_s5 + $0x1100] sm:$0xff]  ;;  %v4392_v55 = vpack.c.bf16 %v1338_v45, %v1330_v10  ;;  %v1385_v43 = vld [vmem:[%s9175_s5 + $0x12d0] sm:$0xff]  ;;  %v1392_v10 = vld [vmem:[%s9175_s5 + $0x1308] sm:$0xff] }
 0x176   :  { %v4146_v46 = vpack.c.bf16 %v1335_v53, %v1327_v51  ;;  %v1400_v45 = vld [vmem:[%s9175_s5 + $0x1348] sm:$0xff]  ;;  %v4406_v51 = vpack.c.bf16 %v1385_v43, %v1377_v22  ;;  %v1439_v22 = vld [vmem:[%s9175_s5 + $0x1480] sm:$0xff]  ;;  %v1441_v43 = vld [vmem:[%s9175_s5 + $0x1490] sm:$0xff] }
 0x177   :  { %v4160_v53 = vpack.c.bf16 %v1400_v45, %v1392_v10  ;;  %v1449_v45 = vld [vmem:[%s9175_s5 + $0x14d0] sm:$0xff] }
 0x178   :  { %4131 = vmatpush1.bf16.msra.mxu0 %v4130_v33  ;;  %4379 = vmatpush1.bf16.msra.mxu1 %v4378_v41  ;;  %v1346_v33 = vld [vmem:[%s9175_s5 + $0x1198] sm:$0xff] }
 0x179   :  { %4133 = vmatprep.subr.bf16.mxu0 %v4132_v61  ;;  %4381 = vmatprep.subr.bf16.mxu1 %v4380_v20  ;;  %v1354_v41 = vld [vmem:[%s9175_s5 + $0x11d8] sm:$0xff]  ;;  %v4148_v61 = vpack.c.bf16 %v1352_v29, %v1344_v17  ;;  %v1343_v20 = vld [vmem:[%s9175_s5 + $0x1180] sm:$0xff]  ;;  %v1401_v29 = vld [vmem:[%s9175_s5 + $0x1350] sm:$0xff] }
 0x17a   :  { %v4396_v4 = vpack.c.bf16 %v1354_v41, %v1346_v33  ;;  %v1408_v33 = vld [vmem:[%s9175_s5 + $0x1388] sm:$0xff] }
 0x17b   :  { %v1416_v41 = vld [vmem:[%s9175_s5 + $0x13c8] sm:$0xff] }
 0x17c   :  { %4135 = vmatpush1.bf16.msra.mxu0 %v4134_v2  ;;  %4383 = vmatpush1.bf16.msra.mxu1 %v4382_v13  ;;  %v1362_v2 = vld [vmem:[%s9175_s5 + $0x1218] sm:$0xff] }
 0x17d   :  { %4137 = vmatprep.subr.bf16.mxu0 %v4136_v18  ;;  %4385 = vmatprep.subr.bf16.mxu1 %v4384_v24  ;;  %v1370_v13 = vld [vmem:[%s9175_s5 + $0x1258] sm:$0xff]  ;;  %v4150_v18 = vpack.c.bf16 %v1351_v59, %v1343_v20  ;;  %v4398_v24 = vpack.c.bf16 %v1353_v63, %v1345_v1  ;;  %v4410_v20 = vpack.c.bf16 %v1401_v29, %v1393_v58  ;;  %v1407_v1 = vld [vmem:[%s9175_s5 + $0x1380] sm:$0xff]  ;;  %v1409_v63 = vld [vmem:[%s9175_s5 + $0x1390] sm:$0xff] }
 0x17e   :  { %v4400_v57 = vpack.c.bf16 %v1370_v13, %v1362_v2  ;;  %v4164_v59 = vpack.c.bf16 %v1416_v41, %v1408_v33  ;;  %v1424_v2 = vld [vmem:[%s9175_s5 + $0x1408] sm:$0xff]  ;;  %v4414_v14 = vpack.c.bf16 %v1417_v62, %v1409_v63  ;;  %v1455_v58 = vld [vmem:[%s9175_s5 + $0x1500] sm:$0xff]  ;;  %v1457_v29 = vld [vmem:[%s9175_s5 + $0x1510] sm:$0xff] }
 0x17f   :  { %1965 = vmatmul.mubr.f32.vlgmr.msra.gmra.mrb[8].mxu0 %v6341_v34  ;;  %2249 = vmatmul.mubr.f32.vlgmr.msra.gmra.mrb[0].mxu1 %v6341_v34  ;;  %v1432_v13 = vld [vmem:[%s9175_s5 + $0x1448] sm:$0xff]  ;;  %v1465_v41 = vld [vmem:[%s9175_s5 + $0x1550] sm:$0xff]  ;;  %v1471_v63 = vld [vmem:[%s9175_s5 + $0x1580] sm:$0xff] }
 0x180   :  { %4139 = vmatpush1.bf16.msra.mxu0 %v4138_v26  ;;  %2035 = vmatprep.mubr.f32.mxu0 %v6353_v36  ;;  %v1378_v26 = vld [vmem:[%s9175_s5 + $0x1298] sm:$0xff]  ;;  %v4168_v30 = vpack.c.bf16 %v1432_v13, %v1424_v2  ;;  %v1473_v62 = vld [vmem:[%s9175_s5 + $0x1590] sm:$0xff] }
 0x181   :  { %4387 = vmatpush1.bf16.msra.mxu1 %v4386_v52  ;;  %2319 = vmatprep.mubr.f32.mxu1 %v6353_v36  ;;  %v1386_v52 = vld [vmem:[%s9175_s5 + $0x12d8] sm:$0xff]  ;;  %v1481_v13 = vld [vmem:[%s9175_s5 + $0x15d0] sm:$0xff] }
 0x182   :  { %4141 = vmatprep.subr.bf16.mxu0 %v4140_v7  ;;  %4389 = vmatprep.subr.bf16.mxu1 %v4388_v12  ;;  %v1375_v7 = vld [vmem:[%s9175_s5 + $0x1280] sm:$0xff]  ;;  %v4404_v42 = vpack.c.bf16 %v1386_v52, %v1378_v26  ;;  %v1440_v26 = vld [vmem:[%s9175_s5 + $0x1488] sm:$0xff] }
 0x183   :  { %v1383_v12 = vld [vmem:[%s9175_s5 + $0x12c0] sm:$0xff]  ;;  %v1448_v52 = vld [vmem:[%s9175_s5 + $0x14c8] sm:$0xff] }
 0x184   :  { %4143 = vmatpush1.bf16.msra.mxu0 %v4142_v47  ;;  %v1394_v47 = vld [vmem:[%s9175_s5 + $0x1318] sm:$0xff] }
 0x185   :  { %4391 = vmatpush1.bf16.msra.mxu1 %v4390_v49  ;;  %4145 = vmatprep.subr.bf16.mxu0 %v4144_v50  ;;  %v1402_v49 = vld [vmem:[%s9175_s5 + $0x1358] sm:$0xff]  ;;  %v4158_v50 = vpack.c.bf16 %v1383_v12, %v1375_v7  ;;  %v4418_v7 = vpack.c.bf16 %v1433_v38, %v1425_v6  ;;  %v4172_v12 = vpack.c.bf16 %v1448_v52, %v1440_v26  ;;  %v1487_v6 = vld [vmem:[%s9175_s5 + $0x1600] sm:$0xff]  ;;  %v1489_v38 = vld [vmem:[%s9175_s5 + $0x1610] sm:$0xff] }
 0x186   :  { %4393 = vmatprep.subr.bf16.mxu1 %v4392_v55  ;;  %v1399_v55 = vld [vmem:[%s9175_s5 + $0x1340] sm:$0xff]  ;;  %v4408_v17 = vpack.c.bf16 %v1402_v49, %v1394_v47  ;;  %v1456_v47 = vld [vmem:[%s9175_s5 + $0x1508] sm:$0xff]  ;;  %v1497_v52 = vld [vmem:[%s9175_s5 + $0x1650] sm:$0xff] }
 0x187   :  { %v1464_v49 = vld [vmem:[%s9175_s5 + $0x1548] sm:$0xff] }
 0x188   :  { %4147 = vmatpush1.bf16.msra.mxu0 %v4146_v46  ;;  %v1410_v46 = vld [vmem:[%s9175_s5 + $0x1398] sm:$0xff] }
 0x189   :  { %4395 = vmatpush1.bf16.msra.mxu1 %v4394_v60  ;;  %4149 = vmatprep.subr.bf16.mxu0 %v4148_v61  ;;  %v1418_v60 = vld [vmem:[%s9175_s5 + $0x13d8] sm:$0xff]  ;;  %v4162_v61 = vpack.c.bf16 %v1399_v55, %v1391_v54  ;;  %v4422_v54 = vpack.c.bf16 %v1449_v45, %v1441_v43  ;;  %v4176_v55 = vpack.c.bf16 %v1464_v49, %v1456_v47  ;;  %v1503_v43 = vld [vmem:[%s9175_s5 + $0x1680] sm:$0xff]  ;;  %v1505_v45 = vld [vmem:[%s9175_s5 + $0x1690] sm:$0xff] }
 0x18a   :  { %4397 = vmatprep.subr.bf16.mxu1 %v4396_v4  ;;  %v1415_v4 = vld [vmem:[%s9175_s5 + $0x13c0] sm:$0xff]  ;;  %v4412_v5 = vpack.c.bf16 %v1418_v60, %v1410_v46  ;;  %v1472_v46 = vld [vmem:[%s9175_s5 + $0x1588] sm:$0xff]  ;;  %v1513_v49 = vld [vmem:[%s9175_s5 + $0x16d0] sm:$0xff] }
 0x18b   :  { %v1480_v60 = vld [vmem:[%s9175_s5 + $0x15c8] sm:$0xff] }
 0x18c   :  { %4151 = vmatpush1.bf16.msra.mxu0 %v4150_v18  ;;  %v1426_v18 = vld [vmem:[%s9175_s5 + $0x1418] sm:$0xff] }
 0x18d   :  { %4399 = vmatpush1.bf16.msra.mxu1 %v4398_v24  ;;  %4153 = vmatprep.subr.bf16.mxu0 %v4152_v28  ;;  %v1434_v24 = vld [vmem:[%s9175_s5 + $0x1458] sm:$0xff]  ;;  %v4166_v28 = vpack.c.bf16 %v1415_v4, %v1407_v1  ;;  %v4426_v1 = vpack.c.bf16 %v1465_v41, %v1457_v29  ;;  %v4180_v4 = vpack.c.bf16 %v1480_v60, %v1472_v46  ;;  %v1519_v29 = vld [vmem:[%s9175_s5 + $0x1700] sm:$0xff]  ;;  %v1521_v41 = vld [vmem:[%s9175_s5 + $0x1710] sm:$0xff] }
 0x18e   :  { %4401 = vmatprep.subr.bf16.mxu1 %v4400_v57  ;;  %v1431_v57 = vld [vmem:[%s9175_s5 + $0x1440] sm:$0xff]  ;;  %v4416_v37 = vpack.c.bf16 %v1434_v24, %v1426_v18  ;;  %v1488_v18 = vld [vmem:[%s9175_s5 + $0x1608] sm:$0xff]  ;;  %v1529_v60 = vld [vmem:[%s9175_s5 + $0x1750] sm:$0xff] }
 0x18f   :  { %v1496_v24 = vld [vmem:[%s9175_s5 + $0x1648] sm:$0xff] }
 0x190   :  { %4155 = vmatpush1.bf16.msra.mxu0 %v4154_v56  ;;  %v1442_v56 = vld [vmem:[%s9175_s5 + $0x1498] sm:$0xff] }
 0x191   :  { %4403 = vmatpush1.bf16.msra.mxu1 %v4402_v40  ;;  %4157 = vmatprep.subr.bf16.mxu0 %v4156_v11  ;;  %v1450_v40 = vld [vmem:[%s9175_s5 + $0x14d8] sm:$0xff]  ;;  %v4170_v11 = vpack.c.bf16 %v1431_v57, %v1423_v31  ;;  %v4430_v31 = vpack.c.bf16 %v1481_v13, %v1473_v62  ;;  %v4184_v57 = vpack.c.bf16 %v1496_v24, %v1488_v18  ;;  %v1535_v62 = vld [vmem:[%s9175_s5 + $0x1780] sm:$0xff]  ;;  %v1537_v13 = vld [vmem:[%s9175_s5 + $0x1790] sm:$0xff] }
 0x192   :  { %4405 = vmatprep.subr.bf16.mxu1 %v4404_v42  ;;  %v1447_v42 = vld [vmem:[%s9175_s5 + $0x14c0] sm:$0xff]  ;;  %v4420_v10 = vpack.c.bf16 %v1450_v40, %v1442_v56  ;;  %v1504_v56 = vld [vmem:[%s9175_s5 + $0x1688] sm:$0xff]  ;;  %v1545_v24 = vld [vmem:[%s9175_s5 + $0x17d0] sm:$0xff] }
 0x193   :  { %v1512_v40 = vld [vmem:[%s9175_s5 + $0x16c8] sm:$0xff] }
 0x194   :  { %4159 = vmatpush1.bf16.msra.mxu0 %v4158_v50  ;;  %v1458_v50 = vld [vmem:[%s9175_s5 + $0x1518] sm:$0xff] }
 0x195   :  { %4407 = vmatpush1.bf16.msra.mxu1 %v4406_v51  ;;  %4161 = vmatprep.subr.bf16.mxu0 %v4160_v53  ;;  %v1466_v51 = vld [vmem:[%s9175_s5 + $0x1558] sm:$0xff]  ;;  %v4174_v53 = vpack.c.bf16 %v1447_v42, %v1439_v22  ;;  %v4434_v22 = vpack.c.bf16 %v1497_v52, %v1489_v38  ;;  %v4188_v42 = vpack.c.bf16 %v1512_v40, %v1504_v56  ;;  %v1551_v38 = vld [vmem:[%s9175_s5 + $0x1800] sm:$0xff]  ;;  %v1553_v56 = vld [vmem:[%s9175_s5 + $0x1810] sm:$0xff] }
 0x196   :  { %4409 = vmatprep.subr.bf16.mxu1 %v4408_v17  ;;  %v1463_v17 = vld [vmem:[%s9175_s5 + $0x1540] sm:$0xff]  ;;  %v4424_v33 = vpack.c.bf16 %v1466_v51, %v1458_v50  ;;  %v1520_v50 = vld [vmem:[%s9175_s5 + $0x1708] sm:$0xff]  ;;  %v1561_v40 = vld [vmem:[%s9175_s5 + $0x1850] sm:$0xff] }
 0x197   :  { %v1528_v51 = vld [vmem:[%s9175_s5 + $0x1748] sm:$0xff] }
 0x198   :  { %4163 = vmatpush1.bf16.msra.mxu0 %v4162_v61  ;;  %v1474_v61 = vld [vmem:[%s9175_s5 + $0x1598] sm:$0xff] }
 0x199   :  { %4411 = vmatpush1.bf16.msra.mxu1 %v4410_v20  ;;  %4165 = vmatprep.subr.bf16.mxu0 %v4164_v59  ;;  %v1482_v20 = vld [vmem:[%s9175_s5 + $0x15d8] sm:$0xff]  ;;  %v4178_v59 = vpack.c.bf16 %v1463_v17, %v1455_v58  ;;  %v4438_v58 = vpack.c.bf16 %v1513_v49, %v1505_v45  ;;  %v4192_v17 = vpack.c.bf16 %v1528_v51, %v1520_v50  ;;  %v1567_v45 = vld [vmem:[%s9175_s5 + $0x1880] sm:$0xff]  ;;  %v1569_v49 = vld [vmem:[%s9175_s5 + $0x1890] sm:$0xff] }
 0x19a   :  { %4413 = vmatprep.subr.bf16.mxu1 %v4412_v5  ;;  %v1479_v5 = vld [vmem:[%s9175_s5 + $0x15c0] sm:$0xff]  ;;  %v4428_v2 = vpack.c.bf16 %v1482_v20, %v1474_v61  ;;  %v1536_v61 = vld [vmem:[%s9175_s5 + $0x1788] sm:$0xff] }
 0x19b   :  { %v1544_v20 = vld [vmem:[%s9175_s5 + $0x17c8] sm:$0xff] }
 0x19c   :  { %4167 = vmatpush1.bf16.msra.mxu0 %v4166_v28  ;;  %v1490_v28 = vld [vmem:[%s9175_s5 + $0x1618] sm:$0xff]  ;;  %v1584_v51 = vld [vmem:[%s9175_s5 + $0x1908] sm:$0xff] }
 0x19d   :  { %4415 = vmatpush1.bf16.msra.mxu1 %v4414_v14  ;;  %4169 = vmatprep.subr.bf16.mxu0 %v4168_v30  ;;  %v1498_v14 = vld [vmem:[%s9175_s5 + $0x1658] sm:$0xff]  ;;  %v4182_v30 = vpack.c.bf16 %v1479_v5, %v1471_v63  ;;  %v4442_v63 = vpack.c.bf16 %v1529_v60, %v1521_v41  ;;  %v4196_v5 = vpack.c.bf16 %v1544_v20, %v1536_v61  ;;  %v1583_v41 = vld [vmem:[%s9175_s5 + $0x1900] sm:$0xff]  ;;  %v1585_v60 = vld [vmem:[%s9175_s5 + $0x1910] sm:$0xff] }
 0x19e   :  { %4417 = vmatprep.subr.bf16.mxu1 %v4416_v37  ;;  %v1495_v37 = vld [vmem:[%s9175_s5 + $0x1640] sm:$0xff]  ;;  %v4432_v26 = vpack.c.bf16 %v1498_v14, %v1490_v28  ;;  %v1552_v28 = vld [vmem:[%s9175_s5 + $0x1808] sm:$0xff]  ;;  %v1593_v20 = vld [vmem:[%s9175_s5 + $0x1950] sm:$0xff] }
 0x19f   :  { %v1560_v14 = vld [vmem:[%s9175_s5 + $0x1848] sm:$0xff] }
 0x1a0   :  { %4171 = vmatpush1.bf16.msra.mxu0 %v4170_v11  ;;  %v1506_v11 = vld [vmem:[%s9175_s5 + $0x1698] sm:$0xff] }
 0x1a1   :  { %4419 = vmatpush1.bf16.msra.mxu1 %v4418_v7  ;;  %4173 = vmatprep.subr.bf16.mxu0 %v4172_v12  ;;  %v1514_v7 = vld [vmem:[%s9175_s5 + $0x16d8] sm:$0xff]  ;;  %v4186_v12 = vpack.c.bf16 %v1495_v37, %v1487_v6  ;;  %v4446_v6 = vpack.c.bf16 %v1545_v24, %v1537_v13  ;;  %v4200_v37 = vpack.c.bf16 %v1560_v14, %v1552_v28  ;;  %v1599_v13 = vld [vmem:[%s9175_s5 + $0x1980] sm:$0xff]  ;;  %v1601_v24 = vld [vmem:[%s9175_s5 + $0x1990] sm:$0xff] }
 0x1a2   :  { %4421 = vmatprep.subr.bf16.mxu1 %v4420_v10  ;;  %v1511_v10 = vld [vmem:[%s9175_s5 + $0x16c0] sm:$0xff]  ;;  %v4436_v47 = vpack.c.bf16 %v1514_v7, %v1506_v11  ;;  %v1568_v11 = vld [vmem:[%s9175_s5 + $0x1888] sm:$0xff]  ;;  %v1609_v14 = vld [vmem:[%s9175_s5 + $0x19d0] sm:$0xff] }
 0x1a3   :  { %v1576_v7 = vld [vmem:[%s9175_s5 + $0x18c8] sm:$0xff] }
 0x1a4   :  { %4175 = vmatpush1.bf16.msra.mxu0 %v4174_v53  ;;  %v1522_v53 = vld [vmem:[%s9175_s5 + $0x1718] sm:$0xff]  ;;  %v4204_v50 = vpack.c.bf16 %v1576_v7, %v1568_v11  ;;  %v1625_v7 = vld [vmem:[%s9175_s5 + $0x1a50] sm:$0xff] }
 0x1a5   :  { %4423 = vmatpush1.bf16.msra.mxu1 %v4422_v54  ;;  %4177 = vmatprep.subr.bf16.mxu0 %v4176_v55  ;;  %v1530_v54 = vld [vmem:[%s9175_s5 + $0x1758] sm:$0xff]  ;;  %v4190_v55 = vpack.c.bf16 %v1511_v10, %v1503_v43  ;;  %v6735_v43 = vmax.f32 %v5956_v19, 0.0  ;;  %v4450_v10 = vpack.c.bf16 %v1561_v40, %v1553_v56  ;;  %v1577_v19 = vld [vmem:[%s9175_s5 + $0x18d0] sm:$0xff]  ;;  %v1623_v56 = vld [vmem:[%s9175_s5 + $0x1a40] sm:$0xff] }
 0x1a6   :  { %4425 = vmatprep.subr.bf16.mxu1 %v4424_v33  ;;  %v1527_v33 = vld [vmem:[%s9175_s5 + $0x1740] sm:$0xff]  ;;  %v4440_v46 = vpack.c.bf16 %v1530_v54, %v1522_v53  ;;  %v1592_v53 = vld [vmem:[%s9175_s5 + $0x1948] sm:$0xff]  ;;  %v6757_v54 = vmax.f32 %v5918_v0, 0.0  ;;  %v1617_v40 = vld [vmem:[%s9175_s5 + $0x1a10] sm:$0xff] }
 0x1a7   :  { %v4208_v0 = vpack.c.bf16 %v1592_v53, %v1584_v51  ;;  %v1633_v51 = vld [vmem:[%s9175_s5 + $0x1a90] sm:$0xff] }
 0x1a8   :  { %4179 = vmatpush1.bf16.msra.mxu0 %v4178_v59  ;;  %v1538_v59 = vld [vmem:[%s9175_s5 + $0x1798] sm:$0xff] }
 0x1a9   :  { %4427 = vmatpush1.bf16.msra.mxu1 %v4426_v1  ;;  %4181 = vmatprep.subr.bf16.mxu0 %v4180_v4  ;;  %v1546_v1 = vld [vmem:[%s9175_s5 + $0x17d8] sm:$0xff]  ;;  %v4194_v4 = vpack.c.bf16 %v1527_v33, %v1519_v29  ;;  %v4454_v33 = vpack.c.bf16 %v1577_v19, %v1569_v49  ;;  %v1639_v19 = vld [vmem:[%s9175_s5 + $0x1ac0] sm:$0xff] }
 0x1aa   :  { %4429 = vmatprep.subr.bf16.mxu1 %v4428_v2  ;;  %v1543_v2 = vld [vmem:[%s9175_s5 + $0x17c0] sm:$0xff]  ;;  %v4444_v18 = vpack.c.bf16 %v1546_v1, %v1538_v59  ;;  %v1600_v59 = vld [vmem:[%s9175_s5 + $0x1988] sm:$0xff] }
 0x1ab   :  { %v1608_v1 = vld [vmem:[%s9175_s5 + $0x19c8] sm:$0xff] }
 0x1ac   :  { %4183 = vmatpush1.bf16.msra.mxu0 %v4182_v30  ;;  %v1554_v30 = vld [vmem:[%s9175_s5 + $0x1818] sm:$0xff] }
 0x1ad   :  { %4431 = vmatpush1.bf16.msra.mxu1 %v4430_v31  ;;  %4185 = vmatprep.subr.bf16.mxu0 %v4184_v57  ;;  %v1562_v31 = vld [vmem:[%s9175_s5 + $0x1858] sm:$0xff]  ;;  %v4198_v57 = vpack.c.bf16 %v1543_v2, %v1535_v62  ;;  %v4458_v62 = vpack.c.bf16 %v1593_v20, %v1585_v60  ;;  %v4212_v2 = vpack.c.bf16 %v1608_v1, %v1600_v59  ;;  %v1647_v60 = vld [vmem:[%s9175_s5 + $0x1b00] sm:$0xff]  ;;  %v1649_v20 = vld [vmem:[%s9175_s5 + $0x1b10] sm:$0xff] }
 0x1ae   :  { %4433 = vmatprep.subr.bf16.mxu1 %v4432_v26  ;;  %v1559_v26 = vld [vmem:[%s9175_s5 + $0x1840] sm:$0xff]  ;;  %v4448_v52 = vpack.c.bf16 %v1562_v31, %v1554_v30  ;;  %v1616_v30 = vld [vmem:[%s9175_s5 + $0x1a08] sm:$0xff]  ;;  %v1657_v1 = vld [vmem:[%s9175_s5 + $0x1b50] sm:$0xff] }
 0x1af   :  { %v1624_v31 = vld [vmem:[%s9175_s5 + $0x1a48] sm:$0xff] }
 0x1b0   :  { %4187 = vmatpush1.bf16.msra.mxu0 %v4186_v12  ;;  %v4202_v12 = vpack.c.bf16 %v1559_v26, %v1551_v38  ;;  %v4462_v38 = vpack.c.bf16 %v1609_v14, %v1601_v24  ;;  %v4216_v26 = vpack.c.bf16 %v1624_v31, %v1616_v30  ;;  %v1663_v24 = vld [vmem:[%s9175_s5 + $0x1b80] sm:$0xff]  ;;  %v1665_v14 = vld [vmem:[%s9175_s5 + $0x1b90] sm:$0xff] }
 0x1b1   :  { %4435 = vmatpush1.bf16.msra.mxu1 %v4434_v22  ;;  %4189 = vmatprep.subr.bf16.mxu0 %v4188_v42  ;;  %v1570_v22 = vld [vmem:[%s9175_s5 + $0x1898] sm:$0xff]  ;;  %v1673_v31 = vld [vmem:[%s9175_s5 + $0x1bd0] sm:$0xff] }
 0x1b2   :  { %4437 = vmatprep.subr.bf16.mxu1 %v4436_v47  ;;  %v1578_v42 = vld [vmem:[%s9175_s5 + $0x18d8] sm:$0xff]  ;;  %v1575_v47 = vld [vmem:[%s9175_s5 + $0x18c0] sm:$0xff] }
 0x1b3   :  { %v4206_v29 = vpack.c.bf16 %v1575_v47, %v1567_v45  ;;  %v4466_v47 = vpack.c.bf16 %v1625_v7, %v1617_v40  ;;  %v1679_v40 = vld [vmem:[%s9175_s5 + $0x1c00] sm:$0xff]  ;;  %v1681_v7 = vld [vmem:[%s9175_s5 + $0x1c10] sm:$0xff] }
 0x1b4   :  { %4191 = vmatpush1.bf16.msra.mxu0 %v4190_v55  ;;  %v4452_v55 = vpack.c.bf16 %v1578_v42, %v1570_v22  ;;  %v1640_v22 = vld [vmem:[%s9175_s5 + $0x1ac8] sm:$0xff]  ;;  %v1634_v42 = vld [vmem:[%s9175_s5 + $0x1a98] sm:$0xff] }
 0x1b5   :  { %4439 = vmatpush1.bf16.msra.mxu1 %v4438_v58  ;;  %4193 = vmatprep.subr.bf16.mxu0 %v4192_v17  ;;  %v1586_v58 = vld [vmem:[%s9175_s5 + $0x1918] sm:$0xff] }
 0x1b6   :  { %4441 = vmatprep.subr.bf16.mxu1 %v4440_v46  ;;  %v1594_v17 = vld [vmem:[%s9175_s5 + $0x1958] sm:$0xff]  ;;  %v1591_v46 = vld [vmem:[%s9175_s5 + $0x1940] sm:$0xff] }
 0x1b7   :  { %v4456_v61 = vpack.c.bf16 %v1594_v17, %v1586_v58  ;;  %v1648_v58 = vld [vmem:[%s9175_s5 + $0x1b08] sm:$0xff] }
 0x1b8   :  { %4195 = vmatpush1.bf16.msra.mxu0 %v4194_v4  ;;  %v1602_v4 = vld [vmem:[%s9175_s5 + $0x1998] sm:$0xff]  ;;  %v1656_v17 = vld [vmem:[%s9175_s5 + $0x1b48] sm:$0xff] }
 0x1b9   :  { %4443 = vmatpush1.bf16.msra.mxu1 %v4442_v63  ;;  %4197 = vmatprep.subr.bf16.mxu0 %v4196_v5  ;;  %v1610_v63 = vld [vmem:[%s9175_s5 + $0x19d8] sm:$0xff]  ;;  %v4210_v5 = vpack.c.bf16 %v1591_v46, %v1583_v41  ;;  %v4224_v46 = vpack.c.bf16 %v1656_v17, %v1648_v58  ;;  %v1705_v17 = vld [vmem:[%s9175_s5 + $0x1cd0] sm:$0xff] }
 0x1ba   :  { %4445 = vmatprep.subr.bf16.mxu1 %v4444_v18  ;;  %v1607_v18 = vld [vmem:[%s9175_s5 + $0x19c0] sm:$0xff]  ;;  %v4460_v28 = vpack.c.bf16 %v1610_v63, %v1602_v4  ;;  %v1664_v4 = vld [vmem:[%s9175_s5 + $0x1b88] sm:$0xff] }
 0x1bb   :  { %v1672_v63 = vld [vmem:[%s9175_s5 + $0x1bc8] sm:$0xff] }
 0x1bc   :  { %4199 = vmatpush1.bf16.msra.mxu0 %v4198_v57  ;;  %v1618_v57 = vld [vmem:[%s9175_s5 + $0x1a18] sm:$0xff] }
 0x1bd   :  { %4447 = vmatpush1.bf16.msra.mxu1 %v4446_v6  ;;  %4201 = vmatprep.subr.bf16.mxu0 %v4200_v37  ;;  %v1626_v6 = vld [vmem:[%s9175_s5 + $0x1a58] sm:$0xff]  ;;  %v4214_v37 = vpack.c.bf16 %v1607_v18, %v1599_v13  ;;  %v4474_v13 = vpack.c.bf16 %v1657_v1, %v1649_v20  ;;  %v4228_v18 = vpack.c.bf16 %v1672_v63, %v1664_v4  ;;  %v1711_v20 = vld [vmem:[%s9175_s5 + $0x1d00] sm:$0xff]  ;;  %v1713_v1 = vld [vmem:[%s9175_s5 + $0x1d10] sm:$0xff] }
 0x1be   :  { %4449 = vmatprep.subr.bf16.mxu1 %v4448_v52  ;;  %v1615_v52 = vld [vmem:[%s9175_s5 + $0x1a00] sm:$0xff]  ;;  %v4464_v11 = vpack.c.bf16 %v1626_v6, %v1618_v57  ;;  %v1680_v57 = vld [vmem:[%s9175_s5 + $0x1c08] sm:$0xff]  ;;  %v1721_v63 = vld [vmem:[%s9175_s5 + $0x1d50] sm:$0xff] }
 0x1bf   :  { %2036 = vmatmul.mubr.f32.vlgmr.msra.gmra.mrb[8].mxu0 %v6735_v43  ;;  %v4218_v45 = vpack.c.bf16 %v1623_v56, %v1615_v52  ;;  %v1688_v6 = vld [vmem:[%s9175_s5 + $0x1c48] sm:$0xff]  ;;  %v4478_v52 = vpack.c.bf16 %v1673_v31, %v1665_v14  ;;  %v1727_v14 = vld [vmem:[%s9175_s5 + $0x1d80] sm:$0xff]  ;;  %v1729_v31 = vld [vmem:[%s9175_s5 + $0x1d90] sm:$0xff] }
 0x1c0   :  { %2320 = vmatmul.mubr.f32.vlgmr.msra.gmra.mrb[0].mxu1 %v6735_v43  ;;  %4203 = vmatpush1.bf16.msra.mxu0 %v4202_v12  ;;  %v1632_v12 = vld [vmem:[%s9175_s5 + $0x1a88] sm:$0xff]  ;;  %v4232_v56 = vpack.c.bf16 %v1688_v6, %v1680_v57  ;;  %v1737_v6 = vld [vmem:[%s9175_s5 + $0x1dd0] sm:$0xff] }
 0x1c1   :  { %3887 = vmatprep.mubr.msk.f32.mxu0 %vm1825_vm3, %v6757_v54  ;;  %4451 = vmatpush1.bf16.msra.mxu1 %v4450_v10  ;;  %v1642_v10 = vld [vmem:[%s9175_s5 + $0x1ad8] sm:$0xff]  ;;  %v4220_v49 = vpack.c.bf16 %v1640_v22, %v1632_v12  ;;  %v1689_v22 = vld [vmem:[%s9175_s5 + $0x1c50] sm:$0xff] }
 0x1c2   :  { %3888 = vmatprep.mubr.msk.f32.mxu1 %vm1825_vm3, %v6757_v54  ;;  %4205 = vmatprep.subr.bf16.mxu0 %v4204_v50  ;;  %v1631_v50 = vld [vmem:[%s9175_s5 + $0x1a80] sm:$0xff]  ;;  %v4468_v53 = vpack.c.bf16 %v1642_v10, %v1634_v42  ;;  %v1696_v42 = vld [vmem:[%s9175_s5 + $0x1c88] sm:$0xff] }
 0x1c3   :  { %4453 = vmatprep.subr.bf16.mxu1 %v4452_v55  ;;  %v1641_v55 = vld [vmem:[%s9175_s5 + $0x1ad0] sm:$0xff]  ;;  %v1704_v10 = vld [vmem:[%s9175_s5 + $0x1cc8] sm:$0xff] }
 0x1c4   :  { %4207 = vmatpush1.bf16.msra.mxu0 %v4206_v29  ;;  %v1650_v29 = vld [vmem:[%s9175_s5 + $0x1b18] sm:$0xff]  ;;  %v4470_v41 = vpack.c.bf16 %v1641_v55, %v1633_v51  ;;  %v1695_v51 = vld [vmem:[%s9175_s5 + $0x1c80] sm:$0xff]  ;;  %v1697_v55 = vld [vmem:[%s9175_s5 + $0x1c90] sm:$0xff] }
 0x1c5   :  { %4455 = vmatpush1.bf16.msra.mxu1 %v4454_v33  ;;  %4209 = vmatprep.subr.bf16.mxu0 %v4208_v0  ;;  %v1658_v33 = vld [vmem:[%s9175_s5 + $0x1b58] sm:$0xff]  ;;  %v4222_v0 = vpack.c.bf16 %v1639_v19, %v1631_v50  ;;  %v4482_v50 = vpack.c.bf16 %v1689_v22, %v1681_v7  ;;  %v4236_v19 = vpack.c.bf16 %v1704_v10, %v1696_v42  ;;  %v1743_v7 = vld [vmem:[%s9175_s5 + $0x1e00] sm:$0xff]  ;;  %v1745_v22 = vld [vmem:[%s9175_s5 + $0x1e10] sm:$0xff] }
 0x1c6   :  { %4457 = vmatprep.subr.bf16.mxu1 %v4456_v61  ;;  %v1655_v61 = vld [vmem:[%s9175_s5 + $0x1b40] sm:$0xff]  ;;  %v4472_v59 = vpack.c.bf16 %v1658_v33, %v1650_v29  ;;  %v1712_v29 = vld [vmem:[%s9175_s5 + $0x1d08] sm:$0xff]  ;;  %v1753_v10 = vld [vmem:[%s9175_s5 + $0x1e50] sm:$0xff] }
 0x1c7   :  { %v1720_v33 = vld [vmem:[%s9175_s5 + $0x1d48] sm:$0xff] }
 0x1c8   :  { %4211 = vmatpush1.bf16.msra.mxu0 %v4210_v5  ;;  %v1666_v5 = vld [vmem:[%s9175_s5 + $0x1b98] sm:$0xff] }
 0x1c9   :  { %4459 = vmatpush1.bf16.msra.mxu1 %v4458_v62  ;;  %4213 = vmatprep.subr.bf16.mxu0 %v4212_v2  ;;  %v1674_v62 = vld [vmem:[%s9175_s5 + $0x1bd8] sm:$0xff]  ;;  %v4226_v2 = vpack.c.bf16 %v1655_v61, %v1647_v60  ;;  %v4486_v60 = vpack.c.bf16 %v1705_v17, %v1697_v55  ;;  %v4240_v61 = vpack.c.bf16 %v1720_v33, %v1712_v29  ;;  %v1759_v55 = vld [vmem:[%s9175_s5 + $0x1e80] sm:$0xff]  ;;  %v1761_v29 = vld [vmem:[%s9175_s5 + $0x1e90] sm:$0xff] }
 0x1ca   :  { %4461 = vmatprep.subr.bf16.mxu1 %v4460_v28  ;;  %v1671_v28 = vld [vmem:[%s9175_s5 + $0x1bc0] sm:$0xff]  ;;  %v4476_v30 = vpack.c.bf16 %v1674_v62, %v1666_v5  ;;  %v1728_v5 = vld [vmem:[%s9175_s5 + $0x1d88] sm:$0xff]  ;;  %v1769_v33 = vld [vmem:[%s9175_s5 + $0x1ed0] sm:$0xff] }
 0x1cb   :  { %v1736_v62 = vld [vmem:[%s9175_s5 + $0x1dc8] sm:$0xff] }
 0x1cc   :  { %4215 = vmatpush1.bf16.msra.mxu0 %v4214_v37  ;;  %v1682_v37 = vld [vmem:[%s9175_s5 + $0x1c18] sm:$0xff] }
 0x1cd   :  { %4463 = vmatpush1.bf16.msra.mxu1 %v4462_v38  ;;  %4217 = vmatprep.subr.bf16.mxu0 %v4216_v26  ;;  %v1690_v38 = vld [vmem:[%s9175_s5 + $0x1c58] sm:$0xff]  ;;  %v4230_v26 = vpack.c.bf16 %v1671_v28, %v1663_v24  ;;  %v4490_v24 = vpack.c.bf16 %v1721_v63, %v1713_v1  ;;  %v4244_v28 = vpack.c.bf16 %v1736_v62, %v1728_v5  ;;  %v795_v63 = vld [vmem:[%s9175_s5 + $0x60] sm:$0xff]  ;;  %v789_v62 = vld [vmem:[%s9175_s5 + $0x30] sm:$0xff] }
 0x1ce   :  { %4465 = vmatprep.subr.bf16.mxu1 %v4464_v11  ;;  %v1687_v11 = vld [vmem:[%s9175_s5 + $0x1c40] sm:$0xff]  ;;  %v4480_v12 = vpack.c.bf16 %v1690_v38, %v1682_v37  ;;  %v1744_v37 = vld [vmem:[%s9175_s5 + $0x1e08] sm:$0xff]  ;;  %v798_v1 = vld [vmem:[%s9175_s5 + $0x78] sm:$0xff] }
 0x1cf   :  { %v1752_v38 = vld [vmem:[%s9175_s5 + $0x1e48] sm:$0xff]  ;;  %v1775_v5 = vld [vmem:[%s9175_s5 + $0x1f00] sm:$0xff] }
 0x1d0   :  { %4219 = vmatpush1.bf16.msra.mxu0 %v4218_v45  ;;  %v1698_v45 = vld [vmem:[%s9175_s5 + $0x1c98] sm:$0xff] }
 0x1d1   :  { %4467 = vmatpush1.bf16.msra.mxu1 %v4466_v47  ;;  %4221 = vmatprep.subr.bf16.mxu0 %v4220_v49  ;;  %v1706_v47 = vld [vmem:[%s9175_s5 + $0x1cd8] sm:$0xff]  ;;  %v4234_v49 = vpack.c.bf16 %v1687_v11, %v1679_v40  ;;  %v4494_v40 = vpack.c.bf16 %v1737_v6, %v1729_v31  ;;  %v4248_v11 = vpack.c.bf16 %v1752_v38, %v1744_v37  ;;  %v803_v38 = vld [vmem:[%s9175_s5 + $0xa0] sm:$0xff] }
 0x1d2   :  { %4469 = vmatprep.subr.bf16.mxu1 %v4468_v53  ;;  %v1703_v53 = vld [vmem:[%s9175_s5 + $0x1cc0] sm:$0xff]  ;;  %v4484_v58 = vpack.c.bf16 %v1706_v47, %v1698_v45  ;;  %v1760_v45 = vld [vmem:[%s9175_s5 + $0x1e88] sm:$0xff]  ;;  %v814_v6 = vld [vmem:[%s9175_s5 + $0xf8] sm:$0xff] }
 0x1d3   :  { %v1768_v47 = vld [vmem:[%s9175_s5 + $0x1ec8] sm:$0xff] }
 0x1d4   :  { %4223 = vmatpush1.bf16.msra.mxu0 %v4222_v0  ;;  %v1714_v0 = vld [vmem:[%s9175_s5 + $0x1d18] sm:$0xff] }
 0x1d5   :  { %4471 = vmatpush1.bf16.msra.mxu1 %v4470_v41  ;;  %4225 = vmatprep.subr.bf16.mxu0 %v4224_v46  ;;  %v1722_v41 = vld [vmem:[%s9175_s5 + $0x1d58] sm:$0xff]  ;;  %v4238_v46 = vpack.c.bf16 %v1703_v53, %v1695_v51  ;;  %v4498_v51 = vpack.c.bf16 %v1753_v10, %v1745_v22  ;;  %v4252_v53 = vpack.c.bf16 %v1768_v47, %v1760_v45  ;;  %v819_v47 = vld [vmem:[%s9175_s5 + $0x120] sm:$0xff] }
 0x1d6   :  { %4473 = vmatprep.subr.bf16.mxu1 %v4472_v59  ;;  %v1719_v59 = vld [vmem:[%s9175_s5 + $0x1d40] sm:$0xff]  ;;  %v4488_v4 = vpack.c.bf16 %v1722_v41, %v1714_v0  ;;  %v4502_v41 = vpack.c.bf16 %v1769_v33, %v1761_v29  ;;  %v830_v22 = vld [vmem:[%s9175_s5 + $0x178] sm:$0xff] }
 0x1d8   :  { %4227 = vmatpush1.bf16.msra.mxu0 %v4226_v2  ;;  %v1730_v2 = vld [vmem:[%s9175_s5 + $0x1d98] sm:$0xff] }
 0x1d9   :  { %4475 = vmatpush1.bf16.msra.mxu1 %v4474_v13  ;;  %4229 = vmatprep.subr.bf16.mxu0 %v4228_v18  ;;  %v1738_v13 = vld [vmem:[%s9175_s5 + $0x1dd8] sm:$0xff]  ;;  %v4242_v18 = vpack.c.bf16 %v1719_v59, %v1711_v20  ;;  %v796_v20 = vld [vmem:[%s9175_s5 + $0x68] sm:$0xff] }
 0x1da   :  { %4477 = vmatprep.subr.bf16.mxu1 %v4476_v30  ;;  %v1735_v30 = vld [vmem:[%s9175_s5 + $0x1dc0] sm:$0xff]  ;;  %v4492_v57 = vpack.c.bf16 %v1738_v13, %v1730_v2  ;;  %v790_v59 = vld [vmem:[%s9175_s5 + $0x38] sm:$0xff]  ;;  %v797_v2 = vld [vmem:[%s9175_s5 + $0x70] sm:$0xff] }
 0x1db   :  { %v1777_v13 = vld [vmem:[%s9175_s5 + $0x1f10] sm:$0xff]  ;;  %v4754_v37 = vpack.c.bf16 %v797_v2, %v789_v62  ;;  %v851_v2 = vld [vmem:[%s9175_s5 + $0x220] sm:$0xff] }
 0x1dc   :  { %4231 = vmatpush1.bf16.msra.mxu0 %v4230_v26  ;;  %v1746_v26 = vld [vmem:[%s9175_s5 + $0x1e18] sm:$0xff] }
 0x1dd   :  { %4479 = vmatpush1.bf16.msra.mxu1 %v4478_v52  ;;  %4233 = vmatprep.subr.bf16.mxu0 %v4232_v56  ;;  %v1754_v52 = vld [vmem:[%s9175_s5 + $0x1e58] sm:$0xff]  ;;  %v4246_v56 = vpack.c.bf16 %v1735_v30, %v1727_v14  ;;  %v7089_v14 = vmax.f32 %v5982_v9, 0.0  ;;  %v4752_v30 = vpack.c.bf16 %v798_v1, %v790_v59  ;;  %v811_v9 = vld [vmem:[%s9175_s5 + $0xe0] sm:$0xff]  ;;  %v860_v59 = vld [vmem:[%s9175_s5 + $0x268] sm:$0xff] }
 0x1de   :  { %4481 = vmatprep.subr.bf16.mxu1 %v4480_v12  ;;  %v1751_v12 = vld [vmem:[%s9175_s5 + $0x1e40] sm:$0xff]  ;;  %v4496_v42 = vpack.c.bf16 %v1754_v52, %v1746_v26  ;;  %v805_v26 = vld [vmem:[%s9175_s5 + $0xb0] sm:$0xff]  ;;  %v854_v1 = vld [vmem:[%s9175_s5 + $0x238] sm:$0xff] }
 0x1e0   :  { %4235 = vmatpush1.bf16.msra.mxu0 %v4234_v49  ;;  %v1762_v49 = vld [vmem:[%s9175_s5 + $0x1e98] sm:$0xff] }
 0x1e1   :  { %4483 = vmatpush1.bf16.msra.mxu1 %v4482_v50  ;;  %4237 = vmatprep.subr.bf16.mxu0 %v4236_v19  ;;  %v1770_v50 = vld [vmem:[%s9175_s5 + $0x1ed8] sm:$0xff]  ;;  %v4250_v19 = vpack.c.bf16 %v1751_v12, %v1743_v7 }
 0x1e2   :  { %4485 = vmatprep.subr.bf16.mxu1 %v4484_v58  ;;  %v1767_v58 = vld [vmem:[%s9175_s5 + $0x1ec0] sm:$0xff]  ;;  %v4500_v17 = vpack.c.bf16 %v1770_v50, %v1762_v49  ;;  %v822_v12 = vld [vmem:[%s9175_s5 + $0x138] sm:$0xff]  ;;  %v821_v50 = vld [vmem:[%s9175_s5 + $0x130] sm:$0xff] }
 0x1e3   :  { %v4254_v0 = vpack.c.bf16 %v1767_v58, %v1759_v55  ;;  %v827_v49 = vld [vmem:[%s9175_s5 + $0x160] sm:$0xff]  ;;  %v844_v55 = vld [vmem:[%s9175_s5 + $0x1e8] sm:$0xff]  ;;  %v838_v58 = vld [vmem:[%s9175_s5 + $0x1b8] sm:$0xff] }
 0x1e4   :  { %4239 = vmatpush1.bf16.msra.mxu0 %v4238_v46  ;;  %v1776_v46 = vld [vmem:[%s9175_s5 + $0x1f08] sm:$0xff] }
 0x1e5   :  { %4487 = vmatpush1.bf16.msra.mxu1 %v4486_v60  ;;  %4241 = vmatprep.subr.bf16.mxu0 %v4240_v61  ;;  %v1778_v60 = vld [vmem:[%s9175_s5 + $0x1f18] sm:$0xff]  ;;  %v788_v61 = vld [vmem:[%s9175_s5 + $0x28] sm:$0xff] }
 0x1e6   :  { %4489 = vmatprep.subr.bf16.mxu1 %v4488_v4  ;;  %v787_v4 = vld [vmem:[%s9175_s5 + $0x20] sm:$0xff] }
 0x1e7   :  { %v4506_v31 = vpack.c.bf16 %v795_v63, %v787_v4  ;;  %v862_v4 = vld [vmem:[%s9175_s5 + $0x278] sm:$0xff] }
 0x1e8   :  { %4243 = vmatpush1.bf16.msra.mxu0 %v4242_v18  ;;  %v4504_v18 = vpack.c.bf16 %v796_v20, %v788_v61  ;;  %v845_v61 = vld [vmem:[%s9175_s5 + $0x1f0] sm:$0xff]  ;;  %v852_v20 = vld [vmem:[%s9175_s5 + $0x228] sm:$0xff] }
 0x1e9   :  { %4491 = vmatpush1.bf16.msra.mxu1 %v4490_v24  ;;  %4245 = vmatprep.subr.bf16.mxu0 %v4244_v28  ;;  %v804_v24 = vld [vmem:[%s9175_s5 + $0xa8] sm:$0xff]  ;;  %v4520_v62 = vpack.c.bf16 %v860_v59, %v852_v20  ;;  %v909_v20 = vld [vmem:[%s9175_s5 + $0x3f0] sm:$0xff] }
 0x1ea   :  { %4493 = vmatprep.subr.bf16.mxu1 %v4492_v57  ;;  %v812_v28 = vld [vmem:[%s9175_s5 + $0xe8] sm:$0xff]  ;;  %v806_v57 = vld [vmem:[%s9175_s5 + $0xb8] sm:$0xff] }
 0x1eb   :  { %v4508_v52 = vpack.c.bf16 %v812_v28, %v804_v24  ;;  %v4756_v7 = vpack.c.bf16 %v814_v6, %v806_v57  ;;  %v4768_v24 = vpack.c.bf16 %v862_v4, %v854_v1  ;;  %v861_v28 = vld [vmem:[%s9175_s5 + $0x270] sm:$0xff]  ;;  %v870_v57 = vld [vmem:[%s9175_s5 + $0x2b8] sm:$0xff]  ;;  %v916_v59 = vld [vmem:[%s9175_s5 + $0x428] sm:$0xff] }
 0x1ec   :  { %4247 = vmatpush1.bf16.msra.mxu0 %v4246_v56  ;;  %v813_v56 = vld [vmem:[%s9175_s5 + $0xf0] sm:$0xff]  ;;  %v878_v6 = vld [vmem:[%s9175_s5 + $0x2f8] sm:$0xff]  ;;  %v924_v1 = vld [vmem:[%s9175_s5 + $0x468] sm:$0xff] }
 0x1ed   :  { %4495 = vmatpush1.bf16.msra.mxu1 %v4494_v40  ;;  %4249 = vmatprep.subr.bf16.mxu0 %v4248_v11  ;;  %v820_v40 = vld [vmem:[%s9175_s5 + $0x128] sm:$0xff]  ;;  %v4758_v10 = vpack.c.bf16 %v813_v56, %v805_v26  ;;  %v867_v26 = vld [vmem:[%s9175_s5 + $0x2a0] sm:$0xff]  ;;  %v869_v56 = vld [vmem:[%s9175_s5 + $0x2b0] sm:$0xff] }
 0x1ee   :  { %4497 = vmatprep.subr.bf16.mxu1 %v4496_v42  ;;  %v828_v11 = vld [vmem:[%s9175_s5 + $0x168] sm:$0xff]  ;;  %v4510_v42 = vpack.c.bf16 %v811_v9, %v803_v38  ;;  %v918_v4 = vld [vmem:[%s9175_s5 + $0x438] sm:$0xff] }
 0x1ef   :  { %v4512_v45 = vpack.c.bf16 %v828_v11, %v820_v40  ;;  %v4772_v40 = vpack.c.bf16 %v878_v6, %v870_v57  ;;  %v877_v11 = vld [vmem:[%s9175_s5 + $0x2f0] sm:$0xff]  ;;  %v940_v57 = vld [vmem:[%s9175_s5 + $0x4e8] sm:$0xff]  ;;  %v934_v6 = vld [vmem:[%s9175_s5 + $0x4b8] sm:$0xff] }
 0x1f0   :  { %4251 = vmatpush1.bf16.msra.mxu0 %v4250_v19  ;;  %v4760_v19 = vpack.c.bf16 %v830_v22, %v822_v12  ;;  %v892_v12 = vld [vmem:[%s9175_s5 + $0x368] sm:$0xff]  ;;  %v886_v22 = vld [vmem:[%s9175_s5 + $0x338] sm:$0xff] }
 0x1f1   :  { %4499 = vmatpush1.bf16.msra.mxu1 %v4498_v51  ;;  %4253 = vmatprep.subr.bf16.mxu0 %v4252_v53  ;;  %v829_v51 = vld [vmem:[%s9175_s5 + $0x170] sm:$0xff]  ;;  %v836_v53 = vld [vmem:[%s9175_s5 + $0x1a8] sm:$0xff] }
 0x1f2   :  { %4501 = vmatprep.subr.bf16.mxu1 %v4500_v17  ;;  %v4514_v17 = vpack.c.bf16 %v827_v49, %v819_v47  ;;  %v4762_v29 = vpack.c.bf16 %v829_v51, %v821_v50  ;;  %v4516_v33 = vpack.c.bf16 %v844_v55, %v836_v53  ;;  %v883_v49 = vld [vmem:[%s9175_s5 + $0x320] sm:$0xff]  ;;  %v893_v53 = vld [vmem:[%s9175_s5 + $0x370] sm:$0xff]  ;;  %v900_v55 = vld [vmem:[%s9175_s5 + $0x3a8] sm:$0xff] }
 0x1f3   :  { %v891_v50 = vld [vmem:[%s9175_s5 + $0x360] sm:$0xff] }
 0x1f4   :  { %4255 = vmatpush1.bf16.msra.mxu0 %v4254_v0  ;;  %v835_v0 = vld [vmem:[%s9175_s5 + $0x1a0] sm:$0xff] }
 0x1f5   :  { %4503 = vmatpush1.bf16.msra.mxu1 %v4502_v41  ;;  %2098 = vmatprep.subr.mxu0 %v1776_v46  ;;  %v843_v41 = vld [vmem:[%s9175_s5 + $0x1e0] sm:$0xff]  ;;  %v837_v46 = vld [vmem:[%s9175_s5 + $0x1b0] sm:$0xff] }
 0x1f6   :  { %2382 = vmatprep.subr.mxu1 %v1778_v60  ;;  %v4518_v63 = vpack.c.bf16 %v843_v41, %v835_v0  ;;  %v899_v41 = vld [vmem:[%s9175_s5 + $0x3a0] sm:$0xff] }
 0x1f8   :  { %2099 = vmatpush1.msra.mxu0 %v1775_v5  ;;  %v4766_v5 = vpack.c.bf16 %v845_v61, %v837_v46  ;;  %v907_v46 = vld [vmem:[%s9175_s5 + $0x3e0] sm:$0xff] }
 0x1f9   :  { %2383 = vmatpush1.msra.mxu1 %v1777_v13  ;;  %2107 = vmatmul.mubr.f32.vlgmr.msra.gmra.mrb[8].mxu0 %v7089_v14  ;;  %v859_v13 = vld [vmem:[%s9175_s5 + $0x260] sm:$0xff] }
 0x1fa   :  { %2391 = vmatmul.mubr.f32.vlgmr.msra.gmra.mrb[0].mxu1 %v7089_v14  ;;  %4505 = vmatprep.subr.bf16.mxu0 %v4504_v18  ;;  %v853_v18 = vld [vmem:[%s9175_s5 + $0x230] sm:$0xff] }
 0x1fb   :  { %4753 = vmatprep.subr.bf16.mxu1 %v4752_v30  ;;  %4507 = vmatpush1.bf16.msra.mxu0 %v4506_v31  ;;  %v868_v30 = vld [vmem:[%s9175_s5 + $0x2a8] sm:$0xff]  ;;  %v4770_v38 = vpack.c.bf16 %v861_v28, %v853_v18  ;;  %v923_v18 = vld [vmem:[%s9175_s5 + $0x460] sm:$0xff] }
 0x1fc   :  { %2461 = vmatprep.mubr.f32.mxu0 %v5937_v15  ;;  %4755 = vmatpush1.bf16.msra.mxu1 %v4754_v37  ;;  %v876_v31 = vld [vmem:[%s9175_s5 + $0x2e8] sm:$0xff]  ;;  %v4522_v37 = vpack.c.bf16 %v859_v13, %v851_v2  ;;  %v4536_v2 = vpack.c.bf16 %v924_v1, %v916_v59  ;;  %v915_v13 = vld [vmem:[%s9175_s5 + $0x420] sm:$0xff]  ;;  %v973_v59 = vld [vmem:[%s9175_s5 + $0x5f0] sm:$0xff] }
 0x1fd   :  { %2745 = vmatprep.mubr.f32.mxu1 %v5937_v15  ;;  %4509 = vmatprep.subr.bf16.mxu0 %v4508_v52  ;;  %v846_v15 = vld [vmem:[%s9175_s5 + $0x1f8] sm:$0xff]  ;;  %v4524_v9 = vpack.c.bf16 %v876_v31, %v868_v30  ;;  %v875_v52 = vld [vmem:[%s9175_s5 + $0x2e0] sm:$0xff]  ;;  %v925_v30 = vld [vmem:[%s9175_s5 + $0x470] sm:$0xff] }
 0x1fe   :  { %4757 = vmatprep.subr.bf16.mxu1 %v4756_v7  ;;  %v4764_v60 = vpack.c.bf16 %v846_v15, %v838_v58  ;;  %v884_v7 = vld [vmem:[%s9175_s5 + $0x328] sm:$0xff]  ;;  %v902_v15 = vld [vmem:[%s9175_s5 + $0x3b8] sm:$0xff] }
 0x1ff   :  { %4511 = vmatpush1.bf16.msra.mxu0 %v4510_v42  ;;  %v894_v42 = vld [vmem:[%s9175_s5 + $0x378] sm:$0xff]  ;;  %v4528_v47 = vpack.c.bf16 %v892_v12, %v884_v7  ;;  %v908_v58 = vld [vmem:[%s9175_s5 + $0x3e8] sm:$0xff]  ;;  %v941_v7 = vld [vmem:[%s9175_s5 + $0x4f0] sm:$0xff] }
 0x200   :  { %4759 = vmatpush1.bf16.msra.mxu1 %v4758_v10  ;;  %4513 = vmatprep.subr.bf16.mxu0 %v4512_v45  ;;  %v4526_v10 = vpack.c.bf16 %v875_v52, %v867_v26  ;;  %v4774_v45 = vpack.c.bf16 %v877_v11, %v869_v56  ;;  %v4776_v51 = vpack.c.bf16 %v894_v42, %v886_v22  ;;  %v932_v31 = vld [vmem:[%s9175_s5 + $0x4a8] sm:$0xff]  ;;  %v931_v52 = vld [vmem:[%s9175_s5 + $0x4a0] sm:$0xff]  ;;  %v950_v42 = vld [vmem:[%s9175_s5 + $0x538] sm:$0xff] }
 0x201   :  { %4761 = vmatprep.subr.bf16.mxu1 %v4760_v19  ;;  %v885_v19 = vld [vmem:[%s9175_s5 + $0x330] sm:$0xff]  ;;  %v4532_v0 = vpack.c.bf16 %v908_v58, %v900_v55  ;;  %v4540_v26 = vpack.c.bf16 %v940_v57, %v932_v31  ;;  %v939_v56 = vld [vmem:[%s9175_s5 + $0x4e0] sm:$0xff]  ;;  %v948_v12 = vld [vmem:[%s9175_s5 + $0x528] sm:$0xff] }
 0x202   :  { %v956_v22 = vld [vmem:[%s9175_s5 + $0x568] sm:$0xff]  ;;  %v957_v55 = vld [vmem:[%s9175_s5 + $0x570] sm:$0xff] }
 0x203   :  { %4515 = vmatpush1.bf16.msra.mxu0 %v4514_v17  ;;  %v910_v17 = vld [vmem:[%s9175_s5 + $0x3f8] sm:$0xff]  ;;  %v964_v58 = vld [vmem:[%s9175_s5 + $0x5a8] sm:$0xff]  ;;  %v989_v31 = vld [vmem:[%s9175_s5 + $0x670] sm:$0xff] }
 0x204   :  { %4763 = vmatpush1.bf16.msra.mxu1 %v4762_v29  ;;  %4517 = vmatprep.subr.bf16.mxu0 %v4516_v33  ;;  %v4530_v29 = vpack.c.bf16 %v891_v50, %v883_v49  ;;  %v4778_v33 = vpack.c.bf16 %v893_v53, %v885_v19  ;;  %v4780_v61 = vpack.c.bf16 %v910_v17, %v902_v15  ;;  %v947_v50 = vld [vmem:[%s9175_s5 + $0x520] sm:$0xff]  ;;  %v972_v15 = vld [vmem:[%s9175_s5 + $0x5e8] sm:$0xff]  ;;  %v966_v17 = vld [vmem:[%s9175_s5 + $0x5b8] sm:$0xff] }
 0x205   :  { %4765 = vmatprep.subr.bf16.mxu1 %v4764_v60  ;;  %v901_v60 = vld [vmem:[%s9175_s5 + $0x3b0] sm:$0xff]  ;;  %v4544_v49 = vpack.c.bf16 %v956_v22, %v948_v12  ;;  %v955_v19 = vld [vmem:[%s9175_s5 + $0x560] sm:$0xff]  ;;  %v980_v1 = vld [vmem:[%s9175_s5 + $0x628] sm:$0xff] }
 0x206   :  { %v996_v57 = vld [vmem:[%s9175_s5 + $0x6a8] sm:$0xff]  ;;  %v1005_v12 = vld [vmem:[%s9175_s5 + $0x6f0] sm:$0xff] }
 0x207   :  { %4519 = vmatpush1.bf16.msra.mxu0 %v4518_v63  ;;  %v926_v63 = vld [vmem:[%s9175_s5 + $0x478] sm:$0xff]  ;;  %v1012_v22 = vld [vmem:[%s9175_s5 + $0x728] sm:$0xff] }
 0x208   :  { %4767 = vmatpush1.bf16.msra.mxu1 %v4766_v5  ;;  %4521 = vmatprep.subr.bf16.mxu0 %v4520_v62  ;;  %v4534_v5 = vpack.c.bf16 %v907_v46, %v899_v41  ;;  %v4782_v62 = vpack.c.bf16 %v909_v20, %v901_v60  ;;  %v4784_v28 = vpack.c.bf16 %v926_v63, %v918_v4  ;;  %v963_v46 = vld [vmem:[%s9175_s5 + $0x5a0] sm:$0xff]  ;;  %v988_v4 = vld [vmem:[%s9175_s5 + $0x668] sm:$0xff]  ;;  %v982_v63 = vld [vmem:[%s9175_s5 + $0x638] sm:$0xff] }
 0x209   :  { %4769 = vmatprep.subr.bf16.mxu1 %v4768_v24  ;;  %v917_v24 = vld [vmem:[%s9175_s5 + $0x430] sm:$0xff]  ;;  %v4548_v41 = vpack.c.bf16 %v972_v15, %v964_v58  ;;  %v971_v60 = vld [vmem:[%s9175_s5 + $0x5e0] sm:$0xff]  ;;  %v1028_v15 = vld [vmem:[%s9175_s5 + $0x7a8] sm:$0xff] }
 0x20a   :  { %v1021_v58 = vld [vmem:[%s9175_s5 + $0x770] sm:$0xff] }
 0x20b   :  { %4523 = vmatpush1.bf16.msra.mxu0 %v4522_v37  ;;  %v942_v37 = vld [vmem:[%s9175_s5 + $0x4f8] sm:$0xff] }
 0x20c   :  { %4771 = vmatpush1.bf16.msra.mxu1 %v4770_v38  ;;  %4525 = vmatprep.subr.bf16.mxu0 %v4524_v9  ;;  %v4538_v38 = vpack.c.bf16 %v923_v18, %v915_v13  ;;  %v4786_v9 = vpack.c.bf16 %v925_v30, %v917_v24  ;;  %v4788_v11 = vpack.c.bf16 %v942_v37, %v934_v6  ;;  %v979_v18 = vld [vmem:[%s9175_s5 + $0x620] sm:$0xff]  ;;  %v1004_v6 = vld [vmem:[%s9175_s5 + $0x6e8] sm:$0xff]  ;;  %v998_v37 = vld [vmem:[%s9175_s5 + $0x6b8] sm:$0xff] }
 0x20d   :  { %4773 = vmatprep.subr.bf16.mxu1 %v4772_v40  ;;  %v933_v40 = vld [vmem:[%s9175_s5 + $0x4b0] sm:$0xff]  ;;  %v4552_v13 = vpack.c.bf16 %v988_v4, %v980_v1  ;;  %v987_v24 = vld [vmem:[%s9175_s5 + $0x660] sm:$0xff]  ;;  %v1044_v4 = vld [vmem:[%s9175_s5 + $0x828] sm:$0xff] }
 0x20e   :  { %v1037_v1 = vld [vmem:[%s9175_s5 + $0x7f0] sm:$0xff] }
 0x20f   :  { %4527 = vmatpush1.bf16.msra.mxu0 %v4526_v10  ;;  %v958_v10 = vld [vmem:[%s9175_s5 + $0x578] sm:$0xff] }
 0x210   :  { %4775 = vmatpush1.bf16.msra.mxu1 %v4774_v45  ;;  %4529 = vmatprep.subr.bf16.mxu0 %v4528_v47  ;;  %v4542_v45 = vpack.c.bf16 %v939_v56, %v931_v52  ;;  %v4790_v47 = vpack.c.bf16 %v941_v7, %v933_v40  ;;  %v4792_v53 = vpack.c.bf16 %v958_v10, %v950_v42  ;;  %v995_v56 = vld [vmem:[%s9175_s5 + $0x6a0] sm:$0xff]  ;;  %v1020_v42 = vld [vmem:[%s9175_s5 + $0x768] sm:$0xff]  ;;  %v1014_v10 = vld [vmem:[%s9175_s5 + $0x738] sm:$0xff] }
 0x211   :  { %4777 = vmatprep.subr.bf16.mxu1 %v4776_v51  ;;  %v949_v51 = vld [vmem:[%s9175_s5 + $0x530] sm:$0xff]  ;;  %v4556_v52 = vpack.c.bf16 %v1004_v6, %v996_v57  ;;  %v1003_v40 = vld [vmem:[%s9175_s5 + $0x6e0] sm:$0xff]  ;;  %v1060_v6 = vld [vmem:[%s9175_s5 + $0x8a8] sm:$0xff] }
 0x212   :  { %v1053_v57 = vld [vmem:[%s9175_s5 + $0x870] sm:$0xff] }
 0x213   :  { %4531 = vmatpush1.bf16.msra.mxu0 %v4530_v29  ;;  %v974_v29 = vld [vmem:[%s9175_s5 + $0x5f8] sm:$0xff] }
 0x214   :  { %4779 = vmatpush1.bf16.msra.mxu1 %v4778_v33  ;;  %4533 = vmatprep.subr.bf16.mxu0 %v4532_v0  ;;  %v4546_v33 = vpack.c.bf16 %v955_v19, %v947_v50  ;;  %v4794_v0 = vpack.c.bf16 %v957_v55, %v949_v51  ;;  %v4796_v20 = vpack.c.bf16 %v974_v29, %v966_v17  ;;  %v1011_v19 = vld [vmem:[%s9175_s5 + $0x720] sm:$0xff]  ;;  %v1036_v17 = vld [vmem:[%s9175_s5 + $0x7e8] sm:$0xff]  ;;  %v1030_v29 = vld [vmem:[%s9175_s5 + $0x7b8] sm:$0xff] }
 0x215   :  { %4781 = vmatprep.subr.bf16.mxu1 %v4780_v61  ;;  %v965_v61 = vld [vmem:[%s9175_s5 + $0x5b0] sm:$0xff]  ;;  %v4560_v50 = vpack.c.bf16 %v1020_v42, %v1012_v22  ;;  %v1019_v51 = vld [vmem:[%s9175_s5 + $0x760] sm:$0xff]  ;;  %v1076_v22 = vld [vmem:[%s9175_s5 + $0x928] sm:$0xff] }
 0x216   :  { %v1084_v42 = vld [vmem:[%s9175_s5 + $0x968] sm:$0xff] }
 0x217   :  { %4535 = vmatpush1.bf16.msra.mxu0 %v4534_v5  ;;  %v990_v5 = vld [vmem:[%s9175_s5 + $0x678] sm:$0xff] }
 0x218   :  { %4783 = vmatpush1.bf16.msra.mxu1 %v4782_v62  ;;  %4537 = vmatprep.subr.bf16.mxu0 %v4536_v2  ;;  %v4550_v62 = vpack.c.bf16 %v971_v60, %v963_v46  ;;  %v4798_v2 = vpack.c.bf16 %v973_v59, %v965_v61  ;;  %v4800_v30 = vpack.c.bf16 %v990_v5, %v982_v63  ;;  %v1027_v60 = vld [vmem:[%s9175_s5 + $0x7a0] sm:$0xff]  ;;  %v1052_v63 = vld [vmem:[%s9175_s5 + $0x868] sm:$0xff]  ;;  %v1046_v5 = vld [vmem:[%s9175_s5 + $0x838] sm:$0xff] }
 0x219   :  { %4785 = vmatprep.subr.bf16.mxu1 %v4784_v28  ;;  %v981_v28 = vld [vmem:[%s9175_s5 + $0x630] sm:$0xff]  ;;  %v4564_v46 = vpack.c.bf16 %v1036_v17, %v1028_v15  ;;  %v1035_v61 = vld [vmem:[%s9175_s5 + $0x7e0] sm:$0xff]  ;;  %v1092_v15 = vld [vmem:[%s9175_s5 + $0x9a8] sm:$0xff] }
 0x21a   :  { %v1100_v17 = vld [vmem:[%s9175_s5 + $0x9e8] sm:$0xff] }
 0x21b   :  { %4539 = vmatpush1.bf16.msra.mxu0 %v4538_v38  ;;  %v1006_v38 = vld [vmem:[%s9175_s5 + $0x6f8] sm:$0xff] }
 0x21c   :  { %4787 = vmatpush1.bf16.msra.mxu1 %v4786_v9  ;;  %4541 = vmatprep.subr.bf16.mxu0 %v4540_v26  ;;  %v4554_v9 = vpack.c.bf16 %v987_v24, %v979_v18  ;;  %v4802_v26 = vpack.c.bf16 %v989_v31, %v981_v28  ;;  %v4804_v7 = vpack.c.bf16 %v1006_v38, %v998_v37  ;;  %v1043_v24 = vld [vmem:[%s9175_s5 + $0x820] sm:$0xff]  ;;  %v1045_v31 = vld [vmem:[%s9175_s5 + $0x830] sm:$0xff]  ;;  %v1068_v37 = vld [vmem:[%s9175_s5 + $0x8e8] sm:$0xff] }
 0x21d   :  { %4789 = vmatprep.subr.bf16.mxu1 %v4788_v11  ;;  %v997_v11 = vld [vmem:[%s9175_s5 + $0x6b0] sm:$0xff]  ;;  %v4568_v18 = vpack.c.bf16 %v1052_v63, %v1044_v4  ;;  %v1051_v28 = vld [vmem:[%s9175_s5 + $0x860] sm:$0xff]  ;;  %v1116_v4 = vld [vmem:[%s9175_s5 + $0xa68] sm:$0xff] }
 0x21e   :  { %v4570_v38 = vpack.c.bf16 %v1051_v28, %v1043_v24  ;;  %v1110_v63 = vld [vmem:[%s9175_s5 + $0xa38] sm:$0xff]  ;;  %v1115_v24 = vld [vmem:[%s9175_s5 + $0xa60] sm:$0xff]  ;;  %v1109_v28 = vld [vmem:[%s9175_s5 + $0xa30] sm:$0xff] }
 0x21f   :  { %4543 = vmatpush1.bf16.msra.mxu0 %v4542_v45  ;;  %v1022_v45 = vld [vmem:[%s9175_s5 + $0x778] sm:$0xff] }
 0x220   :  { %4791 = vmatpush1.bf16.msra.mxu1 %v4790_v47  ;;  %4545 = vmatprep.subr.bf16.mxu0 %v4544_v49  ;;  %v4558_v47 = vpack.c.bf16 %v1003_v40, %v995_v56  ;;  %v4806_v49 = vpack.c.bf16 %v1005_v12, %v997_v11  ;;  %v4808_v55 = vpack.c.bf16 %v1022_v45, %v1014_v10  ;;  %v1059_v56 = vld [vmem:[%s9175_s5 + $0x8a0] sm:$0xff]  ;;  %v1061_v11 = vld [vmem:[%s9175_s5 + $0x8b0] sm:$0xff]  ;;  %v1078_v45 = vld [vmem:[%s9175_s5 + $0x938] sm:$0xff] }
 0x221   :  { %4793 = vmatprep.subr.bf16.mxu1 %v4792_v53  ;;  %v1013_v53 = vld [vmem:[%s9175_s5 + $0x730] sm:$0xff]  ;;  %v1067_v40 = vld [vmem:[%s9175_s5 + $0x8e0] sm:$0xff] }
 0x222   :  { %v1069_v12 = vld [vmem:[%s9175_s5 + $0x8f0] sm:$0xff] }
 0x223   :  { %4547 = vmatpush1.bf16.msra.mxu0 %v4546_v33  ;;  %v1038_v33 = vld [vmem:[%s9175_s5 + $0x7f8] sm:$0xff] }
 0x224   :  { %4795 = vmatpush1.bf16.msra.mxu1 %v4794_v0  ;;  %4549 = vmatprep.subr.bf16.mxu0 %v4548_v41  ;;  %v4562_v0 = vpack.c.bf16 %v1019_v51, %v1011_v19  ;;  %v4810_v41 = vpack.c.bf16 %v1021_v58, %v1013_v53  ;;  %v4812_v59 = vpack.c.bf16 %v1038_v33, %v1030_v29  ;;  %v1075_v51 = vld [vmem:[%s9175_s5 + $0x920] sm:$0xff]  ;;  %v1085_v58 = vld [vmem:[%s9175_s5 + $0x970] sm:$0xff]  ;;  %v1094_v29 = vld [vmem:[%s9175_s5 + $0x9b8] sm:$0xff] }
 0x225   :  { %4797 = vmatprep.subr.bf16.mxu1 %v4796_v20  ;;  %v1029_v20 = vld [vmem:[%s9175_s5 + $0x7b0] sm:$0xff]  ;;  %v4576_v19 = vpack.c.bf16 %v1084_v42, %v1076_v22  ;;  %v1083_v53 = vld [vmem:[%s9175_s5 + $0x960] sm:$0xff]  ;;  %v1140_v22 = vld [vmem:[%s9175_s5 + $0xb28] sm:$0xff] }
 0x226   :  { %v4578_v33 = vpack.c.bf16 %v1083_v53, %v1075_v51  ;;  %v1148_v42 = vld [vmem:[%s9175_s5 + $0xb68] sm:$0xff]  ;;  %v1147_v51 = vld [vmem:[%s9175_s5 + $0xb60] sm:$0xff]  ;;  %v1141_v53 = vld [vmem:[%s9175_s5 + $0xb30] sm:$0xff] }
 0x227   :  { %4551 = vmatpush1.bf16.msra.mxu0 %v4550_v62  ;;  %v1054_v62 = vld [vmem:[%s9175_s5 + $0x878] sm:$0xff] }
 0x228   :  { %4799 = vmatpush1.bf16.msra.mxu1 %v4798_v2  ;;  %4553 = vmatprep.subr.bf16.mxu0 %v4552_v13  ;;  %v4566_v2 = vpack.c.bf16 %v1035_v61, %v1027_v60  ;;  %v4814_v13 = vpack.c.bf16 %v1037_v1, %v1029_v20  ;;  %v1099_v60 = vld [vmem:[%s9175_s5 + $0x9e0] sm:$0xff]  ;;  %v1093_v61 = vld [vmem:[%s9175_s5 + $0x9b0] sm:$0xff]  ;;  %v1108_v1 = vld [vmem:[%s9175_s5 + $0xa28] sm:$0xff] }
 0x229   :  { %4801 = vmatprep.subr.bf16.mxu1 %v4800_v30  ;;  %v4816_v30 = vpack.c.bf16 %v1054_v62, %v1046_v5  ;;  %v1118_v5 = vld [vmem:[%s9175_s5 + $0xa78] sm:$0xff] }
 0x22b   :  { %4555 = vmatpush1.bf16.msra.mxu0 %v4554_v9  ;;  %v1062_v9 = vld [vmem:[%s9175_s5 + $0x8b8] sm:$0xff] }
 0x22c   :  { %4803 = vmatpush1.bf16.msra.mxu1 %v4802_v26  ;;  %4557 = vmatprep.subr.bf16.mxu0 %v4556_v52  ;;  %v1070_v26 = vld [vmem:[%s9175_s5 + $0x8f8] sm:$0xff]  ;;  %v4818_v52 = vpack.c.bf16 %v1053_v57, %v1045_v31  ;;  %v1117_v31 = vld [vmem:[%s9175_s5 + $0xa70] sm:$0xff]  ;;  %v1124_v57 = vld [vmem:[%s9175_s5 + $0xaa8] sm:$0xff] }
 0x22d   :  { %4805 = vmatprep.subr.bf16.mxu1 %v4804_v7  ;;  %v4572_v7 = vpack.c.bf16 %v1068_v37, %v1060_v6  ;;  %v4820_v10 = vpack.c.bf16 %v1070_v26, %v1062_v9  ;;  %v1132_v6 = vld [vmem:[%s9175_s5 + $0xae8] sm:$0xff]  ;;  %v1126_v37 = vld [vmem:[%s9175_s5 + $0xab8] sm:$0xff]  ;;  %v4834_v26 = vpack.c.bf16 %v1117_v31, %v1109_v28 }
 0x22e   :  { %v1188_v31 = vld [vmem:[%s9175_s5 + $0xca8] sm:$0xff] }
 0x22f   :  { %4559 = vmatpush1.bf16.msra.mxu0 %v4558_v47  ;;  %v1086_v47 = vld [vmem:[%s9175_s5 + $0x978] sm:$0xff] }
 0x230   :  { %4807 = vmatpush1.bf16.msra.mxu1 %v4806_v49  ;;  %4561 = vmatprep.subr.bf16.mxu0 %v4560_v50  ;;  %v4574_v49 = vpack.c.bf16 %v1067_v40, %v1059_v56  ;;  %v4822_v50 = vpack.c.bf16 %v1069_v12, %v1061_v11  ;;  %v1123_v56 = vld [vmem:[%s9175_s5 + $0xaa0] sm:$0xff]  ;;  %v1125_v11 = vld [vmem:[%s9175_s5 + $0xab0] sm:$0xff] }
 0x231   :  { %4809 = vmatprep.subr.bf16.mxu1 %v4808_v55  ;;  %v1077_v55 = vld [vmem:[%s9175_s5 + $0x930] sm:$0xff]  ;;  %v1131_v40 = vld [vmem:[%s9175_s5 + $0xae0] sm:$0xff] }
 0x232   :  { %v1133_v12 = vld [vmem:[%s9175_s5 + $0xaf0] sm:$0xff] }
 0x233   :  { %4563 = vmatpush1.bf16.msra.mxu0 %v4562_v0  ;;  %v4826_v0 = vpack.c.bf16 %v1085_v58, %v1077_v55  ;;  %v1156_v58 = vld [vmem:[%s9175_s5 + $0xba8] sm:$0xff] }
 0x234   :  { %4811 = vmatpush1.bf16.msra.mxu1 %v4810_v41  ;;  %4565 = vmatprep.subr.bf16.mxu0 %v4564_v46  ;;  %v4580_v41 = vpack.c.bf16 %v1100_v17, %v1092_v15  ;;  %v1091_v46 = vld [vmem:[%s9175_s5 + $0x9a0] sm:$0xff]  ;;  %v1164_v15 = vld [vmem:[%s9175_s5 + $0xbe8] sm:$0xff]  ;;  %v1158_v17 = vld [vmem:[%s9175_s5 + $0xbb8] sm:$0xff] }
 0x235   :  { %4813 = vmatprep.subr.bf16.mxu1 %v4812_v59  ;;  %v1101_v59 = vld [vmem:[%s9175_s5 + $0x9f0] sm:$0xff]  ;;  %v4582_v62 = vpack.c.bf16 %v1099_v60, %v1091_v46  ;;  %v1163_v46 = vld [vmem:[%s9175_s5 + $0xbe0] sm:$0xff] }
 0x236   :  { %v1157_v60 = vld [vmem:[%s9175_s5 + $0xbb0] sm:$0xff] }
 0x237   :  { %4567 = vmatpush1.bf16.msra.mxu0 %v4566_v2  ;;  %v4830_v2 = vpack.c.bf16 %v1101_v59, %v1093_v61  ;;  %v1172_v59 = vld [vmem:[%s9175_s5 + $0xc28] sm:$0xff] }
 0x238   :  { %4815 = vmatpush1.bf16.msra.mxu1 %v4814_v13  ;;  %4569 = vmatprep.subr.bf16.mxu0 %v4568_v18  ;;  %v4584_v13 = vpack.c.bf16 %v1116_v4, %v1108_v1  ;;  %v1107_v18 = vld [vmem:[%s9175_s5 + $0xa20] sm:$0xff]  ;;  %v1180_v1 = vld [vmem:[%s9175_s5 + $0xc68] sm:$0xff]  ;;  %v1174_v4 = vld [vmem:[%s9175_s5 + $0xc38] sm:$0xff] }
 0x239   :  { %4817 = vmatprep.subr.bf16.mxu1 %v4816_v30  ;;  %v4832_v30 = vpack.c.bf16 %v1118_v5, %v1110_v63  ;;  %v4586_v9 = vpack.c.bf16 %v1115_v24, %v1107_v18  ;;  %v1182_v63 = vld [vmem:[%s9175_s5 + $0xc78] sm:$0xff]  ;;  %v1179_v18 = vld [vmem:[%s9175_s5 + $0xc60] sm:$0xff]  ;;  %v1173_v24 = vld [vmem:[%s9175_s5 + $0xc30] sm:$0xff] }
 0x23a   :  { %2462 = vmatmul.mubr.f32.vlgmr.msra.gmra.mrb[10].mxu0 %v5939_v16  ;;  %v4848_v28 = vpack.c.bf16 %v1182_v63, %v1174_v4  ;;  %v1246_v4 = vld [vmem:[%s9175_s5 + $0xe78] sm:$0xff] }
 0x23b   :  { %2746 = vmatmul.mubr.f32.vlgmr.msra.gmra.mrb[2].mxu1 %v5939_v16  ;;  %4571 = vmatpush1.bf16.msra.mxu0 %v4570_v38  ;;  %v4824_v16 = vpack.c.bf16 %v1086_v47, %v1078_v45  ;;  %v1134_v38 = vld [vmem:[%s9175_s5 + $0xaf8] sm:$0xff]  ;;  %v4590_v47 = vpack.c.bf16 %v1131_v40, %v1123_v56  ;;  %v1195_v56 = vld [vmem:[%s9175_s5 + $0xce0] sm:$0xff]  ;;  %v1189_v40 = vld [vmem:[%s9175_s5 + $0xcb0] sm:$0xff] }
 0x23c   :  { %2532 = vmatprep.mubr.f32.mxu0 %v5974_v8  ;;  %4819 = vmatpush1.bf16.msra.mxu1 %v4818_v52  ;;  %v4588_v52 = vpack.c.bf16 %v1132_v6, %v1124_v57  ;;  %v1150_v45 = vld [vmem:[%s9175_s5 + $0xb78] sm:$0xff]  ;;  %v1196_v57 = vld [vmem:[%s9175_s5 + $0xce8] sm:$0xff] }
 0x23d   :  { %2816 = vmatprep.mubr.f32.mxu1 %v5974_v8  ;;  %4573 = vmatprep.subr.bf16.mxu0 %v4572_v7  ;;  %v1102_v8 = vld [vmem:[%s9175_s5 + $0x9f8] sm:$0xff]  ;;  %v4836_v7 = vpack.c.bf16 %v1134_v38, %v1126_v37 }
 0x23e   :  { %4821 = vmatprep.subr.bf16.mxu1 %v4820_v10  ;;  %v4828_v20 = vpack.c.bf16 %v1102_v8, %v1094_v29  ;;  %v1142_v10 = vld [vmem:[%s9175_s5 + $0xb38] sm:$0xff] }
 0x23f   :  { %4575 = vmatpush1.bf16.msra.mxu0 %v4574_v49  ;;  %v4838_v49 = vpack.c.bf16 %v1133_v12, %v1125_v11  ;;  %v4840_v55 = vpack.c.bf16 %v1150_v45, %v1142_v10  ;;  %v1166_v29 = vld [vmem:[%s9175_s5 + $0xbf8] sm:$0xff]  ;;  %v1204_v12 = vld [vmem:[%s9175_s5 + $0xd28] sm:$0xff] }
 0x240   :  { %4823 = vmatpush1.bf16.msra.mxu1 %v4822_v50  ;;  %4577 = vmatprep.subr.bf16.mxu0 %v4576_v19  ;;  %v4592_v50 = vpack.c.bf16 %v1148_v42, %v1140_v22  ;;  %v1139_v19 = vld [vmem:[%s9175_s5 + $0xb20] sm:$0xff]  ;;  %v4844_v61 = vpack.c.bf16 %v1166_v29, %v1158_v17  ;;  %v1190_v6 = vld [vmem:[%s9175_s5 + $0xcb8] sm:$0xff]  ;;  %v1212_v22 = vld [vmem:[%s9175_s5 + $0xd68] sm:$0xff] }
 0x241   :  { %4825 = vmatprep.subr.bf16.mxu1 %v4824_v16  ;;  %v1149_v16 = vld [vmem:[%s9175_s5 + $0xb70] sm:$0xff]  ;;  %v4594_v8 = vpack.c.bf16 %v1147_v51, %v1139_v19  ;;  %v1198_v37 = vld [vmem:[%s9175_s5 + $0xcf8] sm:$0xff]  ;;  %v1211_v19 = vld [vmem:[%s9175_s5 + $0xd60] sm:$0xff] }
 0x242   :  { %v4852_v11 = vpack.c.bf16 %v1198_v37, %v1190_v6  ;;  %v1206_v42 = vld [vmem:[%s9175_s5 + $0xd38] sm:$0xff]  ;;  %v1205_v51 = vld [vmem:[%s9175_s5 + $0xd30] sm:$0xff] }
 0x243   :  { %4579 = vmatpush1.bf16.msra.mxu0 %v4578_v33  ;;  %v4842_v33 = vpack.c.bf16 %v1149_v16, %v1141_v53  ;;  %v1214_v10 = vld [vmem:[%s9175_s5 + $0xd78] sm:$0xff]  ;;  %v1220_v16 = vld [vmem:[%s9175_s5 + $0xda8] sm:$0xff] }
 0x244   :  { %4827 = vmatpush1.bf16.msra.mxu1 %v4826_v0  ;;  %4581 = vmatprep.subr.bf16.mxu0 %v4580_v41  ;;  %v4596_v0 = vpack.c.bf16 %v1164_v15, %v1156_v58  ;;  %v1155_v41 = vld [vmem:[%s9175_s5 + $0xba0] sm:$0xff]  ;;  %v4856_v53 = vpack.c.bf16 %v1214_v10, %v1206_v42  ;;  %v1228_v58 = vld [vmem:[%s9175_s5 + $0xde8] sm:$0xff]  ;;  %v1222_v15 = vld [vmem:[%s9175_s5 + $0xdb8] sm:$0xff] }
 0x245   :  { %4829 = vmatprep.subr.bf16.mxu1 %v4828_v20  ;;  %v1165_v20 = vld [vmem:[%s9175_s5 + $0xbf0] sm:$0xff]  ;;  %v4598_v5 = vpack.c.bf16 %v1163_v46, %v1155_v41  ;;  %v1230_v17 = vld [vmem:[%s9175_s5 + $0xdf8] sm:$0xff]  ;;  %v1227_v41 = vld [vmem:[%s9175_s5 + $0xde0] sm:$0xff] }
 0x246   :  { %v1221_v46 = vld [vmem:[%s9175_s5 + $0xdb0] sm:$0xff]  ;;  %v1262_v6 = vld [vmem:[%s9175_s5 + $0xef8] sm:$0xff] }
 0x247   :  { %4583 = vmatpush1.bf16.msra.mxu0 %v4582_v62  ;;  %v4846_v62 = vpack.c.bf16 %v1165_v20, %v1157_v60  ;;  %v4860_v60 = vpack.c.bf16 %v1230_v17, %v1222_v15  ;;  %v1236_v20 = vld [vmem:[%s9175_s5 + $0xe28] sm:$0xff]  ;;  %v1278_v42 = vld [vmem:[%s9175_s5 + $0xf78] sm:$0xff] }
 0x248   :  { %4831 = vmatpush1.bf16.msra.mxu1 %v4830_v2  ;;  %4585 = vmatprep.subr.bf16.mxu0 %v4584_v13  ;;  %v4600_v2 = vpack.c.bf16 %v1180_v1, %v1172_v59  ;;  %v1171_v13 = vld [vmem:[%s9175_s5 + $0xc20] sm:$0xff]  ;;  %v1244_v59 = vld [vmem:[%s9175_s5 + $0xe68] sm:$0xff]  ;;  %v1238_v1 = vld [vmem:[%s9175_s5 + $0xe38] sm:$0xff] }
 0x249   :  { %4833 = vmatprep.subr.bf16.mxu1 %v4832_v30  ;;  %v1181_v30 = vld [vmem:[%s9175_s5 + $0xc70] sm:$0xff]  ;;  %v4602_v38 = vpack.c.bf16 %v1179_v18, %v1171_v13  ;;  %v1243_v13 = vld [vmem:[%s9175_s5 + $0xe60] sm:$0xff]  ;;  %v1294_v15 = vld [vmem:[%s9175_s5 + $0xff8] sm:$0xff] }
 0x24a   :  { %v1237_v18 = vld [vmem:[%s9175_s5 + $0xe30] sm:$0xff] }
 0x24b   :  { %4587 = vmatpush1.bf16.msra.mxu0 %v4586_v9  ;;  %v4850_v9 = vpack.c.bf16 %v1181_v30, %v1173_v24  ;;  %v4864_v24 = vpack.c.bf16 %v1246_v4, %v1238_v1  ;;  %v1252_v30 = vld [vmem:[%s9175_s5 + $0xea8] sm:$0xff]  ;;  %v1310_v1 = vld [vmem:[%s9175_s5 + $0x1078] sm:$0xff] }
 0x24c   :  { %4835 = vmatpush1.bf16.msra.mxu1 %v4834_v26  ;;  %4589 = vmatprep.subr.bf16.mxu0 %v4588_v52  ;;  %v4604_v26 = vpack.c.bf16 %v1196_v57, %v1188_v31  ;;  %v1187_v52 = vld [vmem:[%s9175_s5 + $0xca0] sm:$0xff]  ;;  %v1260_v31 = vld [vmem:[%s9175_s5 + $0xee8] sm:$0xff]  ;;  %v1254_v57 = vld [vmem:[%s9175_s5 + $0xeb8] sm:$0xff] }
 0x24d   :  { %4837 = vmatprep.subr.bf16.mxu1 %v4836_v7  ;;  %v1197_v7 = vld [vmem:[%s9175_s5 + $0xcf0] sm:$0xff]  ;;  %v4606_v45 = vpack.c.bf16 %v1195_v56, %v1187_v52  ;;  %v1259_v52 = vld [vmem:[%s9175_s5 + $0xee0] sm:$0xff] }
 0x24e   :  { %v1253_v56 = vld [vmem:[%s9175_s5 + $0xeb0] sm:$0xff] }
 0x24f   :  { %4591 = vmatpush1.bf16.msra.mxu0 %v4590_v47  ;;  %v4854_v47 = vpack.c.bf16 %v1197_v7, %v1189_v40  ;;  %v4868_v40 = vpack.c.bf16 %v1262_v6, %v1254_v57  ;;  %v1268_v7 = vld [vmem:[%s9175_s5 + $0xf28] sm:$0xff]  ;;  %v1318_v57 = vld [vmem:[%s9175_s5 + $0x10b8] sm:$0xff] }
 0x250   :  { %4839 = vmatpush1.bf16.msra.mxu1 %v4838_v49  ;;  %4593 = vmatprep.subr.bf16.mxu0 %v4592_v50  ;;  %v4608_v49 = vpack.c.bf16 %v1212_v22, %v1204_v12  ;;  %v1203_v50 = vld [vmem:[%s9175_s5 + $0xd20] sm:$0xff]  ;;  %v1276_v12 = vld [vmem:[%s9175_s5 + $0xf68] sm:$0xff]  ;;  %v1270_v22 = vld [vmem:[%s9175_s5 + $0xf38] sm:$0xff] }
 0x251   :  { %4841 = vmatprep.subr.bf16.mxu1 %v4840_v55  ;;  %v1213_v55 = vld [vmem:[%s9175_s5 + $0xd70] sm:$0xff]  ;;  %v4610_v29 = vpack.c.bf16 %v1211_v19, %v1203_v50  ;;  %v1275_v50 = vld [vmem:[%s9175_s5 + $0xf60] sm:$0xff]  ;;  %v1326_v6 = vld [vmem:[%s9175_s5 + $0x10f8] sm:$0xff] }
 0x252   :  { %v1269_v19 = vld [vmem:[%s9175_s5 + $0xf30] sm:$0xff] }
 0x253   :  { %4595 = vmatpush1.bf16.msra.mxu0 %v4594_v8  ;;  %v4858_v8 = vpack.c.bf16 %v1213_v55, %v1205_v51  ;;  %v4872_v51 = vpack.c.bf16 %v1278_v42, %v1270_v22  ;;  %v1284_v55 = vld [vmem:[%s9175_s5 + $0xfa8] sm:$0xff]  ;;  %v1342_v22 = vld [vmem:[%s9175_s5 + $0x1178] sm:$0xff] }
 0x254   :  { %4843 = vmatpush1.bf16.msra.mxu1 %v4842_v33  ;;  %4597 = vmatprep.subr.bf16.mxu0 %v4596_v0  ;;  %v4612_v33 = vpack.c.bf16 %v1228_v58, %v1220_v16  ;;  %v1219_v0 = vld [vmem:[%s9175_s5 + $0xda0] sm:$0xff]  ;;  %v1292_v16 = vld [vmem:[%s9175_s5 + $0xfe8] sm:$0xff]  ;;  %v1286_v58 = vld [vmem:[%s9175_s5 + $0xfb8] sm:$0xff] }
 0x255   :  { %4845 = vmatprep.subr.bf16.mxu1 %v4844_v61  ;;  %v1229_v61 = vld [vmem:[%s9175_s5 + $0xdf0] sm:$0xff]  ;;  %v4614_v63 = vpack.c.bf16 %v1227_v41, %v1219_v0  ;;  %v1291_v0 = vld [vmem:[%s9175_s5 + $0xfe0] sm:$0xff] }
 0x256   :  { %v1285_v41 = vld [vmem:[%s9175_s5 + $0xfb0] sm:$0xff] }
 0x257   :  { %4599 = vmatpush1.bf16.msra.mxu0 %v4598_v5  ;;  %v4862_v5 = vpack.c.bf16 %v1229_v61, %v1221_v46  ;;  %v4876_v46 = vpack.c.bf16 %v1294_v15, %v1286_v58  ;;  %v1300_v61 = vld [vmem:[%s9175_s5 + $0x1028] sm:$0xff] }
 0x258   :  { %4847 = vmatpush1.bf16.msra.mxu1 %v4846_v62  ;;  %4601 = vmatprep.subr.bf16.mxu0 %v4600_v2  ;;  %v4616_v62 = vpack.c.bf16 %v1244_v59, %v1236_v20  ;;  %v1235_v2 = vld [vmem:[%s9175_s5 + $0xe20] sm:$0xff]  ;;  %v1308_v20 = vld [vmem:[%s9175_s5 + $0x1068] sm:$0xff]  ;;  %v1302_v59 = vld [vmem:[%s9175_s5 + $0x1038] sm:$0xff] }
 0x259   :  { %4849 = vmatprep.subr.bf16.mxu1 %v4848_v28  ;;  %v1245_v28 = vld [vmem:[%s9175_s5 + $0xe70] sm:$0xff]  ;;  %v4618_v37 = vpack.c.bf16 %v1243_v13, %v1235_v2  ;;  %v1307_v2 = vld [vmem:[%s9175_s5 + $0x1060] sm:$0xff]  ;;  %v4880_v13 = vpack.c.bf16 %v1310_v1, %v1302_v59 }
 0x25b   :  { %4603 = vmatpush1.bf16.msra.mxu0 %v4602_v38  ;;  %v4866_v38 = vpack.c.bf16 %v1245_v28, %v1237_v18  ;;  %v1301_v18 = vld [vmem:[%s9175_s5 + $0x1030] sm:$0xff]  ;;  %v1316_v28 = vld [vmem:[%s9175_s5 + $0x10a8] sm:$0xff] }
 0x25c   :  { %4851 = vmatpush1.bf16.msra.mxu1 %v4850_v9  ;;  %4605 = vmatprep.subr.bf16.mxu0 %v4604_v26  ;;  %v4620_v9 = vpack.c.bf16 %v1260_v31, %v1252_v30  ;;  %v1251_v26 = vld [vmem:[%s9175_s5 + $0xea0] sm:$0xff]  ;;  %v1324_v30 = vld [vmem:[%s9175_s5 + $0x10e8] sm:$0xff] }
 0x25d   :  { %4853 = vmatprep.subr.bf16.mxu1 %v4852_v11  ;;  %v1261_v11 = vld [vmem:[%s9175_s5 + $0xef0] sm:$0xff]  ;;  %v4622_v10 = vpack.c.bf16 %v1259_v52, %v1251_v26  ;;  %v4636_v52 = vpack.c.bf16 %v1324_v30, %v1316_v28  ;;  %v1390_v28 = vld [vmem:[%s9175_s5 + $0x12f8] sm:$0xff] }
 0x25e   :  { %v1317_v26 = vld [vmem:[%s9175_s5 + $0x10b0] sm:$0xff] }
 0x25f   :  { %4607 = vmatpush1.bf16.msra.mxu0 %v4606_v45  ;;  %v4870_v45 = vpack.c.bf16 %v1261_v11, %v1253_v56  ;;  %v1325_v56 = vld [vmem:[%s9175_s5 + $0x10f0] sm:$0xff]  ;;  %v1340_v11 = vld [vmem:[%s9175_s5 + $0x1168] sm:$0xff] }
 0x260   :  { %4855 = vmatpush1.bf16.msra.mxu1 %v4854_v47  ;;  %4609 = vmatprep.subr.bf16.mxu0 %v4608_v49  ;;  %v4624_v47 = vpack.c.bf16 %v1276_v12, %v1268_v7  ;;  %v1267_v49 = vld [vmem:[%s9175_s5 + $0xf20] sm:$0xff]  ;;  %v4884_v7 = vpack.c.bf16 %v1326_v6, %v1318_v57  ;;  %v1334_v12 = vld [vmem:[%s9175_s5 + $0x1138] sm:$0xff] }
 0x261   :  { %4857 = vmatprep.subr.bf16.mxu1 %v4856_v53  ;;  %v1277_v53 = vld [vmem:[%s9175_s5 + $0xf70] sm:$0xff]  ;;  %v4626_v17 = vpack.c.bf16 %v1275_v50, %v1267_v49  ;;  %v1339_v49 = vld [vmem:[%s9175_s5 + $0x1160] sm:$0xff] }
 0x262   :  { %v1333_v50 = vld [vmem:[%s9175_s5 + $0x1130] sm:$0xff]  ;;  %v1379_v6 = vld [vmem:[%s9175_s5 + $0x12a0] sm:$0xff] }
 0x263   :  { %4611 = vmatpush1.bf16.msra.mxu0 %v4610_v29  ;;  %v4874_v29 = vpack.c.bf16 %v1277_v53, %v1269_v19  ;;  %v1341_v19 = vld [vmem:[%s9175_s5 + $0x1170] sm:$0xff]  ;;  %v1356_v53 = vld [vmem:[%s9175_s5 + $0x11e8] sm:$0xff] }
 0x264   :  { %4859 = vmatpush1.bf16.msra.mxu1 %v4858_v8  ;;  %4613 = vmatprep.subr.bf16.mxu0 %v4612_v33  ;;  %v4628_v8 = vpack.c.bf16 %v1292_v16, %v1284_v55  ;;  %v1283_v33 = vld [vmem:[%s9175_s5 + $0xfa0] sm:$0xff]  ;;  %v1350_v55 = vld [vmem:[%s9175_s5 + $0x11b8] sm:$0xff]  ;;  %v4890_v58 = vpack.c.bf16 %v1341_v19, %v1333_v50  ;;  %v1412_v50 = vld [vmem:[%s9175_s5 + $0x13a8] sm:$0xff] }
 0x265   :  { %4861 = vmatprep.subr.bf16.mxu1 %v4860_v60  ;;  %v1293_v60 = vld [vmem:[%s9175_s5 + $0xff0] sm:$0xff]  ;;  %v4630_v4 = vpack.c.bf16 %v1291_v0, %v1283_v33  ;;  %v1414_v19 = vld [vmem:[%s9175_s5 + $0x13b8] sm:$0xff] }
 0x266   :  { %v1357_v0 = vld [vmem:[%s9175_s5 + $0x11f0] sm:$0xff] }
 0x267   :  { %4615 = vmatpush1.bf16.msra.mxu0 %v4614_v63  ;;  %v4878_v63 = vpack.c.bf16 %v1293_v60, %v1285_v41  ;;  %v1364_v41 = vld [vmem:[%s9175_s5 + $0x1228] sm:$0xff]  ;;  %v1366_v60 = vld [vmem:[%s9175_s5 + $0x1238] sm:$0xff] }
 0x268   :  { %4863 = vmatpush1.bf16.msra.mxu1 %v4862_v5  ;;  %4617 = vmatprep.subr.bf16.mxu0 %v4616_v62  ;;  %v4632_v5 = vpack.c.bf16 %v1308_v20, %v1300_v61  ;;  %v1299_v62 = vld [vmem:[%s9175_s5 + $0x1020] sm:$0xff]  ;;  %v1374_v61 = vld [vmem:[%s9175_s5 + $0x1278] sm:$0xff] }
 0x269   :  { %4865 = vmatprep.subr.bf16.mxu1 %v4864_v24  ;;  %v1309_v24 = vld [vmem:[%s9175_s5 + $0x1070] sm:$0xff]  ;;  %v4634_v31 = vpack.c.bf16 %v1307_v2, %v1299_v62  ;;  %v4896_v62 = vpack.c.bf16 %v1374_v61, %v1366_v60 }
 0x26a   :  { %v1373_v2 = vld [vmem:[%s9175_s5 + $0x1270] sm:$0xff] }
 0x26b   :  { %4619 = vmatpush1.bf16.msra.mxu0 %v4618_v37  ;;  %v4882_v37 = vpack.c.bf16 %v1309_v24, %v1301_v18  ;;  %v1388_v18 = vld [vmem:[%s9175_s5 + $0x12e8] sm:$0xff]  ;;  %v1382_v24 = vld [vmem:[%s9175_s5 + $0x12b8] sm:$0xff] }
 0x26c   :  { %4867 = vmatpush1.bf16.msra.mxu1 %v4866_v38  ;;  %4621 = vmatprep.subr.bf16.mxu0 %v4620_v9  ;;  %v1315_v38 = vld [vmem:[%s9175_s5 + $0x10a0] sm:$0xff] }
 0x26d   :  { %4869 = vmatprep.subr.bf16.mxu1 %v4868_v40  ;;  %v1323_v9 = vld [vmem:[%s9175_s5 + $0x10e0] sm:$0xff]  ;;  %v1332_v40 = vld [vmem:[%s9175_s5 + $0x1128] sm:$0xff] }
 0x26e   :  { %v4638_v42 = vpack.c.bf16 %v1323_v9, %v1315_v38  ;;  %v1381_v38 = vld [vmem:[%s9175_s5 + $0x12b0] sm:$0xff]  ;;  %v4900_v9 = vpack.c.bf16 %v1390_v28, %v1382_v24 }
 0x26f   :  { %4623 = vmatpush1.bf16.msra.mxu0 %v4622_v10  ;;  %v4886_v10 = vpack.c.bf16 %v1325_v56, %v1317_v26  ;;  %v1389_v26 = vld [vmem:[%s9175_s5 + $0x12f0] sm:$0xff]  ;;  %v1404_v56 = vld [vmem:[%s9175_s5 + $0x1368] sm:$0xff] }
 0x270   :  { %4871 = vmatpush1.bf16.msra.mxu1 %v4870_v45  ;;  %4625 = vmatprep.subr.bf16.mxu0 %v4624_v47  ;;  %v4640_v45 = vpack.c.bf16 %v1340_v11, %v1332_v40  ;;  %v1331_v47 = vld [vmem:[%s9175_s5 + $0x1120] sm:$0xff]  ;;  %v1398_v40 = vld [vmem:[%s9175_s5 + $0x1338] sm:$0xff] }
 0x271   :  { %4873 = vmatprep.subr.bf16.mxu1 %v4872_v51  ;;  %v1348_v51 = vld [vmem:[%s9175_s5 + $0x11a8] sm:$0xff]  ;;  %v4642_v16 = vpack.c.bf16 %v1339_v49, %v1331_v47  ;;  %v1406_v11 = vld [vmem:[%s9175_s5 + $0x1378] sm:$0xff]  ;;  %v1405_v49 = vld [vmem:[%s9175_s5 + $0x1370] sm:$0xff] }
 0x272   :  { %v4644_v15 = vpack.c.bf16 %v1356_v53, %v1348_v51  ;;  %v4904_v47 = vpack.c.bf16 %v1406_v11, %v1398_v40  ;;  %v1422_v51 = vld [vmem:[%s9175_s5 + $0x13f8] sm:$0xff] }
 0x273   :  { %4627 = vmatpush1.bf16.msra.mxu0 %v4626_v17  ;;  %v1347_v17 = vld [vmem:[%s9175_s5 + $0x11a0] sm:$0xff] }
 0x274   :  { %4875 = vmatpush1.bf16.msra.mxu1 %v4874_v29  ;;  %4629 = vmatprep.subr.bf16.mxu0 %v4628_v8  ;;  %v1355_v29 = vld [vmem:[%s9175_s5 + $0x11e0] sm:$0xff]  ;;  %v1349_v8 = vld [vmem:[%s9175_s5 + $0x11b0] sm:$0xff] }
 0x275   :  { %4877 = vmatprep.subr.bf16.mxu1 %v4876_v46  ;;  %v1372_v46 = vld [vmem:[%s9175_s5 + $0x1268] sm:$0xff]  ;;  %v4646_v20 = vpack.c.bf16 %v1355_v29, %v1347_v17  ;;  %v4894_v59 = vpack.c.bf16 %v1357_v0, %v1349_v8  ;;  %v4908_v17 = vpack.c.bf16 %v1422_v51, %v1414_v19  ;;  %v1421_v29 = vld [vmem:[%s9175_s5 + $0x13f0] sm:$0xff]  ;;  %v1430_v0 = vld [vmem:[%s9175_s5 + $0x1438] sm:$0xff] }
 0x276   :  { %v4648_v1 = vpack.c.bf16 %v1372_v46, %v1364_v41  ;;  %v1428_v8 = vld [vmem:[%s9175_s5 + $0x1428] sm:$0xff]  ;;  %v1438_v41 = vld [vmem:[%s9175_s5 + $0x1478] sm:$0xff] }
 0x277   :  { %4631 = vmatpush1.bf16.msra.mxu0 %v4630_v4  ;;  %v1363_v4 = vld [vmem:[%s9175_s5 + $0x1220] sm:$0xff] }
 0x278   :  { %4879 = vmatpush1.bf16.msra.mxu1 %v4878_v63  ;;  %4633 = vmatprep.subr.bf16.mxu0 %v4632_v5  ;;  %v1371_v63 = vld [vmem:[%s9175_s5 + $0x1260] sm:$0xff]  ;;  %v1365_v5 = vld [vmem:[%s9175_s5 + $0x1230] sm:$0xff] }
 0x279   :  { %4881 = vmatprep.subr.bf16.mxu1 %v4880_v13  ;;  %v1380_v13 = vld [vmem:[%s9175_s5 + $0x12a8] sm:$0xff]  ;;  %v4650_v30 = vpack.c.bf16 %v1371_v63, %v1363_v4  ;;  %v4912_v4 = vpack.c.bf16 %v1438_v41, %v1430_v0  ;;  %v1437_v63 = vld [vmem:[%s9175_s5 + $0x1470] sm:$0xff] }
 0x27a   :  { %2533 = vmatmul.mubr.f32.vlgmr.msra.gmra.mrb[10].mxu0 %v6341_v34  ;;  %v4652_v57 = vpack.c.bf16 %v1388_v18, %v1380_v13  ;;  %v1454_v13 = vld [vmem:[%s9175_s5 + $0x14f8] sm:$0xff] }
 0x27b   :  { %2817 = vmatmul.mubr.f32.vlgmr.msra.gmra.mrb[2].mxu1 %v6341_v34  ;;  %4635 = vmatpush1.bf16.msra.mxu0 %v4634_v31  ;;  %v4888_v34 = vpack.c.bf16 %v1342_v22, %v1334_v12  ;;  %v4898_v31 = vpack.c.bf16 %v1373_v2, %v1365_v5  ;;  %v4902_v12 = vpack.c.bf16 %v1389_v26, %v1381_v38  ;;  %v1444_v5 = vld [vmem:[%s9175_s5 + $0x14a8] sm:$0xff]  ;;  %v1446_v2 = vld [vmem:[%s9175_s5 + $0x14b8] sm:$0xff] }
 0x27c   :  { %2603 = vmatprep.mubr.f32.mxu0 %v6353_v36  ;;  %4883 = vmatpush1.bf16.msra.mxu1 %v4882_v37  ;;  %v1387_v37 = vld [vmem:[%s9175_s5 + $0x12e0] sm:$0xff]  ;;  %v1460_v38 = vld [vmem:[%s9175_s5 + $0x1528] sm:$0xff]  ;;  %v1462_v26 = vld [vmem:[%s9175_s5 + $0x1538] sm:$0xff] }
 0x27d   :  { %2887 = vmatprep.mubr.f32.mxu1 %v6353_v36  ;;  %4637 = vmatprep.subr.bf16.mxu0 %v4636_v52  ;;  %v1358_v36 = vld [vmem:[%s9175_s5 + $0x11f8] sm:$0xff]  ;;  %v1396_v52 = vld [vmem:[%s9175_s5 + $0x1328] sm:$0xff] }
 0x27e   :  { %4885 = vmatprep.subr.bf16.mxu1 %v4884_v7  ;;  %v4892_v33 = vpack.c.bf16 %v1358_v36, %v1350_v55  ;;  %v4654_v7 = vpack.c.bf16 %v1387_v37, %v1379_v6  ;;  %v4656_v22 = vpack.c.bf16 %v1404_v56, %v1396_v52  ;;  %v4916_v6 = vpack.c.bf16 %v1454_v13, %v1446_v2  ;;  %v1453_v37 = vld [vmem:[%s9175_s5 + $0x14f0] sm:$0xff]  ;;  %v1470_v52 = vld [vmem:[%s9175_s5 + $0x1578] sm:$0xff] }
 0x27f   :  { %4639 = vmatpush1.bf16.msra.mxu0 %v4638_v42  ;;  %v1395_v42 = vld [vmem:[%s9175_s5 + $0x1320] sm:$0xff] }
 0x280   :  { %4887 = vmatpush1.bf16.msra.mxu1 %v4886_v10  ;;  %4641 = vmatprep.subr.bf16.mxu0 %v4640_v45  ;;  %v1403_v10 = vld [vmem:[%s9175_s5 + $0x1360] sm:$0xff]  ;;  %v1397_v45 = vld [vmem:[%s9175_s5 + $0x1330] sm:$0xff] }
 0x281   :  { %4889 = vmatprep.subr.bf16.mxu1 %v4888_v34  ;;  %v1420_v34 = vld [vmem:[%s9175_s5 + $0x13e8] sm:$0xff]  ;;  %v4658_v53 = vpack.c.bf16 %v1403_v10, %v1395_v42  ;;  %v4906_v55 = vpack.c.bf16 %v1405_v49, %v1397_v45  ;;  %v4920_v42 = vpack.c.bf16 %v1470_v52, %v1462_v26  ;;  %v1469_v10 = vld [vmem:[%s9175_s5 + $0x1570] sm:$0xff]  ;;  %v1478_v49 = vld [vmem:[%s9175_s5 + $0x15b8] sm:$0xff] }
 0x282   :  { %v4660_v36 = vpack.c.bf16 %v1420_v34, %v1412_v50  ;;  %v1476_v45 = vld [vmem:[%s9175_s5 + $0x15a8] sm:$0xff]  ;;  %v1486_v50 = vld [vmem:[%s9175_s5 + $0x15f8] sm:$0xff] }
 0x283   :  { %4643 = vmatpush1.bf16.msra.mxu0 %v4642_v16  ;;  %v1411_v16 = vld [vmem:[%s9175_s5 + $0x13a0] sm:$0xff] }
 0x284   :  { %4891 = vmatpush1.bf16.msra.mxu1 %v4890_v58  ;;  %4645 = vmatprep.subr.bf16.mxu0 %v4644_v15  ;;  %v1419_v58 = vld [vmem:[%s9175_s5 + $0x13e0] sm:$0xff]  ;;  %v1413_v15 = vld [vmem:[%s9175_s5 + $0x13b0] sm:$0xff] }
 0x285   :  { %4893 = vmatprep.subr.bf16.mxu1 %v4892_v33  ;;  %v1436_v33 = vld [vmem:[%s9175_s5 + $0x1468] sm:$0xff]  ;;  %v4662_v46 = vpack.c.bf16 %v1419_v58, %v1411_v16  ;;  %v4910_v60 = vpack.c.bf16 %v1421_v29, %v1413_v15  ;;  %v4924_v16 = vpack.c.bf16 %v1486_v50, %v1478_v49  ;;  %v1485_v58 = vld [vmem:[%s9175_s5 + $0x15f0] sm:$0xff]  ;;  %v1494_v29 = vld [vmem:[%s9175_s5 + $0x1638] sm:$0xff] }
 0x286   :  { %v4664_v61 = vpack.c.bf16 %v1436_v33, %v1428_v8  ;;  %v1492_v15 = vld [vmem:[%s9175_s5 + $0x1628] sm:$0xff]  ;;  %v1502_v8 = vld [vmem:[%s9175_s5 + $0x1678] sm:$0xff] }
 0x287   :  { %4647 = vmatpush1.bf16.msra.mxu0 %v4646_v20  ;;  %v1427_v20 = vld [vmem:[%s9175_s5 + $0x1420] sm:$0xff] }
 0x288   :  { %4895 = vmatpush1.bf16.msra.mxu1 %v4894_v59  ;;  %4649 = vmatprep.subr.bf16.mxu0 %v4648_v1  ;;  %v1435_v59 = vld [vmem:[%s9175_s5 + $0x1460] sm:$0xff]  ;;  %v1429_v1 = vld [vmem:[%s9175_s5 + $0x1430] sm:$0xff] }
 0x289   :  { %4897 = vmatprep.subr.bf16.mxu1 %v4896_v62  ;;  %v1452_v62 = vld [vmem:[%s9175_s5 + $0x14e8] sm:$0xff]  ;;  %v4666_v18 = vpack.c.bf16 %v1435_v59, %v1427_v20  ;;  %v4914_v24 = vpack.c.bf16 %v1437_v63, %v1429_v1  ;;  %v4928_v20 = vpack.c.bf16 %v1502_v8, %v1494_v29  ;;  %v1501_v59 = vld [vmem:[%s9175_s5 + $0x1670] sm:$0xff]  ;;  %v1510_v63 = vld [vmem:[%s9175_s5 + $0x16b8] sm:$0xff] }
 0x28a   :  { %v4668_v28 = vpack.c.bf16 %v1452_v62, %v1444_v5  ;;  %v1508_v1 = vld [vmem:[%s9175_s5 + $0x16a8] sm:$0xff]  ;;  %v1518_v5 = vld [vmem:[%s9175_s5 + $0x16f8] sm:$0xff] }
 0x28b   :  { %4651 = vmatpush1.bf16.msra.mxu0 %v4650_v30  ;;  %v1443_v30 = vld [vmem:[%s9175_s5 + $0x14a0] sm:$0xff] }
 0x28c   :  { %4899 = vmatpush1.bf16.msra.mxu1 %v4898_v31  ;;  %4653 = vmatprep.subr.bf16.mxu0 %v4652_v57  ;;  %v1451_v31 = vld [vmem:[%s9175_s5 + $0x14e0] sm:$0xff]  ;;  %v1445_v57 = vld [vmem:[%s9175_s5 + $0x14b0] sm:$0xff] }
 0x28d   :  { %4901 = vmatprep.subr.bf16.mxu1 %v4900_v9  ;;  %v1468_v9 = vld [vmem:[%s9175_s5 + $0x1568] sm:$0xff]  ;;  %v4670_v56 = vpack.c.bf16 %v1451_v31, %v1443_v30  ;;  %v4918_v40 = vpack.c.bf16 %v1453_v37, %v1445_v57  ;;  %v4932_v30 = vpack.c.bf16 %v1518_v5, %v1510_v63  ;;  %v1517_v31 = vld [vmem:[%s9175_s5 + $0x16f0] sm:$0xff]  ;;  %v1526_v37 = vld [vmem:[%s9175_s5 + $0x1738] sm:$0xff] }
 0x28e   :  { %v4672_v11 = vpack.c.bf16 %v1468_v9, %v1460_v38  ;;  %v1524_v57 = vld [vmem:[%s9175_s5 + $0x1728] sm:$0xff]  ;;  %v1534_v38 = vld [vmem:[%s9175_s5 + $0x1778] sm:$0xff]  ;;  %v1571_v5 = vld [vmem:[%s9175_s5 + $0x18a0] sm:$0xff] }
 0x28f   :  { %4655 = vmatpush1.bf16.msra.mxu0 %v4654_v7  ;;  %v1459_v7 = vld [vmem:[%s9175_s5 + $0x1520] sm:$0xff] }
 0x290   :  { %4903 = vmatpush1.bf16.msra.mxu1 %v4902_v12  ;;  %4657 = vmatprep.subr.bf16.mxu0 %v4656_v22  ;;  %v1467_v12 = vld [vmem:[%s9175_s5 + $0x1560] sm:$0xff]  ;;  %v1461_v22 = vld [vmem:[%s9175_s5 + $0x1530] sm:$0xff] }
 0x291   :  { %4905 = vmatprep.subr.bf16.mxu1 %v4904_v47  ;;  %v1484_v47 = vld [vmem:[%s9175_s5 + $0x15e8] sm:$0xff]  ;;  %v4674_v34 = vpack.c.bf16 %v1467_v12, %v1459_v7  ;;  %v4922_v19 = vpack.c.bf16 %v1469_v10, %v1461_v22  ;;  %v4936_v7 = vpack.c.bf16 %v1534_v38, %v1526_v37  ;;  %v1533_v12 = vld [vmem:[%s9175_s5 + $0x1770] sm:$0xff]  ;;  %v1542_v10 = vld [vmem:[%s9175_s5 + $0x17b8] sm:$0xff] }
 0x292   :  { %v4676_v51 = vpack.c.bf16 %v1484_v47, %v1476_v45  ;;  %v1540_v22 = vld [vmem:[%s9175_s5 + $0x17a8] sm:$0xff]  ;;  %v1550_v45 = vld [vmem:[%s9175_s5 + $0x17f8] sm:$0xff] }
 0x293   :  { %4659 = vmatpush1.bf16.msra.mxu0 %v4658_v53  ;;  %v1475_v53 = vld [vmem:[%s9175_s5 + $0x15a0] sm:$0xff] }
 0x294   :  { %4907 = vmatpush1.bf16.msra.mxu1 %v4906_v55  ;;  %4661 = vmatprep.subr.bf16.mxu0 %v4660_v36  ;;  %v1483_v55 = vld [vmem:[%s9175_s5 + $0x15e0] sm:$0xff]  ;;  %v1477_v36 = vld [vmem:[%s9175_s5 + $0x15b0] sm:$0xff] }
 0x295   :  { %4909 = vmatprep.subr.bf16.mxu1 %v4908_v17  ;;  %v1500_v17 = vld [vmem:[%s9175_s5 + $0x1668] sm:$0xff]  ;;  %v4678_v33 = vpack.c.bf16 %v1483_v55, %v1475_v53  ;;  %v4926_v0 = vpack.c.bf16 %v1485_v58, %v1477_v36  ;;  %v4940_v53 = vpack.c.bf16 %v1550_v45, %v1542_v10  ;;  %v1549_v55 = vld [vmem:[%s9175_s5 + $0x17f0] sm:$0xff]  ;;  %v1558_v58 = vld [vmem:[%s9175_s5 + $0x1838] sm:$0xff] }
 0x296   :  { %v4680_v41 = vpack.c.bf16 %v1500_v17, %v1492_v15  ;;  %v1556_v36 = vld [vmem:[%s9175_s5 + $0x1828] sm:$0xff]  ;;  %v1566_v15 = vld [vmem:[%s9175_s5 + $0x1878] sm:$0xff]  ;;  %v1603_v10 = vld [vmem:[%s9175_s5 + $0x19a0] sm:$0xff] }
 0x297   :  { %4663 = vmatpush1.bf16.msra.mxu0 %v4662_v46  ;;  %v1491_v46 = vld [vmem:[%s9175_s5 + $0x1620] sm:$0xff] }
 0x298   :  { %4911 = vmatpush1.bf16.msra.mxu1 %v4910_v60  ;;  %4665 = vmatprep.subr.bf16.mxu0 %v4664_v61  ;;  %v1499_v60 = vld [vmem:[%s9175_s5 + $0x1660] sm:$0xff]  ;;  %v1493_v61 = vld [vmem:[%s9175_s5 + $0x1630] sm:$0xff] }
 0x299   :  { %4913 = vmatprep.subr.bf16.mxu1 %v4912_v4  ;;  %v1516_v4 = vld [vmem:[%s9175_s5 + $0x16e8] sm:$0xff]  ;;  %v4682_v62 = vpack.c.bf16 %v1499_v60, %v1491_v46  ;;  %v4930_v2 = vpack.c.bf16 %v1501_v59, %v1493_v61  ;;  %v1557_v46 = vld [vmem:[%s9175_s5 + $0x1830] sm:$0xff]  ;;  %v1611_v45 = vld [vmem:[%s9175_s5 + $0x19e0] sm:$0xff] }
 0x29a   :  { %v4684_v13 = vpack.c.bf16 %v1516_v4, %v1508_v1  ;;  %v1565_v60 = vld [vmem:[%s9175_s5 + $0x1870] sm:$0xff]  ;;  %v1572_v61 = vld [vmem:[%s9175_s5 + $0x18a8] sm:$0xff]  ;;  %v1574_v1 = vld [vmem:[%s9175_s5 + $0x18b8] sm:$0xff] }
 0x29b   :  { %4667 = vmatpush1.bf16.msra.mxu0 %v4666_v18  ;;  %v1507_v18 = vld [vmem:[%s9175_s5 + $0x16a0] sm:$0xff]  ;;  %v1582_v4 = vld [vmem:[%s9175_s5 + $0x18f8] sm:$0xff]  ;;  %v4946_v63 = vpack.c.bf16 %v1565_v60, %v1557_v46 }
 0x29c   :  { %4915 = vmatpush1.bf16.msra.mxu1 %v4914_v24  ;;  %4669 = vmatprep.subr.bf16.mxu0 %v4668_v28  ;;  %v1515_v24 = vld [vmem:[%s9175_s5 + $0x16e0] sm:$0xff]  ;;  %v1509_v28 = vld [vmem:[%s9175_s5 + $0x16b0] sm:$0xff]  ;;  %v1646_v46 = vld [vmem:[%s9175_s5 + $0x1af8] sm:$0xff] }
 0x29d   :  { %4917 = vmatprep.subr.bf16.mxu1 %v4916_v6  ;;  %v1532_v6 = vld [vmem:[%s9175_s5 + $0x1768] sm:$0xff]  ;;  %v4686_v9 = vpack.c.bf16 %v1515_v24, %v1507_v18  ;;  %v4934_v26 = vpack.c.bf16 %v1517_v31, %v1509_v28  ;;  %v1581_v18 = vld [vmem:[%s9175_s5 + $0x18f0] sm:$0xff]  ;;  %v1590_v31 = vld [vmem:[%s9175_s5 + $0x1938] sm:$0xff] }
 0x29e   :  { %v4688_v52 = vpack.c.bf16 %v1532_v6, %v1524_v57  ;;  %v1588_v24 = vld [vmem:[%s9175_s5 + $0x1928] sm:$0xff]  ;;  %v1598_v57 = vld [vmem:[%s9175_s5 + $0x1978] sm:$0xff] }
 0x29f   :  { %4671 = vmatpush1.bf16.msra.mxu0 %v4670_v56  ;;  %v1523_v56 = vld [vmem:[%s9175_s5 + $0x1720] sm:$0xff]  ;;  %v1596_v28 = vld [vmem:[%s9175_s5 + $0x1968] sm:$0xff] }
 0x2a0   :  { %4919 = vmatpush1.bf16.msra.mxu1 %v4918_v40  ;;  %4673 = vmatprep.subr.bf16.mxu0 %v4672_v11  ;;  %v1531_v40 = vld [vmem:[%s9175_s5 + $0x1760] sm:$0xff]  ;;  %v1525_v11 = vld [vmem:[%s9175_s5 + $0x1730] sm:$0xff]  ;;  %v4704_v38 = vpack.c.bf16 %v1596_v28, %v1588_v24 }
 0x2a1   :  { %4921 = vmatprep.subr.bf16.mxu1 %v4920_v42  ;;  %v1548_v42 = vld [vmem:[%s9175_s5 + $0x17e8] sm:$0xff]  ;;  %v4690_v47 = vpack.c.bf16 %v1531_v40, %v1523_v56  ;;  %v4938_v49 = vpack.c.bf16 %v1533_v12, %v1525_v11  ;;  %v1597_v56 = vld [vmem:[%s9175_s5 + $0x1970] sm:$0xff] }
 0x2a2   :  { %v4692_v50 = vpack.c.bf16 %v1548_v42, %v1540_v22  ;;  %v1604_v40 = vld [vmem:[%s9175_s5 + $0x19a8] sm:$0xff] }
 0x2a3   :  { %4675 = vmatpush1.bf16.msra.mxu0 %v4674_v34  ;;  %v1539_v34 = vld [vmem:[%s9175_s5 + $0x17a0] sm:$0xff]  ;;  %v1612_v11 = vld [vmem:[%s9175_s5 + $0x19e8] sm:$0xff] }
 0x2a4   :  { %4923 = vmatpush1.bf16.msra.mxu1 %v4922_v19  ;;  %4677 = vmatprep.subr.bf16.mxu0 %v4676_v51  ;;  %v1547_v19 = vld [vmem:[%s9175_s5 + $0x17e0] sm:$0xff]  ;;  %v1541_v51 = vld [vmem:[%s9175_s5 + $0x17b0] sm:$0xff]  ;;  %v4708_v42 = vpack.c.bf16 %v1612_v11, %v1604_v40  ;;  %v1670_v11 = vld [vmem:[%s9175_s5 + $0x1bb8] sm:$0xff] }
 0x2a5   :  { %4925 = vmatprep.subr.bf16.mxu1 %v4924_v16  ;;  %v1564_v16 = vld [vmem:[%s9175_s5 + $0x1868] sm:$0xff]  ;;  %v4694_v17 = vpack.c.bf16 %v1547_v19, %v1539_v34  ;;  %v4942_v29 = vpack.c.bf16 %v1549_v55, %v1541_v51  ;;  %v1622_v51 = vld [vmem:[%s9175_s5 + $0x1a38] sm:$0xff]  ;;  %v4710_v55 = vpack.c.bf16 %v1611_v45, %v1603_v10  ;;  %v1675_v10 = vld [vmem:[%s9175_s5 + $0x1be0] sm:$0xff] }
 0x2a6   :  { %v4696_v8 = vpack.c.bf16 %v1564_v16, %v1556_v36  ;;  %v1620_v34 = vld [vmem:[%s9175_s5 + $0x1a28] sm:$0xff]  ;;  %v1669_v45 = vld [vmem:[%s9175_s5 + $0x1bb0] sm:$0xff] }
 0x2a7   :  { %4679 = vmatpush1.bf16.msra.mxu0 %v4678_v33  ;;  %v1555_v33 = vld [vmem:[%s9175_s5 + $0x1820] sm:$0xff]  ;;  %v1628_v19 = vld [vmem:[%s9175_s5 + $0x1a68] sm:$0xff] }
 0x2a8   :  { %4927 = vmatpush1.bf16.msra.mxu1 %v4926_v0  ;;  %4681 = vmatprep.subr.bf16.mxu0 %v4680_v41  ;;  %v1563_v0 = vld [vmem:[%s9175_s5 + $0x1860] sm:$0xff]  ;;  %v4944_v41 = vpack.c.bf16 %v1566_v15, %v1558_v58  ;;  %v4712_v16 = vpack.c.bf16 %v1628_v19, %v1620_v34  ;;  %v1692_v34 = vld [vmem:[%s9175_s5 + $0x1c68] sm:$0xff]  ;;  %v1686_v19 = vld [vmem:[%s9175_s5 + $0x1c38] sm:$0xff] }
 0x2a9   :  { %4929 = vmatprep.subr.bf16.mxu1 %v4928_v20  ;;  %v1580_v20 = vld [vmem:[%s9175_s5 + $0x18e8] sm:$0xff]  ;;  %v4698_v59 = vpack.c.bf16 %v1563_v0, %v1555_v33  ;;  %v1619_v58 = vld [vmem:[%s9175_s5 + $0x1a20] sm:$0xff] }
 0x2aa   :  { %v1627_v15 = vld [vmem:[%s9175_s5 + $0x1a60] sm:$0xff]  ;;  %v1636_v33 = vld [vmem:[%s9175_s5 + $0x1aa8] sm:$0xff] }
 0x2ab   :  { %4683 = vmatpush1.bf16.msra.mxu0 %v4682_v62  ;;  %v1579_v62 = vld [vmem:[%s9175_s5 + $0x18e0] sm:$0xff]  ;;  %v1644_v0 = vld [vmem:[%s9175_s5 + $0x1ae8] sm:$0xff]  ;;  %v4714_v60 = vpack.c.bf16 %v1627_v15, %v1619_v58  ;;  %v1685_v15 = vld [vmem:[%s9175_s5 + $0x1c30] sm:$0xff] }
 0x2ac   :  { %4931 = vmatpush1.bf16.msra.mxu1 %v4930_v2  ;;  %4685 = vmatprep.subr.bf16.mxu0 %v4684_v13  ;;  %v1573_v2 = vld [vmem:[%s9175_s5 + $0x18b0] sm:$0xff]  ;;  %v4700_v13 = vpack.c.bf16 %v1580_v20, %v1572_v61  ;;  %v4702_v6 = vpack.c.bf16 %v1579_v62, %v1571_v5  ;;  %v4716_v20 = vpack.c.bf16 %v1644_v0, %v1636_v33  ;;  %v1652_v62 = vld [vmem:[%s9175_s5 + $0x1b28] sm:$0xff]  ;;  %v1691_v58 = vld [vmem:[%s9175_s5 + $0x1c60] sm:$0xff] }
 0x2ad   :  { %4933 = vmatprep.subr.bf16.mxu1 %v4932_v30  ;;  %v4948_v30 = vpack.c.bf16 %v1582_v4, %v1574_v1  ;;  %v4950_v37 = vpack.c.bf16 %v1581_v18, %v1573_v2  ;;  %v1643_v1 = vld [vmem:[%s9175_s5 + $0x1ae0] sm:$0xff]  ;;  %v1637_v4 = vld [vmem:[%s9175_s5 + $0x1ab0] sm:$0xff]  ;;  %v1660_v2 = vld [vmem:[%s9175_s5 + $0x1b68] sm:$0xff] }
 0x2ae   :  { %v1645_v5 = vld [vmem:[%s9175_s5 + $0x1af0] sm:$0xff]  ;;  %v1662_v18 = vld [vmem:[%s9175_s5 + $0x1b78] sm:$0xff]  ;;  %v1708_v33 = vld [vmem:[%s9175_s5 + $0x1ce8] sm:$0xff] }
 0x2af   :  { %4687 = vmatpush1.bf16.msra.mxu0 %v4686_v9  ;;  %v1587_v9 = vld [vmem:[%s9175_s5 + $0x1920] sm:$0xff]  ;;  %v1702_v0 = vld [vmem:[%s9175_s5 + $0x1cb8] sm:$0xff] }
 0x2b0   :  { %4935 = vmatpush1.bf16.msra.mxu1 %v4934_v26  ;;  %4689 = vmatprep.subr.bf16.mxu0 %v4688_v52  ;;  %v1595_v26 = vld [vmem:[%s9175_s5 + $0x1960] sm:$0xff]  ;;  %v4952_v52 = vpack.c.bf16 %v1598_v57, %v1590_v31  ;;  %v4720_v31 = vpack.c.bf16 %v1660_v2, %v1652_v62  ;;  %v1724_v62 = vld [vmem:[%s9175_s5 + $0x1d68] sm:$0xff]  ;;  %v1718_v2 = vld [vmem:[%s9175_s5 + $0x1d38] sm:$0xff] }
 0x2b1   :  { %4937 = vmatprep.subr.bf16.mxu1 %v4936_v7  ;;  %v1606_v7 = vld [vmem:[%s9175_s5 + $0x19b8] sm:$0xff]  ;;  %v4706_v12 = vpack.c.bf16 %v1595_v26, %v1587_v9  ;;  %v1651_v57 = vld [vmem:[%s9175_s5 + $0x1b20] sm:$0xff] }
 0x2b3   :  { %4691 = vmatpush1.bf16.msra.mxu0 %v4690_v47  ;;  %v1605_v47 = vld [vmem:[%s9175_s5 + $0x19b0] sm:$0xff] }
 0x2b4   :  { %4939 = vmatpush1.bf16.msra.mxu1 %v4938_v49  ;;  %4693 = vmatprep.subr.bf16.mxu0 %v4692_v50  ;;  %v1613_v50 = vld [vmem:[%s9175_s5 + $0x19f0] sm:$0xff] }
 0x2b5   :  { %4941 = vmatprep.subr.bf16.mxu1 %v4940_v53  ;;  %v1630_v53 = vld [vmem:[%s9175_s5 + $0x1a78] sm:$0xff]  ;;  %v4958_v36 = vpack.c.bf16 %v1613_v50, %v1605_v47  ;;  %v1684_v50 = vld [vmem:[%s9175_s5 + $0x1c28] sm:$0xff] }
 0x2b7   :  { %4695 = vmatpush1.bf16.msra.mxu0 %v4694_v17  ;;  %v1621_v17 = vld [vmem:[%s9175_s5 + $0x1a30] sm:$0xff] }
 0x2b8   :  { %4943 = vmatpush1.bf16.msra.mxu1 %v4942_v29  ;;  %4697 = vmatprep.subr.bf16.mxu0 %v4696_v8  ;;  %v4960_v29 = vpack.c.bf16 %v1630_v53, %v1622_v51  ;;  %v1629_v8 = vld [vmem:[%s9175_s5 + $0x1a70] sm:$0xff]  ;;  %v1694_v51 = vld [vmem:[%s9175_s5 + $0x1c78] sm:$0xff] }
 0x2b9   :  { %4945 = vmatprep.subr.bf16.mxu1 %v4944_v41  ;;  %v1638_v41 = vld [vmem:[%s9175_s5 + $0x1ab8] sm:$0xff]  ;;  %v4962_v61 = vpack.c.bf16 %v1629_v8, %v1621_v17  ;;  %v4976_v17 = vpack.c.bf16 %v1694_v51, %v1686_v19  ;;  %v1700_v8 = vld [vmem:[%s9175_s5 + $0x1ca8] sm:$0xff] }
 0x2ba   :  { %2604 = vmatmul.mubr.f32.vlgmr.msra.gmra.mrb[10].mxu0 %v6735_v43  ;;  %v1758_v19 = vld [vmem:[%s9175_s5 + $0x1e78] sm:$0xff] }
 0x2bb   :  { %2888 = vmatmul.mubr.f32.vlgmr.msra.gmra.mrb[2].mxu1 %v6735_v43  ;;  %4699 = vmatpush1.bf16.msra.mxu0 %v4698_v59  ;;  %v1589_v43 = vld [vmem:[%s9175_s5 + $0x1930] sm:$0xff]  ;;  %v1635_v59 = vld [vmem:[%s9175_s5 + $0x1aa0] sm:$0xff] }
 0x2bc   :  { %3889 = vmatprep.mubr.msk.f32.mxu0 %vm1825_vm3, %v6757_v54  ;;  %4947 = vmatpush1.bf16.msra.mxu1 %v4946_v63  ;;  %v4954_v22 = vpack.c.bf16 %v1597_v56, %v1589_v43  ;;  %v4964_v63 = vpack.c.bf16 %v1646_v46, %v1638_v41  ;;  %v4718_v24 = vpack.c.bf16 %v1643_v1, %v1635_v59  ;;  %v1661_v43 = vld [vmem:[%s9175_s5 + $0x1b70] sm:$0xff]  ;;  %v1676_v56 = vld [vmem:[%s9175_s5 + $0x1be8] sm:$0xff]  ;;  %v1710_v41 = vld [vmem:[%s9175_s5 + $0x1cf8] sm:$0xff] }
 0x2bd   :  { %3890 = vmatprep.mubr.msk.f32.mxu1 %vm1825_vm3, %v6757_v54  ;;  %4701 = vmatprep.subr.bf16.mxu0 %v4700_v13  ;;  %v1614_v54 = vld [vmem:[%s9175_s5 + $0x19f8] sm:$0xff]  ;;  %v1707_v59 = vld [vmem:[%s9175_s5 + $0x1ce0] sm:$0xff]  ;;  %v1701_v1 = vld [vmem:[%s9175_s5 + $0x1cb0] sm:$0xff] }
 0x2be   :  { %4949 = vmatprep.subr.bf16.mxu1 %v4948_v30  ;;  %v4956_v49 = vpack.c.bf16 %v1614_v54, %v1606_v7  ;;  %v1654_v13 = vld [vmem:[%s9175_s5 + $0x1b38] sm:$0xff]  ;;  %v4966_v30 = vpack.c.bf16 %v1645_v5, %v1637_v4  ;;  %v4980_v4 = vpack.c.bf16 %v1710_v41, %v1702_v0  ;;  %v1716_v5 = vld [vmem:[%s9175_s5 + $0x1d28] sm:$0xff] }
 0x2bf   :  { %4703 = vmatpush1.bf16.msra.mxu0 %v4702_v6  ;;  %v1659_v6 = vld [vmem:[%s9175_s5 + $0x1b60] sm:$0xff]  ;;  %v4968_v26 = vpack.c.bf16 %v1662_v18, %v1654_v13  ;;  %v1678_v7 = vld [vmem:[%s9175_s5 + $0x1bf8] sm:$0xff] }
 0x2c0   :  { %4951 = vmatpush1.bf16.msra.mxu1 %v4950_v37  ;;  %4705 = vmatprep.subr.bf16.mxu0 %v4704_v38  ;;  %v1653_v37 = vld [vmem:[%s9175_s5 + $0x1b30] sm:$0xff]  ;;  %v4722_v54 = vpack.c.bf16 %v1659_v6, %v1651_v57  ;;  %v4972_v47 = vpack.c.bf16 %v1678_v7, %v1670_v11  ;;  %v1726_v13 = vld [vmem:[%s9175_s5 + $0x1d78] sm:$0xff]  ;;  %v1723_v57 = vld [vmem:[%s9175_s5 + $0x1d60] sm:$0xff] }
 0x2c1   :  { %4953 = vmatprep.subr.bf16.mxu1 %v4952_v52  ;;  %v1668_v52 = vld [vmem:[%s9175_s5 + $0x1ba8] sm:$0xff]  ;;  %v1717_v6 = vld [vmem:[%s9175_s5 + $0x1d30] sm:$0xff]  ;;  %v1742_v11 = vld [vmem:[%s9175_s5 + $0x1df8] sm:$0xff] }
 0x2c2   :  { %v1774_v0 = vld [vmem:[%s9175_s5 + $0x1ef8] sm:$0xff] }
 0x2c3   :  { %4707 = vmatpush1.bf16.msra.mxu0 %v4706_v12  ;;  %v4970_v12 = vpack.c.bf16 %v1661_v43, %v1653_v37  ;;  %v4984_v37 = vpack.c.bf16 %v1726_v13, %v1718_v2  ;;  %v1732_v43 = vld [vmem:[%s9175_s5 + $0x1da8] sm:$0xff]  ;;  %v1782_v2 = vld [vmem:[%s9175_s5 + $0x1f38] sm:$0xff]  ;;  %v1779_v13 = vld [vmem:[%s9175_s5 + $0x1f20] sm:$0xff] }
 0x2c4   :  { %4955 = vmatpush1.bf16.msra.mxu1 %v4954_v22  ;;  %4709 = vmatprep.subr.bf16.mxu0 %v4708_v42  ;;  %v4724_v22 = vpack.c.bf16 %v1676_v56, %v1668_v52  ;;  %v1667_v42 = vld [vmem:[%s9175_s5 + $0x1ba0] sm:$0xff]  ;;  %v1740_v52 = vld [vmem:[%s9175_s5 + $0x1de8] sm:$0xff]  ;;  %v1734_v56 = vld [vmem:[%s9175_s5 + $0x1db8] sm:$0xff] }
 0x2c5   :  { %4957 = vmatprep.subr.bf16.mxu1 %v4956_v49  ;;  %v1677_v49 = vld [vmem:[%s9175_s5 + $0x1bf0] sm:$0xff]  ;;  %v4726_v53 = vpack.c.bf16 %v1675_v10, %v1667_v42  ;;  %v1739_v42 = vld [vmem:[%s9175_s5 + $0x1de0] sm:$0xff] }
 0x2c6   :  { %v1733_v10 = vld [vmem:[%s9175_s5 + $0x1db0] sm:$0xff] }
 0x2c7   :  { %4711 = vmatpush1.bf16.msra.mxu0 %v4710_v55  ;;  %v4974_v55 = vpack.c.bf16 %v1677_v49, %v1669_v45  ;;  %v4988_v45 = vpack.c.bf16 %v1742_v11, %v1734_v56  ;;  %v1748_v49 = vld [vmem:[%s9175_s5 + $0x1e28] sm:$0xff] }
 0x2c8   :  { %4959 = vmatpush1.bf16.msra.mxu1 %v4958_v36  ;;  %4713 = vmatprep.subr.bf16.mxu0 %v4712_v16  ;;  %v4728_v36 = vpack.c.bf16 %v1692_v34, %v1684_v50  ;;  %v1683_v16 = vld [vmem:[%s9175_s5 + $0x1c20] sm:$0xff]  ;;  %v1756_v50 = vld [vmem:[%s9175_s5 + $0x1e68] sm:$0xff]  ;;  %v1750_v34 = vld [vmem:[%s9175_s5 + $0x1e38] sm:$0xff] }
 0x2c9   :  { %4961 = vmatprep.subr.bf16.mxu1 %v4960_v29  ;;  %v1693_v29 = vld [vmem:[%s9175_s5 + $0x1c70] sm:$0xff]  ;;  %v4730_v46 = vpack.c.bf16 %v1691_v58, %v1683_v16  ;;  %v1755_v16 = vld [vmem:[%s9175_s5 + $0x1e60] sm:$0xff]  ;;  %v3392_v56 = vld [vmem:[%s9179_s9 + $0x108] sm:$0xff] }
 0x2ca   :  { %v1749_v58 = vld [vmem:[%s9175_s5 + $0x1e30] sm:$0xff] }
 0x2cb   :  { %4715 = vmatpush1.bf16.msra.mxu0 %v4714_v60  ;;  %v4978_v60 = vpack.c.bf16 %v1693_v29, %v1685_v15  ;;  %v4992_v15 = vpack.c.bf16 %v1758_v19, %v1750_v34  ;;  %v1764_v29 = vld [vmem:[%s9175_s5 + $0x1ea8] sm:$0xff]  ;;  %v3394_v34 = vld [vmem:[%s9179_s9 + $0x118] sm:$0xff] }
 0x2cc   :  { %4963 = vmatpush1.bf16.msra.mxu1 %v4962_v61  ;;  %v8387_v28 = vpop.f32.mrb[8].mxu0  ;;  %4717 = vmatprep.subr.bf16.mxu0 %v4716_v20  ;;  %v4732_v61 = vpack.c.bf16 %v1708_v33, %v1700_v8  ;;  %v1699_v20 = vld [vmem:[%s9175_s5 + $0x1ca0] sm:$0xff]  ;;  %v1772_v8 = vld [vmem:[%s9175_s5 + $0x1ee8] sm:$0xff]  ;;  %v1766_v33 = vld [vmem:[%s9175_s5 + $0x1eb8] sm:$0xff] }
 0x2cd   :  { %v8398_v38 = vpop.f32.mrb[0].mxu1  ;;  %v8400_v9 = vpop.f32.mrb[9].mxu0  ;;  %4965 = vmatprep.subr.bf16.mxu1 %v4964_v63  ;;  %v1709_v63 = vld [vmem:[%s9175_s5 + $0x1cf0] sm:$0xff]  ;;  %v4734_v18 = vpack.c.bf16 %v1707_v59, %v1699_v20  ;;  %v1771_v20 = vld [vmem:[%s9175_s5 + $0x1ee0] sm:$0xff]  ;;  %v4996_v59 = vpack.c.bf16 %v1774_v0, %v1766_v33  ;;  %v3396_v33 = vld [vmem:[%s9179_s9 + $0x128] sm:$0xff] }
 0x2ce   :  { %v8411_v40 = vpop.f32.mrb[1].mxu1 }
 0x2cf   :  { %4719 = vmatpush1.bf16.msra.mxu0 %v4718_v24  ;;  %v4982_v24 = vpack.c.bf16 %v1709_v63, %v1701_v1  ;;  %v1765_v1 = vld [vmem:[%s9175_s5 + $0x1eb0] sm:$0xff] }
 0x2d0   :  { %4967 = vmatpush1.bf16.msra.mxu1 %v4966_v30  ;;  %4721 = vmatprep.subr.bf16.mxu0 %v4720_v31  ;;  %v4736_v30 = vpack.c.bf16 %v1724_v62, %v1716_v5  ;;  %v1715_v31 = vld [vmem:[%s9175_s5 + $0x1d20] sm:$0xff]  ;;  %v1780_v62 = vld [vmem:[%s9175_s5 + $0x1f28] sm:$0xff] }
 0x2d1   :  { %4969 = vmatprep.subr.bf16.mxu1 %v4968_v26  ;;  %v1725_v26 = vld [vmem:[%s9175_s5 + $0x1d70] sm:$0xff]  ;;  %v4738_v7 = vpack.c.bf16 %v1723_v57, %v1715_v31  ;;  %v3407_v31 = vld [vmem:[%s9179_s9 + $0x180] sm:$0xff] }
 0x2d3   :  { %4723 = vmatpush1.bf16.msra.mxu0 %v4722_v54  ;;  %v4986_v54 = vpack.c.bf16 %v1725_v26, %v1717_v6  ;;  %v3408_v6 = vld [vmem:[%s9179_s9 + $0x188] sm:$0xff] }
 0x2d4   :  { %4971 = vmatpush1.bf16.msra.mxu1 %v4970_v12  ;;  %4725 = vmatprep.subr.bf16.mxu0 %v4724_v22  ;;  %v4740_v12 = vpack.c.bf16 %v1740_v52, %v1732_v43  ;;  %v1731_v22 = vld [vmem:[%s9175_s5 + $0x1da0] sm:$0xff]  ;;  %v5032_v26 = vpack.c.bf16 %v3408_v6, %v3407_v31  ;;  %v3416_v31 = vld [vmem:[%s9179_s9 + $0x1c8] sm:$0xff] }
 0x2d5   :  { %4973 = vmatprep.subr.bf16.mxu1 %v4972_v47  ;;  %v1741_v47 = vld [vmem:[%s9175_s5 + $0x1df0] sm:$0xff]  ;;  %v4742_v51 = vpack.c.bf16 %v1739_v42, %v1731_v22  ;;  %v3391_v52 = vld [vmem:[%s9179_s9 + $0x100] sm:$0xff]  ;;  %v3410_v42 = vld [vmem:[%s9179_s9 + $0x198] sm:$0xff] }
 0x2d6   :  { %v5034_v11 = vpack.c.bf16 %v3392_v56, %v3391_v52  ;;  %v3368_v6 = vld [vmem:[%s9179_s9 + $0x48] sm:$0xff]  ;;  %v8712_v52 = vld [vmem:[%s9176_s6] sm:$0xff] }
 0x2d7   :  { %4727 = vmatpush1.bf16.msra.mxu0 %v4726_v53  ;;  %v4990_v53 = vpack.c.bf16 %v1741_v47, %v1733_v10  ;;  %v3361_v10 = vld [vmem:[%s9179_s9 + $0x10] sm:$0xff] }
 0x2d8   :  { %4975 = vmatpush1.bf16.msra.mxu1 %v4974_v55  ;;  %4729 = vmatprep.subr.bf16.mxu0 %v4728_v36  ;;  %v4744_v55 = vpack.c.bf16 %v1756_v50, %v1748_v49  ;;  %v1747_v36 = vld [vmem:[%s9175_s5 + $0x1e20] sm:$0xff]  ;;  %v3393_v50 = vld [vmem:[%s9179_s9 + $0x110] sm:$0xff] }
 0x2d9   :  { %4977 = vmatprep.subr.bf16.mxu1 %v4976_v17  ;;  %v1757_v17 = vld [vmem:[%s9175_s5 + $0x1e70] sm:$0xff]  ;;  %v4746_v41 = vpack.c.bf16 %v1755_v16, %v1747_v36  ;;  %v5038_v19 = vpack.c.bf16 %v3394_v34, %v3393_v50  ;;  %v3412_v16 = vld [vmem:[%s9179_s9 + $0x1a8] sm:$0xff]  ;;  %v3402_v34 = vld [vmem:[%s9179_s9 + $0x158] sm:$0xff] }
 0x2da   :  { %v3401_v50 = vld [vmem:[%s9179_s9 + $0x150] sm:$0xff] }
 0x2db   :  { %4731 = vmatpush1.bf16.msra.mxu0 %v4730_v46  ;;  %v4994_v46 = vpack.c.bf16 %v1757_v17, %v1749_v58  ;;  %v3363_v58 = vld [vmem:[%s9179_s9 + $0x20] sm:$0xff] }
 0x2dc   :  { %4979 = vmatpush1.bf16.msra.mxu1 %v4978_v60  ;;  %4733 = vmatprep.subr.bf16.mxu0 %v4732_v61  ;;  %v4748_v60 = vpack.c.bf16 %v1772_v8, %v1764_v29  ;;  %v1763_v61 = vld [vmem:[%s9175_s5 + $0x1ea0] sm:$0xff] }
 0x2dd   :  { %4981 = vmatprep.subr.bf16.mxu1 %v4980_v4  ;;  %v1773_v4 = vld [vmem:[%s9175_s5 + $0x1ef0] sm:$0xff]  ;;  %v4750_v63 = vpack.c.bf16 %v1771_v20, %v1763_v61  ;;  %v3395_v8 = vld [vmem:[%s9179_s9 + $0x120] sm:$0xff]  ;;  %v3414_v20 = vld [vmem:[%s9179_s9 + $0x1b8] sm:$0xff] }
 0x2de   :  { %v4998_v5 = vpack.c.bf16 %v1773_v4, %v1765_v1  ;;  %v5042_v0 = vpack.c.bf16 %v3396_v33, %v3395_v8  ;;  %v3366_v1 = vld [vmem:[%s9179_s9 + $0x38] sm:$0xff]  ;;  %v3372_v8 = vld [vmem:[%s9179_s9 + $0x68] sm:$0xff] }
 0x2df   :  { %4735 = vmatpush1.bf16.msra.mxu0 %v4734_v18  ;;  %v1781_v18 = vld [vmem:[%s9175_s5 + $0x1f30] sm:$0xff] }
 0x2e0   :  { %4983 = vmatpush1.bf16.msra.mxu1 %v4982_v24  ;;  %4737 = vmatprep.subr.bf16.mxu0 %v4736_v30  ;;  %v3375_v24 = vld [vmem:[%s9179_s9 + $0x80] sm:$0xff]  ;;  %v3376_v30 = vld [vmem:[%s9179_s9 + $0x88] sm:$0xff] }
 0x2e1   :  { %4985 = vmatprep.subr.bf16.mxu1 %v4984_v37  ;;  %v5000_v57 = vpack.c.bf16 %v3376_v30, %v3375_v24  ;;  %v3360_v37 = vld [vmem:[%s9179_s9 + $0x8] sm:$0xff]  ;;  %v3415_v24 = vld [vmem:[%s9179_s9 + $0x1c0] sm:$0xff] }
 0x2e3   :  { %4739 = vmatpush1.bf16.msra.mxu0 %v4738_v7  ;;  %v3377_v7 = vld [vmem:[%s9179_s9 + $0x90] sm:$0xff] }
 0x2e4   :  { %4987 = vmatpush1.bf16.msra.mxu1 %v4986_v54  ;;  %4741 = vmatprep.subr.bf16.mxu0 %v4740_v12  ;;  %v3378_v54 = vld [vmem:[%s9179_s9 + $0x98] sm:$0xff]  ;;  %v3409_v12 = vld [vmem:[%s9179_s9 + $0x190] sm:$0xff] }
 0x2e5   :  { %4989 = vmatprep.subr.bf16.mxu1 %v4988_v45  ;;  %v5004_v22 = vpack.c.bf16 %v3378_v54, %v3377_v7  ;;  %v3362_v45 = vld [vmem:[%s9179_s9 + $0x18] sm:$0xff]  ;;  %v5036_v47 = vpack.c.bf16 %v3410_v42, %v3409_v12  ;;  %v3417_v54 = vld [vmem:[%s9179_s9 + $0x1d0] sm:$0xff] }
 0x2e6   :  { %v5006_v49 = vpack.c.bf16 %v3362_v45, %v3361_v10  ;;  %v3386_v7 = vld [vmem:[%s9179_s9 + $0xd8] sm:$0xff]  ;;  %v3369_v42 = vld [vmem:[%s9179_s9 + $0x50] sm:$0xff]  ;;  %v1788_v45 = vrot.slane %v8712_v52, %v5747_v21 }
 0x2e7   :  { %4743 = vmatpush1.bf16.msra.mxu0 %v4742_v51  ;;  %v3379_v51 = vld [vmem:[%s9179_s9 + $0xa0] sm:$0xff]  ;;  %v3370_v10 = vld [vmem:[%s9179_s9 + $0x58] sm:$0xff] }
 0x2e8   :  { %4991 = vmatpush1.bf16.msra.mxu1 %v4990_v53  ;;  %4745 = vmatprep.subr.bf16.mxu0 %v4744_v55  ;;  %v3380_v53 = vld [vmem:[%s9179_s9 + $0xa8] sm:$0xff]  ;;  %v3411_v55 = vld [vmem:[%s9179_s9 + $0x1a0] sm:$0xff]  ;;  %v8765_v33 = vadd.f32 %v8387_v28, %v1788_v45  ;;  %v3389_v28 = vld [vmem:[%s9179_s9 + $0xf0] sm:$0xff] }
 0x2e9   :  { %4993 = vmatprep.subr.bf16.mxu1 %v4992_v15  ;;  %v5008_v36 = vpack.c.bf16 %v3380_v53, %v3379_v51  ;;  %v3364_v15 = vld [vmem:[%s9179_s9 + $0x28] sm:$0xff]  ;;  %v5040_v17 = vpack.c.bf16 %v3412_v16, %v3411_v55  ;;  %v5054_v51 = vpack.c.bf16 %v3402_v34, %v3401_v50  ;;  %v1792_v53 = vrot.slane %v8712_v52, %v5753_v23  ;;  %v3387_v55 = vld [vmem:[%s9179_s9 + $0xe0] sm:$0xff] }
 0x2ea   :  { %v5010_v29 = vpack.c.bf16 %v3364_v15, %v3363_v58  ;;  %v3419_v16 = vld [vmem:[%s9179_s9 + $0x1e0] sm:$0xff]  ;;  %v1800_v58 = vrot.slane %v8712_v52, %v5761_v27 }
 0x2eb   :  { %4747 = vmatpush1.bf16.msra.mxu0 %v4746_v41  ;;  %v3381_v41 = vld [vmem:[%s9179_s9 + $0xb0] sm:$0xff] }
 0x2ec   :  { %4995 = vmatpush1.bf16.msra.mxu1 %v4994_v46  ;;  %4749 = vmatprep.subr.bf16.mxu0 %v4748_v60  ;;  %v3382_v46 = vld [vmem:[%s9179_s9 + $0xb8] sm:$0xff]  ;;  %v3413_v60 = vld [vmem:[%s9179_s9 + $0x1b0] sm:$0xff] }
 0x2ed   :  { %4997 = vmatprep.subr.bf16.mxu1 %v4996_v59  ;;  %v5012_v61 = vpack.c.bf16 %v3382_v46, %v3381_v41  ;;  %v3365_v59 = vld [vmem:[%s9179_s9 + $0x30] sm:$0xff]  ;;  %v5044_v4 = vpack.c.bf16 %v3414_v20, %v3413_v60  ;;  %v3403_v46 = vld [vmem:[%s9179_s9 + $0x160] sm:$0xff]  ;;  %v3404_v60 = vld [vmem:[%s9179_s9 + $0x168] sm:$0xff] }
 0x2ee   :  { %v5058_v20 = vpack.c.bf16 %v3404_v60, %v3403_v46 }
 0x2ef   :  { %4751 = vmatpush1.bf16.msra.mxu0 %v4750_v63  ;;  %v5014_v63 = vpack.c.bf16 %v3366_v1, %v3365_v59  ;;  %v8777_v59 = vadd.f32 %v8400_v9, %v1792_v53  ;;  %v3390_v1 = vld [vmem:[%s9179_s9 + $0xf8] sm:$0xff] }
 0x2f0   :  { %4999 = vmatpush1.bf16.msra.mxu1 %v4998_v5  ;;  %2666 = vmatprep.subr.mxu0 %v1780_v62  ;;  %v3397_v5 = vld [vmem:[%s9179_s9 + $0x130] sm:$0xff]  ;;  %v3398_v62 = vld [vmem:[%s9179_s9 + $0x138] sm:$0xff]  ;;  %v5028_v9 = vpack.c.bf16 %v3390_v1, %v3389_v28 }
 0x2f1   :  { %2950 = vmatprep.subr.mxu1 %v1782_v2  ;;  %v5046_v2 = vpack.c.bf16 %v3398_v62, %v3397_v5  ;;  %v3373_v5 = vld [vmem:[%s9179_s9 + $0x70] sm:$0xff]  ;;  %v3374_v62 = vld [vmem:[%s9179_s9 + $0x78] sm:$0xff] }
 0x2f3   :  { %2667 = vmatpush1.msra.mxu0 %v1779_v13  ;;  %v3383_v13 = vld [vmem:[%s9179_s9 + $0xc0] sm:$0xff] }
 0x2f4   :  { %2951 = vmatpush1.msra.mxu1 %v1781_v18  ;;  %2675 = vmatmul.mubr.f32.vlgmr.msra.gmra.mrb[10].mxu0 %v7089_v14  ;;  %v3384_v18 = vld [vmem:[%s9179_s9 + $0xc8] sm:$0xff] }
 0x2f5   :  { %2959 = vmatmul.mubr.f32.vlgmr.msra.gmra.mrb[2].mxu1 %v7089_v14  ;;  %v3359_v14 = vld [vmem:[%s9179_s9] sm:$0xff]  ;;  %5001 = vmatprep.subr.bf16.mxu0 %v5000_v57  ;;  %v5016_v30 = vpack.c.bf16 %v3384_v18, %v3383_v13  ;;  %v3405_v18 = vld [vmem:[%s9179_s9 + $0x170] sm:$0xff] }
 0x2f6   :  { %v5002_v43 = vpack.c.bf16 %v3360_v37, %v3359_v14  ;;  %5033 = vmatprep.subr.bf16.mxu1 %v5032_v26  ;;  %v3367_v57 = vld [vmem:[%s9179_s9 + $0x40] sm:$0xff]  ;;  %v5048_v14 = vpack.c.bf16 %v3416_v31, %v3415_v24  ;;  %v3406_v24 = vld [vmem:[%s9179_s9 + $0x178] sm:$0xff] }
 0x2f7   :  { %5035 = vmatpush3.bf16.msra.mxu1 %v5034_v11  ;;  %v5018_v37 = vpack.c.bf16 %v3368_v6, %v3367_v57  ;;  %v3399_v26 = vld [vmem:[%s9179_s9 + $0x140] sm:$0xff]  ;;  %v3385_v11 = vld [vmem:[%s9179_s9 + $0xd0] sm:$0xff]  ;;  %v5062_v31 = vpack.c.bf16 %v3406_v24, %v3405_v18  ;;  %v2974_v57 = vsel %vm388_vm1, %v8777_v59, 0.0  ;;  %v1812_v24 = vrot.slane %v8712_v52, %v5783_v44 }
 0x2f8   :  { %5003 = vmatpush3.bf16.msra.mxu0 %v5002_v43  ;;  %5037 = vmatprep.subr.bf16.mxu1 %v5036_v47  ;;  %v3400_v43 = vld [vmem:[%s9179_s9 + $0x148] sm:$0xff]  ;;  %v5020_v12 = vpack.c.bf16 %v3386_v7, %v3385_v11  ;;  %v3439_v6 = vld [vmem:[%s9179_s9 + $0x280] sm:$0xff]  ;;  %v2975_v11 = vrot.slane %v2974_v57, 4  ;;  %v5235_v7 = vmov 0.0|0.0  }
 0x2f9   :  { %5005 = vmatprep.subr.bf16.mxu0 %v5004_v22  ;;  %v5050_v56 = vpack.c.bf16 %v3400_v43, %v3399_v26  ;;  %v3418_v22 = vld [vmem:[%s9179_s9 + $0x1d8] sm:$0xff] }
 0x2fa   :  { %v5052_v47 = vpack.c.bf16 %v3418_v22, %v3417_v54 }
 0x2fb   :  { %5039 = vmatpush3.bf16.msra.mxu1 %v5038_v19  ;;  %v1796_v19 = vrot.slane %v8712_v52, %v5757_v25 }
 0x2fc   :  { %5007 = vmatpush3.bf16.msra.mxu0 %v5006_v49  ;;  %5041 = vmatprep.subr.bf16.mxu1 %v5040_v17  ;;  %v5022_v49 = vpack.c.bf16 %v3370_v10, %v3369_v42  ;;  %v3420_v17 = vld [vmem:[%s9179_s9 + $0x1e8] sm:$0xff]  ;;  %v2976_v42 = vadd.f32 %v2975_v11, %v2974_v57 }
 0x2fd   :  { %5009 = vmatprep.subr.bf16.mxu0 %v5008_v36  ;;  %v3388_v36 = vld [vmem:[%s9179_s9 + $0xe8] sm:$0xff] }
 0x2fe   :  { %v5024_v15 = vpack.c.bf16 %v3388_v36, %v3387_v55 }
 0x2ff   :  { %5043 = vmatpush3.bf16.msra.mxu1 %v5042_v0  ;;  %v5056_v0 = vpack.c.bf16 %v3420_v17, %v3419_v16 }
 0x300   :  { %5011 = vmatpush3.bf16.msra.mxu0 %v5010_v29  ;;  %5045 = vmatprep.subr.bf16.mxu1 %v5044_v4  ;;  %v3371_v29 = vld [vmem:[%s9179_s9 + $0x60] sm:$0xff]  ;;  %v8789_v4 = vadd.f32 %v8411_v40, %v1800_v58  ;;  %v5030_v40 = vpack.c.bf16 %v3374_v62, %v3373_v5 }
 0x301   :  { %5013 = vmatprep.subr.bf16.mxu0 %v5012_v61  ;;  %v5026_v41 = vpack.c.bf16 %v3372_v8, %v3371_v29  ;;  %v8774_v61 = vadd.f32 %v8398_v38, %v1796_v19  ;;  %v3421_v38 = vld [vmem:[%s9179_s9 + $0x1f0] sm:$0xff] }
 0x302   :  { %v2988_v26 = vsel %vm388_vm1, %v8789_v4, 0.0 }
 0x303   :  { %5047 = vmatpush3.bf16.msra.mxu1 %v5046_v2  ;;  %v2967_v2 = vsel %vm388_vm1, %v8765_v33, 0.0  ;;  %v2989_v54 = vrot.slane %v2988_v26, 4 }
 0x304   :  { %5015 = vmatpush3.bf16.msra.mxu0 %v5014_v63  ;;  %5049 = vmatprep.subr.bf16.mxu1 %v5048_v14  ;;  %v3422_v63 = vld [vmem:[%s9179_s9 + $0x1f8] sm:$0xff]  ;;  %v3440_v14 = vld [vmem:[%s9179_s9 + $0x288] sm:$0xff] }
 0x305   :  { %5017 = vmatprep.subr.bf16.mxu0 %v5016_v30  ;;  %v5060_v13 = vpack.c.bf16 %v3422_v63, %v3421_v38  ;;  %v2981_v30 = vsel %vm388_vm1, %v8774_v61, 0.0  ;;  %v5064_v43 = vpack.c.bf16 %v3440_v14, %v3439_v6  ;;  %v2990_v10 = vadd.f32 %v2989_v54, %v2988_v26 }
 0x306   :  { %v1816_v6 = vrot.slane %v8712_v52, %v5789_v48 }
 0x307   :  { %5051 = vmatpush3.bf16.msra.mxu1 %v5050_v56  ;;  %v2982_v56 = vrot.slane %v2981_v30, 4  ;;  %v2991_v50 = vrot.slane %v2990_v10, 2 }
 0x308   :  { %5019 = vmatpush3.bf16.msra.mxu0 %v5018_v37  ;;  %5053 = vmatprep.subr.bf16.mxu1 %v5052_v47  ;;  %v2968_v37 = vrot.slane %v2967_v2, 4 }
 0x309   :  { %5021 = vmatprep.subr.bf16.mxu0 %v5020_v12  ;;  %v2983_v22 = vadd.f32 %v2982_v56, %v2981_v30  ;;  %v2992_v53 = vadd.f32 %v2991_v50, %v2990_v10  ;;  %v1808_v30 = vrot.slane %v8712_v52, %v5773_v35 }
 0x30a   :  { %v2969_v12 = vadd.f32 %v2968_v37, %v2967_v2 }
 0x30b   :  { %5055 = vmatpush3.bf16.msra.mxu1 %v5054_v51  ;;  %v2984_v47 = vrot.slane %v2983_v22, 2  ;;  %v2993_v58 = vrot.slane %v2992_v53, 1 }
 0x30c   :  { %5023 = vmatpush3.bf16.msra.mxu0 %v5022_v49  ;;  %5057 = vmatprep.subr.bf16.mxu1 %v5056_v0  ;;  %v2970_v45 = vrot.slane %v2969_v12, 2  ;;  %v2977_v49 = vrot.slane %v2976_v42, 2 }
 0x30d   :  { %5025 = vmatprep.subr.bf16.mxu0 %v5024_v15  ;;  %v2985_v19 = vadd.f32 %v2984_v47, %v2983_v22  ;;  %v2994_v8 = vadd.f32 %v2993_v58, %v2992_v53 }
 0x30e   :  { %v2971_v34 = vadd.f32 %v2970_v45, %v2969_v12  ;;  %v2978_v51 = vadd.f32 %v2977_v49, %v2976_v42 }
 0x30f   :  { %5059 = vmatpush3.bf16.msra.mxu1 %v5058_v20  ;;  %v2986_v36 = vrot.slane %v2985_v19, 1  ;;  %v8827_v60 = vmul.f32 0.5, %v2994_v8 }
 0x310   :  { %5027 = vmatpush3.bf16.msra.mxu0 %v5026_v41  ;;  %5061 = vmatprep.subr.bf16.mxu1 %v5060_v13  ;;  %v2972_v55 = vrot.slane %v2971_v34, 1  ;;  %v2979_v16 = vrot.slane %v2978_v51, 1 }
 0x311   :  { %5029 = vmatprep.subr.bf16.mxu0 %v5028_v9  ;;  %v2987_v17 = vadd.f32 %v2986_v36, %v2985_v19  ;;  %v3034_v38 = vsub.f32 %v8789_v4, %v8827_v60 }
 0x312   :  { %v2973_v15 = vadd.f32 %v2972_v55, %v2971_v34  ;;  %v2980_v29 = vadd.f32 %v2979_v16, %v2978_v51 }
 0x313   :  { %5063 = vmatpush3.bf16.msra.mxu1 %v5062_v31  ;;  %v8823_v41 = vmul.f32 0.5, %v2987_v17  ;;  %v3042_v62 = vmul.f32 %v3034_v38, %v3034_v38 }
 0x314   :  { %5031 = vmatpush3.bf16.msra.mxu0 %v5030_v40  ;;  %5096 = vmatprep.subr.bf16.mxu1 %v5235_v7  ;;  %v8821_v0 = vmul.f32 0.5, %v2973_v15  ;;  %v8825_v46 = vmul.f32 0.5, %v2980_v29  ;;  %v1804_v40 = vrot.slane %v8712_v52, %v5767_v32 }
 0x315   :  { %5065 = vmatprep.subr.bf16.mxu0 %v5064_v43  ;;  %v3033_v28 = vsub.f32 %v8774_v61, %v8823_v41  ;;  %v3068_v57 = vsel %vm388_vm1, %v3042_v62, 0.0 }
 0x316   :  { %v3031_v20 = vsub.f32 %v8765_v33, %v8821_v0  ;;  %v3032_v1 = vsub.f32 %v8777_v59, %v8825_v46  ;;  %v3069_v54 = vrot.slane %v3068_v57, 4 }
 0x317   :  { %v3041_v63 = vmul.f32 %v3033_v28, %v3033_v28 }
 0x318   :  { %v3039_v9 = vmul.f32 %v3031_v20, %v3031_v20  ;;  %v3040_v5 = vmul.f32 %v3032_v1, %v3032_v1  ;;  %v3070_v36 = vadd.f32 %v3069_v54, %v3068_v57 }
 0x319   :  { %v3061_v13 = vsel %vm388_vm1, %v3041_v63, 0.0 }
 0x31a   :  { %v3047_v2 = vsel %vm388_vm1, %v3039_v9, 0.0  ;;  %v3054_v18 = vsel %vm388_vm1, %v3040_v5, 0.0  ;;  %v3062_v14 = vrot.slane %v3061_v13, 4  ;;  %v3071_v63 = vrot.slane %v3070_v36, 2 }
 0x31b   :  { %v3048_v31 = vrot.slane %v3047_v2, 4  ;;  %v3055_v26 = vrot.slane %v3054_v18, 4 }
 0x31c   :  { %v3063_v52 = vadd.f32 %v3062_v14, %v3061_v13  ;;  %v3072_v14 = vadd.f32 %v3071_v63, %v3070_v36 }
 0x31d   :  { %v3049_v10 = vadd.f32 %v3048_v31, %v3047_v2  ;;  %v3056_v19 = vadd.f32 %v3055_v26, %v3054_v18 }
 0x31e   :  { %v3064_v8 = vrot.slane %v3063_v52, 2 }
 0x31f   :  { %v3050_v15 = vrot.slane %v3049_v10, 2  ;;  %v3057_v1 = vrot.slane %v3056_v19, 2 }
 0x320   :  { %v3065_v18 = vadd.f32 %v3064_v8, %v3063_v52  ;;  %v3073_v52 = vrot.slane %v3072_v14, 1 }
 0x321   :  { %v3051_v2 = vadd.f32 %v3050_v15, %v3049_v10  ;;  %v3058_v31 = vadd.f32 %v3057_v1, %v3056_v19 }
 0x3c7   :  { %v2676_v37 = vpop.f32.mrb[10].mxu0 }
 0x3c8   :  { %v8849_v43 = vadd.f32 %v2676_v37, %v1804_v40  ;;  %v2960_v56 = vpop.f32.mrb[2].mxu1  ;;  %v2678_v11 = vpop.f32.mrb[11].mxu0 }
 0x3c9   :  { %v8851_v12 = vadd.f32 %v2960_v56, %v1812_v24  ;;  %v8853_v22 = vadd.f32 %v2678_v11, %v1808_v30  ;;  %v2962_v42 = vpop.f32.mrb[3].mxu1  ;;  %v3052_v56 = vrot.slane %v3051_v2, 1 }
 0x3ca   :  { %v2995_v45 = vsel %vm388_vm1, %v8849_v43, 0.0  ;;  %v8857_v47 = vadd.f32 %v2962_v42, %v1816_v6  ;;  %v3066_v42 = vrot.slane %v3065_v18, 1 }
 0x3cb   :  { %v2996_v49 = vrot.slane %v2995_v45, 4  ;;  %v3009_v50 = vsel %vm388_vm1, %v8851_v12, 0.0  ;;  %v3002_v34 = vsel %vm388_vm1, %v8853_v22, 0.0 }
 0x3cc   :  { %v3010_v51 = vrot.slane %v3009_v50, 4  ;;  %v3003_v53 = vrot.slane %v3002_v34, 4  ;;  %v3016_v55 = vsel %vm438_vm2, %v8857_v47, 0.0 }
 0x3cd   :  { %v2997_v16 = vadd.f32 %v2996_v49, %v2995_v45  ;;  %v3017_v58 = vrot.slane %v3016_v55, 4 }
 0x3ce   :  { %v3011_v17 = vadd.f32 %v3010_v51, %v3009_v50  ;;  %v3004_v29 = vadd.f32 %v3003_v53, %v3002_v34  ;;  %v3059_v50 = vrot.slane %v3058_v31, 1  ;;  %v3053_v53 = vadd.f32 %v3052_v56, %v3051_v2 }
 0x3cf   :  { %v2998_v20 = vrot.slane %v2997_v16, 2  ;;  %v3018_v28 = vadd.f32 %v3017_v58, %v3016_v55 }
 0x3d0   :  { %v3012_v38 = vrot.slane %v3011_v17, 2  ;;  %v3005_v9 = vrot.slane %v3004_v29, 2 }
 0x3d1   :  { %v2999_v5 = vadd.f32 %v2998_v20, %v2997_v16  ;;  %v3019_v62 = vrot.slane %v3018_v28, 2  ;;  %v3067_v16 = vadd.f32 %v3066_v42, %v3065_v18  ;;  %v3074_v20 = vadd.f32 %v3073_v52, %v3072_v14 }
 0x3d2   :  { %v3013_v13 = vadd.f32 %v3012_v38, %v3011_v17  ;;  %v3006_v40 = vadd.f32 %v3005_v9, %v3004_v29  ;;  %v3060_v17 = vadd.f32 %v3059_v50, %v3058_v31  ;;  %v3103_v38 = vmul.f32 0.5, %v3053_v53 }
 0x3d3   :  { %v3000_v24 = vrot.slane %v2999_v5, 1  ;;  %v3020_v30 = vadd.f32 %v3019_v62, %v3018_v28  ;;  %v3105_v62 = vmul.f32 0.5, %v3067_v16  ;;  %v3106_v31 = vmul.f32 0.5, %v3074_v20 }
 0x3d4   :  { %v3014_v57 = vrot.slane %v3013_v13, 1  ;;  %v3007_v6 = vrot.slane %v3006_v40, 1  ;;  %v3104_v18 = vmul.f32 0.5, %v3060_v17  ;;  %v3111_v14 = vadd.f32 1e-05, %v3103_v38 }
 0x3d5   :  { %v3001_v37 = vadd.f32 %v3000_v24, %v2999_v5  ;;  %v3021_v26 = vrot.slane %v3020_v30, 1  ;;  %v3113_v56 = vadd.f32 1e-05, %v3105_v62  ;;  %v3114_v52 = vadd.f32 1e-05, %v3106_v31 }
 0x3d6   :  { %v3015_v11 = vadd.f32 %v3014_v57, %v3013_v13  ;;  %v3008_v54 = vadd.f32 %v3007_v6, %v3006_v40  ;;  %v3112_v42 = vadd.f32 1e-05, %v3104_v18  ;;  %5191 = vrsqrt.f32 %v3111_v14 }
 0x3d7   :  { %v8865_v45 = vmul.f32 0.5, %v3001_v37  ;;  %v3022_v49 = vadd.f32 %v3021_v26, %v3020_v30  ;;  %5193 = vrsqrt.f32 %v3113_v56 }
 0x3d8   :  { %v8867_v10 = vmul.f32 0.5, %v3015_v11  ;;  %v8869_v34 = vmul.f32 0.5, %v3008_v54  ;;  %5195 = vrsqrt.f32 %v3112_v42 }
 0x3d9   :  { %v3035_v19 = vsub.f32 %v8849_v43, %v8865_v45  ;;  %v8873_v51 = vmul.f32 0.5, %v3022_v49  ;;  %5197 = vrsqrt.f32 %v3114_v52 }
 0x3da   :  { %v3037_v55 = vsub.f32 %v8851_v12, %v8867_v10  ;;  %v3036_v36 = vsub.f32 %v8853_v22, %v8869_v34 }
 0x3db   :  { %v3043_v58 = vmul.f32 %v3035_v19, %v3035_v19  ;;  %v3038_v15 = vsub.f32 %v8857_v47, %v8873_v51 }
 0x3dc   :  { %v3045_v29 = vmul.f32 %v3037_v55, %v3037_v55  ;;  %v3044_v8 = vmul.f32 %v3036_v36, %v3036_v36 }
 0x3dd   :  { %v3075_v28 = vsel %vm388_vm1, %v3043_v58, 0.0  ;;  %v3046_v1 = vmul.f32 %v3038_v15, %v3038_v15 }
 0x3de   :  { %v3076_v9 = vrot.slane %v3075_v28, 4  ;;  %v3089_v63 = vsel %vm388_vm1, %v3045_v29, 0.0  ;;  %v3082_v5 = vsel %vm388_vm1, %v3044_v8, 0.0 }
 0x3df   :  { %v3090_v2 = vrot.slane %v3089_v63, 4  ;;  %v3083_v13 = vrot.slane %v3082_v5, 4  ;;  %v3096_v40 = vsel %vm438_vm2, %v3046_v1, 0.0 }
 0x3e0   :  { %v3077_v24 = vadd.f32 %v3076_v9, %v3075_v28  ;;  %v3097_v30 = vrot.slane %v3096_v40, 4 }
 0x3e1   :  { %v3091_v57 = vadd.f32 %v3090_v2, %v3089_v63  ;;  %v3084_v6 = vadd.f32 %v3083_v13, %v3082_v5  ;;  %v5192_v13 = vpop.eup %5191 }
 0x3e2   :  { %v3078_v37 = vrot.slane %v3077_v24, 2  ;;  %v3098_v26 = vadd.f32 %v3097_v30, %v3096_v40  ;;  %v5194_v40 = vpop.eup %5193 }
 0x3e3   :  { %v3092_v11 = vrot.slane %v3091_v57, 2  ;;  %v3085_v54 = vrot.slane %v3084_v6, 2  ;;  %v5196_v18 = vpop.eup %5195 }
 0x3e4   :  { %v3079_v49 = vadd.f32 %v3078_v37, %v3077_v24  ;;  %v3099_v50 = vrot.slane %v3098_v26, 2  ;;  %v5198_v24 = vpop.eup %5197  ;;  %v3135_v30 = vcombine.low %v5192_v13, %v5196_v18 }
 0x3e5   :  { %v3093_v19 = vadd.f32 %v3092_v11, %v3091_v57  ;;  %v3086_v53 = vadd.f32 %v3085_v54, %v3084_v6  ;;  %v3136_v31 = vcombine.low %v5194_v40, %v5198_v24 }
 0x3e6   :  { %v3080_v55 = vrot.slane %v3079_v49, 1  ;;  %v3100_v36 = vadd.f32 %v3099_v50, %v3098_v26  ;;  %v3145_v37 = vrot.slane %v3135_v30, %v5854_v39 }
 0x3e7   :  { %v3094_v16 = vrot.slane %v3093_v19, 1  ;;  %v3087_v58 = vrot.slane %v3086_v53, 1  ;;  %v3152_v26 = vrot.slane %v3136_v31, %v5854_v39 }
 0x3e8   :  { %v3081_v15 = vadd.f32 %v3080_v55, %v3079_v49  ;;  %v3101_v17 = vrot.slane %v3100_v36, 1  ;;  %v2965_v55 = vld [vmem:[%s9177_s7] sm:$0xff] }
 0x3e9   :  { %v3095_v29 = vadd.f32 %v3094_v16, %v3093_v19  ;;  %v3088_v8 = vadd.f32 %v3087_v58, %v3086_v53  ;;  %v3167_v49 = vcombine.low %v3145_v37, %v3152_v26 }
 0x3ea   :  { %v3107_v20 = vmul.f32 0.5, %v3081_v15  ;;  %v3102_v28 = vadd.f32 %v3101_v17, %v3100_v36 }
 0x3eb   :  { %v3109_v1 = vmul.f32 0.5, %v3095_v29  ;;  %v3108_v38 = vmul.f32 0.5, %v3088_v8  ;;  %v3175_v19 = vrot.slane %v3167_v49, %v5854_v39 }
 0x3ec   :  { %v3115_v9 = vadd.f32 1e-05, %v3107_v20  ;;  %v3110_v63 = vmul.f32 0.5, %v3102_v28 }
 0x3ed   :  { %v3117_v5 = vadd.f32 1e-05, %v3109_v1  ;;  %v3116_v62 = vadd.f32 1e-05, %v3108_v38 }
 0x3ee   :  { %5199 = vrsqrt.f32 %v3115_v9  ;;  %v3118_v2 = vadd.f32 1e-05, %v3110_v63 }
 0x3ef   :  { %5201 = vrsqrt.f32 %v3117_v5 }
 0x3f0   :  { %5203 = vrsqrt.f32 %v3116_v62 }
 0x3f1   :  { %5205 = vrsqrt.f32 %v3118_v2 }
 0x3f8   :  { %v5200_v57 = vpop.eup %5199 }
 0x3f9   :  { %v5202_v6 = vpop.eup %5201 }
 0x3fa   :  { %v5204_v14 = vpop.eup %5203 }
 0x3fb   :  { %v5206_v56 = vpop.eup %5205  ;;  %v3137_v11 = vcombine.low %v5200_v57, %v5204_v14 }
 0x3fc   :  { %v3138_v54 = vcombine.low %v5202_v6, %v5206_v56 }
 0x3fd   :  { %v3159_v42 = vrot.slane %v3137_v11, %v5854_v39 }
 0x3fe   :  { %v3166_v50 = vrot.slane %v3138_v54, %v5854_v39 }
 0x400   :  { %v3168_v52 = vcombine.low %v3159_v42, %v3166_v50 }
 0x402   :  { %v3182_v53 = vrot.slane %v3168_v52, %v5854_v39 }
 0x404   :  { %v3183_v36 = vcombine.low %v3175_v19, %v3182_v53 }
 0x406   :  { %v3185_v16 = vmul.f32 %v3183_v36, %v2965_v55 }
 0x408   :  { %v3190_v58 = vrot.slane %v3185_v16, %v5747_v21  ;;  %v3194_v15 = vrot.slane %v3185_v16, %v5753_v23  ;;  %v3198_v17 = vrot.slane %v3185_v16, %v5757_v25  ;;  %v3202_v29 = vrot.slane %v3185_v16, %v5761_v27 }
 0x409   :  { %v8899_v8 = vrot.slane %v3185_v16, %v5767_v32  ;;  %v3210_v20 = vrot.slane %v3185_v16, %v5773_v35  ;;  %v3214_v28 = vrot.slane %v3185_v16, %v5783_v44  ;;  %v3218_v1 = vrot.slane %v3185_v16, %v5789_v48  ;;  %v3441_v16 = vld [vmem:[%s9179_s9 + $0x290] sm:$0xff] }
 0x40a   :  { %v3235_v38 = vmul.f32 %v3190_v58, %v8821_v0  ;;  %v3236_v9 = vmul.f32 %v3194_v15, %v8825_v46  ;;  %v3237_v63 = vmul.f32 %v3198_v17, %v8823_v41  ;;  %v3238_v5 = vmul.f32 %v3202_v29, %v8827_v60 }
 0x40b   :  { %v3234_v62 = vmul.f32 %v8857_v47, %v3218_v1  ;;  %v3239_v2 = vmul.f32 %v8899_v8, %v8865_v45  ;;  %v3240_v13 = vmul.f32 %v3210_v20, %v8869_v34  ;;  %v3241_v40 = vmul.f32 %v3214_v28, %v8867_v10 }
 0x40c   :  { %v3242_v18 = vmul.f32 %v3218_v1, %v8873_v51  ;;  %v3251_v24 = vcombine.low %v3235_v38, %v3236_v9  ;;  %v3252_v30 = vcombine.low %v3237_v63, %v3238_v5  ;;  %v2966_v51 = vld [vmem:[%s9178_s8] sm:$0xff]  ;;  %v3228_v37 = vmul.f32 %v8777_v59, %v3194_v15  ;;  %v3457_v1 = vld [vmem:[%s9179_s9 + $0x310] sm:$0xff]  ;;  %v3458_v38 = vld [vmem:[%s9179_s9 + $0x318] sm:$0xff] }
 0x40d   :  { %v3253_v0 = vcombine.low %v3239_v2, %v3240_v13  ;;  %v3230_v26 = vmul.f32 %v8789_v4, %v3202_v29  ;;  %v3227_v56 = vmul.f32 %v8765_v33, %v3190_v58  ;;  %v3229_v11 = vmul.f32 %v8774_v61, %v3198_v17  ;;  %v3423_v33 = vld [vmem:[%s9179_s9 + $0x200] sm:$0xff]  ;;  %v3424_v61 = vld [vmem:[%s9179_s9 + $0x208] sm:$0xff]  ;;  %v3425_v29 = vld [vmem:[%s9179_s9 + $0x210] sm:$0xff] }
 0x40e   :  { %v3254_v31 = vcombine.low %v3241_v40, %v3242_v18  ;;  %v3261_v46 = vrot.slane %v3251_v24, %v5854_v39  ;;  %v3268_v41 = vrot.slane %v3252_v30, %v5854_v39  ;;  %v3232_v54 = vmul.f32 %v8853_v22, %v3210_v20  ;;  %v3443_v63 = vld [vmem:[%s9179_s9 + $0x2a0] sm:$0xff]  ;;  %v3444_v5 = vld [vmem:[%s9179_s9 + $0x2a8] sm:$0xff] }
 0x40f   :  { %v3275_v60 = vrot.slane %v3253_v0, %v5854_v39  ;;  %v3233_v4 = vmul.f32 %v8851_v12, %v3214_v28  ;;  %v5066_v55 = vpack.c.bf16 %v3424_v61, %v3423_v33  ;;  %v3426_v28 = vld [vmem:[%s9179_s9 + $0x218] sm:$0xff]  ;;  %v5100_v40 = vpack.c.bf16 %v3458_v38, %v3457_v1  ;;  %v3427_v18 = vld [vmem:[%s9179_s9 + $0x220] sm:$0xff]  ;;  %v3428_v30 = vld [vmem:[%s9179_s9 + $0x228] sm:$0xff] }
 0x410   :  { %v3282_v47 = vrot.slane %v3254_v31, %v5854_v39  ;;  %v3283_v57 = vcombine.low %v3261_v46, %v3268_v41  ;;  %v5070_v13 = vpack.c.bf16 %v3426_v28, %v3425_v29  ;;  %v5072_v24 = vpack.c.bf16 %v3444_v5, %v3443_v63  ;;  %v3459_v0 = vld [vmem:[%s9179_s9 + $0x320] sm:$0xff]  ;;  %v3460_v31 = vld [vmem:[%s9179_s9 + $0x328] sm:$0xff]  ;;  %v3445_v46 = vld [vmem:[%s9179_s9 + $0x2b0] sm:$0xff] }
 0x411   :  { %v3446_v41 = vld [vmem:[%s9179_s9 + $0x2b8] sm:$0xff]  ;;  %v3437_v29 = vld [vmem:[%s9179_s9 + $0x270] sm:$0xff]  ;;  %v3231_v63 = vmul.f32 %v8849_v43, %v8899_v8 }
 0x412   :  { %v3284_v45 = vcombine.low %v3275_v60, %v3282_v47  ;;  %v3291_v34 = vrot.slane %v3283_v57, %v5854_v39  ;;  %v5074_v60 = vpack.c.bf16 %v3428_v30, %v3427_v18  ;;  %v5103_v47 = vpack.c.bf16 %v3460_v31, %v3459_v0  ;;  %v3429_v57 = vld [vmem:[%s9179_s9 + $0x230] sm:$0xff]  ;;  %v3450_v33 = vld [vmem:[%s9179_s9 + $0x2d8] sm:$0xff]  ;;  %v3476_v30 = vld [vmem:[%s9179_s9 + $0x3a8] sm:$0xff] }
 0x413   :  { %v3438_v28 = vld [vmem:[%s9179_s9 + $0x278] sm:$0xff]  ;;  %v3469_v1 = vld [vmem:[%s9179_s9 + $0x370] sm:$0xff] }
 0x414   :  { %v3298_v10 = vrot.slane %v3284_v45, %v5854_v39  ;;  %v5076_v45 = vpack.c.bf16 %v3446_v41, %v3445_v46  ;;  %v3470_v38 = vld [vmem:[%s9179_s9 + $0x378] sm:$0xff]  ;;  %v5094_v5 = vpack.c.bf16 %v3438_v28, %v3437_v29  ;;  %v3473_v8 = vld [vmem:[%s9179_s9 + $0x390] sm:$0xff] }
 0x415   :  { %v3477_v31 = vld [vmem:[%s9179_s9 + $0x3b0] sm:$0xff]  ;;  %v3478_v46 = vld [vmem:[%s9179_s9 + $0x3b8] sm:$0xff] }
 0x416   :  { %v3299_v6 = vcombine.low %v3291_v34, %v3298_v10  ;;  %v3430_v34 = vld [vmem:[%s9179_s9 + $0x238] sm:$0xff]  ;;  %v3461_v10 = vld [vmem:[%s9179_s9 + $0x330] sm:$0xff]  ;;  %v5130_v41 = vpack.c.bf16 %v3478_v46, %v3477_v31 }
 0x418   :  { %v8923_v14 = vsub.f32 %v2966_v51, %v3299_v6  ;;  %v3462_v51 = vld [vmem:[%s9179_s9 + $0x338] sm:$0xff]  ;;  %v3447_v6 = vld [vmem:[%s9179_s9 + $0x2c0] sm:$0xff] }
 0x41a   :  { %v3334_v39 = vrot.slane %v8923_v14, %v5789_v48  ;;  %v3310_v42 = vrot.slane %v8923_v14, %v5753_v23  ;;  %v3318_v49 = vrot.slane %v8923_v14, %v5761_v27  ;;  %v3306_v59 = vrot.slane %v8923_v14, %v5747_v21  ;;  %v3455_v23 = vld [vmem:[%s9179_s9 + $0x300] sm:$0xff]  ;;  %v3456_v27 = vld [vmem:[%s9179_s9 + $0x308] sm:$0xff] }
 0x41b   :  { %v3314_v48 = vrot.slane %v8923_v14, %v5757_v25  ;;  %v3326_v21 = vrot.slane %v8923_v14, %v5773_v35  ;;  %v3330_v22 = vrot.slane %v8923_v14, %v5783_v44  ;;  %v3442_v35 = vld [vmem:[%s9179_s9 + $0x298] sm:$0xff]  ;;  %v5097_v17 = vpack.c.bf16 %v3456_v27, %v3455_v23  ;;  %v3433_v23 = vld [vmem:[%s9179_s9 + $0x250] sm:$0xff] }
 0x41c   :  { %v3350_v50 = vadd.f32 %v3334_v39, %v3234_v62  ;;  %v3344_v52 = vadd.f32 %v3310_v42, %v3228_v37  ;;  %v3346_v19 = vadd.f32 %v3318_v49, %v3230_v26  ;;  %v3343_v25 = vadd.f32 %v3306_v59, %v3227_v56  ;;  %v3448_v37 = vld [vmem:[%s9179_s9 + $0x2c8] sm:$0xff]  ;;  %v3463_v42 = vld [vmem:[%s9179_s9 + $0x340] sm:$0xff]  ;;  %v3449_v59 = vld [vmem:[%s9179_s9 + $0x2d0] sm:$0xff] }
 0x41d   :  { %v3345_v53 = vadd.f32 %v3314_v48, %v3229_v11  ;;  %v3348_v36 = vadd.f32 %v3326_v21, %v3232_v54  ;;  %v8963_v58 = vadd.f32 %v3330_v22, %v3233_v4  ;;  %v5068_v9 = vpack.c.bf16 %v3442_v35, %v3441_v16  ;;  %v3431_v11 = vld [vmem:[%s9179_s9 + $0x240] sm:$0xff]  ;;  %v3432_v39 = vld [vmem:[%s9179_s9 + $0x248] sm:$0xff]  ;;  %v3434_v21 = vld [vmem:[%s9179_s9 + $0x258] sm:$0xff] }
 0x41e   :  { %v3352_v12 = vmax.f32 %v3344_v52, 0.0  ;;  %v3354_v15 = vmax.f32 %v3346_v19, 0.0  ;;  %v3351_v44 = vmax.f32 %v3343_v25, 0.0  ;;  %v3358_v2 = vmax.f32 %v3350_v50, 0.0  ;;  %v3464_v49 = vld [vmem:[%s9179_s9 + $0x348] sm:$0xff]  ;;  %v3465_v4 = vld [vmem:[%s9179_s9 + $0x350] sm:$0xff] }
 0x41f   :  { %v3353_v20 = vmax.f32 %v3345_v53, 0.0  ;;  %v3356_v62 = vmax.f32 %v3348_v36, 0.0  ;;  %v5078_v26 = vpack.c.bf16 %v3430_v34, %v3429_v57  ;;  %v5106_v56 = vpack.c.bf16 %v3462_v51, %v3461_v10  ;;  %v3466_v22 = vld [vmem:[%s9179_s9 + $0x358] sm:$0xff]  ;;  %v3451_v50 = vld [vmem:[%s9179_s9 + $0x2e0] sm:$0xff]  ;;  %v3452_v52 = vld [vmem:[%s9179_s9 + $0x2e8] sm:$0xff] }
 0x420   :  { %3558 = vmatprep.mubr.f32.mxu0 %v3352_v12  ;;  %3628 = vmatprep.mubr.f32.mxu1 %v3354_v15  ;;  %v5080_v54 = vpack.c.bf16 %v3448_v37, %v3447_v6  ;;  %v5082_v61 = vpack.c.bf16 %v3432_v39, %v3431_v11  ;;  %v5109_v48 = vpack.c.bf16 %v3464_v49, %v3463_v42  ;;  %v3435_v53 = vld [vmem:[%s9179_s9 + $0x260] sm:$0xff]  ;;  %v3436_v36 = vld [vmem:[%s9179_s9 + $0x268] sm:$0xff]  ;;  %v3453_v12 = vld [vmem:[%s9179_s9 + $0x2f0] sm:$0xff]  ;;  %v3357_v6 = vmax.f32 %v8963_v58, 0.0 }
 0x421   :  { %3559 = vmatmul.mubr.f32.vlgmr.msra.gmra.mrb[12].mxu0 %v3351_v44  ;;  %3629 = vmatmul.mubr.f32.vlgmr.msra.gmra.mrb[4].mxu1 %v3353_v20  ;;  %v5084_v27 = vpack.c.bf16 %v3450_v33, %v3449_v59  ;;  %v5086_v19 = vpack.c.bf16 %v3434_v21, %v3433_v23  ;;  %v5112_v25 = vpack.c.bf16 %v3466_v22, %v3465_v4  ;;  %v3467_v16 = vld [vmem:[%s9179_s9 + $0x360] sm:$0xff]  ;;  %v3468_v35 = vld [vmem:[%s9179_s9 + $0x368] sm:$0xff]  ;;  %v3454_v15 = vld [vmem:[%s9179_s9 + $0x2f8] sm:$0xff] }
 0x422   :  { %5067 = vmatpush3.bf16.msra.mxu0 %v5066_v55  ;;  %5098 = vmatpush1.bf16.msra.mxu1 %v5097_v17  ;;  %v5088_v55 = vpack.c.bf16 %v3452_v52, %v3451_v50  ;;  %v5090_v44 = vpack.c.bf16 %v3436_v36, %v3435_v53  ;;  %v5115_v17 = vpack.c.bf16 %v3468_v35, %v3467_v16  ;;  %v3482_v34 = vld [vmem:[%s9179_s9 + $0x3d8] sm:$0xff]  ;;  %v3483_v51 = vld [vmem:[%s9179_s9 + $0x3e0] sm:$0xff] }
 0x423   :  { %3698 = vmatprep.mubr.f32.mxu0 %v3356_v62  ;;  %3892 = vmatprep.mubr.msk.f32.mxu1 %vm1825_vm3, %v3358_v2  ;;  %v5092_v20 = vpack.c.bf16 %v3454_v15, %v3453_v12  ;;  %v5118_v62 = vpack.c.bf16 %v3470_v38, %v3469_v1  ;;  %v3777_v37 = vld [vmem:[%s9181_s11] sm:$0xf] }
 0x424   :  { %5069 = vmatprep.subr.bf16.mxu0 %v5068_v9  ;;  %5099 = vmatprep.subr.bf16.mxu1 %v5235_v7  ;;  %v3322_v9 = vrot.slane %v8923_v14, %v5767_v32  ;;  %v3474_v14 = vld [vmem:[%s9179_s9 + $0x398] sm:$0xff] }
 0x425   :  { %v5124_v18 = vpack.c.bf16 %v3474_v14, %v3473_v8 }
 0x426   :  { %5071 = vmatpush3.bf16.msra.mxu0 %v5070_v13  ;;  %5101 = vmatpush1.bf16.msra.mxu1 %v5100_v40  ;;  %v3347_v2 = vadd.f32 %v3322_v9, %v3231_v63  ;;  %v3471_v13 = vld [vmem:[%s9179_s9 + $0x380] sm:$0xff]  ;;  %v3472_v40 = vld [vmem:[%s9179_s9 + $0x388] sm:$0xff] }
 0x427   :  { %5073 = vmatprep.subr.bf16.mxu0 %v5072_v24  ;;  %5102 = vmatprep.subr.bf16.mxu1 %v5235_v7  ;;  %v5121_v32 = vpack.c.bf16 %v3472_v40, %v3471_v13  ;;  %v3475_v24 = vld [vmem:[%s9179_s9 + $0x3a0] sm:$0xff] }
 0x428   :  { %v3355_v43 = vmax.f32 %v3347_v2, 0.0  ;;  %v5127_v0 = vpack.c.bf16 %v3476_v30, %v3475_v24 }
 0x42a   :  { %5075 = vmatpush3.bf16.msra.mxu0 %v5074_v60  ;;  %5104 = vmatpush1.bf16.msra.mxu1 %v5103_v47  ;;  %v3479_v60 = vld [vmem:[%s9179_s9 + $0x3c0] sm:$0xff]  ;;  %v3480_v47 = vld [vmem:[%s9179_s9 + $0x3c8] sm:$0xff] }
 0x42b   :  { %5077 = vmatprep.subr.bf16.mxu0 %v5076_v45  ;;  %5105 = vmatprep.subr.bf16.mxu1 %v5235_v7  ;;  %v5133_v57 = vpack.c.bf16 %v3480_v47, %v3479_v60  ;;  %v3481_v45 = vld [vmem:[%s9179_s9 + $0x3d0] sm:$0xff]  ;;  %s5237_s9 = smov [#allocation2]  }
 0x42c   :  { %v5136_v10 = vpack.c.bf16 %v3482_v34, %v3481_v45 }
 0x42e   :  { %5079 = vmatpush3.bf16.msra.mxu0 %v5078_v26  ;;  %5107 = vmatpush1.bf16.msra.mxu1 %v5106_v56  ;;  %v3891_v56 = vld [vmem:[%s9180_s10] ss:$0 sm:$0xff]  ;;  %s3871_s10 = sshll.u32 %s5237_s9, 4  ;;  %s3872_s10 = int_to_ptr.vmem [resolvable:$true] %s3871_s10 }
 0x42f   :  { %5081 = vmatprep.subr.bf16.mxu0 %v5080_v54  ;;  %5108 = vmatprep.subr.bf16.mxu1 %v5235_v7  ;;  %s5209_s11 = scalar_lea.vmem %s3872_s10, 32  ;;  %p5214_p1 = scmp.lt.s32.totalorder %s3872_s10, %s3872_s10 }
 0x430   :  { %p5210_p0 = scmp.ne.s32.totalorder %s3872_s10, %s5209_s11  ;;  %p5215_p2 = scmp.lt.s32.totalorder %s5209_s11, %s5209_s11 }
 0x432   :  { %5083 = vmatpush3.bf16.msra.mxu0 %v5082_v61  ;;  %5110 = vmatpush1.bf16.msra.mxu1 %v5109_v48  ;;  %p5216_p3 = por %p5215_p2, %p5214_p1 }
 0x433   :  { %5085 = vmatprep.subr.bf16.mxu0 %v5084_v27  ;;  %5111 = vmatprep.subr.bf16.mxu1 %v5235_v7 }
 0x434   :  { %p5217_p4 = pnand %p5216_p3, %p5210_p0 }
 0x436   :  { %5087 = vmatpush3.bf16.msra.mxu0 %v5086_v19  ;;  %5113 = vmatpush1.bf16.msra.mxu1 %v5112_v25 }
 0x437   :  { %5089 = vmatprep.subr.bf16.mxu0 %v5088_v55  ;;  %5114 = vmatprep.subr.bf16.mxu1 %v5235_v7 }
 0x43a   :  { %5091 = vmatpush3.bf16.msra.mxu0 %v5090_v44  ;;  %5116 = vmatpush1.bf16.msra.mxu1 %v5115_v17 }
 0x43b   :  { %5093 = vmatprep.subr.bf16.mxu0 %v5092_v20  ;;  %5117 = vmatprep.subr.bf16.mxu1 %v5235_v7 }
 0x43e   :  { %5095 = vmatpush3.bf16.msra.mxu0 %v5094_v5  ;;  %5119 = vmatpush1.bf16.msra.mxu1 %v5118_v62 }
 0x43f   :  { %5120 = vmatprep.subr.bf16.mxu1 %v5235_v7  ;;  %4003 = vmatprep.subr.mxu0 %v5233_v3 }
 0x441   :  { %3699 = vmatmul.mubr.f32.vlgmr.msra.gmra.mrb[14].mxu0 %v3355_v43 }
 0x442   :  { %5122 = vmatpush1.bf16.msra.mxu1 %v5121_v32  ;;  %4004 = vmatpush3.msk.msra.mxu0 %vm3789_vm4, %v3777_v37 }
 0x443   :  { %5123 = vmatprep.subr.bf16.mxu1 %v5235_v7  ;;  %4005 = vmatprep.mubr.msk.f32.mxu0 %vm5236_vm5, %v5233_v3 }
 0x446   :  { %5125 = vmatpush1.bf16.msra.mxu1 %v5124_v18 }
 0x447   :  { %5126 = vmatprep.subr.bf16.mxu1 %v5235_v7 }
 0x44a   :  { %5128 = vmatpush1.bf16.msra.mxu1 %v5127_v0 }
 0x44b   :  { %5129 = vmatprep.subr.bf16.mxu1 %v5235_v7 }
 0x44e   :  { %5131 = vmatpush1.bf16.msra.mxu1 %v5130_v41 }
 0x44f   :  { %5132 = vmatprep.subr.bf16.mxu1 %v5235_v7 }
 0x452   :  { %5134 = vmatpush1.bf16.msra.mxu1 %v5133_v57 }
 0x453   :  { %5135 = vmatprep.subr.bf16.mxu1 %v5235_v7 }
 0x456   :  { %5137 = vmatpush1.bf16.msra.mxu1 %v5136_v10 }
 0x457   :  { %3760 = vmatprep.subr.mxu1 %v5233_v3 }
 0x45a   :  { %3761 = vmatpush1.msra.mxu1 %v3483_v51 }
 0x45b   :  { %3769 = vmatmul.mubr.f32.vlgmr.msra.gmra.mrb[6].mxu1 %v3357_v6 }
 0x4f4   :  { %v3928_v7 = vpop.f32.mrb[12].mxu0  ;;  %v3963_v26 = vpop.f32.mrb[4].mxu1 }
 0x4f5   :  { %v3929_v11 = vpop.f32.mrb[13].mxu0  ;;  %v3964_v54 = vpop.f32.mrb[5].mxu1 }
 0x4f6   :  { %v3930_v58 = vadd.f32 %v3929_v11, %v3928_v7  ;;  %v3965_v39 = vadd.f32 %v3964_v54, %v3963_v26 }
 0x4f8   :  { %v3561_v42 = vadd.f32 %v3930_v58, %v3891_v56 }
 0x4fa   :  { %v3631_v49 = vadd.f32 %v3965_v39, %v3561_v42 }
 0x514   :  { %v3998_v59 = vpop.f32.mrb[14].mxu0 }
 0x515   :  { %v3999_v33 = vpop.f32.mrb[15].mxu0 }
 0x516   :  { %v4000_v61 = vadd.f32 %v3999_v33, %v3998_v59 }
 0x518   :  { %v3701_v48 = vadd.f32 %v4000_v61, %v3631_v49 }
 0x52e   :  { %v3770_v23 = vpop.f32.mrb[6].mxu1 }
 0x52f   :  { %v3771_v27 = vadd.f32 %v3770_v23, %v3701_v48  ;;  %v3772_v21 = vpop.f32.mrb[7].mxu1 }
 0x531   :  { %5207 = vtanh.f32 %v3771_v27 }
 0x53b   :  { %v5208_v3 = vpop.eup %5207 }
 0x53c   :  { %4006 = vmatmul.mubr.msk.f32.vlgmr.msra.gmra.mrb[16].mxu0 %vm3785_vm6, %v5208_v3  ;;  %3776 = vst.msk [vmem:[#allocation2] sm:$0x3] %vm3775_vm7, %v5208_v3 }
 0x53d   :  { %5220 = shalt.err (!%p5217_p4)
}
 0x53e   :  { %s5221_s0 = scalar_lea.hbm %s9183_s13, 32 }
 0x53f   :  { %p5222_p5 = scmp.ne.s32.totalorder %s9183_s13, %s5221_s0  ;;  %p5225_p6 = scmp.lt.u32.totalorder %s5221_s0, %s9183_s13 }
 0x541   :  { %p5227_p7 = pnand %p5225_p6, %p5222_p5 }
 0x543   :  { %5230 = shalt.err (!%p5227_p7)
}
 0x544   :  { %3874 = dma.vmem_to_hbm [thread:$0]  %s3872_s10, 32, %s9183_s13, [#allocation3]   ;;  %v3893_v4 = vld [vmem:[%s9182_s12] ss:$0 sm:$0xff]  ;;  %vm3863_vm8 = vcmask 58368  }
 0x60f   :  { %v3859_v22 = vpop.f32.mrb[16].mxu0 }
 0x610   :  { %v3860_v50 = vadd.f32 %v3893_v4, %v3859_v22  ;;  %v4007_v52 = vpop.f32.mrb[17].mxu0 }
 0x612   :  { %3864 = vst.msk [vmem:[%s9184_s14] sm:$0x3] %vm3863_vm8, %v3860_v50 }
 0x613   :  { %5231 = dma.done.wait [#allocation3], 32  }
 0x614   :  { %5232 = vsyncadd [#allocation3], 4294967264 }
 0x615   :  { %3882 = vsyncpa [#allocation3], 1 }

</bundles_post_ra>
